<compile_context>
chip_gen: v6e
topology: v6e:2x2x1
jax: 0.10.0
libtpu: 0.0.40
codegen_flags: <defaults>
</compile_context>

<pallas_src>
import functools

import jax
import jax.numpy as jnp
from jax.experimental import pallas as pl
from jax.experimental.pallas import tpu as pltpu


def _attention_kernel(x_ref, wq_ref, wkv_ref, wproj_ref, bproj_ref, o_ref,
                      kv_ref, ctx_ref, *, num_heads, heads_per_group, q_tile):
    # x_ref:     (N, C)      bf16  full token rows of the current batch element
    # wq_ref:    (C, C)      bf16  Q projection weight (softmax scale folded in)
    # wkv_ref:   (C, 2C)     bf16  [K | V] projection weight
    # wproj_ref: (C, C)      bf16  output projection weight
    # bproj_ref: (1, C)      f32   output projection bias
    # o_ref:     (TQ, C)     bf16  output rows for this query tile
    # kv_ref:    (N, 2C)     bf16  VMEM scratch: [K | V], persists across q-tiles
    # ctx_ref:   (TQ, C)     bf16  VMEM scratch: head-concatenated context
    t = pl.program_id(1)
    N, C = x_ref.shape
    hd = C // num_heads
    gw = heads_per_group * hd            # lane width of one head group (=128 normally)

    # --- K/V projection: once per batch element (first q-tile only). ---------
    @pl.when(t == 0)
    def _():
        kv = jnp.dot(x_ref[...], wkv_ref[...],
                     preferred_element_type=jnp.float32)          # (N, 2C) f32
        kv_ref[...] = kv.astype(jnp.bfloat16)

    # --- Q projection for this query tile only (kept in values). -------------
    row0 = pl.multiple_of(t * q_tile, q_tile)
    x_tile = x_ref[pl.ds(row0, q_tile), :]                        # (TQ, C) bf16
    q = jnp.dot(x_tile, wq_ref[...],
                preferred_element_type=jnp.float32)               # (TQ, C) f32
    q = q.astype(jnp.bfloat16)

    # --- Per-head attention, grouped so ctx stores are 128-lane aligned. -----
    num_groups = num_heads // heads_per_group
    for grp in range(num_groups):                                 # C // 128 groups
        base = grp * gw
        k_grp = kv_ref[:, base:base + gw]                         # (N, gw)  bf16
        v_grp = kv_ref[:, C + base:C + base + gw]                 # (N, gw)  bf16
        q_grp = q[:, base:base + gw]                              # (TQ, gw) bf16

        parts = []
        for hh in range(heads_per_group):
            lo = hh * hd
            qh = q_grp[:, lo:lo + hd]                             # (TQ, hd)
            kh = k_grp[:, lo:lo + hd]                             # (N, hd)
            vh = v_grp[:, lo:lo + hd]                             # (N, hd)

            # Scores: contract the head dim directly (no materialized k.T).
            s = jax.lax.dot_general(qh, kh, (((1,), (1,)), ((), ())),
                                    preferred_element_type=jnp.float32)  # (TQ, N)
            # Numerically-stable softmax, normalization deferred to the context.
            m = jnp.max(s, axis=-1, keepdims=True)
            p = jnp.exp(s - m)                                    # unnormalized, f32
            l = jnp.sum(p, axis=-1, keepdims=True)                # f32 row-sum BEFORE bf16 cast
            # TODO(synk): attn_drop / proj_drop are identity (eval mode, p=0.0).
            ctx_h = jnp.dot(p.astype(jnp.bfloat16), vh,
                            preferred_element_type=jnp.float32)   # (TQ, hd) f32
            ctx_h = ctx_h * pl.reciprocal(l, approx=True)         # deferred 1/l (EUP)
            parts.append(ctx_h.astype(jnp.bfloat16))

        ctx_grp = parts[0] if len(parts) == 1 else jnp.concatenate(parts, axis=-1)
        ctx_ref[:, base:base + gw] = ctx_grp                      # one unmasked 128-lane store

    # --- Single full-C output projection + bias for this query tile. ---------
    out = jnp.dot(ctx_ref[...], wproj_ref[...],
                  preferred_element_type=jnp.float32) + bproj_ref[...]   # (TQ, C) f32
    o_ref[...] = out.astype(o_ref.dtype)


def attention_forward(x, w_qkv, w_proj, b_proj, *, num_heads, qk_scale=None,
                      out_dtype=jnp.bfloat16):
    """x: (B, N, C) f32; w_qkv: (C, 3C); w_proj: (C, C); b_proj: (C,).

    Weight layout is (in_features, out_features), i.e. the kernel computes
    `x @ W` (equal to PyTorch's `x @ W.T`).
    """
    B, N, C = x.shape
    assert C % num_heads == 0
    head_dim = C // num_heads
    scale = qk_scale if qk_scale is not None else head_dim ** (-0.5)

    # Query-tile size: 256 fills the 256-row MXU on v6e/v7x; fall back to 128
    # (v5e MXU rows) or the full N for small/odd token counts.
    if N % 256 == 0:
        q_tile = 256
    elif N % 128 == 0:
        q_tile = 128
    else:
        q_tile = N
    num_q_tiles = N // q_tile

    # Heads per 128-lane group (4 at head_dim=32, 2 at head_dim=64).
    if head_dim <= 128 and 128 % head_dim == 0 and num_heads % (128 // head_dim) == 0:
        heads_per_group = 128 // head_dim
    else:
        heads_per_group = 1  # TODO(synk): ctx stores are lane-masked in this (rare) case.

    # Split the QKV weight, fold the softmax scale into the Q columns (once,
    # in f32), and cast all matmul operands to bf16 here (not per grid step).
    w_q = (w_qkv[:, :C] * scale).astype(jnp.bfloat16)     # (C, C)
    w_kv = w_qkv[:, C:].astype(jnp.bfloat16)              # (C, 2C) = [K | V]
    w_p = w_proj.astype(jnp.bfloat16)                     # (C, C)
    x_bf = x.astype(jnp.bfloat16)
    b2d = b_proj.reshape(1, C).astype(jnp.float32)

    # Explicit VMEM budget: weights x1 (single-buffered), x/out tiles x2,
    # scratches x1, plus headroom for the f32 score / Q temporaries.
    out_isize = jnp.dtype(out_dtype).itemsize
    bytes_needed = (
        2 * N * C * 2                      # x block (bf16, double-buffered)
        + C * C * 2                        # w_q
        + C * 2 * C * 2                    # w_kv
        + C * C * 2                        # w_proj
        + 8 * 128 * 4                      # bias (padded tile)
        + 2 * q_tile * C * out_isize       # out block (double-buffered)
        + N * 2 * C * 2                    # kv scratch (bf16)
        + q_tile * C * 2                   # ctx scratch (bf16)
        + 2 * q_tile * N * 4               # f32 score/prob temporaries
        + 2 * q_tile * C * 4               # f32 Q / projection temporaries
    )
    try:
        vmem_cap = pltpu.get_tpu_info().vmem_capacity_bytes   # 64 MiB v7x, 128 MiB v5e/v6e
    except Exception:
        vmem_cap = 64 * 1024 * 1024
    vmem_limit = max(int(bytes_needed) + (8 << 20), 32 << 20)
    vmem_limit = min(vmem_limit, vmem_cap - (8 << 20))

    kernel = functools.partial(_attention_kernel, num_heads=num_heads,
                               heads_per_group=heads_per_group, q_tile=q_tile)

    return pl.pallas_call(
        kernel,
        out_shape=jax.ShapeDtypeStruct((B, N, C), out_dtype),
        grid_spec=pltpu.PrefetchScalarGridSpec(
            num_scalar_prefetch=0,
            grid=(B, num_q_tiles),
            in_specs=[
                # Full token rows of one batch element; the block index only
                # depends on b, so it is re-DMA'd only when b changes.
                pl.BlockSpec((None, N, C), lambda b, t: (b, 0, 0)),
                # Constant-index weights/bias: single-buffer to halve their
                # resident VMEM footprint.
                pl.BlockSpec((C, C), lambda b, t: (0, 0),
                             pipeline_mode=pl.Buffered(1)),
                pl.BlockSpec((C, 2 * C), lambda b, t: (0, 0),
                             pipeline_mode=pl.Buffered(1)),
                pl.BlockSpec((C, C), lambda b, t: (0, 0),
                             pipeline_mode=pl.Buffered(1)),
                pl.BlockSpec((1, C), lambda b, t: (0, 0),
                             pipeline_mode=pl.Buffered(1)),
            ],
            out_specs=pl.BlockSpec((None, q_tile, C), lambda b, t: (b, t, 0)),
            scratch_shapes=[
                pltpu.VMEM((N, 2 * C), jnp.bfloat16),    # [K | V], persists across q-tiles
                pltpu.VMEM((q_tile, C), jnp.bfloat16),   # head-concatenated context
            ],
        ),
        compiler_params=pltpu.CompilerParams(
            # Batch axis parallel (megacore); the q-tile axis carries the K/V
            # scratch dependency (computed at t==0) so it must stay arbitrary.
            dimension_semantics=("parallel", "arbitrary"),
            vmem_limit_bytes=int(vmem_limit),
        ),
    )(x_bf, w_q, w_kv, w_p, b2d)


def reference_forward(x, w_qkv, w_proj, b_proj, *, num_heads, qk_scale=None):
    """Pure-JAX f32 reference mirroring the PyTorch module."""
    B, N, C = x.shape
    hd = C // num_heads
    scale = qk_scale if qk_scale is not None else hd ** (-0.5)
    qkv = x @ w_qkv                                       # (B, N, 3C)
    qkv = qkv.reshape(B, N, 3, num_heads, hd).transpose(2, 0, 3, 1, 4)
    q, k, v = qkv[0], qkv[1], qkv[2]                      # (B, H, N, hd)
    attn = jnp.einsum("bhqd,bhkd->bhqk", q, k) * scale
    attn = jax.nn.softmax(attn, axis=-1)
    out = jnp.einsum("bhqk,bhkd->bhqd", attn, v)          # (B, H, N, hd)
    out = out.transpose(0, 2, 1, 3).reshape(B, N, C)
    return out @ w_proj + b_proj


if __name__ == "__main__":
    # Small but layout-realistic shapes: (8,128)-aligned N and C, dim divisible
    # by num_heads (module default num_heads=8 -> head_dim=32).
    B, N, C = 2, 128, 256
    num_heads = 8

    key = jax.random.PRNGKey(0)
    kx, kq, kp, kb = jax.random.split(key, 4)

    x = jax.random.normal(kx, (B, N, C), dtype=jnp.float32)
    # Deterministic synthetic parameters (shapes follow nn.Linear in __init__).
    w_qkv = jax.random.normal(kq, (C, 3 * C), dtype=jnp.float32) * 0.05  # qkv_bias=False
    w_proj = jax.random.normal(kp, (C, C), dtype=jnp.float32) * 0.05
    b_proj = jax.random.normal(kb, (C,), dtype=jnp.float32) * 0.05

    out = attention_forward(x, w_qkv, w_proj, b_proj, num_heads=num_heads)
    out = jax.block_until_ready(out)

    ref = reference_forward(x, w_qkv, w_proj, b_proj, num_heads=num_heads)
    assert out.shape == (B, N, C)
    max_err = float(jnp.max(jnp.abs(out.astype(jnp.float32) - ref)))
    # bf16 matmul operands + bf16 output + approx reciprocal vs. pure-f32 ref.
    assert max_err < 5e-2, f"mismatch vs reference: max abs err {max_err}"
    print("KERNEL_OK")
</pallas_src>

<mosaic_0001>
module attributes {stable_mosaic.version = 11 : i64} {
  func.func @_attention_kernel(%arg0: i32, %arg1: i32, %arg2: memref<1x128x256xbf16, #tpu.memory_space<vmem>>, %arg3: memref<256x256xbf16, #tpu.memory_space<vmem>>, %arg4: memref<256x512xbf16, #tpu.memory_space<vmem>>, %arg5: memref<256x256xbf16, #tpu.memory_space<vmem>>, %arg6: memref<1x256xf32, #tpu.memory_space<vmem>>, %arg7: memref<1x128x256xbf16, #tpu.memory_space<vmem>>, %arg8: memref<128x512xbf16, #tpu.memory_space<vmem>>, %arg9: memref<128x256xbf16, #tpu.memory_space<vmem>>) attributes {dimension_semantics = [#tpu.dimension_semantics<parallel>, #tpu.dimension_semantics<arbitrary>], iteration_bounds = array<i64: 2, 1>, scalar_prefetch = 0 : i64, scratch_operands = 2 : i64, tpu.core_type = #tpu.core_type<tc>, window_params = [{transform_indices = @transform_0, window_bounds = array<i64: 1, 128, 256>}, {pipeline_mode = #tpu.pipeline_mode<synchronous>, transform_indices = @transform_1, window_bounds = array<i64: 256, 256>}, {pipeline_mode = #tpu.pipeline_mode<synchronous>, transform_indices = @transform_2, window_bounds = array<i64: 256, 512>}, {pipeline_mode = #tpu.pipeline_mode<synchronous>, transform_indices = @transform_3, window_bounds = array<i64: 256, 256>}, {pipeline_mode = #tpu.pipeline_mode<synchronous>, transform_indices = @transform_4, window_bounds = array<i64: 1, 256>}, {transform_indices = @transform_5, window_bounds = array<i64: 1, 128, 256>}]} {
    %c0_i32 = arith.constant 0 : i32
    %0 = arith.cmpi eq, %arg1, %c0_i32 : i32
    %1 = arith.extui %0 : i1 to i32
    %c0_i32_0 = arith.constant 0 : i32
    %2 = arith.cmpi ne, %1, %c0_i32_0 : i32
    scf.if %2 {
      %c0_55 = arith.constant 0 : index
      %c0_56 = arith.constant 0 : index
      %c0_57 = arith.constant 0 : index
      %167 = vector.load %arg2[%c0_55, %c0_56, %c0_57] : memref<1x128x256xbf16, #tpu.memory_space<vmem>>, vector<1x128x256xbf16>
      %168 = vector.shape_cast %167 : vector<1x128x256xbf16> to vector<128x256xbf16>
      %c0_58 = arith.constant 0 : index
      %c0_59 = arith.constant 0 : index
      %169 = vector.load %arg4[%c0_58, %c0_59] : memref<256x512xbf16, #tpu.memory_space<vmem>>, vector<256x512xbf16>
      %cst_60 = arith.constant dense<0.000000e+00> : vector<128x512xf32>
      %170 = tpu.matmul %168, %169, %cst_60 {dimension_numbers = #tpu.dot_dimension_numbers<[1], [0], [0], [1], [0, 0, 1, 1], [], []>} : vector<128x256xbf16>, vector<256x512xbf16>, vector<128x512xf32> -> vector<128x512xf32>
      %171 = arith.truncf %170 : vector<128x512xf32> to vector<128x512xbf16>
      %c0_61 = arith.constant 0 : index
      %c0_62 = arith.constant 0 : index
      %172 = vector.load %arg8[%c0_61, %c0_62] : memref<128x512xbf16, #tpu.memory_space<vmem>>, vector<128x512xbf16>
      tpu.vector_store %arg8[%c0_61, %c0_62], %171 {strides = array<i32>} : memref<128x512xbf16, #tpu.memory_space<vmem>>, vector<128x512xbf16>,
    } else {
    }
    %c128_i32 = arith.constant 128 : i32
    %3 = arith.muli %arg1, %c128_i32 : i32
    %4 = tpu.assume_multiple %3, 128 : i32
    %c0 = arith.constant 0 : index
    %5 = arith.index_cast %4 : i32 to index
    %c0_1 = arith.constant 0 : index
    %6 = vector.load %arg2[%c0, %5, %c0_1] : memref<1x128x256xbf16, #tpu.memory_space<vmem>>, vector<1x128x256xbf16>
    %7 = vector.shape_cast %6 : vector<1x128x256xbf16> to vector<128x256xbf16>
    %c0_2 = arith.constant 0 : index
    %c0_3 = arith.constant 0 : index
    %8 = vector.load %arg3[%c0_2, %c0_3] : memref<256x256xbf16, #tpu.memory_space<vmem>>, vector<256x256xbf16>
    %cst = arith.constant dense<0.000000e+00> : vector<128x256xf32>
    %9 = tpu.matmul %7, %8, %cst {dimension_numbers = #tpu.dot_dimension_numbers<[1], [0], [0], [1], [0, 0, 1, 1], [], []>} : vector<128x256xbf16>, vector<256x256xbf16>, vector<128x256xf32> -> vector<128x256xf32>
    %10 = arith.truncf %9 : vector<128x256xf32> to vector<128x256xbf16>
    %c0_4 = arith.constant 0 : index
    %c0_5 = arith.constant 0 : index
    %11 = vector.load %arg8[%c0_4, %c0_5] : memref<128x512xbf16, #tpu.memory_space<vmem>>, vector<128x128xbf16>
    %c0_6 = arith.constant 0 : index
    %c256 = arith.constant 256 : index
    %12 = vector.load %arg8[%c0_6, %c256] : memref<128x512xbf16, #tpu.memory_space<vmem>>, vector<128x128xbf16>
    %13 = vector.extract_strided_slice %10 {offsets = [0, 0], sizes = [128, 128], strides = [1, 1]} : vector<128x256xbf16> to vector<128x128xbf16>
    %14 = vector.extract_strided_slice %13 {offsets = [0, 0], sizes = [128, 32], strides = [1, 1]} : vector<128x128xbf16> to vector<128x32xbf16>
    %15 = vector.extract_strided_slice %11 {offsets = [0, 0], sizes = [128, 32], strides = [1, 1]} : vector<128x128xbf16> to vector<128x32xbf16>
    %16 = vector.extract_strided_slice %12 {offsets = [0, 0], sizes = [128, 32], strides = [1, 1]} : vector<128x128xbf16> to vector<128x32xbf16>
    %cst_7 = arith.constant dense<0.000000e+00> : vector<128x128xf32>
    %17 = tpu.matmul %14, %15, %cst_7 {dimension_numbers = #tpu.dot_dimension_numbers<[1], [1], [0], [0], [0, 0, 1, 0], [], []>} : vector<128x32xbf16>, vector<128x32xbf16>, vector<128x128xf32> -> vector<128x128xf32>
    %cst_8 = arith.constant dense<0xFF800000> : vector<128xf32>
    %18 = vector.multi_reduction <maximumf>, %17, %cst_8 [1] : vector<128x128xf32> to vector<128xf32>
    %19 = vector.shape_cast %18 : vector<128xf32> to vector<128x1xf32>
    %20 = vector.broadcast %19 : vector<128x1xf32> to vector<128x128xf32>
    %21 = arith.subf %17, %20 : vector<128x128xf32>
    %22 = math.exp %21 : vector<128x128xf32>
    %cst_9 = arith.constant dense<0.000000e+00> : vector<128xf32>
    %23 = vector.multi_reduction <add>, %22, %cst_9 [1] : vector<128x128xf32> to vector<128xf32>
    %24 = vector.shape_cast %23 : vector<128xf32> to vector<128x1xf32>
    %25 = arith.truncf %22 : vector<128x128xf32> to vector<128x128xbf16>
    %cst_10 = arith.constant dense<0.000000e+00> : vector<128x32xf32>
    %26 = tpu.matmul %25, %16, %cst_10 {dimension_numbers = #tpu.dot_dimension_numbers<[1], [0], [0], [1], [0, 0, 1, 1], [], []>} : vector<128x128xbf16>, vector<128x32xbf16>, vector<128x32xf32> -> vector<128x32xf32>
    %27 = tpu.reciprocal %24 {approx = true} : vector<128x1xf32> -> vector<128x1xf32>
    %28 = vector.broadcast %27 : vector<128x1xf32> to vector<128x32xf32>
    %29 = arith.mulf %26, %28 : vector<128x32xf32>
    %30 = arith.truncf %29 : vector<128x32xf32> to vector<128x32xbf16>
    %31 = vector.extract_strided_slice %13 {offsets = [0, 32], sizes = [128, 32], strides = [1, 1]} : vector<128x128xbf16> to vector<128x32xbf16>
    %32 = vector.extract_strided_slice %11 {offsets = [0, 32], sizes = [128, 32], strides = [1, 1]} : vector<128x128xbf16> to vector<128x32xbf16>
    %33 = vector.extract_strided_slice %12 {offsets = [0, 32], sizes = [128, 32], strides = [1, 1]} : vector<128x128xbf16> to vector<128x32xbf16>
    %cst_11 = arith.constant dense<0.000000e+00> : vector<128x128xf32>
    %34 = tpu.matmul %31, %32, %cst_11 {dimension_numbers = #tpu.dot_dimension_numbers<[1], [1], [0], [0], [0, 0, 1, 0], [], []>} : vector<128x32xbf16>, vector<128x32xbf16>, vector<128x128xf32> -> vector<128x128xf32>
    %cst_12 = arith.constant dense<0xFF800000> : vector<128xf32>
    %35 = vector.multi_reduction <maximumf>, %34, %cst_12 [1] : vector<128x128xf32> to vector<128xf32>
    %36 = vector.shape_cast %35 : vector<128xf32> to vector<128x1xf32>
    %37 = vector.broadcast %36 : vector<128x1xf32> to vector<128x128xf32>
    %38 = arith.subf %34, %37 : vector<128x128xf32>
    %39 = math.exp %38 : vector<128x128xf32>
    %cst_13 = arith.constant dense<0.000000e+00> : vector<128xf32>
    %40 = vector.multi_reduction <add>, %39, %cst_13 [1] : vector<128x128xf32> to vector<128xf32>
    %41 = vector.shape_cast %40 : vector<128xf32> to vector<128x1xf32>
    %42 = arith.truncf %39 : vector<128x128xf32> to vector<128x128xbf16>
    %cst_14 = arith.constant dense<0.000000e+00> : vector<128x32xf32>
    %43 = tpu.matmul %42, %33, %cst_14 {dimension_numbers = #tpu.dot_dimension_numbers<[1], [0], [0], [1], [0, 0, 1, 1], [], []>} : vector<128x128xbf16>, vector<128x32xbf16>, vector<128x32xf32> -> vector<128x32xf32>
    %44 = tpu.reciprocal %41 {approx = true} : vector<128x1xf32> -> vector<128x1xf32>
    %45 = vector.broadcast %44 : vector<128x1xf32> to vector<128x32xf32>
    %46 = arith.mulf %43, %45 : vector<128x32xf32>
    %47 = arith.truncf %46 : vector<128x32xf32> to vector<128x32xbf16>
    %48 = vector.extract_strided_slice %13 {offsets = [0, 64], sizes = [128, 32], strides = [1, 1]} : vector<128x128xbf16> to vector<128x32xbf16>
    %49 = vector.extract_strided_slice %11 {offsets = [0, 64], sizes = [128, 32], strides = [1, 1]} : vector<128x128xbf16> to vector<128x32xbf16>
    %50 = vector.extract_strided_slice %12 {offsets = [0, 64], sizes = [128, 32], strides = [1, 1]} : vector<128x128xbf16> to vector<128x32xbf16>
    %cst_15 = arith.constant dense<0.000000e+00> : vector<128x128xf32>
    %51 = tpu.matmul %48, %49, %cst_15 {dimension_numbers = #tpu.dot_dimension_numbers<[1], [1], [0], [0], [0, 0, 1, 0], [], []>} : vector<128x32xbf16>, vector<128x32xbf16>, vector<128x128xf32> -> vector<128x128xf32>
    %cst_16 = arith.constant dense<0xFF800000> : vector<128xf32>
    %52 = vector.multi_reduction <maximumf>, %51, %cst_16 [1] : vector<128x128xf32> to vector<128xf32>
    %53 = vector.shape_cast %52 : vector<128xf32> to vector<128x1xf32>
    %54 = vector.broadcast %53 : vector<128x1xf32> to vector<128x128xf32>
    %55 = arith.subf %51, %54 : vector<128x128xf32>
    %56 = math.exp %55 : vector<128x128xf32>
    %cst_17 = arith.constant dense<0.000000e+00> : vector<128xf32>
    %57 = vector.multi_reduction <add>, %56, %cst_17 [1] : vector<128x128xf32> to vector<128xf32>
    %58 = vector.shape_cast %57 : vector<128xf32> to vector<128x1xf32>
    %59 = arith.truncf %56 : vector<128x128xf32> to vector<128x128xbf16>
    %cst_18 = arith.constant dense<0.000000e+00> : vector<128x32xf32>
    %60 = tpu.matmul %59, %50, %cst_18 {dimension_numbers = #tpu.dot_dimension_numbers<[1], [0], [0], [1], [0, 0, 1, 1], [], []>} : vector<128x128xbf16>, vector<128x32xbf16>, vector<128x32xf32> -> vector<128x32xf32>
    %61 = tpu.reciprocal %58 {approx = true} : vector<128x1xf32> -> vector<128x1xf32>
    %62 = vector.broadcast %61 : vector<128x1xf32> to vector<128x32xf32>
    %63 = arith.mulf %60, %62 : vector<128x32xf32>
    %64 = arith.truncf %63 : vector<128x32xf32> to vector<128x32xbf16>
    %65 = vector.extract_strided_slice %13 {offsets = [0, 96], sizes = [128, 32], strides = [1, 1]} : vector<128x128xbf16> to vector<128x32xbf16>
    %66 = vector.extract_strided_slice %11 {offsets = [0, 96], sizes = [128, 32], strides = [1, 1]} : vector<128x128xbf16> to vector<128x32xbf16>
    %67 = vector.extract_strided_slice %12 {offsets = [0, 96], sizes = [128, 32], strides = [1, 1]} : vector<128x128xbf16> to vector<128x32xbf16>
    %cst_19 = arith.constant dense<0.000000e+00> : vector<128x128xf32>
    %68 = tpu.matmul %65, %66, %cst_19 {dimension_numbers = #tpu.dot_dimension_numbers<[1], [1], [0], [0], [0, 0, 1, 0], [], []>} : vector<128x32xbf16>, vector<128x32xbf16>, vector<128x128xf32> -> vector<128x128xf32>
    %cst_20 = arith.constant dense<0xFF800000> : vector<128xf32>
    %69 = vector.multi_reduction <maximumf>, %68, %cst_20 [1] : vector<128x128xf32> to vector<128xf32>
    %70 = vector.shape_cast %69 : vector<128xf32> to vector<128x1xf32>
    %71 = vector.broadcast %70 : vector<128x1xf32> to vector<128x128xf32>
    %72 = arith.subf %68, %71 : vector<128x128xf32>
    %73 = math.exp %72 : vector<128x128xf32>
    %cst_21 = arith.constant dense<0.000000e+00> : vector<128xf32>
    %74 = vector.multi_reduction <add>, %73, %cst_21 [1] : vector<128x128xf32> to vector<128xf32>
    %75 = vector.shape_cast %74 : vector<128xf32> to vector<128x1xf32>
    %76 = arith.truncf %73 : vector<128x128xf32> to vector<128x128xbf16>
    %cst_22 = arith.constant dense<0.000000e+00> : vector<128x32xf32>
    %77 = tpu.matmul %76, %67, %cst_22 {dimension_numbers = #tpu.dot_dimension_numbers<[1], [0], [0], [1], [0, 0, 1, 1], [], []>} : vector<128x128xbf16>, vector<128x32xbf16>, vector<128x32xf32> -> vector<128x32xf32>
    %78 = tpu.reciprocal %75 {approx = true} : vector<128x1xf32> -> vector<128x1xf32>
    %79 = vector.broadcast %78 : vector<128x1xf32> to vector<128x32xf32>
    %80 = arith.mulf %77, %79 : vector<128x32xf32>
    %81 = arith.truncf %80 : vector<128x32xf32> to vector<128x32xbf16>
    %82 = tpu.concatenate %30, %47, %64, %81 in 1 : vector<128x32xbf16>, vector<128x32xbf16>, vector<128x32xbf16>, vector<128x32xbf16> -> vector<128x128xbf16>
    %c0_23 = arith.constant 0 : index
    %c0_24 = arith.constant 0 : index
    %83 = vector.load %arg9[%c0_23, %c0_24] : memref<128x256xbf16, #tpu.memory_space<vmem>>, vector<128x128xbf16>
    tpu.vector_store %arg9[%c0_23, %c0_24], %82 {strides = array<i32>} : memref<128x256xbf16, #tpu.memory_space<vmem>>, vector<128x128xbf16>,
    %c0_25 = arith.constant 0 : index
    %c128 = arith.constant 128 : index
    %84 = vector.load %arg8[%c0_25, %c128] : memref<128x512xbf16, #tpu.memory_space<vmem>>, vector<128x128xbf16>
    %c0_26 = arith.constant 0 : index
    %c384 = arith.constant 384 : index
    %85 = vector.load %arg8[%c0_26, %c384] : memref<128x512xbf16, #tpu.memory_space<vmem>>, vector<128x128xbf16>
    %86 = vector.extract_strided_slice %10 {offsets = [0, 128], sizes = [128, 128], strides = [1, 1]} : vector<128x256xbf16> to vector<128x128xbf16>
    %87 = vector.extract_strided_slice %86 {offsets = [0, 0], sizes = [128, 32], strides = [1, 1]} : vector<128x128xbf16> to vector<128x32xbf16>
    %88 = vector.extract_strided_slice %84 {offsets = [0, 0], sizes = [128, 32], strides = [1, 1]} : vector<128x128xbf16> to vector<128x32xbf16>
    %89 = vector.extract_strided_slice %85 {offsets = [0, 0], sizes = [128, 32], strides = [1, 1]} : vector<128x128xbf16> to vector<128x32xbf16>
    %cst_27 = arith.constant dense<0.000000e+00> : vector<128x128xf32>
    %90 = tpu.matmul %87, %88, %cst_27 {dimension_numbers = #tpu.dot_dimension_numbers<[1], [1], [0], [0], [0, 0, 1, 0], [], []>} : vector<128x32xbf16>, vector<128x32xbf16>, vector<128x128xf32> -> vector<128x128xf32>
    %cst_28 = arith.constant dense<0xFF800000> : vector<128xf32>
    %91 = vector.multi_reduction <maximumf>, %90, %cst_28 [1] : vector<128x128xf32> to vector<128xf32>
    %92 = vector.shape_cast %91 : vector<128xf32> to vector<128x1xf32>
    %93 = vector.broadcast %92 : vector<128x1xf32> to vector<128x128xf32>
    %94 = arith.subf %90, %93 : vector<128x128xf32>
    %95 = math.exp %94 : vector<128x128xf32>
    %cst_29 = arith.constant dense<0.000000e+00> : vector<128xf32>
    %96 = vector.multi_reduction <add>, %95, %cst_29 [1] : vector<128x128xf32> to vector<128xf32>
    %97 = vector.shape_cast %96 : vector<128xf32> to vector<128x1xf32>
    %98 = arith.truncf %95 : vector<128x128xf32> to vector<128x128xbf16>
    %cst_30 = arith.constant dense<0.000000e+00> : vector<128x32xf32>
    %99 = tpu.matmul %98, %89, %cst_30 {dimension_numbers = #tpu.dot_dimension_numbers<[1], [0], [0], [1], [0, 0, 1, 1], [], []>} : vector<128x128xbf16>, vector<128x32xbf16>, vector<128x32xf32> -> vector<128x32xf32>
    %100 = tpu.reciprocal %97 {approx = true} : vector<128x1xf32> -> vector<128x1xf32>
    %101 = vector.broadcast %100 : vector<128x1xf32> to vector<128x32xf32>
    %102 = arith.mulf %99, %101 : vector<128x32xf32>
    %103 = arith.truncf %102 : vector<128x32xf32> to vector<128x32xbf16>
    %104 = vector.extract_strided_slice %86 {offsets = [0, 32], sizes = [128, 32], strides = [1, 1]} : vector<128x128xbf16> to vector<128x32xbf16>
    %105 = vector.extract_strided_slice %84 {offsets = [0, 32], sizes = [128, 32], strides = [1, 1]} : vector<128x128xbf16> to vector<128x32xbf16>
    %106 = vector.extract_strided_slice %85 {offsets = [0, 32], sizes = [128, 32], strides = [1, 1]} : vector<128x128xbf16> to vector<128x32xbf16>
    %cst_31 = arith.constant dense<0.000000e+00> : vector<128x128xf32>
    %107 = tpu.matmul %104, %105, %cst_31 {dimension_numbers = #tpu.dot_dimension_numbers<[1], [1], [0], [0], [0, 0, 1, 0], [], []>} : vector<128x32xbf16>, vector<128x32xbf16>, vector<128x128xf32> -> vector<128x128xf32>
    %cst_32 = arith.constant dense<0xFF800000> : vector<128xf32>
    %108 = vector.multi_reduction <maximumf>, %107, %cst_32 [1] : vector<128x128xf32> to vector<128xf32>
    %109 = vector.shape_cast %108 : vector<128xf32> to vector<128x1xf32>
    %110 = vector.broadcast %109 : vector<128x1xf32> to vector<128x128xf32>
    %111 = arith.subf %107, %110 : vector<128x128xf32>
    %112 = math.exp %111 : vector<128x128xf32>
    %cst_33 = arith.constant dense<0.000000e+00> : vector<128xf32>
    %113 = vector.multi_reduction <add>, %112, %cst_33 [1] : vector<128x128xf32> to vector<128xf32>
    %114 = vector.shape_cast %113 : vector<128xf32> to vector<128x1xf32>
    %115 = arith.truncf %112 : vector<128x128xf32> to vector<128x128xbf16>
    %cst_34 = arith.constant dense<0.000000e+00> : vector<128x32xf32>
    %116 = tpu.matmul %115, %106, %cst_34 {dimension_numbers = #tpu.dot_dimension_numbers<[1], [0], [0], [1], [0, 0, 1, 1], [], []>} : vector<128x128xbf16>, vector<128x32xbf16>, vector<128x32xf32> -> vector<128x32xf32>
    %117 = tpu.reciprocal %114 {approx = true} : vector<128x1xf32> -> vector<128x1xf32>
    %118 = vector.broadcast %117 : vector<128x1xf32> to vector<128x32xf32>
    %119 = arith.mulf %116, %118 : vector<128x32xf32>
    %120 = arith.truncf %119 : vector<128x32xf32> to vector<128x32xbf16>
    %121 = vector.extract_strided_slice %86 {offsets = [0, 64], sizes = [128, 32], strides = [1, 1]} : vector<128x128xbf16> to vector<128x32xbf16>
    %122 = vector.extract_strided_slice %84 {offsets = [0, 64], sizes = [128, 32], strides = [1, 1]} : vector<128x128xbf16> to vector<128x32xbf16>
    %123 = vector.extract_strided_slice %85 {offsets = [0, 64], sizes = [128, 32], strides = [1, 1]} : vector<128x128xbf16> to vector<128x32xbf16>
    %cst_35 = arith.constant dense<0.000000e+00> : vector<128x128xf32>
    %124 = tpu.matmul %121, %122, %cst_35 {dimension_numbers = #tpu.dot_dimension_numbers<[1], [1], [0], [0], [0, 0, 1, 0], [], []>} : vector<128x32xbf16>, vector<128x32xbf16>, vector<128x128xf32> -> vector<128x128xf32>
    %cst_36 = arith.constant dense<0xFF800000> : vector<128xf32>
    %125 = vector.multi_reduction <maximumf>, %124, %cst_36 [1] : vector<128x128xf32> to vector<128xf32>
    %126 = vector.shape_cast %125 : vector<128xf32> to vector<128x1xf32>
    %127 = vector.broadcast %126 : vector<128x1xf32> to vector<128x128xf32>
    %128 = arith.subf %124, %127 : vector<128x128xf32>
    %129 = math.exp %128 : vector<128x128xf32>
    %cst_37 = arith.constant dense<0.000000e+00> : vector<128xf32>
    %130 = vector.multi_reduction <add>, %129, %cst_37 [1] : vector<128x128xf32> to vector<128xf32>
    %131 = vector.shape_cast %130 : vector<128xf32> to vector<128x1xf32>
    %132 = arith.truncf %129 : vector<128x128xf32> to vector<128x128xbf16>
    %cst_38 = arith.constant dense<0.000000e+00> : vector<128x32xf32>
    %133 = tpu.matmul %132, %123, %cst_38 {dimension_numbers = #tpu.dot_dimension_numbers<[1], [0], [0], [1], [0, 0, 1, 1], [], []>} : vector<128x128xbf16>, vector<128x32xbf16>, vector<128x32xf32> -> vector<128x32xf32>
    %134 = tpu.reciprocal %131 {approx = true} : vector<128x1xf32> -> vector<128x1xf32>
    %135 = vector.broadcast %134 : vector<128x1xf32> to vector<128x32xf32>
    %136 = arith.mulf %133, %135 : vector<128x32xf32>
    %137 = arith.truncf %136 : vector<128x32xf32> to vector<128x32xbf16>
    %138 = vector.extract_strided_slice %86 {offsets = [0, 96], sizes = [128, 32], strides = [1, 1]} : vector<128x128xbf16> to vector<128x32xbf16>
    %139 = vector.extract_strided_slice %84 {offsets = [0, 96], sizes = [128, 32], strides = [1, 1]} : vector<128x128xbf16> to vector<128x32xbf16>
    %140 = vector.extract_strided_slice %85 {offsets = [0, 96], sizes = [128, 32], strides = [1, 1]} : vector<128x128xbf16> to vector<128x32xbf16>
    %cst_39 = arith.constant dense<0.000000e+00> : vector<128x128xf32>
    %141 = tpu.matmul %138, %139, %cst_39 {dimension_numbers = #tpu.dot_dimension_numbers<[1], [1], [0], [0], [0, 0, 1, 0], [], []>} : vector<128x32xbf16>, vector<128x32xbf16>, vector<128x128xf32> -> vector<128x128xf32>
    %cst_40 = arith.constant dense<0xFF800000> : vector<128xf32>
    %142 = vector.multi_reduction <maximumf>, %141, %cst_40 [1] : vector<128x128xf32> to vector<128xf32>
    %143 = vector.shape_cast %142 : vector<128xf32> to vector<128x1xf32>
    %144 = vector.broadcast %143 : vector<128x1xf32> to vector<128x128xf32>
    %145 = arith.subf %141, %144 : vector<128x128xf32>
    %146 = math.exp %145 : vector<128x128xf32>
    %cst_41 = arith.constant dense<0.000000e+00> : vector<128xf32>
    %147 = vector.multi_reduction <add>, %146, %cst_41 [1] : vector<128x128xf32> to vector<128xf32>
    %148 = vector.shape_cast %147 : vector<128xf32> to vector<128x1xf32>
    %149 = arith.truncf %146 : vector<128x128xf32> to vector<128x128xbf16>
    %cst_42 = arith.constant dense<0.000000e+00> : vector<128x32xf32>
    %150 = tpu.matmul %149, %140, %cst_42 {dimension_numbers = #tpu.dot_dimension_numbers<[1], [0], [0], [1], [0, 0, 1, 1], [], []>} : vector<128x128xbf16>, vector<128x32xbf16>, vector<128x32xf32> -> vector<128x32xf32>
    %151 = tpu.reciprocal %148 {approx = true} : vector<128x1xf32> -> vector<128x1xf32>
    %152 = vector.broadcast %151 : vector<128x1xf32> to vector<128x32xf32>
    %153 = arith.mulf %150, %152 : vector<128x32xf32>
    %154 = arith.truncf %153 : vector<128x32xf32> to vector<128x32xbf16>
    %155 = tpu.concatenate %103, %120, %137, %154 in 1 : vector<128x32xbf16>, vector<128x32xbf16>, vector<128x32xbf16>, vector<128x32xbf16> -> vector<128x128xbf16>
    %c0_43 = arith.constant 0 : index
    %c128_44 = arith.constant 128 : index
    %156 = vector.load %arg9[%c0_43, %c128_44] : memref<128x256xbf16, #tpu.memory_space<vmem>>, vector<128x128xbf16>
    tpu.vector_store %arg9[%c0_43, %c128_44], %155 {strides = array<i32>} : memref<128x256xbf16, #tpu.memory_space<vmem>>, vector<128x128xbf16>,
    %c0_45 = arith.constant 0 : index
    %c0_46 = arith.constant 0 : index
    %157 = vector.load %arg9[%c0_45, %c0_46] : memref<128x256xbf16, #tpu.memory_space<vmem>>, vector<128x256xbf16>
    %c0_47 = arith.constant 0 : index
    %c0_48 = arith.constant 0 : index
    %158 = vector.load %arg5[%c0_47, %c0_48] : memref<256x256xbf16, #tpu.memory_space<vmem>>, vector<256x256xbf16>
    %cst_49 = arith.constant dense<0.000000e+00> : vector<128x256xf32>
    %159 = tpu.matmul %157, %158, %cst_49 {dimension_numbers = #tpu.dot_dimension_numbers<[1], [0], [0], [1], [0, 0, 1, 1], [], []>} : vector<128x256xbf16>, vector<256x256xbf16>, vector<128x256xf32> -> vector<128x256xf32>
    %c0_50 = arith.constant 0 : index
    %c0_51 = arith.constant 0 : index
    %160 = vector.load %arg6[%c0_50, %c0_51] : memref<1x256xf32, #tpu.memory_space<vmem>>, vector<1x256xf32>
    %161 = vector.broadcast %160 : vector<1x256xf32> to vector<128x256xf32>
    %162 = arith.addf %159, %161 : vector<128x256xf32>
    %163 = arith.truncf %162 : vector<128x256xf32> to vector<128x256xbf16>
    %c0_52 = arith.constant 0 : index
    %c0_53 = arith.constant 0 : index
    %c0_54 = arith.constant 0 : index
    %164 = vector.load %arg7[%c0_52, %c0_53, %c0_54] : memref<1x128x256xbf16, #tpu.memory_space<vmem>>, vector<1x128x256xbf16>
    %165 = vector.shape_cast %164 : vector<1x128x256xbf16> to vector<128x256xbf16>
    %166 = vector.shape_cast %163 : vector<128x256xbf16> to vector<1x128x256xbf16>
    tpu.vector_store %arg7[%c0_52, %c0_53, %c0_54], %166 {strides = array<i32>} : memref<1x128x256xbf16, #tpu.memory_space<vmem>>, vector<1x128x256xbf16>,
    return
  }
  func.func @transform_0(%arg0: i32, %arg1: i32) -> (i32, i32, i32) {
    %c0_i32 = arith.constant 0 : i32
    %c0_i32_0 = arith.constant 0 : i32
    %c0_i32_1 = arith.constant 0 : i32
    return %arg0, %c0_i32, %c0_i32_0 : i32, i32, i32
  }
  func.func @transform_1(%arg0: i32, %arg1: i32) -> (i32, i32) {
    %c0_i32 = arith.constant 0 : i32
    %c0_i32_0 = arith.constant 0 : i32
    %c0_i32_1 = arith.constant 0 : i32
    return %c0_i32, %c0_i32_0 : i32, i32
  }
  func.func @transform_2(%arg0: i32, %arg1: i32) -> (i32, i32) {
    %c0_i32 = arith.constant 0 : i32
    %c0_i32_0 = arith.constant 0 : i32
    %c0_i32_1 = arith.constant 0 : i32
    return %c0_i32, %c0_i32_0 : i32, i32
  }
  func.func @transform_3(%arg0: i32, %arg1: i32) -> (i32, i32) {
    %c0_i32 = arith.constant 0 : i32
    %c0_i32_0 = arith.constant 0 : i32
    %c0_i32_1 = arith.constant 0 : i32
    return %c0_i32, %c0_i32_0 : i32, i32
  }
  func.func @transform_4(%arg0: i32, %arg1: i32) -> (i32, i32) {
    %c0_i32 = arith.constant 0 : i32
    %c0_i32_0 = arith.constant 0 : i32
    %c0_i32_1 = arith.constant 0 : i32
    return %c0_i32, %c0_i32_0 : i32, i32
  }
  func.func @transform_5(%arg0: i32, %arg1: i32) -> (i32, i32, i32) {
    %c0_i32 = arith.constant 0 : i32
    %c0_i32_0 = arith.constant 0 : i32
    return %arg0, %arg1, %c0_i32 : i32, i32, i32
  }
}

</mosaic_0001>

<bundles_post_ra>
// kernel: tpu_custom_call.1
= control target key start
LH: loop header
LB: loop body
LE: loop exit
PB: predicated region body
PF: predicated region fallthrough
CT: control target
= control target key end

     0   :  { %s11912_s0 = inlined_call_operand.hbm [shape: bf16[2,128,256], index: 0, kind: input, shape index: {}]   ;;  %s11913_s1 = inlined_call_operand.hbm [shape: bf16[256,256], index: 1, kind: input, shape index: {}]   ;;  %s11914_s2 = inlined_call_operand.hbm [shape: bf16[256,512], index: 2, kind: input, shape index: {}]   ;;  %s11915_s3 = inlined_call_operand.hbm [shape: bf16[256,256], index: 3, kind: input, shape index: {}]   ;;  %s11916_s4 = inlined_call_operand.vmem [shape: f32[1,256], index: 4, kind: input, shape index: {}]   ;;  %s11917_s5 = inlined_call_operand.hbm [shape: bf16[2,128,256], index: 5, kind: output, shape index: {}]  }
   0x1   :  { %12000 = sst [smem:[#allocation172_spill]] %s11913_s1 }
   0x2   :  { %12001 = sst [smem:[#allocation173_spill]] %s11914_s2 }
   0x3   :  { %10 = vsyncpa [#allocation5], 0 }
   0x4   :  { %12 = vsyncpa [#allocation5 + $0x1], 0 }
   0x5   :  { %13 = vsyncpa [#allocation8], 0 }
   0x6   :  { %14 = vsyncpa [#allocation11], 0 }
   0x7   :  { %15 = vsyncpa [#allocation6], 0 }
   0x8   :  { %17 = vsyncpa [#allocation6 + $0x1], 0  ;;  %s8924_s18 = smov 0   ;;  %s8926_s19 = smov 0  }
   0x9   :  { %s8928_s20 = smov 0   ;;  %s8930_s21 = smov 0  }
   0xa   :  { %s8932_s22 = smov 0   ;;  %s8934_s23 = smov 0  }
   0xb LB: > { %s6528_s24 = sadd.s32 4294967295, %s8878_s23   ;;  %s6529_s25 = sadd.s32 4294967294, %s8878_s23   ;;  %s8878_s23 = sphi %s8934_s23, %s23_s23   ;;  %s8874_s22 = sphi %s8932_s22, %s12502_s22   ;;  %s8870_s21 = sphi %s8930_s21, %s12501_s21   ;;  %s8866_s20 = sphi %s8928_s20, %s12500_s20   ;;  %s8862_s19 = sphi %s8926_s19, %s12499_s19   ;;  %s8858_s18 = sphi %s8924_s18, %s12498_s18  }
   0xc   : > { %p55_p0 = scmp.ne.s32.totalorder %s8862_s19, %s8858_s18  ;;  %p8958_p1 = scmp.eq.s32.totalorder %s6528_s24, 0 }
   0xd   : > { %p8962_p2 = scmp.eq.s32.totalorder %s6528_s24, 1  ;;  %p171_p3 = scmp.eq.s32.totalorder %s6529_s25, 1 }
   0xe   : > { %p8968_p4 = por %p8958_p1, %p55_p0  ;;  %p6530_p5 = scmp.ge.s32.totalorder %s8878_s23, 1 }
   0xf   : > { %p8973_p6 = por %p171_p3, %p55_p0  ;;  %p178_p7 = scmp.lt.s32.totalorder %s8878_s23, 3 }
  0x10   : > { %s8880_s6 = smov [#allocation7]   ;;  %s8881_s9 = smov [#allocation9]  }
  0x11   : > { %s12005_s29 = scalar_select %p8973_p6, 1, 0 }
  0x12   : > { %p8978_p8 = pnand %p6530_p5, %p178_p7  ;;  %s190_s7 = sshll.u32 %s8880_s6, 4  ;;  %s191_s7 = int_to_ptr.vmem [resolvable:$true] %s190_s7 }
  0x13   : > { %s203_s10 = sshll.u32 %s8881_s9, 4  ;;  %s8695_s11 = scalar_lea.vmem %s191_s7, 4096  ;;  %s204_s10 = int_to_ptr.vmem [resolvable:$true] %s203_s10 }
  0x14   : > { %p7799_p9 = pneg %p8978_p8  ;;  %p8696_p13 = scmp.ne.s32.totalorder %s191_s7, %s8695_s11 }
  0x15   : > { %p8703_p5 = scmp.lt.s32.totalorder %s191_s7, %s191_s7  ;;  %p8704_p7 = scmp.lt.s32.totalorder %s8695_s11, %s8695_s11 }
  0x16   : > { %p8987_p11 = pnand %p7799_p9, %p8958_p1 }
  0x17   : > { %p8705_p10 = por %p8704_p7, %p8703_p5 }
  0x18   : > { %p8686_p12 = pneg %p8987_p11 }
  0x1a   : > { %p8698_p0 = pnand %p8696_p13, %p8686_p12 }
  0x1c   : > { %p8699_p3 = pneg %p8698_p0 }
  0x1e   : > { %p8706_p9 = pnand %p8705_p10, %p8699_p3 }
  0x20   : > { %8709 = shalt.err (!%p8706_p9)
}
  0x21   : > { %s11918_s12 = smov 128   ;;  %s11919_s13 = smov 8  }
  0x22   : > { %s12008_s1 = sld [smem:[#allocation172_spill]]  ;;  %s8721_s16 = scalar_lea.vmem %s204_s10, 8192 }
  0x23   : > { %p8722_p13 = scmp.ne.s32.totalorder %s204_s10, %s8721_s16  ;;  %p8729_p10 = scmp.lt.s32.totalorder %s204_s10, %s204_s10 }
  0x24   : > { %p8730_p3 = scmp.lt.s32.totalorder %s8721_s16, %s8721_s16 }
  0x25   : > { %p8724_p0 = pnand %p8722_p13, %p8686_p12 }
  0x26   : > { %p8731_p7 = por %p8730_p3, %p8729_p10 }
  0x27   : > { %p8725_p5 = pneg %p8724_p0 }
  0x28   : > { %7802 = dma.hbm_to_vmem [thread:$0]  (!%p8987_p11), %s12008_s1, 4096, %s191_s7, [#allocation8], %s11918_s12, %s11918_s12, %s11919_s13  }
  0x29   : > { %p8732_p9 = pnand %p8731_p7, %p8725_p5 }
  0x2b   : > { %8735 = shalt.err (!%p8732_p9)
}
  0x2c   : > { %s8884_s17 = smov 256   ;;  %s8885_s24 = smov 16  }
  0x2d   : > { %s12009_s2 = sld [smem:[#allocation173_spill]]  ;;  %s8886_s7 = smov [#allocation10]  }
  0x2e   : > { %s216_s9 = sshll.u32 %s8886_s7, 4  ;;  %s217_s9 = int_to_ptr.vmem [resolvable:$true] %s216_s9 }
  0x2f   : > { %s8747_s11 = scalar_lea.vmem %s217_s9, 4096  ;;  %p8755_p5 = scmp.lt.s32.totalorder %s217_s9, %s217_s9 }
  0x30   : > { %p8748_p13 = scmp.ne.s32.totalorder %s217_s9, %s8747_s11  ;;  %p8756_p3 = scmp.lt.s32.totalorder %s8747_s11, %s8747_s11 }
  0x32   : > { %p8750_p0 = pnand %p8748_p13, %p8686_p12  ;;  %p8757_p7 = por %p8756_p3, %p8755_p5 }
  0x33   : > { %7805 = dma.hbm_to_vmem [thread:$0]  (!%p8987_p11), %s12009_s2, 8192, %s204_s10, [#allocation8], %s8884_s17, %s8884_s17, %s8885_s24  }
  0x34   : > { %p8751_p10 = pneg %p8750_p0 }
  0x36   : > { %p8758_p9 = pnand %p8757_p7, %p8751_p10 }
  0x38   : > { %8761 = shalt.err (!%p8758_p9)
}
  0x39   : > { %7808 = dma.hbm_to_vmem [thread:$0]  (!%p8987_p11), %s11915_s3, 4096, %s217_s9, [#allocation11], %s11918_s12, %s11918_s12, %s11919_s13  }
  0x3a   : > { %s35_s15 = sadd.s32 1, %s8874_s22  ;;  %s42_s8 = sadd.s32 1, %s8866_s20 }
  0x3b   : > { %p37_p12 = scmp.ge.s32.totalorder %s35_s15, 2  ;;  %p49_p13 = scmp.ne.s32.totalorder %s8866_s20, %s8862_s19 }
  0x3c   : > { %p50_p0 = scmp.eq.s32.totalorder %s8878_s23, 0  ;;  %p7820_p11 = scmp.lt.s32.totalorder %s8878_s23, 2 }
  0x3d   : > { %s12504_s15 = smov (%p37_p12, %s35_s15), 0  ;;  %p9036_p5 = por %p8962_p2, %p49_p13 }
  0x3e   : > { %p9030_p10 = por %p50_p0, %p49_p13  ;;  %s39_s24 = ssub.s32 %s8874_s22, %s12504_s15 }
  0x3f   : > { %s12011_s17 = scalar_select %p9036_p5, 1, 0 }
  0x40   : > { %p40_p3 = scmp.eq.s32.totalorder %s39_s24, 0  ;;  %s233_s25 = sand.u32 1, %s8866_s20  }
  0x41   : > { %s6535_s6 = sshll.u32 %s233_s25, 7  ;;  %s6901_s9 = sshll.u32 %s8874_s22, 11 }
  0x42   : > { %s9045_s7 = scalar_select %p40_p3, %s8866_s20, %s42_s8  }
  0x43   : > { %s243_s14 = scalar_lea.hbm %s11912_s0, %s6901_s9  ;;  %s237_s12 = scalar_lea.vmem [#allocation4], %s6535_s6 }
  0x44   : > { %s244_s13 = sshll.u32 %s237_s12, 4  ;;  %p9053_p2 = pnand %p7820_p11, %p9030_p10  ;;  %s245_s13 = int_to_ptr.vmem [resolvable:$true] %s244_s13 }
  0x45   : > { %s234_s1 = scalar_lea.sflag [#allocation5], %s233_s25  ;;  %s8775_s24 = scalar_lea.vmem %s245_s13, 2048 }
  0x46   : > { %p8764_p7 = pneg %p9053_p2  ;;  %p8776_p9 = scmp.ne.s32.totalorder %s245_s13, %s8775_s24 }
  0x47   : > { %s8887_s8 = smov [#allocation4]  }
  0x48   : > { %p8778_p12 = pnand %p8776_p9, %p8764_p7  ;;  %s8780_s2 = sshll.u32 %s8887_s8, 4  ;;  %s8781_s2 = int_to_ptr.vmem [resolvable:$false] %s8780_s2 }
  0x49   : > { %s8782_s9 = scalar_lea.vmem %s8781_s2, 4096  ;;  %p8783_p0 = scmp.lt.s32.totalorder %s245_s13, %s8781_s2 }
  0x4a   : > { %p8779_p13 = pneg %p8778_p12  ;;  %p8784_p3 = scmp.lt.s32.totalorder %s8782_s9, %s8775_s24 }
  0x4c   : > { %p8785_p6 = por %p8784_p3, %p8783_p0 }
  0x4e   : > { %p8786_p5 = pnand %p8785_p6, %p8779_p13 }
  0x50   : > { %8789 = shalt.err (!%p8786_p5)
}
  0x51   : > { %s12013_s12 = smov 8   ;;  %s12014_s16 = smov 128  }
  0x52   : > { %7812 = dma.hbm_to_vmem [thread:$0]  (!%p9053_p2), %s243_s14, 2048, %s245_s13, %s234_s1, %s12014_s16, %s12014_s16, %s12013_s12  }
  0x53   : > { %256 = sbr.rel (%p8978_p8) target bundleno = 3984 (0xf90), region = 40 }
  0x58   : > { %s9067_s25 = sand.u32 1, %s8862_s19  }
  0x59   : > { %s6539_s2 = sshll.u32 %s9067_s25, 7  ;;  %s259_s6 = scalar_lea.sflag [#allocation5], %s9067_s25 }
  0x5a   : > { %s9073_s11 = scalar_lea.vmem [#allocation4], %s6539_s2 }
  0x5b   : > { %8841 = dma.done.wait (%p8968_p4), %s259_s6, 2048  }
  0x5c   : > { %8843 = vsyncadd (%p8968_p4), %s259_s6, 4294965248 }
  0x5d   : > { %8845 = dma.done.wait (%p8958_p1), [#allocation8], 12288  }
  0x5e   : > { %8847 = vsyncadd (%p8958_p1), [#allocation8], 4294955008 }
  0x5f   : > { %8849 = dma.done.wait (%p8958_p1), [#allocation11], 4096  }
  0x60   : > { %8851 = vsyncadd (%p8958_p1), [#allocation11], 4294963200  ;;  %v7885_v0 = vld [vmem:[#allocation9 + $0xe4] ss:$16 sps:$4 sm:$0xff]   ;;  %v7887_v1 = vld [vmem:[#allocation9 + $0xe0] ss:$16 sps:$4 sm:$0xff]  }
  0x61   : > { %787 = vmatprep.subr.bf16.mxu1 %v7885_v0  ;;  %v7888_v2 = vld [vmem:[#allocation9 + $0xc4] ss:$16 sps:$4 sm:$0xff]   ;;  %v7890_v3 = vld [vmem:[#allocation9 + $0xc0] ss:$16 sps:$4 sm:$0xff]   ;;  %v8007_v59 = vld [vmem:[#allocation9 + $0xec] ss:$16 sps:$4 sm:$0xff]  }
  0x62   : > { %788 = vmatpush1.bf16.msra.mxu1 %v7887_v1  ;;  %v7891_v4 = vld [vmem:[#allocation9 + $0xa4] ss:$16 sps:$4 sm:$0xff]   ;;  %v7893_v5 = vld [vmem:[#allocation9 + $0xa0] ss:$16 sps:$4 sm:$0xff]   ;;  %v8005_v63 = vld [vmem:[#allocation9 + $0xe8] ss:$16 sps:$4 sm:$0xff]  }
  0x63   : > { %789 = vmatprep.subr.bf16.mxu1 %v7888_v2  ;;  %v7894_v6 = vld [vmem:[#allocation9 + $0x84] ss:$16 sps:$4 sm:$0xff]   ;;  %v7896_v7 = vld [vmem:[#allocation9 + $0x80] ss:$16 sps:$4 sm:$0xff]   ;;  %v8010_v0 = vld [vmem:[#allocation9 + $0xcc] ss:$16 sps:$4 sm:$0xff]  }
  0x64   : > { %v7897_v8 = vld [vmem:[#allocation9 + $0x64] ss:$16 sps:$4 sm:$0xff]   ;;  %v7899_v9 = vld [vmem:[#allocation9 + $0x60] ss:$16 sps:$4 sm:$0xff]   ;;  %vm1732_vm0 = vcmask 261120   ;;  %s8888_s1 = smov 96  }
  0x65   : > { %v7900_v10 = vld [vmem:[#allocation9 + $0x44] ss:$16 sps:$4 sm:$0xff]   ;;  %v7923_v12 = vld [vmem:[#allocation7 + $0x70] ss:$8 sps:$4 sm:$0xff]   ;;  %v7929_v15 = vld [vmem:[#allocation7 + $0x60] ss:$8 sps:$4 sm:$0xff]  }
  0x66   : > { %790 = vmatpush1.bf16.msra.mxu1 %v7890_v3  ;;  %v7920_v11 = vld [vmem:[#allocation7 + $0x74] ss:$8 sps:$4 sm:$0xff]   ;;  %v7902_v13 = vld [vmem:[#allocation9 + $0x40] ss:$16 sps:$4 sm:$0xff]   ;;  %v7926_v14 = vld [vmem:[#allocation7 + $0x64] ss:$8 sps:$4 sm:$0xff]  }
  0x67   : > { %791 = vmatprep.subr.bf16.mxu1 %v7891_v4  ;;  %1531 = vmatprep.subr.bf16.mxu0 %v7920_v11  ;;  %v7903_v16 = vld [vmem:[#allocation9 + $0x24] ss:$16 sps:$4 sm:$0xff]   ;;  %v7905_v18 = vld [vmem:[#allocation9 + $0x20] ss:$16 sps:$4 sm:$0xff]   ;;  %v8008_v3 = vld [vmem:[#allocation9 + $0xc8] ss:$16 sps:$4 sm:$0xff]  }
  0x68   : > { %1532 = vmatpush1.bf16.msra.mxu0 %v7923_v12  ;;  %v7932_v17 = vld [vmem:[#allocation7 + $0x54] ss:$8 sps:$4 sm:$0xff]   ;;  %v7935_v19 = vld [vmem:[#allocation7 + $0x50] ss:$8 sps:$4 sm:$0xff]   ;;  %v7938_v21 = vld [vmem:[#allocation7 + $0x44] ss:$8 sps:$4 sm:$0xff]  }
  0x69   : > { %1533 = vmatprep.subr.bf16.mxu0 %v7926_v14  ;;  %v7906_v20 = vld [vmem:[#allocation9 + $0x4] ss:$16 sps:$4 sm:$0xff]   ;;  %v7908_v22 = vld [vmem:[#allocation9] ss:$16 sps:$4 sm:$0xff]   ;;  %v8013_v4 = vld [vmem:[#allocation9 + $0xac] ss:$16 sps:$4 sm:$0xff]  }
  0x6a   : > { %792 = vmatpush1.bf16.msra.mxu1 %v7893_v5  ;;  %v7909_v23 = vld [vmem:[#allocation9 + $0x1e4] ss:$16 sps:$4 sm:$0xff]   ;;  %v7941_v24 = vld [vmem:[#allocation7 + $0x40] ss:$8 sps:$4 sm:$0xff]   ;;  %v7947_v29 = vld [vmem:[#allocation7 + $0x30] ss:$8 sps:$4 sm:$0xff]  }
  0x6b   : > { %793 = vmatprep.subr.bf16.mxu1 %v7894_v6  ;;  %v7944_v25 = vld [vmem:[#allocation7 + $0x34] ss:$8 sps:$4 sm:$0xff]   ;;  %v9088_v26 = vld [vmem:[%s9073_s11 + $0x4] ss:$8 sps:$4 sm:$0xff]   ;;  %v7911_v27 = vld [vmem:[#allocation9 + $0x1e0] ss:$16 sps:$4 sm:$0xff]  }
  0x6c   : > { %1534 = vmatpush1.bf16.msra.mxu0 %v7929_v15  ;;  %v7912_v28 = vld [vmem:[#allocation9 + $0x1c4] ss:$16 sps:$4 sm:$0xff]   ;;  %819 = vmatprep.mubr.bf16.mxu1 %v9088_v26  ;;  %v7914_v31 = vld [vmem:[#allocation9 + $0x1c0] ss:$16 sps:$4 sm:$0xff]   ;;  %v8014_v12 = vld [vmem:[#allocation9 + $0x88] ss:$16 sps:$4 sm:$0xff]  }
  0x6d   : > { %1535 = vmatprep.subr.bf16.mxu0 %v7932_v17  ;;  %v7951_v30 = vld [vmem:[#allocation7 + $0x24] ss:$8 sps:$4 sm:$0xff]   ;;  %1563 = vmatprep.mubr.bf16.mxu0 %v9088_v26  ;;  %v7953_v33 = vld [vmem:[#allocation7 + $0x20] ss:$8 sps:$4 sm:$0xff]   ;;  %v7954_v34 = vld [vmem:[#allocation7 + $0x14] ss:$8 sps:$4 sm:$0xff]  }
  0x6e   : > { %794 = vmatpush1.bf16.msra.mxu1 %v7896_v7  ;;  %v7915_v32 = vld [vmem:[#allocation9 + $0x1a4] ss:$16 sps:$4 sm:$0xff]   ;;  %v7917_v35 = vld [vmem:[#allocation9 + $0x1a0] ss:$16 sps:$4 sm:$0xff]   ;;  %v8022_v17 = vld [vmem:[#allocation9 + $0x4c] ss:$16 sps:$4 sm:$0xff]  }
  0x6f   : > { %795 = vmatprep.subr.bf16.mxu1 %v7897_v8  ;;  %v7918_v36 = vld [vmem:[#allocation9 + $0x184] ss:$16 sps:$4 sm:$0xff]   ;;  %v7956_v37 = vld [vmem:[#allocation7 + $0x10] ss:$8 sps:$4 sm:$0xff]   ;;  %v7962_v41 = vld [vmem:[#allocation7] ss:$8 sps:$4 sm:$0xff]  }
  0x70   : > { %1536 = vmatpush1.bf16.msra.mxu0 %v7935_v19  ;;  %v7960_v38 = vld [vmem:[#allocation7 + $0x4] ss:$8 sps:$4 sm:$0xff]   ;;  %v7922_v39 = vld [vmem:[#allocation9 + $0x180] ss:$16 sps:$4 sm:$0xff]   ;;  %v7963_v42 = vld [vmem:[#allocation7 + $0xf4] ss:$8 sps:$4 sm:$0xff]  }
  0x71   : > { %1537 = vmatprep.subr.bf16.mxu0 %v7938_v21  ;;  %v7924_v40 = vld [vmem:[#allocation9 + $0x164] ss:$16 sps:$4 sm:$0xff]   ;;  %v7928_v43 = vld [vmem:[#allocation9 + $0x160] ss:$16 sps:$4 sm:$0xff]   ;;  %v8025_v19 = vld [vmem:[#allocation9 + $0x2c] ss:$16 sps:$4 sm:$0xff]  }
  0x72   : > { %796 = vmatpush1.bf16.msra.mxu1 %v7899_v9  ;;  %v7930_v44 = vld [vmem:[#allocation9 + $0x144] ss:$16 sps:$4 sm:$0xff]   ;;  %v7965_v45 = vld [vmem:[#allocation7 + $0xf0] ss:$8 sps:$4 sm:$0xff]   ;;  %v7971_v49 = vld [vmem:[#allocation7 + $0xe0] ss:$8 sps:$4 sm:$0xff]  }
  0x73   : > { %797 = vmatprep.subr.bf16.mxu1 %v7900_v10  ;;  %v7969_v46 = vld [vmem:[#allocation7 + $0xe4] ss:$8 sps:$4 sm:$0xff]   ;;  %v7934_v47 = vld [vmem:[#allocation9 + $0x140] ss:$16 sps:$4 sm:$0xff]   ;;  %v7972_v50 = vld [vmem:[#allocation7 + $0xd4] ss:$8 sps:$4 sm:$0xff]  }
  0x74   : > { %1538 = vmatpush1.bf16.msra.mxu0 %v7941_v24  ;;  %v7936_v48 = vld [vmem:[#allocation9 + $0x124] ss:$16 sps:$4 sm:$0xff]   ;;  %v7940_v51 = vld [vmem:[#allocation9 + $0x120] ss:$16 sps:$4 sm:$0xff]   ;;  %v8011_v9 = vld [vmem:[#allocation9 + $0xa8] ss:$16 sps:$4 sm:$0xff]  }
  0x75   : > { %1539 = vmatprep.subr.bf16.mxu0 %v7944_v25  ;;  %v7942_v52 = vld [vmem:[#allocation9 + $0x104] ss:$16 sps:$4 sm:$0xff]   ;;  %v7974_v53 = vld [vmem:[#allocation7 + $0xd0] ss:$8 sps:$4 sm:$0xff]   ;;  %v7980_v56 = vld [vmem:[#allocation7 + $0xc0] ss:$8 sps:$4 sm:$0xff]  }
  0x76   : > { %798 = vmatpush1.bf16.msra.mxu1 %v7902_v13  ;;  %v7978_v54 = vld [vmem:[#allocation7 + $0xc4] ss:$8 sps:$4 sm:$0xff]   ;;  %v7946_v55 = vld [vmem:[#allocation9 + $0x100] ss:$16 sps:$4 sm:$0xff]   ;;  %v7981_v57 = vld [vmem:[#allocation7 + $0xb4] ss:$8 sps:$4 sm:$0xff]  }
  0x77   : > { %799 = vmatprep.subr.bf16.mxu1 %v7903_v16  ;;  %v9093_v58 = vld [vmem:[%s9073_s11] ss:$8 sps:$4 sm:$0xff]   ;;  %v9096_v60 = vld [vmem:[%s9073_s11 + $0x14] ss:$8 sps:$4 sm:$0xff]   ;;  %v7983_v61 = vld [vmem:[#allocation7 + $0xb0] ss:$8 sps:$4 sm:$0xff]  }
  0x78   : > { %1540 = vmatpush1.bf16.msra.mxu0 %v7947_v29  ;;  %v7987_v62 = vld [vmem:[#allocation7 + $0xa4] ss:$8 sps:$4 sm:$0xff]   ;;  %v7989_v1 = vld [vmem:[#allocation7 + $0xa0] ss:$8 sps:$4 sm:$0xff]   ;;  %v7990_v2 = vld [vmem:[#allocation7 + $0x94] ss:$8 sps:$4 sm:$0xff]  }
  0x79   : > { %1541 = vmatprep.subr.bf16.mxu0 %v7951_v30  ;;  %v9101_v5 = vld [vmem:[%s9073_s11 + $0x10] ss:$8 sps:$4 sm:$0xff]   ;;  %v9104_v6 = vld [vmem:[%s9073_s11 + $0x24] ss:$8 sps:$4 sm:$0xff]   ;;  %v7998_v11 = vld [vmem:[#allocation7 + $0x80] ss:$8 sps:$4 sm:$0xff]  }
  0x7a   : > { %800 = vmatpush1.bf16.msra.mxu1 %v7905_v18  ;;  %v7992_v7 = vld [vmem:[#allocation7 + $0x90] ss:$8 sps:$4 sm:$0xff]   ;;  %v7996_v8 = vld [vmem:[#allocation7 + $0x84] ss:$8 sps:$4 sm:$0xff]   ;;  %v9109_v14 = vld [vmem:[%s9073_s11 + $0x20] ss:$8 sps:$4 sm:$0xff]  }
  0x7b   : > { %801 = vmatprep.subr.bf16.mxu1 %v7906_v20  ;;  %v8016_v10 = vld [vmem:[#allocation9 + $0x8c] ss:$16 sps:$4 sm:$0xff]   ;;  %v8017_v16 = vld [vmem:[#allocation9 + $0x68] ss:$16 sps:$4 sm:$0xff]   ;;  %s8889_s26 = smov 64   ;;  %s8890_s28 = smov 32  }
  0x7c   : > { %1542 = vmatpush1.bf16.msra.mxu0 %v7953_v33  ;;  %v8019_v13 = vld [vmem:[#allocation9 + $0x6c] ss:$16 sps:$4 sm:$0xff]   ;;  %v8020_v18 = vld [vmem:[#allocation9 + $0x48] ss:$16 sps:$4 sm:$0xff]   ;;  %vm3661_vm1 = vcmask 523264   ;;  %vm3678_vm2 = vcmask 785408  }
  0x7d   : > { %1543 = vmatprep.subr.bf16.mxu0 %v7954_v34  ;;  %v9112_v15 = vld [vmem:[%s9073_s11 + $0x34] ss:$8 sps:$4 sm:$0xff]   ;;  %v9119_v20 = vld [vmem:[%s9073_s11 + $0x30] ss:$8 sps:$4 sm:$0xff]   ;;  %v9122_v21 = vld [vmem:[%s9073_s11 + $0x44] ss:$8 sps:$4 sm:$0xff]  }
  0x7e   : > { %802 = vmatpush1.bf16.msra.mxu1 %v7908_v22  ;;  %v8023_v22 = vld [vmem:[#allocation9 + $0x28] ss:$16 sps:$4 sm:$0xff]   ;;  %v7999_v29 = vld [vmem:[%s9073_s11 + $0x64] ss:$8 sps:$4 sm:$0xff]   ;;  %s11809_s10 = scalar_lea.vmem [#allocation12], %s6539_s2  ;;  %s6950_s14 = sshll.u32 %s8870_s21, 11 }
  0x7f   : > { %803 = vmatprep.subr.bf16.mxu1 %v7909_v23  ;;  %v8028_v23 = vld [vmem:[#allocation9 + $0xc] ss:$16 sps:$4 sm:$0xff]   ;;  %v8026_v24 = vld [vmem:[#allocation9 + $0x8] ss:$16 sps:$4 sm:$0xff]   ;;  %s6413_s27 = sshll.u32 %s11809_s10, 4  ;;  %s11861_s9 = scalar_lea.hbm %s11917_s5, %s6950_s14  ;;  %s11863_s27 = int_to_ptr.vmem [resolvable:$true] %s6413_s27 }
  0x80   : > { %1544 = vmatpush1.bf16.msra.mxu0 %v7956_v37  ;;  %v9129_v25 = vld [vmem:[%s9073_s11 + $0x40] ss:$8 sps:$4 sm:$0xff]   ;;  %v8031_v33 = vld [vmem:[#allocation9 + $0x1ec] ss:$16 sps:$4 sm:$0xff]   ;;  %s6397_s21 = scalar_lea.sflag [#allocation6], %s9067_s25  ;;  %s8790_s12 = scalar_lea.vmem %s11863_s27, 2048 }
  0x81   : > { %1545 = vmatprep.subr.bf16.mxu0 %v7960_v38  ;;  %v8001_v30 = vld [vmem:[%s9073_s11 + $0x60] ss:$8 sps:$4 sm:$0xff]   ;;  %v8037_v37 = vld [vmem:[#allocation9 + $0x1ac] ss:$16 sps:$4 sm:$0xff]   ;;  %p8791_p1 = scmp.ne.s32.totalorder %s11863_s27, %s8790_s12  ;;  %p12495_p4 = scmp.ne.s32.totalorder %s12011_s17, 0 }
  0x82   : > { %804 = vmatpush2.bf16.msra.mxu1 %v7911_v27  ;;  %v9132_v27 = vld [vmem:[%s9073_s11 + $0x54] ss:$8 sps:$4 sm:$0xff]   ;;  %v8029_v34 = vld [vmem:[#allocation9 + $0x1e8] ss:$16 sps:$4 sm:$0xff]   ;;  %s8891_s16 = smov [#allocation12]  }
  0x83   : > { %805 = vmatprep.subr.bf16.mxu1 %v7912_v28  ;;  %v7995_v28 = vld [vmem:[%s9073_s11 + $0x50] ss:$8 sps:$4 sm:$0xff]   ;;  %p8792_p6 = pnand %p8791_p1, %p12495_p4  ;;  %s8794_s2 = sshll.u32 %s8891_s16, 4  ;;  %s8795_s2 = int_to_ptr.vmem [resolvable:$false] %s8794_s2 }
  0x84   : > { %1546 = vmatpush1.bf16.msra.mxu0 %v7962_v41  ;;  %v8035_v38 = vld [vmem:[#allocation9 + $0x1a8] ss:$16 sps:$4 sm:$0xff]   ;;  %s8796_s6 = scalar_lea.vmem %s8795_s2, 4096  ;;  %p8797_p10 = scmp.lt.s32.totalorder %s11863_s27, %s8795_s2 }
  0x85   : > { %1547 = vmatprep.subr.bf16.mxu0 %v7963_v42  ;;  %v8041_v41 = vld [vmem:[#allocation9 + $0x168] ss:$16 sps:$4 sm:$0xff]   ;;  %v8046_v42 = vld [vmem:[#allocation9 + $0x14c] ss:$16 sps:$4 sm:$0xff]   ;;  %p8793_p8 = pneg %p8792_p6  ;;  %p8798_p5 = scmp.lt.s32.totalorder %s8796_s6, %s8790_s12 }
  0x86   : > { %806 = vmatpush2.bf16.msra.mxu1 %v7914_v31  ;;  %v8002_v31 = vld [vmem:[%s9073_s11 + $0x74] ss:$8 sps:$4 sm:$0xff]  }
  0x87   : > { %807 = vmatprep.subr.bf16.mxu1 %v7915_v32  ;;  %v8004_v32 = vld [vmem:[%s9073_s11 + $0x70] ss:$8 sps:$4 sm:$0xff]   ;;  %p8799_p11 = por %p8798_p5, %p8797_p10 }
  0x88   : > { %1548 = vmatpush2.bf16.msra.mxu0 %v7965_v45  ;;  %v8047_v45 = vld [vmem:[#allocation9 + $0x128] ss:$16 sps:$4 sm:$0xff]  }
  0x89   : > { %1549 = vmatprep.subr.bf16.mxu0 %v7969_v46  ;;  %v8052_v46 = vld [vmem:[#allocation9 + $0x10c] ss:$16 sps:$4 sm:$0xff]   ;;  %p8800_p2 = pnand %p8799_p11, %p8793_p8 }
  0x8a   : > { %808 = vmatpush2.bf16.msra.mxu1 %v7917_v35  ;;  %v8034_v35 = vld [vmem:[#allocation9 + $0x1cc] ss:$16 sps:$4 sm:$0xff]  }
  0x8b   : > { %809 = vmatprep.subr.bf16.mxu1 %v7918_v36  ;;  %v8032_v36 = vld [vmem:[#allocation9 + $0x1c8] ss:$16 sps:$4 sm:$0xff]  }
  0x8c   : > { %1550 = vmatpush2.bf16.msra.mxu0 %v7971_v49 }
  0x8d   : > { %1551 = vmatprep.subr.bf16.mxu0 %v7972_v50 }
  0x8e   : > { %810 = vmatpush2.bf16.msra.mxu1 %v7922_v39  ;;  %v8040_v39 = vld [vmem:[#allocation9 + $0x18c] ss:$16 sps:$4 sm:$0xff]  }
  0x8f   : > { %811 = vmatprep.subr.bf16.mxu1 %v7924_v40  ;;  %v8038_v40 = vld [vmem:[#allocation9 + $0x188] ss:$16 sps:$4 sm:$0xff]  }
  0x90   : > { %1552 = vmatpush2.bf16.msra.mxu0 %v7974_v53 }
  0x91   : > { %1553 = vmatprep.subr.bf16.mxu0 %v7978_v54 }
  0x92   : > { %812 = vmatpush2.bf16.msra.mxu1 %v7928_v43  ;;  %v8044_v43 = vld [vmem:[#allocation9 + $0x148] ss:$16 sps:$4 sm:$0xff]  }
  0x93   : > { %813 = vmatprep.subr.bf16.mxu1 %v7930_v44  ;;  %v8049_v44 = vld [vmem:[#allocation9 + $0x12c] ss:$16 sps:$4 sm:$0xff]  }
  0x94   : > { %1554 = vmatpush2.bf16.msra.mxu0 %v7980_v56 }
  0x95   : > { %1555 = vmatprep.subr.bf16.mxu0 %v7981_v57 }
  0x96   : > { %814 = vmatpush2.bf16.msra.mxu1 %v7934_v47  ;;  %v8050_v47 = vld [vmem:[#allocation9 + $0x108] ss:$16 sps:$4 sm:$0xff]  }
  0x97   : > { %815 = vmatprep.subr.bf16.mxu1 %v7936_v48 }
  0x98   : > { %1556 = vmatpush2.bf16.msra.mxu0 %v7983_v61 }
  0x99   : > { %1557 = vmatprep.subr.bf16.mxu0 %v7987_v62 }
  0x9a   : > { %816 = vmatpush2.bf16.msra.mxu1 %v7940_v51 }
  0x9b   : > { %817 = vmatprep.subr.bf16.mxu1 %v7942_v52 }
  0x9c   : > { %1558 = vmatpush2.bf16.msra.mxu0 %v7989_v1 }
  0x9d   : > { %1559 = vmatprep.subr.bf16.mxu0 %v7990_v2 }
  0x9e   : > { %818 = vmatpush2.bf16.msra.mxu1 %v7946_v55 }
  0x9f   : > { %900 = vmatprep.subr.bf16.mxu1 %v8007_v59 }
  0xa0   : > { %1560 = vmatpush2.bf16.msra.mxu0 %v7992_v7 }
  0xa1   : > { %820 = vmatmul.mubr.bf16.vlgmr.msra.gmra.mxu1 %v9093_v58  ;;  %1561 = vmatprep.subr.bf16.mxu0 %v7996_v8 }
  0xa2   : > { %829 = vmatprep.mubr.bf16.mxu1 %v9096_v60  ;;  %901 = vmatpush1.bf16.msra.mxu1 %v8005_v63 }
  0xa3   : > { %902 = vmatprep.subr.bf16.mxu1 %v8010_v0 }
  0xa4   : > { %1562 = vmatpush2.bf16.msra.mxu0 %v7998_v11 }
  0xa6   : > { %903 = vmatpush1.bf16.msra.mxu1 %v8008_v3 }
  0xa7   : > { %904 = vmatprep.subr.bf16.mxu1 %v8013_v4  ;;  %1564 = vmatmul.mubr.bf16.vlgmr.msra.gmra.mxu0 %v9093_v58 }
  0xa8   : > { %1573 = vmatprep.mubr.bf16.mxu0 %v9096_v60 }
  0xa9   : > { %830 = vmatmul.mubr.bf16.gmra.mxu1 %v9101_v5 }
  0xaa   : > { %839 = vmatprep.mubr.bf16.mxu1 %v9104_v6  ;;  %905 = vmatpush1.bf16.msra.mxu1 %v8011_v9 }
  0xab   : > { %906 = vmatprep.subr.bf16.mxu1 %v8016_v10 }
  0xae   : > { %907 = vmatpush1.bf16.msra.mxu1 %v8014_v12 }
  0xaf   : > { %908 = vmatprep.subr.bf16.mxu1 %v8019_v13  ;;  %1574 = vmatmul.mubr.bf16.gmra.mxu0 %v9101_v5 }
  0xb0   : > { %1583 = vmatprep.mubr.bf16.mxu0 %v9104_v6 }
  0xb1   : > { %840 = vmatmul.mubr.bf16.gmra.mxu1 %v9109_v14 }
  0xb2   : > { %849 = vmatprep.mubr.bf16.mxu1 %v9112_v15  ;;  %909 = vmatpush1.bf16.msra.mxu1 %v8017_v16 }
  0xb3   : > { %910 = vmatprep.subr.bf16.mxu1 %v8022_v17 }
  0xb6   : > { %911 = vmatpush1.bf16.msra.mxu1 %v8020_v18 }
  0xb7   : > { %912 = vmatprep.subr.bf16.mxu1 %v8025_v19  ;;  %1584 = vmatmul.mubr.bf16.gmra.mxu0 %v9109_v14 }
  0xb8   : > { %1593 = vmatprep.mubr.bf16.mxu0 %v9112_v15 }
  0xb9   : > { %850 = vmatmul.mubr.bf16.gmra.mxu1 %v9119_v20 }
  0xba   : > { %859 = vmatprep.mubr.bf16.mxu1 %v9122_v21  ;;  %913 = vmatpush1.bf16.msra.mxu1 %v8023_v22 }
  0xbb   : > { %914 = vmatprep.subr.bf16.mxu1 %v8028_v23 }
  0xbe   : > { %915 = vmatpush1.bf16.msra.mxu1 %v8026_v24 }
  0xbf   : > { %1594 = vmatmul.mubr.bf16.gmra.mxu0 %v9119_v20  ;;  %916 = vmatprep.subr.bf16.mxu1 %v8031_v33 }
  0xc0   : > { %1603 = vmatprep.mubr.bf16.mxu0 %v9122_v21 }
  0xc1   : > { %860 = vmatmul.mubr.bf16.gmra.mxu1 %v9129_v25 }
  0xc2   : > { %869 = vmatprep.mubr.bf16.mxu1 %v9132_v27  ;;  %917 = vmatpush2.bf16.msra.mxu1 %v8029_v34 }
  0xc3   : > { %918 = vmatprep.subr.bf16.mxu1 %v8034_v35 }
  0xc6   : > { %919 = vmatpush2.bf16.msra.mxu1 %v8032_v36 }
  0xc7   : > { %1604 = vmatmul.mubr.bf16.gmra.mxu0 %v9129_v25  ;;  %920 = vmatprep.subr.bf16.mxu1 %v8037_v37 }
  0xc8   : > { %1613 = vmatprep.mubr.bf16.mxu0 %v9132_v27 }
  0xc9   : > { %870 = vmatmul.mubr.bf16.gmra.mxu1 %v7995_v28 }
  0xca   : > { %879 = vmatprep.mubr.bf16.mxu1 %v7999_v29  ;;  %921 = vmatpush2.bf16.msra.mxu1 %v8035_v38 }
  0xcb   : > { %922 = vmatprep.subr.bf16.mxu1 %v8040_v39 }
  0xce   : > { %923 = vmatpush2.bf16.msra.mxu1 %v8038_v40 }
  0xcf   : > { %1614 = vmatmul.mubr.bf16.gmra.mxu0 %v7995_v28 }
  0xd0   : > { %1623 = vmatprep.mubr.bf16.mxu0 %v7999_v29 }
  0xd1   : > { %880 = vmatmul.mubr.bf16.gmra.mxu1 %v8001_v30 }
  0xd2   : > { %889 = vmatprep.mubr.bf16.mxu1 %v8002_v31 }
  0xd7   : > { %1624 = vmatmul.mubr.bf16.gmra.mxu0 %v8001_v30 }
  0xd8   : > { %1633 = vmatprep.mubr.bf16.mxu0 %v8002_v31 }
  0xd9   : > { %890 = vmatmul.mubr.bf16.gmra.mxu1 %v8004_v32 }
  0xda   : > { %932 = vmatprep.mubr.bf16.mxu1 %v9088_v26  ;;  %v8043_v26 = vld [vmem:[#allocation9 + $0x16c] ss:$16 sps:$4 sm:$0xff]  }
  0xdb   : > { %924 = vmatprep.subr.bf16.mxu1 %v8043_v26 }
  0xdc   : > { %925 = vmatpush2.bf16.msra.mxu1 %v8041_v41 }
  0xdd   : > { %926 = vmatprep.subr.bf16.mxu1 %v8046_v42 }
  0xdf   : > { %1634 = vmatmul.mubr.bf16.gmra.mxu0 %v8004_v32 }
  0xe0   : > { %927 = vmatpush2.bf16.msra.mxu1 %v8044_v43 }
  0xe1   : > { %928 = vmatprep.subr.bf16.mxu1 %v8049_v44 }
  0xe4   : > { %929 = vmatpush2.bf16.msra.mxu1 %v8047_v45 }
  0xe5   : > { %930 = vmatprep.subr.bf16.mxu1 %v8052_v46 }
  0xe8   : > { %931 = vmatpush2.bf16.msra.mxu1 %v8050_v47 }
  0xeb   : > { %933 = vmatmul.mubr.bf16.vlgmr.msra.gmra.mxu1 %v9093_v58 }
  0xec   : > { %942 = vmatprep.mubr.bf16.mxu1 %v9096_v60 }
  0xf3   : > { %943 = vmatmul.mubr.bf16.gmra.mxu1 %v9101_v5 }
  0xf4   : > { %952 = vmatprep.mubr.bf16.mxu1 %v9104_v6 }
  0xfb   : > { %953 = vmatmul.mubr.bf16.gmra.mxu1 %v9109_v14 }
  0xfc   : > { %962 = vmatprep.mubr.bf16.mxu1 %v9112_v15 }
 0x103   : > { %963 = vmatmul.mubr.bf16.gmra.mxu1 %v9119_v20 }
 0x104   : > { %972 = vmatprep.mubr.bf16.mxu1 %v9122_v21 }
 0x10b   : > { %973 = vmatmul.mubr.bf16.gmra.mxu1 %v9129_v25 }
 0x10c   : > { %982 = vmatprep.mubr.bf16.mxu1 %v9132_v27 }
 0x113   : > { %983 = vmatmul.mubr.bf16.gmra.mxu1 %v7995_v28 }
 0x114   : > { %992 = vmatprep.mubr.bf16.mxu1 %v7999_v29 }
 0x11b   : > { %993 = vmatmul.mubr.bf16.gmra.mxu1 %v8001_v30 }
 0x11c   : > { %1002 = vmatprep.mubr.bf16.mxu1 %v8002_v31 }
 0x123   : > { %1003 = vmatmul.mubr.bf16.gmra.mxu1 %v8004_v32 }
 0x161   : > { %v821_v48 = vpop.f32.mrf.mxu1 }
 0x163   : > { %v823_v49 = vpop.f32.mrf.mxu1 }
 0x164   : > { %v6902_v50 = vpack.c.bf16 %v823_v49, %v821_v48 }
 0x165   : > { %v825_v51 = vpop.f32.mrf.mxu1 }
 0x166   : > { %1205 = vst [vmem:[#allocation2] sm:$0xff] %v6902_v50 }
 0x167   : > { %v827_v52 = vpop.f32.mrf.mxu1  ;;  %v1565_v61 = vpop.f32.mrf.mxu0 }
 0x168   : > { %v6904_v53 = vpack.c.bf16 %v827_v52, %v825_v51 }
 0x169   : > { %v831_v54 = vpop.f32.mrf.mxu1  ;;  %v9158_v63 = vpop.f32.mrf.mxu0 }
 0x16a   : > { %1207 = vst [vmem:[#allocation2 + $0x10] sm:$0xff] %v6904_v53  ;;  %12015 = vst [vmem:[#allocation17_spill] sm:$0xff] %v9158_v63 }
 0x16b   : > { %v833_v55 = vpop.f32.mrf.mxu1  ;;  %v1569_v2 = vpop.f32.mrf.mxu0 }
 0x16c   : > { %v6906_v56 = vpack.c.bf16 %v833_v55, %v831_v54  ;;  %v9160_v3 = vpack.c.bf16 %v1569_v2, %v1565_v61 }
 0x16d   : > { %v835_v57 = vpop.f32.mrf.mxu1  ;;  %v9162_v5 = vpop.f32.mrf.mxu0 }
 0x16e   : > { %1209 = vst [vmem:[#allocation2 + $0x20] sm:$0xff] %v6906_v56  ;;  %12016 = vst [vmem:[#allocation18_spill] sm:$0xff] %v9162_v5  ;;  %7223 = vmatprep.mubr.msk.bf16.mxu1 %vm1732_vm0, %v9160_v3 }
 0x16f   : > { %v837_v58 = vpop.f32.mrf.mxu1  ;;  %v9166_v8 = vpop.f32.mrf.mxu0 }
 0x170   : > { %v6908_v59 = vpack.c.bf16 %v837_v58, %v835_v57 }
 0x171   : > { %v841_v60 = vpop.f32.mrf.mxu1  ;;  %v9168_v10 = vpop.f32.mrf.mxu0  ;;  %v9210_v57 = vld [vmem:[#allocation2] ss:$16 sps:$4 sm:$0xff]  }
 0x172   : > { %1211 = vst [vmem:[#allocation2 + $0x30] sm:$0xff] %v6908_v59  ;;  %12017 = vst [vmem:[#allocation19_spill] sm:$0xff] %v9168_v10 }
 0x173   : > { %v843_v62 = vpop.f32.mrf.mxu1  ;;  %v9170_v13 = vpop.f32.mrf.mxu0 }
 0x174   : > { %v6910_v0 = vpack.c.bf16 %v843_v62, %v841_v60 }
 0x175   : > { %v845_v1 = vpop.f32.mrf.mxu1  ;;  %v9172_v15 = vpop.f32.mrf.mxu0 }
 0x176   : > { %1213 = vst [vmem:[#allocation2 + $0x40] sm:$0xff] %v6910_v0  ;;  %12018 = vst [vmem:[#allocation20_spill] sm:$0xff] %v9172_v15 }
 0x177   : > { %v847_v4 = vpop.f32.mrf.mxu1  ;;  %v9174_v18 = vpop.f32.mrf.mxu0 }
 0x178   : > { %v6912_v6 = vpack.c.bf16 %v847_v4, %v845_v1 }
 0x179   : > { %v851_v7 = vpop.f32.mrf.mxu1  ;;  %v9176_v20 = vpop.f32.mrf.mxu0 }
 0x17a   : > { %1215 = vst [vmem:[#allocation2 + $0x50] sm:$0xff] %v6912_v6  ;;  %12019 = vst [vmem:[#allocation21_spill] sm:$0xff] %v9176_v20 }
 0x17b   : > { %v853_v9 = vpop.f32.mrf.mxu1  ;;  %v9178_v23 = vpop.f32.mrf.mxu0 }
 0x17c   : > { %v6914_v11 = vpack.c.bf16 %v853_v9, %v851_v7  ;;  %v9238_v2 = vpack.c.bf16 %v9178_v23, %v9174_v18  ;;  %v9245_v7 = vld [vmem:[#allocation2 + $0x20] ss:$16 sps:$4 sm:$0xff]  }
 0x17d   : > { %v855_v12 = vpop.f32.mrf.mxu1  ;;  %v9180_v25 = vpop.f32.mrf.mxu0 }
 0x17e   : > { %1217 = vst [vmem:[#allocation2 + $0x60] sm:$0xff] %v6914_v11  ;;  %12020 = vst [vmem:[#allocation22_spill] sm:$0xff] %v9180_v25  ;;  %v9257_v11 = vpack.c.bf16 %v9170_v13, %v9166_v8 }
 0x17f   : > { %v857_v14 = vpop.f32.mrf.mxu1  ;;  %v9182_v29 = vpop.f32.mrf.mxu0 }
 0x180   : > { %v6916_v16 = vpack.c.bf16 %v857_v14, %v855_v12 }
 0x181   : > { %v861_v17 = vpop.f32.mrf.mxu1  ;;  %v9184_v31 = vpop.f32.mrf.mxu0  ;;  %v9206_v55 = vld [vmem:[#allocation2 + $0x40] ss:$16 sps:$4 sm:$0xff]  }
 0x182   : > { %1219 = vst [vmem:[#allocation2 + $0x70] sm:$0xff] %v6916_v16  ;;  %12021 = vst [vmem:[#allocation23_spill] sm:$0xff] %v9184_v31 }
 0x183   : > { %v863_v19 = vpop.f32.mrf.mxu1  ;;  %v9186_v34 = vpop.f32.mrf.mxu0 }
 0x184   : > { %v6918_v21 = vpack.c.bf16 %v863_v19, %v861_v17 }
 0x185   : > { %v865_v22 = vpop.f32.mrf.mxu1  ;;  %v9188_v37 = vpop.f32.mrf.mxu0 }
 0x186   : > { %1221 = vst [vmem:[#allocation2 + $0x80] sm:$0xff] %v6918_v21  ;;  %12022 = vst [vmem:[#allocation24_spill] sm:$0xff] %v9188_v37 }
 0x187   : > { %v867_v24 = vpop.f32.mrf.mxu1  ;;  %v9190_v26 = vpop.f32.mrf.mxu0 }
 0x188   : > { %v6920_v27 = vpack.c.bf16 %v867_v24, %v865_v22  ;;  %v9286_v22 = vpack.c.bf16 %v9186_v34, %v9182_v29 }
 0x189   : > { %v871_v28 = vpop.f32.mrf.mxu1  ;;  %v9192_v44 = vpop.f32.mrf.mxu0  ;;  %v8059_v1 = vld [vmem:[#allocation2 + $0x60] ss:$16 sps:$4 sm:$0xff]  }
 0x18a   : > { %1223 = vst [vmem:[#allocation2 + $0x90] sm:$0xff] %v6920_v27  ;;  %12023 = vst [vmem:[#allocation25_spill] sm:$0xff] %v9192_v44 }
 0x18b   : > { %v873_v30 = vpop.f32.mrf.mxu1  ;;  %v9198_v49 = vpop.f32.mrf.mxu0 }
 0x18c   : > { %v6922_v32 = vpack.c.bf16 %v873_v30, %v871_v28  ;;  %v9293_v30 = vpack.c.bf16 %v9198_v49, %v9190_v26 }
 0x18d   : > { %v875_v33 = vpop.f32.mrf.mxu1  ;;  %v9204_v54 = vpop.f32.mrf.mxu0 }
 0x18e   : > { %1225 = vst [vmem:[#allocation2 + $0xa0] sm:$0xff] %v6922_v32  ;;  %12024 = vst [vmem:[#allocation26_spill] sm:$0xff] %v9204_v54  ;;  %v1767_v32 = vsel %vm1732_vm0, %v8059_v1, 0 }
 0x18f   : > { %v877_v35 = vpop.f32.mrf.mxu1  ;;  %v1615_v56 = vpop.f32.mrf.mxu0 }
 0x190   : > { %v6924_v36 = vpack.c.bf16 %v877_v35, %v875_v33 }
 0x191   : > { %v881_v38 = vpop.f32.mrf.mxu1  ;;  %v9200_v51 = vld [vmem:[#allocation2 + $0x80] ss:$16 sps:$4 sm:$0xff]   ;;  %v9214_v58 = vpop.f32.mrf.mxu0 }
 0x192   : > { %1227 = vst [vmem:[#allocation2 + $0xb0] sm:$0xff] %v6924_v36  ;;  %12025 = vst [vmem:[#allocation27_spill] sm:$0xff] %v9214_v58  ;;  %v1770_v17 = vsel %vm1732_vm0, %v9200_v51, 0 }
 0x193   : > { %v883_v39 = vpop.f32.mrf.mxu1  ;;  %v1619_v62 = vpop.f32.mrf.mxu0 }
 0x194   : > { %v6926_v40 = vpack.c.bf16 %v883_v39, %v881_v38  ;;  %v9259_v12 = vpack.c.bf16 %v1619_v62, %v1615_v56 }
 0x195   : > { %v885_v41 = vpop.f32.mrf.mxu1  ;;  %v9234_v0 = vpop.f32.mrf.mxu0 }
 0x196   : > { %1229 = vst [vmem:[#allocation2 + $0xc0] sm:$0xff] %v6926_v40  ;;  %12026 = vst [vmem:[#allocation28_spill] sm:$0xff] %v9234_v0 }
 0x197   : > { %v887_v42 = vpop.f32.mrf.mxu1  ;;  %v1625_v6 = vpop.f32.mrf.mxu0 }
 0x198   : > { %v6928_v43 = vpack.c.bf16 %v887_v42, %v885_v41  ;;  %v1764_v42 = vsel %vm1732_vm0, %v9206_v55, 0 }
 0x199   : > { %v891_v45 = vpop.f32.mrf.mxu1  ;;  %v9194_v46 = vld [vmem:[#allocation2 + $0xa0] ss:$16 sps:$4 sm:$0xff]   ;;  %v9253_v9 = vpop.f32.mrf.mxu0 }
 0x19a   : > { %1231 = vst [vmem:[#allocation2 + $0xd0] sm:$0xff] %v6928_v43  ;;  %2217 = vrot.lane.b32.xlu1 %v9194_v46, %s8888_s1  ;;  %12027 = vst [vmem:[#allocation29_spill] sm:$0xff] %v9253_v9  ;;  %v1773_v14 = vsel %vm1732_vm0, %v9194_v46, 0 }
 0x19b   : > { %v893_v47 = vpop.f32.mrf.mxu1  ;;  %v1629_v16 = vpop.f32.mrf.mxu0 }
 0x19c   : > { %v6930_v48 = vpack.c.bf16 %v893_v47, %v891_v45  ;;  %v9273_v8 = vpack.c.bf16 %v1629_v16, %v1625_v6 }
 0x19d   : > { %v895_v50 = vpop.f32.mrf.mxu1  ;;  %v9281_v18 = vpop.f32.mrf.mxu0 }
 0x19e   : > { %1233 = vst [vmem:[#allocation2 + $0xe0] sm:$0xff] %v6930_v48  ;;  %2215 = vrot.lane.b32.xlu1 %v9200_v51, %s8888_s1  ;;  %12028 = vst [vmem:[#allocation30_spill] sm:$0xff] %v9281_v18 }
 0x19f   : > { %v897_v52 = vpop.f32.mrf.mxu1  ;;  %v1635_v24 = vpop.f32.mrf.mxu0 }
 0x1a0   : > { %v6932_v53 = vpack.c.bf16 %v897_v52, %v895_v50  ;;  %v1761_v52 = vsel %vm1732_vm0, %v9245_v7, 0 }
 0x1a1   : > { %v9226_v61 = vld [vmem:[#allocation2 + $0xc0] ss:$16 sps:$4 sm:$0xff]   ;;  %v9300_v33 = vpop.f32.mrf.mxu0 }
 0x1a2   : > { %1235 = vst [vmem:[#allocation2 + $0xf0] sm:$0xff] %v6932_v53  ;;  %2211 = vrot.lane.b32.xlu1 %v9206_v55, %s8888_s1  ;;  %v1776_v4 = vsel %vm1732_vm0, %v9226_v61, 0  ;;  %12029 = vst [vmem:[#allocation31_spill] sm:$0xff] %v9300_v33 }
 0x1a3   : > { %v1639_v38 = vpop.f32.mrf.mxu0 }
 0x1a4   : > { %v9312_v26 = vpack.c.bf16 %v1639_v38, %v1635_v24 }
 0x1a6   : > { %2207 = vrot.lane.b32.xlu1 %v9210_v57, %s8888_s1  ;;  %12030 = vst [vmem:[#allocation32_spill] sm:$0xff] %v9312_v26 }
 0x1a9   : > { %v9216_v59 = vld [vmem:[#allocation2 + $0xe0] ss:$16 sps:$4 sm:$0xff]  }
 0x1aa   : > { %2679 = vrot.lane.b32.xlu1 %v9216_v59, %s8889_s26  ;;  %2221 = vrot.lane.b32.xlu0 %v9216_v59, %s8888_s1  ;;  %v1779_v60 = vsel %vm1732_vm0, %v9216_v59, 0 }
 0x1ab   : > { %7719 = vmatprep.subr.msk.bf16.mxu1 %vm1732_vm0, %v9216_v59  ;;  %v934_v13 = vpop.f32.mrf.mxu1 }
 0x1ac   : > { %7208 = vmatpush3.bf16.xpose.msra.mxu1 %v1779_v60 }
 0x1ad   : > { %7720 = vmatprep.subr.msk.bf16.mxu1 %vm1732_vm0, %v9226_v61  ;;  %v936_v19 = vpop.f32.mrf.mxu1 }
 0x1ae   : > { %2677 = vrot.lane.b32.xlu1 %v9226_v61, %s8889_s26  ;;  %2219 = vrot.lane.b32.xlu0 %v9226_v61, %s8888_s1  ;;  %v6903_v21 = vpack.c.bf16 %v936_v19, %v934_v13 }
 0x1af   : > { %v938_v23 = vpop.f32.mrf.mxu1 }
 0x1b0   : > { %1206 = vst [vmem:[#allocation2 + $0x8] sm:$0xff] %v6903_v21 }
 0x1b1   : > { %v940_v27 = vpop.f32.mrf.mxu1 }
 0x1b2   : > { %2673 = vrot.lane.b32.xlu1 %v9200_v51, %s8889_s26  ;;  %2213 = vrot.lane.b32.xlu0 %v8059_v1, %s8888_s1  ;;  %v6905_v28 = vpack.c.bf16 %v940_v27, %v938_v23 }
 0x1b3   : > { %v944_v29 = vpop.f32.mrf.mxu1 }
 0x1b4   : > { %7210 = vmatpush3.bf16.xpose.msra.mxu1 %v1776_v4  ;;  %1208 = vst [vmem:[#allocation2 + $0x18] sm:$0xff] %v6905_v28 }
 0x1b5   : > { %7721 = vmatprep.subr.msk.bf16.mxu1 %vm1732_vm0, %v9194_v46  ;;  %v946_v34 = vpop.f32.mrf.mxu1 }
 0x1b6   : > { %2195 = vrot.lane.b32.xlu1 %v9238_v2, %s8888_s1  ;;  %2209 = vrot.lane.b32.xlu0 %v9245_v7, %s8888_s1  ;;  %v6907_v35 = vpack.c.bf16 %v946_v34, %v944_v29 }
 0x1b7   : > { %v948_v36 = vpop.f32.mrf.mxu1 }
 0x1b8   : > { %1210 = vst [vmem:[#allocation2 + $0x28] sm:$0xff] %v6907_v35 }
 0x1b9   : > { %v950_v39 = vpop.f32.mrf.mxu1 }
 0x1ba   : > { %2669 = vrot.lane.b32.xlu1 %v9206_v55, %s8889_s26  ;;  %2191 = vrot.lane.b32.xlu0 %v9160_v3, %s8888_s1  ;;  %v6909_v40 = vpack.c.bf16 %v950_v39, %v948_v36 }
 0x1bb   : > { %v954_v41 = vpop.f32.mrf.mxu1  ;;  %v9336_v6 = vld [vmem:[#allocation2 + $0x8] ss:$16 sps:$4 sm:$0xff]  }
 0x1bc   : > { %7212 = vmatpush3.bf16.xpose.msra.mxu1 %v1773_v14  ;;  %1212 = vst [vmem:[#allocation2 + $0x38] sm:$0xff] %v6909_v40 }
 0x1bd   : > { %7722 = vmatprep.subr.msk.bf16.mxu1 %vm1732_vm0, %v9200_v51  ;;  %v956_v43 = vpop.f32.mrf.mxu1 }
 0x1be   : > { %2201 = vrot.lane.b32.xlu1 %v9259_v12, %s8888_s1  ;;  %2193 = vrot.lane.b32.xlu0 %v9257_v11, %s8888_s1  ;;  %v6911_v45 = vpack.c.bf16 %v956_v43, %v954_v41 }
 0x1bf   : > { %v958_v47 = vpop.f32.mrf.mxu1 }
 0x1c0   : > { %1214 = vst [vmem:[#allocation2 + $0x48] sm:$0xff] %v6911_v45 }
 0x1c1   : > { %v960_v48 = vpop.f32.mrf.mxu1 }
 0x1c2   : > { %2203 = vrot.lane.b32.xlu1 %v9273_v8, %s8888_s1  ;;  %2675 = vrot.lane.b32.xlu0 %v9194_v46, %s8889_s26  ;;  %v6913_v49 = vpack.c.bf16 %v960_v48, %v958_v47 }
 0x1c3   : > { %v964_v50 = vpop.f32.mrf.mxu1  ;;  %v9350_v19 = vld [vmem:[#allocation2 + $0x28] ss:$16 sps:$4 sm:$0xff]  }
 0x1c4   : > { %7214 = vmatpush3.bf16.xpose.msra.mxu1 %v1770_v17  ;;  %1216 = vst [vmem:[#allocation2 + $0x58] sm:$0xff] %v6913_v49 }
 0x1c5   : > { %7723 = vmatprep.subr.msk.bf16.mxu1 %vm1732_vm0, %v8059_v1  ;;  %v966_v53 = vpop.f32.mrf.mxu1 }
 0x1c6   : > { %2665 = vrot.lane.b32.xlu1 %v9210_v57, %s8889_s26  ;;  %2671 = vrot.lane.b32.xlu0 %v8059_v1, %s8889_s26  ;;  %v1758_v1 = vsel %vm1732_vm0, %v9210_v57, 0 }
 0x1c7   : > { %v968_v56 = vpop.f32.mrf.mxu1 }
 0x1ca   : > { %2651 = vrot.lane.b32.xlu1 %v9257_v11, %s8889_s26  ;;  %2197 = vrot.lane.b32.xlu0 %v9286_v22, %s8888_s1 }
 0x1cb   : > { %v8063_v23 = vld [vmem:[#allocation2 + $0x48] ss:$16 sps:$4 sm:$0xff]  }
 0x1cc   : > { %7216 = vmatpush3.bf16.xpose.msra.mxu1 %v1767_v32 }
 0x1cd   : > { %7724 = vmatprep.subr.msk.bf16.mxu1 %vm1732_vm0, %v9206_v55  ;;  %v6915_v55 = vpack.c.bf16 %v966_v53, %v964_v50 }
 0x1ce   : > { %2655 = vrot.lane.b32.xlu1 %v9286_v22, %s8889_s26  ;;  %2199 = vrot.lane.b32.xlu0 %v9293_v30, %s8888_s1 }
 0x1cf   : > { %1218 = vst [vmem:[#allocation2 + $0x68] sm:$0xff] %v6915_v55 }
 0x1d2   : > { %2659 = vrot.lane.b32.xlu1 %v9259_v12, %s8889_s26  ;;  %2667 = vrot.lane.b32.xlu0 %v9245_v7, %s8889_s26 }
 0x1d4   : > { %7218 = vmatpush3.bf16.xpose.msra.mxu1 %v1764_v42 }
 0x1d5   : > { %7725 = vmatprep.subr.msk.bf16.mxu1 %vm1732_vm0, %v9245_v7 }
 0x1d6   : > { %2663 = vrot.lane.b32.xlu1 %v9312_v26, %s8889_s26  ;;  %2205 = vrot.lane.b32.xlu0 %v9312_v26, %s8888_s1 }
 0x1da   : > { %3133 = vrot.lane.b32.xlu1 %v9194_v46, %s8890_s28  ;;  %2649 = vrot.lane.b32.xlu0 %v9160_v3, %s8889_s26  ;;  %v970_v46 = vpop.f32.mrf.mxu1 }
 0x1db   : > { %v6917_v60 = vpack.c.bf16 %v970_v46, %v968_v56 }
 0x1dc   : > { %7220 = vmatpush3.bf16.xpose.msra.mxu1 %v1761_v52  ;;  %v974_v62 = vpop.f32.mrf.mxu1 }
 0x1dd   : > { %7726 = vmatprep.subr.msk.bf16.mxu1 %vm1732_vm0, %v9210_v57  ;;  %1220 = vst [vmem:[#allocation2 + $0x78] sm:$0xff] %v6917_v60 }
 0x1de   : > { %2653 = vrot.lane.b32.xlu0 %v9238_v2, %s8889_s26  ;;  %v976_v4 = vpop.f32.mrf.mxu1  ;;  %2488 = vrot.lane.b32.xlu1 %v9336_v6, %s8888_s1 }
 0x1df   : > { %v6919_v7 = vpack.c.bf16 %v976_v4, %v974_v62 }
 0x1e0   : > { %v978_v14 = vpop.f32.mrf.mxu1 }
 0x1e1   : > { %1222 = vst [vmem:[#allocation2 + $0x88] sm:$0xff] %v6919_v7 }
 0x1e2   : > { %2657 = vrot.lane.b32.xlu0 %v9293_v30, %s8889_s26  ;;  %v980_v16 = vpop.f32.mrf.mxu1  ;;  %2946 = vrot.lane.b32.xlu1 %v9336_v6, %s8889_s26 }
 0x1e3   : > { %v6921_v13 = vpack.c.bf16 %v980_v16, %v978_v14 }
 0x1e4   : > { %7222 = vmatpush3.bf16.xpose.msra.mxu1 %v1758_v1  ;;  %v984_v57 = vpop.f32.mrf.mxu1 }
 0x1e5   : > { %1224 = vst [vmem:[#allocation2 + $0x98] sm:$0xff] %v6921_v13 }
 0x1e6   : > { %2661 = vrot.lane.b32.xlu0 %v9273_v8, %s8889_s26  ;;  %v986_v17 = vpop.f32.mrf.mxu1  ;;  %2948 = vrot.lane.b32.xlu1 %v9350_v19, %s8889_s26 }
 0x1e7   : > { %v6923_v21 = vpack.c.bf16 %v986_v17, %v984_v57 }
 0x1e9   : > { %1226 = vst [vmem:[#allocation2 + $0xa8] sm:$0xff] %v6923_v21 }
 0x1ea   : > { %3135 = vrot.lane.b32.xlu0 %v9226_v61, %s8890_s28  ;;  %v988_v61 = vpop.f32.mrf.mxu1  ;;  %2492 = vrot.lane.b32.xlu1 %v8063_v23, %s8888_s1 }
 0x1eb   : > { %7224 = vmatmul.mubr.msk.bf16.vlgmr.msra.gmra.mxu1 %vm1732_vm0, %v9257_v11 }
 0x1ec   : > { %7227 = vmatprep.mubr.msk.bf16.mxu1 %vm1732_vm0, %v9238_v2  ;;  %v990_v24 = vpop.f32.mrf.mxu1  ;;  %v9370_v38 = vld [vmem:[#allocation2 + $0x88] ss:$16 sps:$4 sm:$0xff]  }
 0x1ed   : > { %v6925_v27 = vpack.c.bf16 %v990_v24, %v988_v61  ;;  %12032 = vst [vmem:[#allocation34_spill] sm:$0xff] %v9370_v38 }
 0x1ee   : > { %3131 = vrot.lane.b32.xlu0 %v9200_v51, %s8890_s28  ;;  %v994_v28 = vpop.f32.mrf.mxu1  ;;  %2950 = vrot.lane.b32.xlu1 %v8063_v23, %s8889_s26 }
 0x1ef   : > { %1228 = vst [vmem:[#allocation2 + $0xb8] sm:$0xff] %v6925_v27 }
 0x1f0   : > { %v996_v51 = vpop.f32.mrf.mxu1 }
 0x1f1   : > { %v6927_v29 = vpack.c.bf16 %v996_v51, %v994_v28 }
 0x1f2   : > { %3137 = vrot.lane.b32.xlu0 %v9216_v59, %s8890_s28  ;;  %v998_v32 = vpop.f32.mrf.mxu1  ;;  %v9366_v59 = vld [vmem:[#allocation2 + $0x68] ss:$16 sps:$4 sm:$0xff]  }
 0x1f3   : > { %7228 = vmatmul.mubr.msk.bf16.gmra.mxu1 %vm1732_vm0, %v9286_v22  ;;  %1230 = vst [vmem:[#allocation2 + $0xc8] sm:$0xff] %v6927_v29  ;;  %12031 = vst [vmem:[#allocation33_spill] sm:$0xff] %v9366_v59  ;;  %2952 = vrot.lane.b32.xlu1 %v9366_v59, %s8889_s26 }
 0x1f4   : > { %7231 = vmatprep.mubr.msk.bf16.mxu1 %vm1732_vm0, %v9293_v30  ;;  %v1000_v34 = vpop.f32.mrf.mxu1 }
 0x1f5   : > { %v6929_v35 = vpack.c.bf16 %v1000_v34, %v998_v32 }
 0x1f6   : > { %2490 = vrot.lane.b32.xlu0 %v9350_v19, %s8888_s1  ;;  %v1004_v36 = vpop.f32.mrf.mxu1  ;;  %v9380_v42 = vld [vmem:[#allocation2 + $0xa8] ss:$16 sps:$4 sm:$0xff]  }
 0x1f7   : > { %1232 = vst [vmem:[#allocation2 + $0xd8] sm:$0xff] %v6929_v35  ;;  %2496 = vrot.lane.b32.xlu1 %v9370_v38, %s8888_s1  ;;  %12033 = vst [vmem:[#allocation35_spill] sm:$0xff] %v9380_v42 }
 0x1f8   : > { %v1006_v39 = vpop.f32.mrf.mxu1 }
 0x1f9   : > { %v6931_v40 = vpack.c.bf16 %v1006_v39, %v1004_v36 }
 0x1fa   : > { %2494 = vrot.lane.b32.xlu0 %v9366_v59, %s8888_s1  ;;  %v1008_v41 = vpop.f32.mrf.mxu1 }
 0x1fb   : > { %7232 = vmatmul.mubr.msk.bf16.gmra.mxu1 %vm1732_vm0, %v9259_v12  ;;  %1234 = vst [vmem:[#allocation2 + $0xe8] sm:$0xff] %v6931_v40  ;;  %2954 = vrot.lane.b32.xlu1 %v9370_v38, %s8889_s26 }
 0x1fc   : > { %7235 = vmatprep.mubr.msk.bf16.mxu1 %vm1732_vm0, %v9273_v8  ;;  %v1010_v43 = vpop.f32.mrf.mxu1 }
 0x1fd   : > { %v6933_v45 = vpack.c.bf16 %v1010_v43, %v1008_v41 }
 0x1fe   : > { %2956 = vrot.lane.b32.xlu0 %v9380_v42, %s8889_s26  ;;  %v9390_v47 = vld [vmem:[#allocation2 + $0xc8] ss:$16 sps:$4 sm:$0xff]  }
 0x1ff   : > { %1236 = vst [vmem:[#allocation2 + $0xf8] sm:$0xff] %v6933_v45  ;;  %2498 = vrot.lane.b32.xlu1 %v9380_v42, %s8888_s1  ;;  %12034 = vst [vmem:[#allocation36_spill] sm:$0xff] %v9390_v47 }
 0x202   : > { %2500 = vrot.lane.b32.xlu0 %v9390_v47, %s8888_s1 }
 0x203   : > { %7236 = vmatmul.mubr.msk.bf16.gmra.mxu1 %vm1732_vm0, %v9312_v26  ;;  %2958 = vrot.lane.b32.xlu1 %v9390_v47, %s8889_s26 }
 0x206   : > { %v9396_v48 = vld [vmem:[#allocation2 + $0xe8] ss:$16 sps:$4 sm:$0xff]  }
 0x207   : > { %7239 = vmatprep.subr.bf16.mxu1 %v9396_v48  ;;  %2960 = vrot.lane.b32.xlu0 %v9396_v48, %s8889_s26 }
 0x208   : > { %7240 = vmatpush3.bf16.msra.mxu1 %v9396_v48  ;;  %2502 = vrot.lane.b32.xlu1 %v9396_v48, %s8888_s1 }
 0x209   : > { %7241 = vmatprep.subr.bf16.mxu1 %v9390_v47 }
 0x20c   : > { %7242 = vmatpush3.bf16.msra.mxu1 %v9390_v47  ;;  %v2218_v53 = vpop.permute.xlu1 %2217 }
 0x20d   : > { %7243 = vmatprep.subr.bf16.mxu1 %v9380_v42  ;;  %v2263_v4 = vsel %vm1732_vm0, %v2218_v53, 0 }
 0x210   : > { %7244 = vmatpush3.bf16.msra.mxu1 %v9380_v42  ;;  %v2216_v46 = vpop.permute.xlu1 %2215 }
 0x211   : > { %7245 = vmatprep.subr.bf16.mxu1 %v9370_v38  ;;  %v2260_v14 = vsel %vm1732_vm0, %v2216_v46, 0 }
 0x214   : > { %7246 = vmatpush3.bf16.msra.mxu1 %v9370_v38  ;;  %v2212_v1 = vpop.permute.xlu1 %2211 }
 0x215   : > { %7247 = vmatprep.subr.bf16.mxu1 %v9366_v59  ;;  %v2254_v17 = vsel %vm1732_vm0, %v2212_v1, 0 }
 0x218   : > { %7248 = vmatpush3.bf16.msra.mxu1 %v9366_v59  ;;  %v2208_v7 = vpop.permute.xlu1 %2207 }
 0x219   : > { %7249 = vmatprep.subr.bf16.mxu1 %v8063_v23  ;;  %v2248_v27 = vsel %vm1732_vm0, %v2208_v7, 0 }
 0x21c   : > { %v2222_v49 = vpop.permute.xlu0 %2221  ;;  %7250 = vmatpush3.bf16.msra.mxu1 %v8063_v23  ;;  %v2680_v16 = vpop.permute.xlu1 %2679 }
 0x21d   : > { %7727 = vmatprep.subr.msk.bf16.mxu0 %vm1732_vm0, %v2222_v49  ;;  %v2269_v50 = vsel %vm1732_vm0, %v2222_v49, 0  ;;  %7251 = vmatprep.subr.bf16.mxu1 %v9350_v19  ;;  %v2727_v34 = vsel %vm1732_vm0, %v2680_v16, 0 }
 0x21e   : > { %7272 = vmatpush3.bf16.xpose.msra.mxu0 %v2269_v50 }
 0x220   : > { %v2220_v52 = vpop.permute.xlu0 %2219  ;;  %7252 = vmatpush3.bf16.msra.mxu1 %v9350_v19 }
 0x221   : > { %7728 = vmatprep.subr.msk.bf16.mxu0 %vm1732_vm0, %v2220_v52  ;;  %v2266_v56 = vsel %vm1732_vm0, %v2220_v52, 0  ;;  %7253 = vmatprep.subr.bf16.mxu1 %v9336_v6 }
 0x224   : > { %v2214_v55 = vpop.permute.xlu0 %2213  ;;  %7254 = vmatpush3.bf16.msra.mxu1 %v9336_v6  ;;  %v2678_v6 = vpop.permute.xlu1 %2677 }
 0x225   : > { %v2257_v13 = vsel %vm1732_vm0, %v2214_v55, 0  ;;  %v2724_v39 = vsel %vm1732_vm0, %v2678_v6, 0 }
 0x226   : > { %7274 = vmatpush3.bf16.xpose.msra.mxu0 %v2266_v56 }
 0x227   : > { %7729 = vmatprep.subr.msk.bf16.mxu0 %vm1732_vm0, %v2218_v53 }
 0x228   : > { %v2210_v60 = vpop.permute.xlu0 %2209  ;;  %v2674_v57 = vpop.permute.xlu1 %2673 }
 0x229   : > { %v2251_v61 = vsel %vm1732_vm0, %v2210_v60, 0  ;;  %v2718_v53 = vsel %vm1732_vm0, %v2674_v57, 0 }
 0x22c   : > { %v2192_v62 = vpop.permute.xlu0 %2191  ;;  %v2196_v19 = vpop.permute.xlu1 %2195 }
 0x22d   : > { %7287 = vmatprep.mubr.msk.bf16.mxu0 %vm1732_vm0, %v2192_v62 }
 0x22e   : > { %7276 = vmatpush3.bf16.xpose.msra.mxu0 %v2263_v4 }
 0x22f   : > { %7730 = vmatprep.subr.msk.bf16.mxu0 %vm1732_vm0, %v2216_v46 }
 0x230   : > { %v2194_v21 = vpop.permute.xlu0 %2193  ;;  %v2670_v23 = vpop.permute.xlu1 %2669 }
 0x234   : > { %v2676_v24 = vpop.permute.xlu0 %2675  ;;  %v2202_v28 = vpop.permute.xlu1 %2201 }
 0x235   : > { %v2721_v43 = vsel %vm1732_vm0, %v2676_v24, 0 }
 0x236   : > { %7278 = vmatpush3.bf16.xpose.msra.mxu0 %v2260_v14 }
 0x237   : > { %7731 = vmatprep.subr.msk.bf16.mxu0 %vm1732_vm0, %v2214_v55 }
 0x238   : > { %v2672_v51 = vpop.permute.xlu0 %2671  ;;  %v2204_v29 = vpop.permute.xlu1 %2203 }
 0x239   : > { %v2715_v56 = vsel %vm1732_vm0, %v2672_v51, 0 }
 0x23c   : > { %v2198_v32 = vpop.permute.xlu0 %2197  ;;  %v2666_v35 = vpop.permute.xlu1 %2665 }
 0x23d   : > { %v2706_v14 = vsel %vm1732_vm0, %v2666_v35, 0 }
 0x23e   : > { %7280 = vmatpush3.bf16.xpose.msra.mxu0 %v2257_v13 }
 0x23f   : > { %7732 = vmatprep.subr.msk.bf16.mxu0 %vm1732_vm0, %v2212_v1 }
 0x240   : > { %v2200_v36 = vpop.permute.xlu0 %2199  ;;  %v2652_v40 = vpop.permute.xlu1 %2651 }
 0x244   : > { %v2668_v41 = vpop.permute.xlu0 %2667  ;;  %v2656_v45 = vpop.permute.xlu1 %2655 }
 0x245   : > { %v2709_v4 = vsel %vm1732_vm0, %v2668_v41, 0 }
 0x246   : > { %7282 = vmatpush3.bf16.xpose.msra.mxu0 %v2254_v17 }
 0x247   : > { %7733 = vmatprep.subr.msk.bf16.mxu0 %vm1732_vm0, %v2210_v60  ;;  %v2712_v60 = vsel %vm1732_vm0, %v2670_v23, 0 }
 0x248   : > { %v2206_v49 = vpop.permute.xlu0 %2205  ;;  %v2660_v50 = vpop.permute.xlu1 %2659 }
 0x24c   : > { %v2650_v52 = vpop.permute.xlu0 %2649  ;;  %v2664_v55 = vpop.permute.xlu1 %2663 }
 0x24e   : > { %7284 = vmatpush3.bf16.xpose.msra.mxu0 %v2251_v61 }
 0x24f   : > { %7734 = vmatprep.subr.msk.bf16.mxu0 %vm1732_vm0, %v2208_v7 }
 0x250   : > { %v9452_v46 = vpop.permute.xlu1 %3133  ;;  %v2654_v13 = vpop.permute.xlu0 %2653 }
 0x251   : > { %12035 = vst [vmem:[#allocation37_spill] sm:$0xff] %v9452_v46 }
 0x254   : > { %v9455_v62 = vpop.permute.xlu1 %2488  ;;  %v2658_v17 = vpop.permute.xlu0 %2657 }
 0x256   : > { %7286 = vmatpush3.bf16.xpose.msra.mxu0 %v2248_v27 }
 0x257   : > { %7735 = vmatprep.subr.msk.bf16.mxu0 %vm1732_vm0, %v2680_v16 }
 0x258   : > { %v9458_v1 = vpop.permute.xlu1 %2946 }
 0x259   : > { %12036 = vst [vmem:[#allocation38_spill] sm:$0xff] %v9458_v1 }
 0x25c   : > { %v9462_v7 = vpop.permute.xlu1 %2948 }
 0x25d   : > { %7288 = vmatmul.mubr.msk.bf16.vlgmr.msra.gmra.mxu0 %vm1732_vm0, %v2194_v21  ;;  %12037 = vst [vmem:[#allocation39_spill] sm:$0xff] %v9462_v7 }
 0x25e   : > { %7336 = vmatpush3.bf16.xpose.msra.mxu0 %v2727_v34  ;;  %7291 = vmatprep.mubr.msk.bf16.mxu0 %vm1732_vm0, %v2196_v19 }
 0x25f   : > { %7736 = vmatprep.subr.msk.bf16.mxu0 %vm1732_vm0, %v2678_v6 }
 0x260   : > { %v9465_v16 = vpop.permute.xlu1 %2492 }
 0x264   : > { %v9468_v6 = vpop.permute.xlu1 %2950 }
 0x265   : > { %7292 = vmatmul.mubr.msk.bf16.gmra.mxu0 %vm1732_vm0, %v2198_v32  ;;  %12038 = vst [vmem:[#allocation40_spill] sm:$0xff] %v9468_v6 }
 0x266   : > { %7338 = vmatpush3.bf16.xpose.msra.mxu0 %v2724_v39  ;;  %7295 = vmatprep.mubr.msk.bf16.mxu0 %vm1732_vm0, %v2200_v36 }
 0x267   : > { %7737 = vmatprep.subr.msk.bf16.mxu0 %vm1732_vm0, %v2676_v24 }
 0x26d   : > { %7296 = vmatmul.mubr.msk.bf16.gmra.mxu0 %vm1732_vm0, %v2202_v28 }
 0x26e   : > { %7340 = vmatpush3.bf16.xpose.msra.mxu0 %v2721_v43  ;;  %7299 = vmatprep.mubr.msk.bf16.mxu0 %vm1732_vm0, %v2204_v29 }
 0x26f   : > { %7738 = vmatprep.subr.msk.bf16.mxu0 %vm1732_vm0, %v2674_v57  ;;  %v9471_v57 = vpop.permute.xlu1 %2952 }
 0x273   : > { %v9474_v19 = vpop.permute.xlu1 %2496 }
 0x275   : > { %7300 = vmatmul.mubr.msk.bf16.gmra.mxu0 %vm1732_vm0, %v2206_v49 }
 0x276   : > { %7342 = vmatpush3.bf16.xpose.msra.mxu0 %v2718_v53  ;;  %7351 = vmatprep.mubr.msk.bf16.mxu0 %vm1732_vm0, %v2650_v52 }
 0x277   : > { %7739 = vmatprep.subr.msk.bf16.mxu0 %vm1732_vm0, %v2672_v51  ;;  %v9477_v21 = vpop.permute.xlu1 %2954 }
 0x27b   : > { %v9485_v27 = vpop.permute.xlu1 %2498 }
 0x27e   : > { %7344 = vmatpush3.bf16.xpose.msra.mxu0 %v2715_v56 }
 0x27f   : > { %7740 = vmatprep.subr.msk.bf16.mxu0 %vm1732_vm0, %v2670_v23  ;;  %v2662_v23 = vpop.permute.xlu0 %2661  ;;  %v9493_v29 = vpop.permute.xlu1 %2958 }
 0x283   : > { %v9505_v36 = vpop.permute.xlu1 %2502 }
 0x284   : > { %7303 = vmatprep.subr.bf16.mxu1 %v9505_v36 }
 0x286   : > { %7346 = vmatpush3.bf16.xpose.msra.mxu0 %v2712_v60 }
 0x287   : > { %7741 = vmatprep.subr.msk.bf16.mxu0 %vm1732_vm0, %v2668_v41 }
 0x28e   : > { %7348 = vmatpush3.bf16.xpose.msra.mxu0 %v2709_v4 }
 0x28f   : > { %7742 = vmatprep.subr.msk.bf16.mxu0 %vm1732_vm0, %v2666_v35 }
 0x296   : > { %7350 = vmatpush3.bf16.xpose.msra.mxu0 %v2706_v14  ;;  %v9545_v14 = vpop.f32.mrf.mxu0 }
 0x297   : > { %12042 = vst [vmem:[#allocation44_spill] sm:$0xff] %v9545_v14 }
 0x29d   : > { %7352 = vmatmul.mubr.msk.bf16.vlgmr.msra.gmra.mxu0 %vm1732_vm0, %v2652_v40 }
 0x29e   : > { %7355 = vmatprep.mubr.msk.bf16.mxu0 %vm1732_vm0, %v2654_v13 }
 0x2a5   : > { %7356 = vmatmul.mubr.msk.bf16.gmra.mxu0 %vm1732_vm0, %v2656_v45 }
 0x2a6   : > { %7359 = vmatprep.mubr.msk.bf16.mxu0 %vm1732_vm0, %v2658_v17 }
 0x2ab   : > { %v9479_v61 = vpop.f32.mrf.mxu1 }
 0x2ac   : > { %1882 = vmax.xlane.f32.xlu0 %v9479_v61 }
 0x2ad   : > { %v9482_v24 = vpop.f32.mrf.mxu1  ;;  %7360 = vmatmul.mubr.msk.bf16.gmra.mxu0 %vm1732_vm0, %v2660_v50 }
 0x2ae   : > { %7363 = vmatprep.mubr.msk.bf16.mxu0 %vm1732_vm0, %v2662_v23 }
 0x2af   : > { %v9488_v28 = vpop.f32.mrf.mxu1 }
 0x2b0   : > { %1878 = vmax.xlane.f32.xlu0 %v9482_v24 }
 0x2b1   : > { %v9491_v51 = vpop.f32.mrf.mxu1 }
 0x2b2   : > { %1880 = vmax.xlane.f32.xlu1 %v9491_v51 }
 0x2b3   : > { %v9496_v32 = vpop.f32.mrf.mxu1 }
 0x2b4   : > { %1884 = vmax.xlane.f32.xlu0 %v9488_v28 }
 0x2b5   : > { %v9499_v34 = vpop.f32.mrf.mxu1  ;;  %7364 = vmatmul.mubr.msk.bf16.gmra.mxu0 %vm1732_vm0, %v2664_v55  ;;  %v9537_v55 = vpop.permute.xlu0 %3135 }
 0x2b6   : > { %1890 = vmax.xlane.f32.xlu1 %v9496_v32  ;;  %12039 = vst [vmem:[#allocation41_spill] sm:$0xff] %v9537_v55 }
 0x2b7   : > { %v9503_v35 = vpop.f32.mrf.mxu1 }
 0x2b8   : > { %1892 = vmax.xlane.f32.xlu0 %v9503_v35 }
 0x2b9   : > { %v9509_v39 = vpop.f32.mrf.mxu1  ;;  %v9539_v56 = vpop.permute.xlu0 %3131 }
 0x2ba   : > { %1886 = vmax.xlane.f32.xlu1 %v9499_v34  ;;  %12040 = vst [vmem:[#allocation42_spill] sm:$0xff] %v9539_v56 }
 0x2bb   : > { %v9512_v40 = vpop.f32.mrf.mxu1 }
 0x2bc   : > { %1888 = vmax.xlane.f32.xlu0 %v9509_v39 }
 0x2bd   : > { %v9515_v41 = vpop.f32.mrf.mxu1  ;;  %v9541_v60 = vpop.permute.xlu0 %3137 }
 0x2be   : > { %1898 = vmax.xlane.f32.xlu1 %v9512_v40  ;;  %12041 = vst [vmem:[#allocation43_spill] sm:$0xff] %v9541_v60 }
 0x2bf   : > { %v9518_v43 = vpop.f32.mrf.mxu1 }
 0x2c0   : > { %1900 = vmax.xlane.f32.xlu0 %v9518_v43 }
 0x2c1   : > { %v9521_v45 = vpop.f32.mrf.mxu1  ;;  %v9543_v4 = vpop.permute.xlu0 %2490 }
 0x2c2   : > { %1894 = vmax.xlane.f32.xlu1 %v9515_v41 }
 0x2c3   : > { %v9524_v49 = vpop.f32.mrf.mxu1 }
 0x2c4   : > { %1896 = vmax.xlane.f32.xlu0 %v9521_v45 }
 0x2c5   : > { %v9527_v50 = vpop.f32.mrf.mxu1  ;;  %v9549_v17 = vpop.permute.xlu0 %2494 }
 0x2c6   : > { %1906 = vmax.xlane.f32.xlu1 %v9524_v49 }
 0x2c7   : > { %v9530_v52 = vpop.f32.mrf.mxu1 }
 0x2c8   : > { %1908 = vmax.xlane.f32.xlu0 %v9530_v52 }
 0x2c9   : > { %v9533_v53 = vpop.f32.mrf.mxu1  ;;  %v9560_v9 = vpop.permute.xlu0 %2956 }
 0x2ca   : > { %1902 = vmax.xlane.f32.xlu1 %v9527_v50 }
 0x2cc   : > { %1904 = vmax.xlane.f32.xlu0 %v9533_v53 }
 0x2cd   : > { %v9570_v54 = vpop.permute.xlu0 %2500 }
 0x2d1   : > { %v9580_v25 = vpop.permute.xlu0 %2960 }
 0x31d   : > { %v9547_v13 = vpop.f32.mrf.mxu0 }
 0x31e   : > { %2372 = vmax.xlane.f32.xlu0 %v9547_v13 }
 0x31f   : > { %v9552_v23 = vpop.f32.mrf.mxu0 }
 0x320   : > { %2368 = vmax.xlane.f32.xlu1 %v9552_v23 }
 0x321   : > { %v9555_v33 = vpop.f32.mrf.mxu0 }
 0x322   : > { %2374 = vmax.xlane.f32.xlu0 %v9555_v33 }
 0x323   : > { %v9558_v18 = vpop.f32.mrf.mxu0 }
 0x325   : > { %v9562_v0 = vpop.f32.mrf.mxu0 }
 0x326   : > { %2370 = vmax.xlane.f32.xlu0 %v9558_v18 }
 0x327   : > { %v9565_v14 = vpop.f32.mrf.mxu0 }
 0x328   : > { %2376 = vmax.xlane.f32.xlu1 %v9565_v14 }
 0x329   : > { %v9568_v58 = vpop.f32.mrf.mxu0 }
 0x32a   : > { %2380 = vmax.xlane.f32.xlu0 %v9562_v0 }
 0x32b   : > { %v9573_v44 = vpop.f32.mrf.mxu0 }
 0x32d   : > { %v9575_v37 = vpop.f32.mrf.mxu0 }
 0x32e   : > { %2382 = vmax.xlane.f32.xlu0 %v9568_v58 }
 0x32f   : > { %v9578_v31 = vpop.f32.mrf.mxu0 }
 0x331   : > { %v9582_v20 = vpop.f32.mrf.mxu0 }
 0x332   : > { %2378 = vmax.xlane.f32.xlu0 %v9573_v44  ;;  %2390 = vmax.xlane.f32.xlu1 %v9582_v20 }
 0x333   : > { %v9586_v15 = vpop.f32.mrf.mxu0 }
 0x335   : > { %v1883_v10 = vpop.xlane.xlu0 %1882  ;;  %v9588_v5 = vpop.f32.mrf.mxu0 }
 0x336   : > { %2388 = vmax.xlane.f32.xlu0 %v9575_v37  ;;  %2386 = vmax.xlane.f32.xlu1 %v9586_v15  ;;  %v1912_v56 = vsub.f32 %v9479_v61, %v1883_v10 }
 0x337   : > { %v9592_v63 = vpop.f32.mrf.mxu0 }
 0x338   : > { %v1930_v47 = vmul.f32 1.442695, %v1912_v56 }
 0x339   : > { %v1879_v46 = vpop.xlane.xlu0 %1878  ;;  %v9595_v55 = vpop.f32.mrf.mxu0 }
 0x33a   : > { %v1910_v60 = vsub.f32 %v9482_v24, %v1879_v46  ;;  %2384 = vmax.xlane.f32.xlu0 %v9578_v31  ;;  %2398 = vmax.xlane.f32.xlu1 %v9595_v55 }
 0x33b   : > { %v1881_v59 = vpop.xlane.xlu1 %1880  ;;  %v9600_v1 = vpop.f32.mrf.mxu0 }
 0x33c   : > { %v1926_v38 = vmul.f32 1.442695, %v1910_v60  ;;  %v1911_v7 = vsub.f32 %v9491_v51, %v1881_v59 }
 0x33d   : > { %v1885_v42 = vpop.xlane.xlu0 %1884 }
 0x33e   : > { %v1928_v6 = vmul.f32 1.442695, %v1911_v7  ;;  %v1913_v10 = vsub.f32 %v9488_v28, %v1885_v42  ;;  %2396 = vmax.xlane.f32.xlu0 %v9588_v5  ;;  %2394 = vmax.xlane.f32.xlu1 %v9600_v1  ;;  %8157 = vpow2.f32 %v1926_v38 }
 0x33f   : > { %v1891_v46 = vpop.xlane.xlu1 %1890 }
 0x340   : > { %8159 = vpow2.f32 %v1928_v6  ;;  %v1932_v61 = vmul.f32 1.442695, %v1913_v10  ;;  %v1916_v7 = vsub.f32 %v9496_v32, %v1891_v46 }
 0x341   : > { %8161 = vpow2.f32 %v1930_v47  ;;  %v1893_v24 = vpop.xlane.xlu0 %1892 }
 0x342   : > { %8163 = vpow2.f32 %v1932_v61  ;;  %v1917_v60 = vsub.f32 %v9503_v35, %v1893_v24  ;;  %2392 = vmax.xlane.f32.xlu0 %v9592_v63  ;;  %v1938_v6 = vmul.f32 1.442695, %v1916_v7 }
 0x343   : > { %v1887_v59 = vpop.xlane.xlu1 %1886 }
 0x344   : > { %v1940_v51 = vmul.f32 1.442695, %v1917_v60  ;;  %v1914_v42 = vsub.f32 %v9499_v34, %v1887_v59 }
 0x345   : > { %v1889_v28 = vpop.xlane.xlu0 %1888 }
 0x346   : > { %v1934_v56 = vmul.f32 1.442695, %v1914_v42  ;;  %v1915_v38 = vsub.f32 %v9509_v39, %v1889_v28  ;;  %8165 = vpow2.f32 %v1940_v51 }
 0x347   : > { %v1899_v26 = vpop.xlane.xlu1 %1898 }
 0x348   : > { %v1936_v47 = vmul.f32 1.442695, %v1915_v38  ;;  %8167 = vpow2.f32 %v1934_v56  ;;  %v1920_v32 = vsub.f32 %v9512_v40, %v1899_v26 }
 0x349   : > { %v1901_v10 = vpop.xlane.xlu0 %1900 }
 0x34a   : > { %8169 = vpow2.f32 %v1936_v47  ;;  %v1921_v35 = vsub.f32 %v9518_v43, %v1901_v10  ;;  %v1946_v56 = vmul.f32 1.442695, %v1920_v32 }
 0x34b   : > { %v1895_v61 = vpop.xlane.xlu1 %1894  ;;  %v9612_v24 = vpop.eup %8157  ;;  %8171 = vpow2.f32 %v1938_v6 }
 0x34c   : > { %12043 = vst [vmem:[#allocation45_spill] sm:$0xff] %v9612_v24  ;;  %v1948_v34 = vmul.f32 1.442695, %v1921_v35  ;;  %v1918_v46 = vsub.f32 %v9515_v41, %v1895_v61 }
 0x34d   : > { %v9616_v60 = vpop.eup %8159  ;;  %v1897_v39 = vpop.xlane.xlu0 %1896 }
 0x34e   : > { %12044 = vst [vmem:[#allocation46_spill] sm:$0xff] %v9616_v60  ;;  %v9618_v59 = vpop.eup %8161  ;;  %v1942_v7 = vmul.f32 1.442695, %v1918_v46  ;;  %v1919_v51 = vsub.f32 %v9521_v45, %v1897_v39  ;;  %v1990_v43 = vpack.c.bf16 %v9616_v60, %v9612_v24  ;;  %8173 = vpow2.f32 %v1948_v34 }
 0x34f   : > { %12045 = vst [vmem:[#allocation47_spill] sm:$0xff] %v9618_v59  ;;  %v9623_v42 = vpop.eup %8163  ;;  %v1907_v28 = vpop.xlane.xlu1 %1906 }
 0x350   : > { %12046 = vst [vmem:[#allocation48_spill] sm:$0xff] %v9623_v42  ;;  %v1944_v26 = vmul.f32 1.442695, %v1919_v51  ;;  %7255 = vmatprep.mubr.bf16.mxu1 %v1990_v43  ;;  %v1991_v40 = vpack.c.bf16 %v9623_v42, %v9618_v59  ;;  %8175 = vpow2.f32 %v1942_v7  ;;  %v1924_v6 = vsub.f32 %v9524_v49, %v1907_v28 }
 0x351   : > { %v1909_v41 = vpop.xlane.xlu0 %1908 }
 0x352   : > { %8177 = vpow2.f32 %v1944_v26  ;;  %v1925_v38 = vsub.f32 %v9530_v52, %v1909_v41  ;;  %7256 = vmatmul.mubr.bf16.vlgmr.msra.gmra.mxu1 %v1991_v40 }
 0x353   : > { %7304 = vmatpush3.bf16.msra.mxu1 %v9505_v36  ;;  %v1903_v45 = vpop.xlane.xlu1 %1902  ;;  %8179 = vpow2.f32 %v1946_v56  ;;  %v9632_v35 = vpop.eup %8165  ;;  %v1954_v36 = vmul.f32 1.442695, %v1924_v6 }
 0x354   : > { %v1956_v47 = vmul.f32 1.442695, %v1925_v38  ;;  %v1922_v10 = vsub.f32 %v9527_v50, %v1903_v45  ;;  %7305 = vmatprep.subr.bf16.mxu1 %v9570_v54  ;;  %12047 = vst [vmem:[#allocation49_spill] sm:$0xff] %v9632_v35 }
 0x355   : > { %v1905_v61 = vpop.xlane.xlu0 %1904  ;;  %v9634_v32 = vpop.eup %8167 }
 0x356   : > { %12048 = vst [vmem:[#allocation50_spill] sm:$0xff] %v9634_v32  ;;  %v1950_v34 = vmul.f32 1.442695, %v1922_v10  ;;  %v1923_v52 = vsub.f32 %v9533_v53, %v1905_v61  ;;  %8181 = vpow2.f32 %v1956_v47 }
 0x357   : > { %v9637_v46 = vpop.eup %8169  ;;  %7306 = vmatpush3.bf16.msra.mxu1 %v9570_v54 }
 0x358   : > { %12049 = vst [vmem:[#allocation51_spill] sm:$0xff] %v9637_v46  ;;  %v1952_v49 = vmul.f32 1.442695, %v1923_v52  ;;  %7307 = vmatprep.subr.bf16.mxu1 %v9485_v27  ;;  %v1992_v50 = vpack.c.bf16 %v9637_v46, %v9634_v32  ;;  %v9643_v39 = vpop.eup %8171  ;;  %8183 = vpow2.f32 %v1950_v34 }
 0x359   : > { %12050 = vst [vmem:[#allocation52_spill] sm:$0xff] %v9643_v39  ;;  %v1993_v53 = vpack.c.bf16 %v9632_v35, %v9643_v39 }
 0x35a   : > { %8185 = vpow2.f32 %v1952_v49  ;;  %7259 = vmatprep.mubr.bf16.mxu1 %v1992_v50  ;;  %v8670_v50 = vld [vmem:[#allocation2 + $0x60] ss:$16 sps:$4 sm:$0xff]  }
 0x35b   : > { %7308 = vmatpush3.bf16.msra.mxu1 %v9485_v27  ;;  %8187 = vpow2.f32 %v1954_v36  ;;  %v9649_v54 = vpop.eup %8173 }
 0x35c   : > { %7260 = vmatmul.mubr.bf16.gmra.mxu1 %v1993_v53  ;;  %7309 = vmatprep.subr.bf16.mxu1 %v9474_v19  ;;  %12051 = vst [vmem:[#allocation53_spill] sm:$0xff] %v9649_v54 }
 0x35d   : > { %v9651_v7 = vpop.f32.mrf.mxu0  ;;  %v9653_v51 = vpop.eup %8175 }
 0x35e   : > { %12052 = vst [vmem:[#allocation54_spill] sm:$0xff] %v9653_v51  ;;  %2830 = vmax.xlane.f32.xlu0 %v9651_v7 }
 0x35f   : > { %v9656_v43 = vpop.eup %8177  ;;  %7310 = vmatpush3.bf16.msra.mxu1 %v9474_v19  ;;  %v9659_v28 = vpop.f32.mrf.mxu0 }
 0x360   : > { %12053 = vst [vmem:[#allocation55_spill] sm:$0xff] %v9656_v43  ;;  %7311 = vmatprep.subr.bf16.mxu1 %v9549_v17  ;;  %v1994_v27 = vpack.c.bf16 %v9656_v43, %v9653_v51  ;;  %v9664_v56 = vpop.eup %8179 }
 0x361   : > { %12054 = vst [vmem:[#allocation56_spill] sm:$0xff] %v9664_v56  ;;  %v9666_v26 = vpop.f32.mrf.mxu0  ;;  %v1995_v40 = vpack.c.bf16 %v9649_v54, %v9664_v56 }
 0x362   : > { %7263 = vmatprep.mubr.bf16.mxu1 %v1994_v27  ;;  %2826 = vmax.xlane.f32.xlu0 %v9659_v28 }
 0x363   : > { %7312 = vmatpush3.bf16.msra.mxu1 %v9549_v17  ;;  %2832 = vmax.xlane.f32.xlu1 %v9666_v26  ;;  %v9673_v19 = vpop.f32.mrf.mxu0  ;;  %v9676_v41 = vpop.eup %8181 }
 0x364   : > { %7264 = vmatmul.mubr.bf16.gmra.mxu1 %v1995_v40  ;;  %7313 = vmatprep.subr.bf16.mxu1 %v9465_v16  ;;  %12055 = vst [vmem:[#allocation57_spill] sm:$0xff] %v9676_v41 }
 0x365   : > { %v9678_v38 = vpop.f32.mrf.mxu0  ;;  %v9680_v45 = vpop.eup %8183 }
 0x366   : > { %12056 = vst [vmem:[#allocation58_spill] sm:$0xff] %v9680_v45  ;;  %2838 = vmax.xlane.f32.xlu0 %v9678_v38 }
 0x367   : > { %v9683_v6 = vpop.eup %8185  ;;  %7314 = vmatpush3.bf16.msra.mxu1 %v9465_v16  ;;  %2828 = vmax.xlane.f32.xlu1 %v9673_v19  ;;  %v9687_v17 = vpop.f32.mrf.mxu0 }
 0x368   : > { %12057 = vst [vmem:[#allocation59_spill] sm:$0xff] %v9683_v6  ;;  %7315 = vmatprep.subr.bf16.mxu1 %v9543_v4  ;;  %v1996_v47 = vpack.c.bf16 %v9683_v6, %v9680_v45  ;;  %v9692_v10 = vpop.eup %8187 }
 0x369   : > { %12058 = vst [vmem:[#allocation60_spill] sm:$0xff] %v9692_v10  ;;  %v9694_v61 = vpop.f32.mrf.mxu0  ;;  %v1997_v34 = vpack.c.bf16 %v9676_v41, %v9692_v10 }
 0x36a   : > { %7267 = vmatprep.mubr.bf16.mxu1 %v1996_v47 }
 0x36b   : > { %7316 = vmatpush3.bf16.msra.mxu1 %v9543_v4  ;;  %2834 = vmax.xlane.f32.xlu1 %v9687_v17  ;;  %v9700_v16 = vpop.f32.mrf.mxu0 }
 0x36c   : > { %7268 = vmatmul.mubr.bf16.gmra.mxu1 %v1997_v34  ;;  %7317 = vmatprep.subr.bf16.mxu1 %v9455_v62 }
 0x36d   : > { %2836 = vmax.xlane.f32.xlu0 %v9700_v16  ;;  %v9707_v52 = vpop.f32.mrf.mxu0 }
 0x36f   : > { %7318 = vmatpush3.bf16.msra.mxu1 %v9455_v62  ;;  %2840 = vmax.xlane.f32.xlu1 %v9694_v61  ;;  %v9710_v4 = vpop.f32.mrf.mxu0  ;;  %v8669_v62 = vld [vmem:[#allocation2 + $0x40] ss:$16 sps:$4 sm:$0xff]  }
 0x370   : > { %7367 = vmatprep.subr.bf16.mxu1 %v9580_v25 }
 0x371   : > { %v9713_v36 = vpop.f32.mrf.mxu0 }
 0x373   : > { %2846 = vmax.xlane.f32.xlu1 %v9707_v52  ;;  %v9716_v49 = vpop.f32.mrf.mxu0 }
 0x375   : > { %v9721_v53 = vpop.f32.mrf.mxu0 }
 0x377   : > { %2842 = vmax.xlane.f32.xlu1 %v9710_v4  ;;  %v9724_v27 = vpop.f32.mrf.mxu0 }
 0x379   : > { %v9727_v47 = vpop.f32.mrf.mxu0 }
 0x37b   : > { %2848 = vmax.xlane.f32.xlu1 %v9713_v36  ;;  %v9734_v51 = vpop.f32.mrf.mxu0 }
 0x37f   : > { %2844 = vmax.xlane.f32.xlu1 %v9716_v49 }
 0x383   : > { %3127 = vrot.lane.b32.xlu0 %v8669_v62, %s8890_s28 }
 0x390   : > { %3129 = vrot.lane.b32.xlu1 %v8670_v50, %s8890_s28 }
 0x3a2   : > { %2854 = vmax.xlane.f32.xlu0 %v9721_v53 }
 0x3a6   : > { %2850 = vmax.xlane.f32.xlu0 %v9724_v27 }
 0x3a7   : > { %v2373_v40 = vpop.xlane.xlu0 %2372 }
 0x3a8   : > { %v2402_v50 = vsub.f32 %v9547_v13, %v2373_v40 }
 0x3a9   : > { %v2369_v34 = vpop.xlane.xlu1 %2368 }
 0x3aa   : > { %2856 = vmax.xlane.f32.xlu0 %v9727_v47  ;;  %v2400_v10 = vsub.f32 %v9552_v23, %v2369_v34  ;;  %v2420_v43 = vmul.f32 1.442695, %v2402_v50 }
 0x3ab   : > { %v2375_v62 = vpop.xlane.xlu0 %2374 }
 0x3ac   : > { %v2403_v41 = vsub.f32 %v9555_v33, %v2375_v62  ;;  %v2416_v6 = vmul.f32 1.442695, %v2400_v10 }
 0x3ae   : > { %v2422_v45 = vmul.f32 1.442695, %v2403_v41  ;;  %8189 = vpow2.f32 %v2416_v6 }
 0x3af   : > { %v2371_v54 = vpop.xlane.xlu0 %2370 }
 0x3b0   : > { %v2401_v56 = vsub.f32 %v9558_v18, %v2371_v54  ;;  %8191 = vpow2.f32 %v2422_v45 }
 0x3b1   : > { %v2377_v32 = vpop.xlane.xlu1 %2376 }
 0x3b2   : > { %v2418_v39 = vmul.f32 1.442695, %v2401_v56  ;;  %v2404_v33 = vsub.f32 %v9565_v14, %v2377_v32 }
 0x3b3   : > { %v2381_v35 = vpop.xlane.xlu0 %2380 }
 0x3b4   : > { %8193 = vpow2.f32 %v2418_v39  ;;  %2852 = vmax.xlane.f32.xlu1 %v9734_v51  ;;  %v2406_v41 = vsub.f32 %v9562_v0, %v2381_v35  ;;  %v2424_v18 = vmul.f32 1.442695, %v2404_v33 }
 0x3b5   : > { %8195 = vpow2.f32 %v2420_v43 }
 0x3b6   : > { %v2428_v45 = vmul.f32 1.442695, %v2406_v41  ;;  %8197 = vpow2.f32 %v2424_v18 }
 0x3b7   : > { %v2383_v13 = vpop.xlane.xlu0 %2382 }
 0x3b8   : > { %v2407_v23 = vsub.f32 %v9568_v58, %v2383_v13  ;;  %v8671_v58 = vld [vmem:[#allocation2 + $0x20] ss:$16 sps:$4 sm:$0xff]  }
 0x3ba   : > { %v2430_v54 = vmul.f32 1.442695, %v2407_v23 }
 0x3bb   : > { %v2379_v10 = vpop.xlane.xlu0 %2378  ;;  %v2391_v40 = vpop.xlane.xlu1 %2390 }
 0x3bc   : > { %v2405_v56 = vsub.f32 %v9573_v44, %v2379_v10  ;;  %v9741_v39 = vpop.eup %8189  ;;  %8199 = vpow2.f32 %v2430_v54  ;;  %v2411_v44 = vsub.f32 %v9582_v20, %v2391_v40  ;;  %v8672_v20 = vld [vmem:[#allocation2] ss:$16 sps:$4 sm:$0xff]  }
 0x3bd   : > { %v9743_v14 = vpop.eup %8191 }
 0x3be   : > { %v2426_v6 = vmul.f32 1.442695, %v2405_v56 }
 0x3bf   : > { %v2389_v43 = vpop.xlane.xlu0 %2388  ;;  %v2387_v34 = vpop.xlane.xlu1 %2386 }
 0x3c0   : > { %8201 = vpow2.f32 %v2426_v6  ;;  %3125 = vrot.lane.b32.xlu0 %v8671_v58, %s8890_s28  ;;  %v2410_v0 = vsub.f32 %v9575_v37, %v2389_v43  ;;  %v2409_v35 = vsub.f32 %v9586_v15, %v2387_v34  ;;  %v2438_v37 = vmul.f32 1.442695, %v2411_v44 }
 0x3c1   : > { %v9748_v32 = vpop.eup %8193  ;;  %8203 = vpow2.f32 %v2428_v45 }
 0x3c2   : > { %v9751_v62 = vpop.eup %8195  ;;  %v2436_v50 = vmul.f32 1.442695, %v2410_v0  ;;  %v2480_v33 = vpack.c.bf16 %v9748_v32, %v9741_v39  ;;  %v2434_v13 = vmul.f32 1.442695, %v2409_v35  ;;  %v12068_v35 = vld [vmem:[#allocation35_spill] sm:$0xff] }
 0x3c3   : > { %v2385_v23 = vpop.xlane.xlu0 %2384  ;;  %v2399_v41 = vpop.xlane.xlu1 %2398  ;;  %v2481_v18 = vpack.c.bf16 %v9743_v14, %v9751_v62 }
 0x3c4   : > { %3107 = vrot.lane.b32.xlu0 %v9160_v3, %s8890_s28  ;;  %v2408_v15 = vsub.f32 %v9578_v31, %v2385_v23  ;;  %7319 = vmatprep.mubr.bf16.mxu1 %v2480_v33  ;;  %8205 = vpow2.f32 %v2436_v50  ;;  %v2415_v56 = vsub.f32 %v9595_v55, %v2399_v41  ;;  %v9771_v45 = vpop.eup %8197  ;;  %v12073_v33 = vld [vmem:[#allocation34_spill] sm:$0xff] }
 0x3c5   : > { %3123 = vrot.lane.b32.xlu1 %v8672_v20, %s8890_s28  ;;  %7320 = vmatmul.mubr.bf16.vlgmr.msra.gmra.mxu1 %v2481_v18  ;;  %8207 = vpow2.f32 %v2434_v13  ;;  %12059 = vst [vmem:[#allocation61_spill] sm:$0xff] %v9771_v45  ;;  %v8673_v23 = vld [vmem:[#allocation2 + $0x48] ss:$16 sps:$4 sm:$0xff]   ;;  %v12077_v20 = vld [vmem:[#allocation33_spill] sm:$0xff] }
 0x3c6   : > { %v2432_v54 = vmul.f32 1.442695, %v2408_v15  ;;  %7368 = vmatpush3.bf16.msra.mxu1 %v9580_v25  ;;  %v2446_v55 = vmul.f32 1.442695, %v2415_v56  ;;  %v12076_v15 = vld [vmem:[#allocation38_spill] sm:$0xff] }
 0x3c7   : > { %7369 = vmatprep.subr.bf16.mxu1 %v9493_v29  ;;  %v2397_v10 = vpop.xlane.xlu0 %2396  ;;  %v2395_v40 = vpop.xlane.xlu1 %2394 }
 0x3c8   : > { %8209 = vpow2.f32 %v2432_v54  ;;  %3111 = vrot.lane.b32.xlu0 %v9238_v2, %s8890_s28  ;;  %v2414_v3 = vsub.f32 %v9588_v5, %v2397_v10  ;;  %v2413_v31 = vsub.f32 %v9600_v1, %v2395_v40  ;;  %v12078_v54 = vld [vmem:[#allocation43_spill] sm:$0xff] }
 0x3c9   : > { %8211 = vpow2.f32 %v2438_v37  ;;  %3109 = vrot.lane.b32.xlu1 %v9257_v11, %s8890_s28  ;;  %v9774_v2 = vpop.eup %8199 }
 0x3ca   : > { %v2444_v25 = vmul.f32 1.442695, %v2414_v3  ;;  %7370 = vmatpush3.bf16.msra.mxu1 %v9493_v29  ;;  %v2442_v6 = vmul.f32 1.442695, %v2413_v31  ;;  %12060 = vst [vmem:[#allocation62_spill] sm:$0xff] %v9774_v2 }
 0x3cb   : > { %7371 = vmatprep.subr.bf16.mxu1 %v9560_v9  ;;  %v2393_v43 = vpop.xlane.xlu0 %2392 }
 0x3cc   : > { %3115 = vrot.lane.b32.xlu0 %v9293_v30, %s8890_s28  ;;  %v2412_v5 = vsub.f32 %v9592_v63, %v2393_v43  ;;  %8213 = vpow2.f32 %v2444_v25 }
 0x3cd   : > { %v9779_v1 = vpop.eup %8201  ;;  %3113 = vrot.lane.b32.xlu1 %v9286_v22, %s8890_s28  ;;  %8215 = vpow2.f32 %v2442_v6 }
 0x3ce   : > { %v9783_v11 = vpop.eup %8203  ;;  %v2440_v29 = vmul.f32 1.442695, %v2412_v5  ;;  %7372 = vmatpush3.bf16.msra.mxu1 %v9560_v9  ;;  %v2482_v34 = vpack.c.bf16 %v9779_v1, %v9771_v45 }
 0x3cf   : > { %12061 = vst [vmem:[#allocation63_spill] sm:$0xff] %v9783_v11  ;;  %7373 = vmatprep.subr.bf16.mxu1 %v9477_v21  ;;  %v2483_v63 = vpack.c.bf16 %v9774_v2, %v9783_v11 }
 0x3d0   : > { %8217 = vpow2.f32 %v2440_v29  ;;  %3119 = vrot.lane.b32.xlu0 %v9273_v8, %s8890_s28  ;;  %7323 = vmatprep.mubr.bf16.mxu1 %v2482_v34  ;;  %v12065_v8 = vld [vmem:[#allocation32_spill] sm:$0xff] }
 0x3d1   : > { %8219 = vpow2.f32 %v2446_v55  ;;  %3117 = vrot.lane.b32.xlu1 %v9259_v12, %s8890_s28  ;;  %7324 = vmatmul.mubr.bf16.gmra.mxu1 %v2483_v63  ;;  %v9796_v9 = vpop.eup %8205 }
 0x3d2   : > { %7374 = vmatpush3.bf16.msra.mxu1 %v9477_v21  ;;  %12062 = vst [vmem:[#allocation64_spill] sm:$0xff] %v9796_v9  ;;  %v9799_v22 = vpop.eup %8207  ;;  %v12067_v21 = vld [vmem:[#allocation40_spill] sm:$0xff] }
 0x3d3   : > { %7375 = vmatprep.subr.bf16.mxu1 %v9471_v57  ;;  %12063 = vst [vmem:[#allocation65_spill] sm:$0xff] %v9799_v22 }
 0x3d4   : > { %3418 = vrot.lane.b32.xlu0 %v9396_v48, %s8890_s28  ;;  %v12069_v48 = vld [vmem:[#allocation36_spill] sm:$0xff] }
 0x3d5   : > { %v9803_v30 = vpop.eup %8209  ;;  %3121 = vrot.lane.b32.xlu1 %v12065_v8, %s8890_s28 }
 0x3d6   : > { %12064 = vst [vmem:[#allocation66_spill] sm:$0xff] %v9803_v30  ;;  %v9807_v58 = vpop.eup %8211  ;;  %7376 = vmatpush3.bf16.msra.mxu1 %v9471_v57  ;;  %v2484_v12 = vpack.c.bf16 %v9799_v22, %v9803_v30  ;;  %v12071_v57 = vld [vmem:[#allocation39_spill] sm:$0xff] }
 0x3d7   : > { %12066 = vst [vmem:[#allocation32_spill] sm:$0xff] %v9807_v58  ;;  %7377 = vmatprep.subr.bf16.mxu1 %v12067_v21  ;;  %v2485_v0 = vpack.c.bf16 %v9807_v58, %v9796_v9 }
 0x3d8   : > { %3414 = vrot.lane.b32.xlu0 %v12068_v35, %s8890_s28  ;;  %7327 = vmatprep.mubr.bf16.mxu1 %v2484_v12 }
 0x3d9   : > { %3416 = vrot.lane.b32.xlu1 %v12069_v48, %s8890_s28  ;;  %7328 = vmatmul.mubr.bf16.gmra.mxu1 %v2485_v0  ;;  %v9820_v44 = vpop.eup %8213 }
 0x3da   : > { %7378 = vmatpush3.bf16.msra.mxu1 %v12067_v21  ;;  %12070 = vst [vmem:[#allocation40_spill] sm:$0xff] %v9820_v44  ;;  %v9823_v50 = vpop.eup %8215 }
 0x3db   : > { %7379 = vmatprep.subr.bf16.mxu1 %v12071_v57  ;;  %12072 = vst [vmem:[#allocation35_spill] sm:$0xff] %v9823_v50 }
 0x3dc   : > { %3412 = vrot.lane.b32.xlu0 %v12073_v33, %s8890_s28 }
 0x3dd   : > { %v9827_v13 = vpop.eup %8217  ;;  %3408 = vrot.lane.b32.xlu1 %v8673_v23, %s8890_s28 }
 0x3de   : > { %12074 = vst [vmem:[#allocation36_spill] sm:$0xff] %v9827_v13  ;;  %v9830_v41 = vpop.eup %8219  ;;  %7380 = vmatpush3.bf16.msra.mxu1 %v12071_v57  ;;  %v2486_v18 = vpack.c.bf16 %v9823_v50, %v9827_v13 }
 0x3df   : > { %12075 = vst [vmem:[#allocation39_spill] sm:$0xff] %v9830_v41  ;;  %7381 = vmatprep.subr.bf16.mxu1 %v12076_v15  ;;  %v2487_v37 = vpack.c.bf16 %v9830_v41, %v9820_v44 }
 0x3e0   : > { %3410 = vrot.lane.b32.xlu0 %v12077_v20, %s8890_s28  ;;  %7331 = vmatprep.mubr.bf16.mxu1 %v2486_v18 }
 0x3e1   : > { %7332 = vmatmul.mubr.bf16.gmra.mxu1 %v2487_v37 }
 0x3e2   : > { %7382 = vmatpush3.bf16.msra.mxu1 %v12076_v15 }
 0x3e3   : > { %7743 = vmatprep.subr.msk.bf16.mxu1 %vm1732_vm0, %v12078_v54 }
 0x3e7   : > { %v2831_v10 = vpop.xlane.xlu0 %2830 }
 0x3e8   : > { %v2860_v25 = vsub.f32 %v9651_v7, %v2831_v10 }
 0x3ea   : > { %v2878_v34 = vmul.f32 1.442695, %v2860_v25 }
 0x3eb   : > { %v2827_v40 = vpop.xlane.xlu0 %2826 }
 0x3ec   : > { %v2858_v3 = vsub.f32 %v9659_v28, %v2827_v40  ;;  %v2833_v31 = vpop.xlane.xlu1 %2832 }
 0x3ed   : > { %v2861_v56 = vsub.f32 %v9666_v26, %v2833_v31 }
 0x3ee   : > { %v2874_v6 = vmul.f32 1.442695, %v2858_v3  ;;  %v3185_v3 = vsel %vm1732_vm0, %v12078_v54, 0 }
 0x3ef   : > { %v2880_v43 = vmul.f32 1.442695, %v2861_v56  ;;  %v2839_v55 = vpop.xlane.xlu0 %2838 }
 0x3f0   : > { %v2829_v5 = vpop.xlane.xlu1 %2828  ;;  %8221 = vpow2.f32 %v2874_v6  ;;  %v2864_v8 = vsub.f32 %v9678_v38, %v2839_v55  ;;  %v12080_v6 = vld [vmem:[#allocation41_spill] sm:$0xff] }
 0x3f1   : > { %v2859_v29 = vsub.f32 %v9673_v19, %v2829_v5  ;;  %8223 = vpow2.f32 %v2880_v43 }
 0x3f2   : > { %v2886_v0 = vmul.f32 1.442695, %v2864_v8 }
 0x3f3   : > { %v2876_v63 = vmul.f32 1.442695, %v2859_v29 }
 0x3f4   : > { %v2835_v12 = vpop.xlane.xlu1 %2834 }
 0x3f5   : > { %8225 = vpow2.f32 %v2876_v63  ;;  %v2862_v28 = vsub.f32 %v9687_v17, %v2835_v12  ;;  %v3182_v63 = vsel %vm1732_vm0, %v12080_v6, 0 }
 0x3f6   : > { %8227 = vpow2.f32 %v2878_v34  ;;  %v2837_v26 = vpop.xlane.xlu0 %2836 }
 0x3f7   : > { %v2882_v21 = vmul.f32 1.442695, %v2862_v28  ;;  %v2863_v7 = vsub.f32 %v9700_v16, %v2837_v26  ;;  %v12085_v28 = vld [vmem:[#allocation42_spill] sm:$0xff] }
 0x3f8   : > { %v2841_v35 = vpop.xlane.xlu1 %2840 }
 0x3f9   : > { %v2884_v48 = vmul.f32 1.442695, %v2863_v7  ;;  %v2865_v19 = vsub.f32 %v9694_v61, %v2841_v35  ;;  %8229 = vpow2.f32 %v2882_v21 }
 0x3fb   : > { %8231 = vpow2.f32 %v2884_v48  ;;  %v2888_v57 = vmul.f32 1.442695, %v2865_v19  ;;  %v3176_v48 = vsel %vm1732_vm0, %v12085_v28, 0 }
 0x3fc   : > { %8233 = vpow2.f32 %v2886_v0  ;;  %v2847_v33 = vpop.xlane.xlu1 %2846 }
 0x3fd   : > { %8235 = vpow2.f32 %v2888_v57  ;;  %v9851_v38 = vpop.eup %8221  ;;  %v2868_v40 = vsub.f32 %v9707_v52, %v2847_v33  ;;  %v3128_v33 = vpop.permute.xlu0 %3127 }
 0x3fe   : > { %v9853_v17 = vpop.eup %8223 }
 0x3ff   : > { %v2894_v54 = vmul.f32 1.442695, %v2868_v40 }
 0x400   : > { %v2843_v23 = vpop.xlane.xlu1 %2842 }
 0x401   : > { %v2866_v16 = vsub.f32 %v9710_v4, %v2843_v23 }
 0x402   : > { %v9855_v18 = vpop.eup %8225 }
 0x403   : > { %v9857_v15 = vpop.eup %8227  ;;  %v2938_v61 = vpack.c.bf16 %v9855_v18, %v9851_v38  ;;  %v2890_v56 = vmul.f32 1.442695, %v2866_v16  ;;  %v3170_v16 = vsel %vm1732_vm0, %v3128_v33, 0 }
 0x404   : > { %v2939_v37 = vpack.c.bf16 %v9853_v17, %v9857_v15  ;;  %v2849_v20 = vpop.xlane.xlu1 %2848 }
 0x405   : > { %v2869_v10 = vsub.f32 %v9713_v36, %v2849_v20  ;;  %7383 = vmatprep.mubr.bf16.mxu1 %v2938_v61  ;;  %8237 = vpow2.f32 %v2890_v56 }
 0x406   : > { %7384 = vmatmul.mubr.bf16.vlgmr.msra.gmra.mxu1 %v2939_v37  ;;  %v9868_v31 = vpop.eup %8229 }
 0x407   : > { %12079 = vst [vmem:[#allocation34_spill] sm:$0xff] %v9868_v31  ;;  %7400 = vmatpush3.bf16.xpose.msra.mxu1 %v3185_v3  ;;  %v2896_v25 = vmul.f32 1.442695, %v2869_v10 }
 0x408   : > { %v9870_v4 = vpop.eup %8231  ;;  %7744 = vmatprep.subr.msk.bf16.mxu1 %vm1732_vm0, %v12080_v6  ;;  %v2845_v43 = vpop.xlane.xlu1 %2844 }
 0x409   : > { %v9874_v5 = vpop.eup %8233  ;;  %v2867_v36 = vsub.f32 %v9716_v49, %v2845_v43  ;;  %v2940_v52 = vpack.c.bf16 %v9870_v4, %v9868_v31  ;;  %8239 = vpow2.f32 %v2896_v25  ;;  %v12083_v49 = vld [vmem:[#allocation37_spill] sm:$0xff] }
 0x40a   : > { %12081 = vst [vmem:[#allocation38_spill] sm:$0xff] %v9874_v5  ;;  %v9879_v55 = vpop.eup %8235  ;;  %v3179_v8 = vsel %vm1732_vm0, %v12083_v49, 0 }
 0x40b   : > { %12082 = vst [vmem:[#allocation33_spill] sm:$0xff] %v9879_v55  ;;  %v2892_v29 = vmul.f32 1.442695, %v2867_v36  ;;  %7387 = vmatprep.mubr.bf16.mxu1 %v2940_v52  ;;  %v2941_v34 = vpack.c.bf16 %v9879_v55, %v9874_v5 }
 0x40c   : > { %v3130_v19 = vpop.permute.xlu1 %3129 }
 0x40d   : > { %8241 = vpow2.f32 %v2892_v29  ;;  %v3173_v57 = vsel %vm1732_vm0, %v3130_v19, 0 }
 0x40e   : > { %8243 = vpow2.f32 %v2894_v54  ;;  %7388 = vmatmul.mubr.bf16.gmra.mxu1 %v2941_v34 }
 0x40f   : > { %7402 = vmatpush3.bf16.xpose.msra.mxu1 %v3182_v63  ;;  %v9917_v63 = vld [vmem:[#allocation2 + $0xec] ss:$16 sps:$4 sm:$0xff]  }
 0x410   : > { %7745 = vmatprep.subr.msk.bf16.mxu1 %vm1732_vm0, %v12083_v49 }
 0x412   : > { %v9889_v12 = vpop.eup %8237 }
 0x413   : > { %12084 = vst [vmem:[#allocation43_spill] sm:$0xff] %v9889_v12 }
 0x416   : > { %v9893_v26 = vpop.eup %8239 }
 0x417   : > { %7404 = vmatpush3.bf16.xpose.msra.mxu1 %v3179_v8  ;;  %12086 = vst [vmem:[#allocation41_spill] sm:$0xff] %v9893_v26 }
 0x418   : > { %7746 = vmatprep.subr.msk.bf16.mxu1 %vm1732_vm0, %v12085_v28 }
 0x41a   : > { %v9895_v21 = vpop.eup %8241 }
 0x41b   : > { %12087 = vst [vmem:[#allocation37_spill] sm:$0xff] %v9895_v21  ;;  %v9897_v7 = vpop.eup %8243  ;;  %v2942_v0 = vpack.c.bf16 %v9895_v21, %v9889_v12 }
 0x41c   : > { %12088 = vst [vmem:[#allocation42_spill] sm:$0xff] %v9897_v7  ;;  %v2943_v35 = vpack.c.bf16 %v9893_v26, %v9897_v7 }
 0x41d   : > { %7391 = vmatprep.mubr.bf16.mxu1 %v2942_v0 }
 0x41e   : > { %7392 = vmatmul.mubr.bf16.gmra.mxu1 %v2943_v35 }
 0x41f   : > { %7406 = vmatpush3.bf16.xpose.msra.mxu1 %v3176_v48 }
 0x420   : > { %7747 = vmatprep.subr.msk.bf16.mxu1 %vm1732_vm0, %v3130_v19 }
 0x427   : > { %7408 = vmatpush3.bf16.xpose.msra.mxu1 %v3173_v57 }
 0x428   : > { %7748 = vmatprep.subr.msk.bf16.mxu1 %vm1732_vm0, %v3128_v33 }
 0x42b   : > { %v2855_v23 = vpop.xlane.xlu0 %2854 }
 0x42c   : > { %v2872_v56 = vsub.f32 %v9721_v53, %v2855_v23 }
 0x42e   : > { %v2902_v54 = vmul.f32 1.442695, %v2872_v56  ;;  %v9944_v56 = vld [vmem:[#allocation2 + $0x8c] ss:$16 sps:$4 sm:$0xff]  }
 0x42f   : > { %7410 = vmatpush3.bf16.xpose.msra.mxu1 %v3170_v16  ;;  %v2851_v61 = vpop.xlane.xlu0 %2850 }
 0x430   : > { %v2870_v10 = vsub.f32 %v9724_v27, %v2851_v61 }
 0x432   : > { %v2898_v6 = vmul.f32 1.442695, %v2870_v10  ;;  %v9934_v10 = vld [vmem:[#allocation2 + $0xcc] ss:$16 sps:$4 sm:$0xff]  }
 0x433   : > { %v2857_v37 = vpop.xlane.xlu0 %2856 }
 0x434   : > { %v2873_v3 = vsub.f32 %v9727_v47, %v2857_v37  ;;  %8245 = vpow2.f32 %v2898_v6  ;;  %v9949_v6 = vld [vmem:[#allocation2 + $0x6c] ss:$16 sps:$4 sm:$0xff]  }
 0x436   : > { %v2904_v43 = vmul.f32 1.442695, %v2873_v3  ;;  %v9939_v3 = vld [vmem:[#allocation2 + $0xac] ss:$16 sps:$4 sm:$0xff]  }
 0x437   : > { %v3126_v20 = vpop.permute.xlu0 %3125 }
 0x438   : > { %7749 = vmatprep.subr.msk.bf16.mxu1 %vm1732_vm0, %v3126_v20  ;;  %v3167_v40 = vsel %vm1732_vm0, %v3126_v20, 0  ;;  %8247 = vpow2.f32 %v2904_v43  ;;  %v9954_v43 = vld [vmem:[#allocation2 + $0x4c] ss:$16 sps:$4 sm:$0xff]  }
 0x439   : > { %7412 = vmatpush3.bf16.xpose.msra.mxu1 %v3167_v40 }
 0x43b   : > { %v3108_v25 = vpop.permute.xlu0 %3107 }
 0x43d   : > { %v2853_v36 = vpop.xlane.xlu1 %2852 }
 0x43e   : > { %v2871_v52 = vsub.f32 %v9734_v51, %v2853_v36  ;;  %v9958_v36 = vpop.f32.mrf.mxu1 }
 0x43f   : > { %v3112_v29 = vpop.permute.xlu0 %3111  ;;  %12093 = vst [vmem:[#allocation71_spill] sm:$0xff] %v9958_v36 }
 0x440   : > { %v2900_v34 = vmul.f32 1.442695, %v2871_v52  ;;  %v9961_v52 = vld [vmem:[#allocation2 + $0x2c] ss:$16 sps:$4 sm:$0xff]  }
 0x441   : > { %v3124_v27 = vpop.permute.xlu1 %3123  ;;  %v9920_v0 = vpop.eup %8245 }
 0x442   : > { %8249 = vpow2.f32 %v2900_v34  ;;  %7750 = vmatprep.subr.msk.bf16.mxu1 %vm1732_vm0, %v3124_v27  ;;  %v3164_v47 = vsel %vm1732_vm0, %v3124_v27, 0  ;;  %12089 = vst [vmem:[#allocation67_spill] sm:$0xff] %v9920_v0 }
 0x443   : > { %8251 = vpow2.f32 %v2902_v54  ;;  %v3116_v53 = vpop.permute.xlu0 %3115  ;;  %7414 = vmatpush3.bf16.xpose.msra.mxu1 %v3164_v47  ;;  %v9964_v54 = vpop.f32.mrf.mxu1 }
 0x444   : > { %7495 = vmatprep.subr.bf16.mxu1 %v9917_v63  ;;  %12094 = vst [vmem:[#allocation72_spill] sm:$0xff] %v9964_v54 }
 0x445   : > { %v3110_v49 = vpop.permute.xlu1 %3109  ;;  %v9922_v48 = vpop.eup %8247 }
 0x446   : > { %12090 = vst [vmem:[#allocation68_spill] sm:$0xff] %v9922_v48  ;;  %v9971_v34 = vpop.f32.mrf.mxu1 }
 0x447   : > { %v3120_v51 = vpop.permute.xlu0 %3119  ;;  %12095 = vst [vmem:[#allocation73_spill] sm:$0xff] %v9971_v34 }
 0x448   : > { %v9975_v27 = vpop.f32.mrf.mxu1 }
 0x449   : > { %v3114_v8 = vpop.permute.xlu1 %3113  ;;  %12096 = vst [vmem:[#allocation74_spill] sm:$0xff] %v9975_v27 }
 0x44a   : > { %v9977_v47 = vpop.f32.mrf.mxu1 }
 0x44b   : > { %v3419_v28 = vpop.permute.xlu0 %3418  ;;  %12097 = vst [vmem:[#allocation75_spill] sm:$0xff] %v9977_v47 }
 0x44c   : > { %7431 = vmatprep.subr.bf16.mxu0 %v3419_v28 }
 0x44d   : > { %7432 = vmatpush3.bf16.msra.mxu0 %v3419_v28  ;;  %v3118_v35 = vpop.permute.xlu1 %3117 }
 0x44f   : > { %v9924_v19 = vpop.eup %8249  ;;  %v3415_v61 = vpop.permute.xlu0 %3414 }
 0x450   : > { %12091 = vst [vmem:[#allocation69_spill] sm:$0xff] %v9924_v19  ;;  %v9926_v57 = vpop.eup %8251  ;;  %v2944_v33 = vpack.c.bf16 %v9924_v19, %v9920_v0 }
 0x451   : > { %12092 = vst [vmem:[#allocation70_spill] sm:$0xff] %v9926_v57  ;;  %v3122_v23 = vpop.permute.xlu1 %3121  ;;  %v2945_v16 = vpack.c.bf16 %v9922_v48, %v9926_v57 }
 0x452   : > { %7395 = vmatprep.mubr.bf16.mxu1 %v2944_v33 }
 0x453   : > { %7396 = vmatmul.mubr.bf16.gmra.mxu1 %v2945_v16  ;;  %v3413_v20 = vpop.permute.xlu0 %3412 }
 0x454   : > { %7415 = vmatprep.mubr.msk.bf16.mxu1 %vm1732_vm0, %v3108_v25 }
 0x455   : > { %v3417_v37 = vpop.permute.xlu1 %3416 }
 0x456   : > { %7433 = vmatprep.subr.bf16.mxu0 %v3417_v37 }
 0x457   : > { %7434 = vmatpush3.bf16.msra.mxu0 %v3417_v37  ;;  %v3411_v40 = vpop.permute.xlu0 %3410 }
 0x458   : > { %7435 = vmatprep.subr.bf16.mxu0 %v3415_v61 }
 0x459   : > { %v3409_v25 = vpop.permute.xlu1 %3408 }
 0x45b   : > { %7416 = vmatmul.mubr.msk.bf16.vlgmr.msra.gmra.mxu1 %vm1732_vm0, %v3110_v49  ;;  %7436 = vmatpush3.bf16.msra.mxu0 %v3415_v61 }
 0x45c   : > { %7496 = vmatpush3.bf16.msra.mxu1 %v9917_v63  ;;  %7419 = vmatprep.mubr.msk.bf16.mxu1 %vm1732_vm0, %v3112_v29  ;;  %v9968_v29 = vld [vmem:[#allocation2 + $0xc] ss:$16 sps:$4 sm:$0xff]  }
 0x45d   : > { %7437 = vmatprep.subr.bf16.mxu0 %v3413_v20  ;;  %7497 = vmatprep.subr.bf16.mxu1 %v9934_v10 }
 0x45f   : > { %7438 = vmatpush3.bf16.msra.mxu0 %v3413_v20 }
 0x460   : > { %7498 = vmatpush3.bf16.msra.mxu1 %v9934_v10  ;;  %7439 = vmatprep.subr.bf16.mxu0 %v3411_v40 }
 0x461   : > { %7499 = vmatprep.subr.bf16.mxu1 %v9939_v3 }
 0x463   : > { %7420 = vmatmul.mubr.msk.bf16.gmra.mxu1 %vm1732_vm0, %v3114_v8  ;;  %7440 = vmatpush3.bf16.msra.mxu0 %v3411_v40 }
 0x464   : > { %7500 = vmatpush3.bf16.msra.mxu1 %v9939_v3  ;;  %7423 = vmatprep.mubr.msk.bf16.mxu1 %vm1732_vm0, %v3116_v53  ;;  %v9979_v53 = vpop.f32.mrf.mxu1 }
 0x465   : > { %7441 = vmatprep.subr.bf16.mxu0 %v3409_v25  ;;  %7501 = vmatprep.subr.bf16.mxu1 %v9944_v56  ;;  %12098 = vst [vmem:[#allocation76_spill] sm:$0xff] %v9979_v53 }
 0x466   : > { %v9981_v49 = vpop.f32.mrf.mxu1 }
 0x467   : > { %7442 = vmatpush3.bf16.msra.mxu0 %v3409_v25  ;;  %12099 = vst [vmem:[#allocation77_spill] sm:$0xff] %v9981_v49 }
 0x468   : > { %7502 = vmatpush3.bf16.msra.mxu1 %v9944_v56 }
 0x469   : > { %7503 = vmatprep.subr.bf16.mxu1 %v9949_v6 }
 0x46b   : > { %7424 = vmatmul.mubr.msk.bf16.gmra.mxu1 %vm1732_vm0, %v3118_v35 }
 0x46c   : > { %7504 = vmatpush3.bf16.msra.mxu1 %v9949_v6  ;;  %7427 = vmatprep.mubr.msk.bf16.mxu1 %vm1732_vm0, %v3120_v51  ;;  %v9983_v51 = vpop.f32.mrf.mxu1 }
 0x46d   : > { %7505 = vmatprep.subr.bf16.mxu1 %v9954_v43  ;;  %12100 = vst [vmem:[#allocation78_spill] sm:$0xff] %v9983_v51 }
 0x46e   : > { %v9985_v8 = vpop.f32.mrf.mxu1 }
 0x46f   : > { %12101 = vst [vmem:[#allocation79_spill] sm:$0xff] %v9985_v8 }
 0x470   : > { %7506 = vmatpush3.bf16.msra.mxu1 %v9954_v43  ;;  %v9987_v28 = vpop.f32.mrf.mxu1 }
 0x471   : > { %7507 = vmatprep.subr.bf16.mxu1 %v9961_v52  ;;  %12102 = vst [vmem:[#allocation80_spill] sm:$0xff] %v9987_v28 }
 0x472   : > { %v9989_v35 = vpop.f32.mrf.mxu1 }
 0x473   : > { %7428 = vmatmul.mubr.msk.bf16.gmra.mxu1 %vm1732_vm0, %v3122_v23  ;;  %12103 = vst [vmem:[#allocation81_spill] sm:$0xff] %v9989_v35 }
 0x474   : > { %7508 = vmatpush3.bf16.msra.mxu1 %v9961_v52  ;;  %v9991_v33 = vpop.f32.mrf.mxu1 }
 0x475   : > { %7509 = vmatprep.subr.bf16.mxu1 %v9968_v29  ;;  %12104 = vst [vmem:[#allocation82_spill] sm:$0xff] %v9991_v33 }
 0x476   : > { %v9993_v23 = vpop.f32.mrf.mxu1 }
 0x477   : > { %12105 = vst [vmem:[#allocation83_spill] sm:$0xff] %v9993_v23 }
 0x478   : > { %7510 = vmatpush3.bf16.msra.mxu1 %v9968_v29  ;;  %v9995_v16 = vpop.f32.mrf.mxu1 }
 0x479   : > { %12106 = vst [vmem:[#allocation84_spill] sm:$0xff] %v9995_v16 }
 0x47a   : > { %v9997_v61 = vpop.f32.mrf.mxu1 }
 0x47b   : > { %12107 = vst [vmem:[#allocation85_spill] sm:$0xff] %v9997_v61 }
 0x47c   : > { %v9999_v37 = vpop.f32.mrf.mxu1 }
 0x47d   : > { %12108 = vst [vmem:[#allocation86_spill] sm:$0xff] %v9999_v37 }
 0x485   : > { %v10001_v20 = vpop.f32.mrf.mxu1 }
 0x486   : > { %12109 = vst [vmem:[#allocation87_spill] sm:$0xff] %v10001_v20 }
 0x487   : > { %v10003_v40 = vpop.f32.mrf.mxu1 }
 0x488   : > { %12110 = vst [vmem:[#allocation88_spill] sm:$0xff] %v10003_v40 }
 0x489   : > { %v10005_v25 = vpop.f32.mrf.mxu1 }
 0x48a   : > { %12111 = vst [vmem:[#allocation89_spill] sm:$0xff] %v10005_v25 }
 0x48b   : > { %v10007_v49 = vpop.f32.mrf.mxu1 }
 0x48c   : > { %12112 = vst [vmem:[#allocation90_spill] sm:$0xff] %v10007_v49  ;;  %v10107_v49 = vld [vmem:[#allocation2 + $0xc4] ss:$16 sps:$4 sm:$0xff]  }
 0x491   : > { %v10009_v28 = vpop.f32.mrf.mxu1 }
 0x492   : > { %12113 = vst [vmem:[#allocation91_spill] sm:$0xff] %v10009_v28 }
 0x493   : > { %v10011_v47 = vpop.f32.mrf.mxu1 }
 0x494   : > { %12114 = vst [vmem:[#allocation92_spill] sm:$0xff] %v10011_v47 }
 0x495   : > { %v10013_v33 = vpop.f32.mrf.mxu1 }
 0x496   : > { %12115 = vst [vmem:[#allocation93_spill] sm:$0xff] %v10013_v33 }
 0x497   : > { %v10015_v23 = vpop.f32.mrf.mxu1 }
 0x498   : > { %12116 = vst [vmem:[#allocation94_spill] sm:$0xff] %v10015_v23 }
 0x499   : > { %v10017_v16 = vpop.f32.mrf.mxu1 }
 0x49a   : > { %12117 = vst [vmem:[#allocation95_spill] sm:$0xff] %v10017_v16 }
 0x49b   : > { %v10019_v61 = vpop.f32.mrf.mxu1 }
 0x49c   : > { %12118 = vst [vmem:[#allocation96_spill] sm:$0xff] %v10019_v61 }
 0x49d   : > { %v10021_v37 = vpop.f32.mrf.mxu1 }
 0x49e   : > { %12119 = vst [vmem:[#allocation97_spill] sm:$0xff] %v10021_v37 }
 0x49f   : > { %v10023_v51 = vpop.f32.mrf.mxu1 }
 0x4a0   : > { %12120 = vst [vmem:[#allocation98_spill] sm:$0xff] %v10023_v51 }
 0x4a1   : > { %v10025_v53 = vpop.f32.mrf.mxu1 }
 0x4a2   : > { %12121 = vst [vmem:[#allocation99_spill] sm:$0xff] %v10025_v53 }
 0x4a3   : > { %v10027_v35 = vpop.f32.mrf.mxu1 }
 0x4a4   : > { %12122 = vst [vmem:[#allocation100_spill] sm:$0xff] %v10027_v35 }
 0x4a5   : > { %v10029_v8 = vpop.f32.mrf.mxu1 }
 0x4a6   : > { %12123 = vst [vmem:[#allocation101_spill] sm:$0xff] %v10029_v8 }
 0x4a7   : > { %v10031_v34 = vpop.f32.mrf.mxu1 }
 0x4a8   : > { %12124 = vst [vmem:[#allocation102_spill] sm:$0xff] %v10031_v34 }
 0x4c6   : > { %v10033_v36 = vpop.f32.mrf.mxu1 }
 0x4c7   : > { %12125 = vst [vmem:[#allocation103_spill] sm:$0xff] %v10033_v36 }
 0x4c8   : > { %v10035_v33 = vpop.f32.mrf.mxu1 }
 0x4c9   : > { %12126 = vst [vmem:[#allocation104_spill] sm:$0xff] %v10035_v33  ;;  %v10103_v33 = vld [vmem:[#allocation2 + $0xe4] ss:$16 sps:$4 sm:$0xff]  }
 0x4ca   : > { %v10037_v28 = vpop.f32.mrf.mxu1 }
 0x4cb   : > { %12127 = vst [vmem:[#allocation105_spill] sm:$0xff] %v10037_v28 }
 0x4cc   : > { %v10039_v16 = vpop.f32.mrf.mxu1 }
 0x4cd   : > { %12128 = vst [vmem:[#allocation106_spill] sm:$0xff] %v10039_v16 }
 0x4ce   : > { %v10041_v61 = vpop.f32.mrf.mxu1 }
 0x4cf   : > { %12129 = vst [vmem:[#allocation107_spill] sm:$0xff] %v10041_v61 }
 0x4d0   : > { %v10043_v37 = vpop.f32.mrf.mxu1 }
 0x4d1   : > { %12130 = vst [vmem:[#allocation108_spill] sm:$0xff] %v10043_v37 }
 0x4d2   : > { %v10045_v51 = vpop.f32.mrf.mxu1 }
 0x4d3   : > { %12131 = vst [vmem:[#allocation109_spill] sm:$0xff] %v10045_v51 }
 0x4d4   : > { %v10047_v53 = vpop.f32.mrf.mxu1 }
 0x4d5   : > { %12132 = vst [vmem:[#allocation110_spill] sm:$0xff] %v10047_v53 }
 0x4de   : > { %v10049_v35 = vpop.f32.mrf.mxu1 }
 0x4df   : > { %12133 = vst [vmem:[#allocation111_spill] sm:$0xff] %v10049_v35 }
 0x4e0   : > { %v10051_v8 = vpop.f32.mrf.mxu1 }
 0x4e1   : > { %12134 = vst [vmem:[#allocation112_spill] sm:$0xff] %v10051_v8  ;;  %v8674_v8 = vld [vmem:[#allocation2 + $0x28] ss:$16 sps:$4 sm:$0xff]  }
 0x4e2   : > { %v10053_v34 = vpop.f32.mrf.mxu1 }
 0x4e3   : > { %12135 = vst [vmem:[#allocation113_spill] sm:$0xff] %v10053_v34  ;;  %v8675_v34 = vld [vmem:[#allocation2 + $0x8] ss:$16 sps:$4 sm:$0xff]  }
 0x4e4   : > { %v10055_v23 = vpop.f32.mrf.mxu1 }
 0x4e5   : > { %12136 = vst [vmem:[#allocation114_spill] sm:$0xff] %v10055_v23 }
 0x513   : > { %v10057_v47 = vpop.f32.mrf.mxu1 }
 0x514   : > { %12137 = vst [vmem:[#allocation115_spill] sm:$0xff] %v10057_v47 }
 0x515   : > { %v10059_v28 = vpop.f32.mrf.mxu1 }
 0x516   : > { %12138 = vst [vmem:[#allocation116_spill] sm:$0xff] %v10059_v28 }
 0x517   : > { %v10061_v36 = vpop.f32.mrf.mxu1 }
 0x518   : > { %12139 = vst [vmem:[#allocation117_spill] sm:$0xff] %v10061_v36 }
 0x519   : > { %v10063_v61 = vpop.f32.mrf.mxu1 }
 0x51a   : > { %12140 = vst [vmem:[#allocation118_spill] sm:$0xff] %v10063_v61 }
 0x51b   : > { %v7417_v37 = vpop.f32.mrf.mxu1 }
 0x51c   : > { %3288 = vmax.xlane.f32.xlu1 %v7417_v37 }
 0x51d   : > { %v3221_v51 = vpop.f32.mrf.mxu1 }
 0x51e   : > { %3284 = vmax.xlane.f32.xlu0 %v3221_v51 }
 0x51f   : > { %v7418_v53 = vpop.f32.mrf.mxu1 }
 0x520   : > { %3290 = vmax.xlane.f32.xlu1 %v7418_v53 }
 0x521   : > { %v3224_v35 = vpop.f32.mrf.mxu1 }
 0x523   : > { %v10067_v47 = vpop.f32.mrf.mxu1 }
 0x524   : > { %3286 = vmax.xlane.f32.xlu1 %v3224_v35 }
 0x525   : > { %v10069_v28 = vpop.f32.mrf.mxu1 }
 0x527   : > { %v10071_v36 = vpop.f32.mrf.mxu1 }
 0x529   : > { %v10073_v61 = vpop.f32.mrf.mxu1 }
 0x52b   : > { %v10075_v23 = vpop.f32.mrf.mxu1 }
 0x52d   : > { %v10077_v27 = vpop.f32.mrf.mxu1 }
 0x52f   : > { %v10079_v54 = vpop.f32.mrf.mxu1 }
 0x534   : > { %3406 = vrot.lane.b32.xlu0 %v8674_v8, %s8890_s28  ;;  %v10082_v8 = vpop.f32.mrf.mxu1 }
 0x535   : > { %3404 = vrot.lane.b32.xlu1 %v8675_v34, %s8890_s28 }
 0x536   : > { %v10086_v34 = vpop.f32.mrf.mxu1 }
 0x538   : > { %v10090_v25 = vpop.f32.mrf.mxu1 }
 0x53a   : > { %v10094_v20 = vpop.f32.mrf.mxu1 }
 0x53c   : > { %v10098_v16 = vpop.f32.mrf.mxu1 }
 0x553   : > { %3292 = vmax.xlane.f32.xlu0 %v10069_v28 }
 0x557   : > { %3296 = vmax.xlane.f32.xlu0 %v10067_v47 }
 0x559   : > { %3294 = vmax.xlane.f32.xlu1 %v10073_v61 }
 0x55b   : > { %3298 = vmax.xlane.f32.xlu0 %v10071_v36 }
 0x55d   : > { %3300 = vmax.xlane.f32.xlu1 %v10077_v27 }
 0x55f   : > { %3302 = vmax.xlane.f32.xlu0 %v10082_v8 }
 0x561   : > { %3304 = vmax.xlane.f32.xlu1 %v10075_v23 }
 0x563   : > { %3306 = vmax.xlane.f32.xlu0 %v10079_v54 }
 0x565   : > { %3308 = vmax.xlane.f32.xlu1 %v10090_v25 }
 0x567   : > { %3310 = vmax.xlane.f32.xlu0 %v10098_v16 }
 0x569   : > { %3312 = vmax.xlane.f32.xlu1 %v10086_v34 }
 0x56b   : > { %3314 = vmax.xlane.f32.xlu0 %v10094_v20 }
 0x57a   : > { %4327 = vrot.lane.b32.xlu1 %v10103_v33, %s8888_s1 }
 0x57e   : > { %4325 = vrot.lane.b32.xlu1 %v10107_v49, %s8888_s1 }
 0x5a5   : > { %v3289_v40 = vpop.xlane.xlu1 %3288 }
 0x5a6   : > { %v3318_v57 = vsub.f32 %v7417_v37, %v3289_v40 }
 0x5a7   : > { %v3285_v59 = vpop.xlane.xlu0 %3284 }
 0x5a8   : > { %v3316_v46 = vsub.f32 %v3221_v51, %v3285_v59  ;;  %v3336_v13 = vmul.f32 1.442695, %v3318_v57  ;;  %v10143_v57 = vld [vmem:[#allocation2 + $0x64] ss:$16 sps:$4 sm:$0xff]  }
 0x5a9   : > { %v3291_v24 = vpop.xlane.xlu1 %3290 }
 0x5aa   : > { %v3319_v42 = vsub.f32 %v7418_v53, %v3291_v24  ;;  %v3332_v60 = vmul.f32 1.442695, %v3316_v46 }
 0x5ab   : > { %v3407_v44 = vpop.permute.xlu0 %3406 }
 0x5ac   : > { %7443 = vmatprep.subr.bf16.mxu0 %v3407_v44  ;;  %v3338_v48 = vmul.f32 1.442695, %v3319_v42  ;;  %8253 = vpow2.f32 %v3332_v60 }
 0x5ad   : > { %7444 = vmatpush3.bf16.msra.mxu0 %v3407_v44  ;;  %v3287_v0 = vpop.xlane.xlu1 %3286 }
 0x5ae   : > { %v3317_v41 = vsub.f32 %v3224_v35, %v3287_v0  ;;  %8255 = vpow2.f32 %v3338_v48  ;;  %v10137_v48 = vld [vmem:[#allocation2 + $0x84] ss:$16 sps:$4 sm:$0xff]  }
 0x5b0   : > { %v3334_v19 = vmul.f32 1.442695, %v3317_v41  ;;  %v3882_v41 = vsel %vm1732_vm0, %v10107_v49, 0 }
 0x5b1   : > { %v3405_v7 = vpop.permute.xlu1 %3404 }
 0x5b2   : > { %8257 = vpow2.f32 %v3334_v19  ;;  %7445 = vmatprep.subr.bf16.mxu0 %v3405_v7  ;;  %v3876_v19 = vsel %vm1732_vm0, %v10137_v48, 0 }
 0x5b3   : > { %8259 = vpow2.f32 %v3336_v13  ;;  %7446 = vmatpush3.bf16.msra.mxu0 %v3405_v7  ;;  %v3885_v13 = vsel %vm1732_vm0, %v10103_v33, 0  ;;  %v10131_v7 = vld [vmem:[#allocation2 + $0xa4] ss:$16 sps:$4 sm:$0xff]  }
 0x5b4   : > { %7751 = vmatprep.subr.msk.bf16.mxu0 %vm1732_vm0, %v10103_v33  ;;  %v3879_v0 = vsel %vm1732_vm0, %v10131_v7, 0 }
 0x5b9   : > { %v10113_v24 = vpop.eup %8253 }
 0x5bb   : > { %v10115_v59 = vpop.eup %8255 }
 0x5bf   : > { %v10117_v42 = vpop.eup %8257 }
 0x5c0   : > { %v10119_v46 = vpop.eup %8259  ;;  %v3396_v60 = vpack.c.bf16 %v10117_v42, %v10113_v24 }
 0x5c1   : > { %12141 = vst [vmem:[#allocation119_spill] sm:$0xff] %v10119_v46  ;;  %v3397_v44 = vpack.c.bf16 %v10115_v59, %v10119_v46 }
 0x5c2   : > { %7447 = vmatprep.mubr.bf16.mxu0 %v3396_v60 }
 0x5c3   : > { %7448 = vmatmul.mubr.bf16.vlgmr.msra.gmra.mxu0 %v3397_v44 }
 0x5c4   : > { %7464 = vmatpush3.bf16.xpose.msra.mxu0 %v3885_v13  ;;  %v3873_v13 = vsel %vm1732_vm0, %v10143_v57, 0 }
 0x5c5   : > { %7752 = vmatprep.subr.msk.bf16.mxu0 %vm1732_vm0, %v10107_v49 }
 0x5cc   : > { %7466 = vmatpush3.bf16.xpose.msra.mxu0 %v3882_v41  ;;  %v10152_v41 = vld [vmem:[#allocation2 + $0x44] ss:$16 sps:$4 sm:$0xff]  }
 0x5cd   : > { %7753 = vmatprep.subr.msk.bf16.mxu0 %vm1732_vm0, %v10131_v7  ;;  %v3870_v9 = vsel %vm1732_vm0, %v10152_v41, 0 }
 0x5d4   : > { %7468 = vmatpush3.bf16.xpose.msra.mxu0 %v3879_v0 }
 0x5d5   : > { %7754 = vmatprep.subr.msk.bf16.mxu0 %vm1732_vm0, %v10137_v48 }
 0x5dc   : > { %7470 = vmatpush3.bf16.xpose.msra.mxu0 %v3876_v19  ;;  %v3293_v53 = vpop.xlane.xlu0 %3292 }
 0x5dd   : > { %7755 = vmatprep.subr.msk.bf16.mxu0 %vm1732_vm0, %v10143_v57  ;;  %v3320_v51 = vsub.f32 %v10069_v28, %v3293_v53 }
 0x5df   : > { %v3340_v40 = vmul.f32 1.442695, %v3320_v51 }
 0x5e0   : > { %v3297_v35 = vpop.xlane.xlu0 %3296 }
 0x5e1   : > { %v3322_v37 = vsub.f32 %v10067_v47, %v3297_v35  ;;  %8261 = vpow2.f32 %v3340_v40 }
 0x5e2   : > { %v3295_v60 = vpop.xlane.xlu1 %3294 }
 0x5e3   : > { %v3321_v44 = vsub.f32 %v10073_v61, %v3295_v60  ;;  %v3344_v0 = vmul.f32 1.442695, %v3322_v37 }
 0x5e4   : > { %7472 = vmatpush3.bf16.xpose.msra.mxu0 %v3873_v13  ;;  %v3299_v19 = vpop.xlane.xlu0 %3298 }
 0x5e5   : > { %v3342_v50 = vmul.f32 1.442695, %v3321_v44  ;;  %7756 = vmatprep.subr.msk.bf16.mxu0 %vm1732_vm0, %v10152_v41  ;;  %v3323_v28 = vsub.f32 %v10071_v36, %v3299_v19  ;;  %v10162_v36 = vld [vmem:[#allocation2 + $0x24] ss:$16 sps:$4 sm:$0xff]  }
 0x5e6   : > { %v3301_v47 = vpop.xlane.xlu1 %3300 }
 0x5e7   : > { %8263 = vpow2.f32 %v3342_v50  ;;  %v3346_v53 = vmul.f32 1.442695, %v3323_v28  ;;  %v3324_v61 = vsub.f32 %v10077_v27, %v3301_v47 }
 0x5e8   : > { %8265 = vpow2.f32 %v3344_v0  ;;  %v3303_v51 = vpop.xlane.xlu0 %3302 }
 0x5e9   : > { %8267 = vpow2.f32 %v3346_v53  ;;  %v3348_v35 = vmul.f32 1.442695, %v3324_v61  ;;  %v3325_v37 = vsub.f32 %v10082_v8, %v3303_v51 }
 0x5ea   : > { %v3305_v60 = vpop.xlane.xlu1 %3304 }
 0x5eb   : > { %v3350_v13 = vmul.f32 1.442695, %v3325_v37  ;;  %v3326_v44 = vsub.f32 %v10075_v23, %v3305_v60  ;;  %8269 = vpow2.f32 %v3348_v35  ;;  %v3867_v35 = vsel %vm1732_vm0, %v10162_v36, 0 }
 0x5ec   : > { %7474 = vmatpush3.bf16.xpose.msra.mxu0 %v3870_v9  ;;  %v3307_v50 = vpop.xlane.xlu0 %3306 }
 0x5ed   : > { %8271 = vpow2.f32 %v3350_v13  ;;  %v3352_v27 = vmul.f32 1.442695, %v3326_v44  ;;  %7757 = vmatprep.subr.msk.bf16.mxu0 %vm1732_vm0, %v10162_v36  ;;  %v3327_v40 = vsub.f32 %v10079_v54, %v3307_v50  ;;  %v10174_v54 = vld [vmem:[#allocation2 + $0x4] ss:$16 sps:$4 sm:$0xff]  }
 0x5ee   : > { %v3309_v8 = vpop.xlane.xlu1 %3308  ;;  %v10169_v9 = vpop.eup %8261 }
 0x5ef   : > { %v3354_v0 = vmul.f32 1.442695, %v3327_v40  ;;  %v3328_v19 = vsub.f32 %v10090_v25, %v3309_v8  ;;  %8273 = vpow2.f32 %v3352_v27  ;;  %12142 = vst [vmem:[#allocation120_spill] sm:$0xff] %v10169_v9 }
 0x5f0   : > { %v3311_v23 = vpop.xlane.xlu0 %3310 }
 0x5f1   : > { %8275 = vpow2.f32 %v3354_v0  ;;  %v3356_v28 = vmul.f32 1.442695, %v3328_v19  ;;  %v3329_v47 = vsub.f32 %v10098_v16, %v3311_v23  ;;  %v3864_v0 = vsel %vm1732_vm0, %v10174_v54, 0 }
 0x5f2   : > { %v3313_v53 = vpop.xlane.xlu1 %3312 }
 0x5f3   : > { %v3358_v61 = vmul.f32 1.442695, %v3329_v47  ;;  %v3330_v51 = vsub.f32 %v10086_v34, %v3313_v53  ;;  %8277 = vpow2.f32 %v3356_v28 }
 0x5f4   : > { %v10176_v37 = vpop.eup %8263  ;;  %7476 = vmatpush3.bf16.xpose.msra.mxu0 %v3867_v35  ;;  %v3315_v25 = vpop.xlane.xlu0 %3314 }
 0x5f5   : > { %12143 = vst [vmem:[#allocation121_spill] sm:$0xff] %v10176_v37  ;;  %v10178_v60 = vpop.eup %8265  ;;  %8279 = vpow2.f32 %v3358_v61  ;;  %v3360_v16 = vmul.f32 1.442695, %v3330_v51  ;;  %7758 = vmatprep.subr.msk.bf16.mxu0 %vm1732_vm0, %v10174_v54  ;;  %v3331_v13 = vsub.f32 %v10094_v20, %v3315_v25  ;;  %v3398_v34 = vpack.c.bf16 %v10176_v37, %v10169_v9 }
 0x5f6   : > { %12144 = vst [vmem:[#allocation122_spill] sm:$0xff] %v10178_v60  ;;  %v10185_v44 = vpop.eup %8267  ;;  %v10187_v50 = vpop.permute.xlu1 %4327 }
 0x5f7   : > { %12145 = vst [vmem:[#allocation123_spill] sm:$0xff] %v10185_v44  ;;  %v3362_v27 = vmul.f32 1.442695, %v3331_v13  ;;  %7451 = vmatprep.mubr.bf16.mxu0 %v3398_v34  ;;  %7759 = vmatprep.subr.msk.bf16.mxu1 %vm1732_vm0, %v10187_v50  ;;  %v3399_v40 = vpack.c.bf16 %v10185_v44, %v10178_v60  ;;  %8281 = vpow2.f32 %v3360_v16  ;;  %v12154_v13 = vld [vmem:[#allocation17_spill] sm:$0xff]  ;;  %v12155_v34 = vld [vmem:[#allocation18_spill] sm:$0xff] }
 0x5f8   : > { %v10193_v8 = vpop.eup %8269 }
 0x5f9   : > { %12146 = vst [vmem:[#allocation124_spill] sm:$0xff] %v10193_v8  ;;  %8283 = vpow2.f32 %v3362_v27  ;;  %7452 = vmatmul.mubr.bf16.gmra.mxu0 %v3399_v40  ;;  %v10221_v27 = vpack.c.bf16 %v12155_v34, %v12154_v13  ;;  %v12156_v40 = vld [vmem:[#allocation19_spill] sm:$0xff]  ;;  %v12161_v34 = vld [vmem:[#allocation24_spill] sm:$0xff] }
 0x5fa   : > { %v10195_v20 = vpop.eup %8271  ;;  %v12160_v13 = vld [vmem:[#allocation23_spill] sm:$0xff]  ;;  %v4326_v22 = vpop.permute.xlu1 %4325 }
 0x5fb   : > { %12147 = vst [vmem:[#allocation125_spill] sm:$0xff] %v10195_v20  ;;  %v3400_v19 = vpack.c.bf16 %v10195_v20, %v10193_v8 }
 0x5fc   : > { %7478 = vmatpush3.bf16.xpose.msra.mxu0 %v3864_v0  ;;  %v10201_v23 = vpop.eup %8273  ;;  %v12157_v0 = vld [vmem:[#allocation20_spill] sm:$0xff] }
 0x5fd   : > { %12148 = vst [vmem:[#allocation126_spill] sm:$0xff] %v10201_v23  ;;  %7455 = vmatprep.mubr.bf16.mxu0 %v3400_v19  ;;  %v10227_v19 = vpack.c.bf16 %v12157_v0, %v12156_v40  ;;  %v12165_v40 = vld [vmem:[#allocation28_spill] sm:$0xff] }
 0x5fe   : > { %v10203_v28 = vpop.eup %8275 }
 0x5ff   : > { %12149 = vst [vmem:[#allocation127_spill] sm:$0xff] %v10203_v28  ;;  %v3401_v47 = vpack.c.bf16 %v10203_v28, %v10201_v23  ;;  %v12167_v23 = vld [vmem:[#allocation30_spill] sm:$0xff] }
 0x600   : > { %v10207_v53 = vpop.eup %8277 }
 0x601   : > { %12150 = vst [vmem:[#allocation128_spill] sm:$0xff] %v10207_v53  ;;  %7456 = vmatmul.mubr.bf16.gmra.mxu0 %v3401_v47  ;;  %v12158_v47 = vld [vmem:[#allocation21_spill] sm:$0xff] }
 0x602   : > { %v10209_v61 = vpop.eup %8279 }
 0x603   : > { %12151 = vst [vmem:[#allocation129_spill] sm:$0xff] %v10209_v61  ;;  %v3402_v51 = vpack.c.bf16 %v10209_v61, %v10207_v53  ;;  %v12159_v53 = vld [vmem:[#allocation22_spill] sm:$0xff] }
 0x604   : > { %v10213_v35 = vpop.eup %8281 }
 0x605   : > { %12152 = vst [vmem:[#allocation130_spill] sm:$0xff] %v10213_v35  ;;  %7459 = vmatprep.mubr.bf16.mxu0 %v3402_v51  ;;  %v10231_v51 = vpack.c.bf16 %v12159_v53, %v12158_v47  ;;  %v12164_v53 = vld [vmem:[#allocation27_spill] sm:$0xff]  ;;  %v12166_v47 = vld [vmem:[#allocation29_spill] sm:$0xff] }
 0x606   : > { %v10215_v25 = vpop.eup %8283  ;;  %v10251_v0 = vpack.c.bf16 %v12165_v40, %v12164_v53  ;;  %v10255_v28 = vpack.c.bf16 %v12167_v23, %v12166_v47 }
 0x607   : > { %12153 = vst [vmem:[#allocation131_spill] sm:$0xff] %v10215_v25  ;;  %v3403_v16 = vpack.c.bf16 %v10215_v25, %v10213_v35  ;;  %v12162_v35 = vld [vmem:[#allocation25_spill] sm:$0xff]  ;;  %v12163_v25 = vld [vmem:[#allocation26_spill] sm:$0xff] }
 0x608   : > { %v10243_v61 = vpack.c.bf16 %v12163_v25, %v12162_v35  ;;  %v12168_v35 = vld [vmem:[#allocation31_spill] sm:$0xff]  ;;  %v12169_v25 = vld [vmem:[#allocation44_spill] sm:$0xff] }
 0x609   : > { %7460 = vmatmul.mubr.bf16.gmra.mxu0 %v3403_v16  ;;  %v10239_v16 = vpack.c.bf16 %v12161_v34, %v12160_v13  ;;  %v10263_v13 = vpack.c.bf16 %v12169_v25, %v12168_v35 }
 0x60a   : > { %7479 = vmatprep.mubr.msk.bf16.mxu0 %vm1732_vm0, %v10221_v27 }
 0x611   : > { %7480 = vmatmul.mubr.msk.bf16.vlgmr.msra.gmra.mxu0 %vm1732_vm0, %v10227_v19 }
 0x612   : > { %7483 = vmatprep.mubr.msk.bf16.mxu0 %vm1732_vm0, %v10231_v51 }
 0x619   : > { %7484 = vmatmul.mubr.msk.bf16.gmra.mxu0 %vm1732_vm0, %v10239_v16 }
 0x61a   : > { %7487 = vmatprep.mubr.msk.bf16.mxu0 %vm1732_vm0, %v10243_v61 }
 0x621   : > { %7488 = vmatmul.mubr.msk.bf16.gmra.mxu0 %vm1732_vm0, %v10251_v0 }
 0x622   : > { %7491 = vmatprep.mubr.msk.bf16.mxu0 %vm1732_vm0, %v10255_v28 }
 0x629   : > { %7492 = vmatmul.mubr.msk.bf16.gmra.mxu0 %vm1732_vm0, %v10263_v13 }
 0x683   : > { %v10267_v34 = vpop.f32.mrf.mxu0 }
 0x684   : > { %12170 = vst [vmem:[#allocation17_spill] sm:$0xff] %v10267_v34 }
 0x685   : > { %v10269_v53 = vpop.f32.mrf.mxu0 }
 0x686   : > { %12171 = vst [vmem:[#allocation18_spill] sm:$0xff] %v10269_v53 }
 0x687   : > { %v10271_v40 = vpop.f32.mrf.mxu0 }
 0x688   : > { %12172 = vst [vmem:[#allocation19_spill] sm:$0xff] %v10271_v40 }
 0x689   : > { %v10273_v23 = vpop.f32.mrf.mxu0 }
 0x68a   : > { %12173 = vst [vmem:[#allocation20_spill] sm:$0xff] %v10273_v23 }
 0x6b9   : > { %v10275_v47 = vpop.f32.mrf.mxu0 }
 0x6ba   : > { %12174 = vst [vmem:[#allocation21_spill] sm:$0xff] %v10275_v47 }
 0x6bb   : > { %v10277_v8 = vpop.f32.mrf.mxu0 }
 0x6bc   : > { %12175 = vst [vmem:[#allocation22_spill] sm:$0xff] %v10277_v8 }
 0x6bd   : > { %v10279_v26 = vpop.f32.mrf.mxu0 }
 0x6be   : > { %12176 = vst [vmem:[#allocation23_spill] sm:$0xff] %v10279_v26 }
 0x6bf   : > { %v10281_v12 = vpop.f32.mrf.mxu0 }
 0x6c0   : > { %12177 = vst [vmem:[#allocation24_spill] sm:$0xff] %v10281_v12 }
 0x6c1   : > { %v10283_v35 = vpop.f32.mrf.mxu0 }
 0x6c2   : > { %12178 = vst [vmem:[#allocation25_spill] sm:$0xff] %v10283_v35 }
 0x6c3   : > { %v10285_v25 = vpop.f32.mrf.mxu0 }
 0x6c4   : > { %12179 = vst [vmem:[#allocation26_spill] sm:$0xff] %v10285_v25 }
 0x6c5   : > { %v10287_v58 = vpop.f32.mrf.mxu0 }
 0x6c6   : > { %12180 = vst [vmem:[#allocation27_spill] sm:$0xff] %v10287_v58 }
 0x6c7   : > { %v10289_v34 = vpop.f32.mrf.mxu0 }
 0x6c8   : > { %12181 = vst [vmem:[#allocation28_spill] sm:$0xff] %v10289_v34 }
 0x6c9   : > { %v10291_v53 = vpop.f32.mrf.mxu0 }
 0x6ca   : > { %12182 = vst [vmem:[#allocation29_spill] sm:$0xff] %v10291_v53 }
 0x6cb   : > { %v10293_v40 = vpop.f32.mrf.mxu0 }
 0x6cc   : > { %12183 = vst [vmem:[#allocation30_spill] sm:$0xff] %v10293_v40 }
 0x6cd   : > { %v10295_v23 = vpop.f32.mrf.mxu0 }
 0x6ce   : > { %12184 = vst [vmem:[#allocation31_spill] sm:$0xff] %v10295_v23 }
 0x6cf   : > { %v10297_v47 = vpop.f32.mrf.mxu0 }
 0x6d0   : > { %12185 = vst [vmem:[#allocation44_spill] sm:$0xff] %v10297_v47 }
 0x6d1   : > { %v7481_v8 = vpop.f32.mrf.mxu0 }
 0x6d2   : > { %3988 = vmax.xlane.f32.xlu1 %v7481_v8 }
 0x6d3   : > { %v3921_v26 = vpop.f32.mrf.mxu0 }
 0x6d5   : > { %v7482_v12 = vpop.f32.mrf.mxu0 }
 0x6d6   : > { %3984 = vmax.xlane.f32.xlu1 %v3921_v26  ;;  %3990 = vmax.xlane.f32.xlu0 %v7482_v12 }
 0x6d7   : > { %v3924_v35 = vpop.f32.mrf.mxu0 }
 0x6d9   : > { %v10301_v58 = vpop.f32.mrf.mxu0 }
 0x6da   : > { %3986 = vmax.xlane.f32.xlu0 %v3924_v35 }
 0x6db   : > { %v10305_v53 = vpop.f32.mrf.mxu0 }
 0x6dd   : > { %v10307_v23 = vpop.f32.mrf.mxu0 }
 0x6df   : > { %v10309_v47 = vpop.f32.mrf.mxu0 }
 0x6e1   : > { %v10311_v40 = vpop.f32.mrf.mxu0 }
 0x6e3   : > { %v10313_v34 = vpop.f32.mrf.mxu0 }
 0x6e5   : > { %v10315_v25 = vpop.f32.mrf.mxu0 }
 0x6e7   : > { %4321 = vrot.lane.b32.xlu1 %v10137_v48, %s8888_s1  ;;  %v10317_v30 = vpop.f32.mrf.mxu0 }
 0x6e9   : > { %v10320_v20 = vpop.f32.mrf.mxu0 }
 0x6eb   : > { %v10334_v60 = vpop.f32.mrf.mxu0 }
 0x6ed   : > { %v10341_v21 = vpop.f32.mrf.mxu0 }
 0x6ef   : > { %v10346_v5 = vpop.f32.mrf.mxu0 }
 0x6f0   : > { %4323 = vrot.lane.b32.xlu0 %v10131_v7, %s8888_s1 }
 0x70b   : > { %4002 = vmax.xlane.f32.xlu1 %v10317_v30 }
 0x70f   : > { %3996 = vmax.xlane.f32.xlu0 %v10301_v58  ;;  %4012 = vmax.xlane.f32.xlu1 %v10320_v20 }
 0x713   : > { %3992 = vmax.xlane.f32.xlu0 %v10305_v53 }
 0x717   : > { %3998 = vmax.xlane.f32.xlu0 %v10307_v23 }
 0x71b   : > { %3994 = vmax.xlane.f32.xlu0 %v10309_v47 }
 0x71f   : > { %4004 = vmax.xlane.f32.xlu0 %v10311_v40 }
 0x720   : > { %4317 = vrot.lane.b32.xlu1 %v10152_v41, %s8888_s1 }
 0x723   : > { %4000 = vmax.xlane.f32.xlu0 %v10313_v34 }
 0x724   : > { %4315 = vrot.lane.b32.xlu1 %v10162_v36, %s8888_s1 }
 0x727   : > { %4006 = vmax.xlane.f32.xlu0 %v10315_v25 }
 0x72b   : > { %4008 = vmax.xlane.f32.xlu0 %v10334_v60 }
 0x741   : > { %4319 = vrot.lane.b32.xlu0 %v10143_v57, %s8888_s1 }
 0x745   : > { %4301 = vrot.lane.b32.xlu0 %v10231_v51, %s8888_s1 }
 0x748   : > { %4014 = vmax.xlane.f32.xlu1 %v10341_v21 }
 0x749   : > { %4305 = vrot.lane.b32.xlu0 %v10243_v61, %s8888_s1 }
 0x74c   : > { %4010 = vmax.xlane.f32.xlu1 %v10346_v5 }
 0x74d   : > { %4309 = vrot.lane.b32.xlu0 %v10255_v28, %s8888_s1 }
 0x751   : > { %4608 = vrot.lane.b32.xlu0 %v9917_v63, %s8888_s1 }
 0x755   : > { %4604 = vrot.lane.b32.xlu0 %v9939_v3, %s8888_s1 }
 0x759   : > { %4602 = vrot.lane.b32.xlu0 %v9944_v56, %s8888_s1 }
 0x75b   : > { %v3989_v11 = vpop.xlane.xlu1 %3988 }
 0x75c   : > { %v4018_v2 = vsub.f32 %v7481_v8, %v3989_v11 }
 0x75d   : > { %4600 = vrot.lane.b32.xlu0 %v9949_v6, %s8888_s1  ;;  %4313 = vrot.lane.b32.xlu1 %v10174_v54, %s8888_s1  ;;  %v4375_v6 = vsel %vm1732_vm0, %v10187_v50, 0 }
 0x75e   : > { %v4036_v37 = vmul.f32 1.442695, %v4018_v2 }
 0x75f   : > { %v3985_v44 = vpop.xlane.xlu1 %3984  ;;  %v3991_v9 = vpop.xlane.xlu0 %3990 }
 0x760   : > { %v4016_v55 = vsub.f32 %v3921_v26, %v3985_v44  ;;  %v4019_v31 = vsub.f32 %v7482_v12, %v3991_v9 }
 0x761   : > { %4596 = vrot.lane.b32.xlu0 %v9961_v52, %s8888_s1  ;;  %4297 = vrot.lane.b32.xlu1 %v10221_v27, %s8888_s1 }
 0x762   : > { %v4032_v63 = vmul.f32 1.442695, %v4016_v55  ;;  %v4038_v3 = vmul.f32 1.442695, %v4019_v31 }
 0x763   : > { %v3987_v56 = vpop.xlane.xlu0 %3986 }
 0x764   : > { %v4017_v45 = vsub.f32 %v3924_v35, %v3987_v56  ;;  %8285 = vpow2.f32 %v4032_v63 }
 0x765   : > { %4785 = vrot.lane.b32.xlu0 %v10103_v33, %s8889_s26  ;;  %4299 = vrot.lane.b32.xlu1 %v10227_v19, %s8888_s1  ;;  %8287 = vpow2.f32 %v4038_v3 }
 0x766   : > { %v4034_v12 = vmul.f32 1.442695, %v4017_v45 }
 0x767   : > { %v4324_v52 = vpop.permute.xlu0 %4323 }
 0x768   : > { %8289 = vpow2.f32 %v4034_v12  ;;  %v4369_v9 = vsel %vm1732_vm0, %v4324_v52, 0 }
 0x769   : > { %8291 = vpow2.f32 %v4036_v37  ;;  %4783 = vrot.lane.b32.xlu0 %v10107_v49, %s8889_s26  ;;  %4303 = vrot.lane.b32.xlu1 %v10239_v16, %s8888_s1  ;;  %v4322_v37 = vpop.permute.xlu1 %4321 }
 0x76d   : > { %4779 = vrot.lane.b32.xlu0 %v10137_v48, %s8889_s26  ;;  %4307 = vrot.lane.b32.xlu1 %v10251_v0, %s8888_s1 }
 0x771   : > { %4311 = vrot.lane.b32.xlu1 %v10263_v13, %s8888_s1  ;;  %v10379_v2 = vpop.eup %8285 }
 0x772   : > { %12186 = vst [vmem:[#allocation132_spill] sm:$0xff] %v10379_v2  ;;  %v10381_v45 = vpop.eup %8287 }
 0x773   : > { %12187 = vst [vmem:[#allocation133_spill] sm:$0xff] %v10381_v45 }
 0x775   : > { %v10383_v11 = vpop.eup %8289  ;;  %4606 = vrot.lane.b32.xlu1 %v9934_v10, %s8888_s1  ;;  %v4372_v10 = vsel %vm1732_vm0, %v4326_v22, 0 }
 0x776   : > { %12188 = vst [vmem:[#allocation134_spill] sm:$0xff] %v10383_v11  ;;  %v10387_v31 = vpop.eup %8291  ;;  %v4096_v55 = vpack.c.bf16 %v10383_v11, %v10379_v2 }
 0x777   : > { %12189 = vst [vmem:[#allocation135_spill] sm:$0xff] %v10387_v31  ;;  %v4097_v26 = vpack.c.bf16 %v10381_v45, %v10387_v31 }
 0x778   : > { %7511 = vmatprep.mubr.bf16.mxu1 %v4096_v55 }
 0x779   : > { %7512 = vmatmul.mubr.bf16.vlgmr.msra.gmra.mxu1 %v4097_v26  ;;  %4598 = vrot.lane.b32.xlu1 %v9954_v43, %s8888_s1  ;;  %v4366_v43 = vsel %vm1732_vm0, %v4322_v37, 0 }
 0x77a   : > { %7528 = vmatpush3.bf16.xpose.msra.mxu1 %v4375_v6 }
 0x77b   : > { %7760 = vmatprep.subr.msk.bf16.mxu1 %vm1732_vm0, %v4326_v22 }
 0x77d   : > { %4594 = vrot.lane.b32.xlu1 %v9968_v29, %s8888_s1 }
 0x781   : > { %4781 = vrot.lane.b32.xlu1 %v10131_v7, %s8889_s26 }
 0x782   : > { %7530 = vmatpush3.bf16.xpose.msra.mxu1 %v4372_v10 }
 0x783   : > { %7761 = vmatprep.subr.msk.bf16.mxu1 %vm1732_vm0, %v4324_v52 }
 0x78a   : > { %7532 = vmatpush3.bf16.xpose.msra.mxu1 %v4369_v9 }
 0x78b   : > { %7762 = vmatprep.subr.msk.bf16.mxu1 %vm1732_vm0, %v4322_v37 }
 0x792   : > { %7534 = vmatpush3.bf16.xpose.msra.mxu1 %v4366_v43 }
 0x794   : > { %v4003_v12 = vpop.xlane.xlu1 %4002 }
 0x795   : > { %v4025_v10 = vsub.f32 %v10317_v30, %v4003_v12 }
 0x798   : > { %v3997_v44 = vpop.xlane.xlu0 %3996 }
 0x799   : > { %v4022_v35 = vsub.f32 %v10301_v58, %v3997_v44 }
 0x79b   : > { %v4044_v26 = vmul.f32 1.442695, %v4022_v35 }
 0x79c   : > { %v3993_v29 = vpop.xlane.xlu0 %3992 }
 0x79d   : > { %v4020_v22 = vsub.f32 %v10305_v53, %v3993_v29  ;;  %v4050_v53 = vmul.f32 1.442695, %v4025_v10 }
 0x79f   : > { %v4040_v63 = vmul.f32 1.442695, %v4020_v22 }
 0x7a0   : > { %v3999_v50 = vpop.xlane.xlu0 %3998 }
 0x7a1   : > { %v4023_v8 = vsub.f32 %v10307_v23, %v3999_v50  ;;  %8293 = vpow2.f32 %v4040_v63 }
 0x7a3   : > { %v4046_v3 = vmul.f32 1.442695, %v4023_v8  ;;  %v4013_v8 = vpop.xlane.xlu1 %4012 }
 0x7a4   : > { %v3995_v56 = vpop.xlane.xlu0 %3994 }
 0x7a5   : > { %v4021_v55 = vsub.f32 %v10309_v47, %v3995_v56  ;;  %8295 = vpow2.f32 %v4046_v3 }
 0x7a7   : > { %v4042_v6 = vmul.f32 1.442695, %v4021_v55  ;;  %v4318_v56 = vpop.permute.xlu1 %4317 }
 0x7a8   : > { %v4005_v52 = vpop.xlane.xlu0 %4004 }
 0x7a9   : > { %8297 = vpow2.f32 %v4042_v6  ;;  %v4026_v23 = vsub.f32 %v10311_v40, %v4005_v52 }
 0x7aa   : > { %8299 = vpow2.f32 %v4044_v26 }
 0x7ab   : > { %8301 = vpow2.f32 %v4050_v53  ;;  %v4052_v43 = vmul.f32 1.442695, %v4026_v23  ;;  %v4360_v23 = vsel %vm1732_vm0, %v4318_v56, 0 }
 0x7ac   : > { %v4001_v9 = vpop.xlane.xlu0 %4000 }
 0x7ad   : > { %v4024_v58 = vsub.f32 %v10313_v34, %v4001_v9  ;;  %v4316_v9 = vpop.permute.xlu1 %4315 }
 0x7ae   : > { %v10415_v22 = vpop.eup %8293 }
 0x7af   : > { %v4048_v37 = vmul.f32 1.442695, %v4024_v58  ;;  %12190 = vst [vmem:[#allocation136_spill] sm:$0xff] %v10415_v22 }
 0x7b0   : > { %v4007_v44 = vpop.xlane.xlu0 %4006 }
 0x7b1   : > { %8303 = vpow2.f32 %v4048_v37  ;;  %v4027_v47 = vsub.f32 %v10315_v25, %v4007_v44  ;;  %v4357_v44 = vsel %vm1732_vm0, %v4316_v9, 0 }
 0x7b2   : > { %8305 = vpow2.f32 %v4052_v43  ;;  %v10417_v50 = vpop.eup %8295 }
 0x7b3   : > { %v4054_v29 = vmul.f32 1.442695, %v4027_v47  ;;  %12191 = vst [vmem:[#allocation137_spill] sm:$0xff] %v10417_v50 }
 0x7b4   : > { %v4009_v30 = vpop.xlane.xlu0 %4008 }
 0x7b5   : > { %8307 = vpow2.f32 %v4054_v29  ;;  %v4028_v47 = vsub.f32 %v10334_v60, %v4009_v30 }
 0x7b6   : > { %v10419_v40 = vpop.eup %8297 }
 0x7b7   : > { %12192 = vst [vmem:[#allocation138_spill] sm:$0xff] %v10419_v40  ;;  %v10421_v35 = vpop.eup %8299  ;;  %v4098_v34 = vpack.c.bf16 %v10419_v40, %v10415_v22 }
 0x7b8   : > { %12193 = vst [vmem:[#allocation139_spill] sm:$0xff] %v10421_v35  ;;  %v4320_v63 = vpop.permute.xlu0 %4319  ;;  %v4099_v25 = vpack.c.bf16 %v10417_v50, %v10421_v35  ;;  %v10430_v55 = vpop.eup %8301  ;;  %v10611_v35 = vld [vmem:[#allocation2 + $0x2c] ss:$16 sps:$4 sm:$0xff]  }
 0x7b9   : > { %7515 = vmatprep.mubr.bf16.mxu1 %v4098_v34  ;;  %7763 = vmatprep.subr.msk.bf16.mxu1 %vm1732_vm0, %v4320_v63  ;;  %v4363_v3 = vsel %vm1732_vm0, %v4320_v63, 0  ;;  %12194 = vst [vmem:[#allocation140_spill] sm:$0xff] %v10430_v55  ;;  %v4030_v63 = vsub.f32 %v10320_v20, %v4013_v8 }
 0x7ba   : > { %7516 = vmatmul.mubr.bf16.gmra.mxu1 %v4099_v25  ;;  %v4056_v25 = vmul.f32 1.442695, %v4028_v47 }
 0x7bb   : > { %7536 = vmatpush3.bf16.xpose.msra.mxu1 %v4363_v3 }
 0x7bc   : > { %7764 = vmatprep.subr.msk.bf16.mxu1 %vm1732_vm0, %v4318_v56  ;;  %v4302_v12 = vpop.permute.xlu0 %4301  ;;  %8309 = vpow2.f32 %v4056_v25 }
 0x7be   : > { %v10432_v26 = vpop.eup %8303 }
 0x7bf   : > { %12195 = vst [vmem:[#allocation141_spill] sm:$0xff] %v10432_v26  ;;  %v4100_v6 = vpack.c.bf16 %v10430_v55, %v10432_v26  ;;  %v10436_v52 = vpop.eup %8305  ;;  %v10605_v55 = vld [vmem:[#allocation2 + $0xc] ss:$16 sps:$4 sm:$0xff]  }
 0x7c0   : > { %v4306_v10 = vpop.permute.xlu0 %4305  ;;  %12196 = vst [vmem:[#allocation142_spill] sm:$0xff] %v10436_v52 }
 0x7c1   : > { %7519 = vmatprep.mubr.bf16.mxu1 %v4100_v6 }
 0x7c2   : > { %v10438_v53 = vpop.eup %8307 }
 0x7c3   : > { %12197 = vst [vmem:[#allocation143_spill] sm:$0xff] %v10438_v53  ;;  %7538 = vmatpush3.bf16.xpose.msra.mxu1 %v4360_v23  ;;  %v4101_v58 = vpack.c.bf16 %v10438_v53, %v10436_v52  ;;  %v4060_v23 = vmul.f32 1.442695, %v4030_v63  ;;  %v10601_v52 = vld [vmem:[#allocation2 + $0x6c] ss:$16 sps:$4 sm:$0xff]  }
 0x7c4   : > { %7765 = vmatprep.subr.msk.bf16.mxu1 %vm1732_vm0, %v4316_v9  ;;  %v4310_v37 = vpop.permute.xlu0 %4309 }
 0x7c5   : > { %7520 = vmatmul.mubr.bf16.gmra.mxu1 %v4101_v58 }
 0x7c8   : > { %v4609_v43 = vpop.permute.xlu0 %4608 }
 0x7c9   : > { %7559 = vmatprep.subr.bf16.mxu0 %v4609_v43  ;;  %v10451_v20 = vpop.eup %8309 }
 0x7ca   : > { %7560 = vmatpush3.bf16.msra.mxu0 %v4609_v43  ;;  %12198 = vst [vmem:[#allocation144_spill] sm:$0xff] %v10451_v20 }
 0x7cb   : > { %7540 = vmatpush3.bf16.xpose.msra.mxu1 %v4357_v44 }
 0x7d1   : > { %v4015_v29 = vpop.xlane.xlu1 %4014 }
 0x7d2   : > { %v4031_v34 = vsub.f32 %v10341_v21, %v4015_v29 }
 0x7d4   : > { %v4062_v3 = vmul.f32 1.442695, %v4031_v34  ;;  %v4605_v34 = vpop.permute.xlu0 %4604 }
 0x7d5   : > { %v4011_v56 = vpop.xlane.xlu1 %4010 }
 0x7d6   : > { %v4029_v6 = vsub.f32 %v10346_v5, %v4011_v56  ;;  %8311 = vpow2.f32 %v4062_v3 }
 0x7d8   : > { %v4058_v58 = vmul.f32 1.442695, %v4029_v6  ;;  %v4603_v25 = vpop.permute.xlu0 %4602 }
 0x7d9   : > { %v4314_v53 = vpop.permute.xlu1 %4313 }
 0x7da   : > { %8313 = vpow2.f32 %v4058_v58  ;;  %7766 = vmatprep.subr.msk.bf16.mxu1 %vm1732_vm0, %v4314_v53  ;;  %v4354_v60 = vsel %vm1732_vm0, %v4314_v53, 0 }
 0x7db   : > { %8315 = vpow2.f32 %v4060_v23  ;;  %7542 = vmatpush3.bf16.xpose.msra.mxu1 %v4354_v60 }
 0x7dc   : > { %v4601_v3 = vpop.permute.xlu0 %4600 }
 0x7dd   : > { %v4298_v21 = vpop.permute.xlu1 %4297 }
 0x7e0   : > { %v4597_v6 = vpop.permute.xlu0 %4596 }
 0x7e1   : > { %v4300_v30 = vpop.permute.xlu1 %4299 }
 0x7e3   : > { %v10453_v9 = vpop.eup %8311 }
 0x7e4   : > { %12199 = vst [vmem:[#allocation145_spill] sm:$0xff] %v10453_v9  ;;  %v10470_v23 = vpop.permute.xlu0 %4785 }
 0x7e5   : > { %v4304_v8 = vpop.permute.xlu1 %4303 }
 0x7e7   : > { %v10455_v5 = vpop.eup %8313 }
 0x7e8   : > { %12200 = vst [vmem:[#allocation146_spill] sm:$0xff] %v10455_v5  ;;  %v10457_v43 = vpop.eup %8315  ;;  %v4102_v44 = vpack.c.bf16 %v10455_v5, %v10451_v20  ;;  %v10595_v5 = vld [vmem:[#allocation2 + $0x4c] ss:$16 sps:$4 sm:$0xff]   ;;  %v10599_v20 = vpop.permute.xlu0 %4783 }
 0x7e9   : > { %12201 = vst [vmem:[#allocation147_spill] sm:$0xff] %v10457_v43  ;;  %v4308_v47 = vpop.permute.xlu1 %4307  ;;  %v4103_v53 = vpack.c.bf16 %v10453_v9, %v10457_v43 }
 0x7ea   : > { %7523 = vmatprep.mubr.bf16.mxu1 %v4102_v44 }
 0x7eb   : > { %7524 = vmatmul.mubr.bf16.gmra.mxu1 %v4103_v53 }
 0x7ec   : > { %7543 = vmatprep.mubr.msk.bf16.mxu1 %vm1732_vm0, %v4298_v21  ;;  %v10617_v22 = vpop.permute.xlu0 %4779 }
 0x7ed   : > { %v4312_v29 = vpop.permute.xlu1 %4311 }
 0x7f1   : > { %v4607_v63 = vpop.permute.xlu1 %4606 }
 0x7f2   : > { %7561 = vmatprep.subr.bf16.mxu0 %v4607_v63 }
 0x7f3   : > { %7544 = vmatmul.mubr.msk.bf16.vlgmr.msra.gmra.mxu1 %vm1732_vm0, %v4300_v30  ;;  %7562 = vmatpush3.bf16.msra.mxu0 %v4607_v63 }
 0x7f4   : > { %7547 = vmatprep.mubr.msk.bf16.mxu1 %vm1732_vm0, %v4302_v12  ;;  %7563 = vmatprep.subr.bf16.mxu0 %v4605_v34 }
 0x7f5   : > { %v4599_v56 = vpop.permute.xlu1 %4598 }
 0x7f7   : > { %7564 = vmatpush3.bf16.msra.mxu0 %v4605_v34 }
 0x7f8   : > { %7565 = vmatprep.subr.bf16.mxu0 %v4603_v25 }
 0x7f9   : > { %v4595_v12 = vpop.permute.xlu1 %4594 }
 0x7fb   : > { %7548 = vmatmul.mubr.msk.bf16.gmra.mxu1 %vm1732_vm0, %v4304_v8  ;;  %7566 = vmatpush3.bf16.msra.mxu0 %v4603_v25 }
 0x7fc   : > { %7551 = vmatprep.mubr.msk.bf16.mxu1 %vm1732_vm0, %v4306_v10  ;;  %7567 = vmatprep.subr.bf16.mxu0 %v4601_v3 }
 0x7fd   : > { %v10609_v26 = vpop.permute.xlu1 %4781 }
 0x7ff   : > { %7568 = vmatpush3.bf16.msra.mxu0 %v4601_v3 }
 0x800   : > { %7569 = vmatprep.subr.bf16.mxu0 %v4599_v56 }
 0x803   : > { %7552 = vmatmul.mubr.msk.bf16.gmra.mxu1 %vm1732_vm0, %v4308_v47  ;;  %7570 = vmatpush3.bf16.msra.mxu0 %v4599_v56 }
 0x804   : > { %7555 = vmatprep.mubr.msk.bf16.mxu1 %vm1732_vm0, %v4310_v37  ;;  %7571 = vmatprep.subr.bf16.mxu0 %v4597_v6 }
 0x807   : > { %7572 = vmatpush3.bf16.msra.mxu0 %v4597_v6 }
 0x808   : > { %7573 = vmatprep.subr.bf16.mxu0 %v4595_v12 }
 0x80b   : > { %7556 = vmatmul.mubr.msk.bf16.gmra.mxu1 %vm1732_vm0, %v4312_v29  ;;  %7574 = vmatpush3.bf16.msra.mxu0 %v4595_v12 }
 0x80c   : > { %7767 = vmatprep.subr.msk.bf16.mxu0 %vm1732_vm0, %v10470_v23 }
 0x839   : > { %v10475_v10 = vpop.f32.mrf.mxu1 }
 0x83a   : > { %12202 = vst [vmem:[#allocation148_spill] sm:$0xff] %v10475_v10 }
 0x83b   : > { %v10477_v58 = vpop.f32.mrf.mxu1 }
 0x83c   : > { %12203 = vst [vmem:[#allocation149_spill] sm:$0xff] %v10477_v58 }
 0x83d   : > { %v10479_v60 = vpop.f32.mrf.mxu1 }
 0x83e   : > { %12204 = vst [vmem:[#allocation150_spill] sm:$0xff] %v10479_v60 }
 0x83f   : > { %v10481_v21 = vpop.f32.mrf.mxu1 }
 0x840   : > { %12205 = vst [vmem:[#allocation151_spill] sm:$0xff] %v10481_v21 }
 0x87a   : > { %v10483_v37 = vpop.f32.mrf.mxu1 }
 0x87b   : > { %12206 = vst [vmem:[#allocation152_spill] sm:$0xff] %v10483_v37 }
 0x87c   : > { %v10485_v30 = vpop.f32.mrf.mxu1 }
 0x87d   : > { %12207 = vst [vmem:[#allocation153_spill] sm:$0xff] %v10485_v30  ;;  %v10591_v30 = vld [vmem:[#allocation2 + $0x8c] ss:$16 sps:$4 sm:$0xff]  }
 0x87e   : > { %v10487_v8 = vpop.f32.mrf.mxu1 }
 0x87f   : > { %12208 = vst [vmem:[#allocation154_spill] sm:$0xff] %v10487_v8 }
 0x880   : > { %v10489_v44 = vpop.f32.mrf.mxu1 }
 0x881   : > { %12209 = vst [vmem:[#allocation155_spill] sm:$0xff] %v10489_v44  ;;  %v10587_v44 = vld [vmem:[#allocation2 + $0xcc] ss:$16 sps:$4 sm:$0xff]  }
 0x885   : > { %v10491_v47 = vpop.f32.mrf.mxu1 }
 0x886   : > { %12210 = vst [vmem:[#allocation156_spill] sm:$0xff] %v10491_v47  ;;  %v10583_v47 = vld [vmem:[#allocation2 + $0xac] ss:$16 sps:$4 sm:$0xff]  }
 0x887   : > { %v10493_v53 = vpop.f32.mrf.mxu1 }
 0x888   : > { %12211 = vst [vmem:[#allocation157_spill] sm:$0xff] %v10493_v53 }
 0x889   : > { %v10495_v29 = vpop.f32.mrf.mxu1 }
 0x88a   : > { %12212 = vst [vmem:[#allocation158_spill] sm:$0xff] %v10495_v29  ;;  %v10577_v29 = vld [vmem:[#allocation2 + $0xec] ss:$16 sps:$4 sm:$0xff]  }
 0x88b   : > { %v10497_v34 = vpop.f32.mrf.mxu1 }
 0x88c   : > { %12213 = vst [vmem:[#allocation159_spill] sm:$0xff] %v10497_v34 }
 0x8ab   : > { %v10499_v63 = vpop.f32.mrf.mxu1 }
 0x8ac   : > { %12214 = vst [vmem:[#allocation160_spill] sm:$0xff] %v10499_v63 }
 0x8ad   : > { %v10501_v25 = vpop.f32.mrf.mxu1 }
 0x8ae   : > { %12215 = vst [vmem:[#allocation161_spill] sm:$0xff] %v10501_v25 }
 0x8af   : > { %v10503_v3 = vpop.f32.mrf.mxu1 }
 0x8b0   : > { %12216 = vst [vmem:[#allocation162_spill] sm:$0xff] %v10503_v3 }
 0x8b1   : > { %v10505_v56 = vpop.f32.mrf.mxu1 }
 0x8b2   : > { %12217 = vst [vmem:[#allocation163_spill] sm:$0xff] %v10505_v56 }
 0x8b3   : > { %v10507_v6 = vpop.f32.mrf.mxu1 }
 0x8b4   : > { %4478 = vmax.xlane.f32.xlu1 %v10507_v6 }
 0x8b5   : > { %v10510_v12 = vpop.f32.mrf.mxu1 }
 0x8b6   : > { %4474 = vmax.xlane.f32.xlu0 %v10510_v12 }
 0x8b7   : > { %v10513_v53 = vpop.f32.mrf.mxu1 }
 0x8b8   : > { %4480 = vmax.xlane.f32.xlu1 %v10513_v53 }
 0x8b9   : > { %v10516_v34 = vpop.f32.mrf.mxu1 }
 0x8bb   : > { %v10518_v63 = vpop.f32.mrf.mxu1 }
 0x8bc   : > { %4476 = vmax.xlane.f32.xlu1 %v10516_v34  ;;  %4486 = vmax.xlane.f32.xlu0 %v10518_v63 }
 0x8bd   : > { %v10522_v3 = vpop.f32.mrf.mxu1 }
 0x8bf   : > { %v10524_v21 = vpop.f32.mrf.mxu1 }
 0x8c0   : > { %4482 = vmax.xlane.f32.xlu1 %v10522_v3 }
 0x8c1   : > { %v10527_v60 = vpop.f32.mrf.mxu1 }
 0x8c2   : > { %4484 = vmax.xlane.f32.xlu0 %v10527_v60 }
 0x8c3   : > { %v10531_v58 = vpop.f32.mrf.mxu1 }
 0x8c4   : > { %4488 = vmax.xlane.f32.xlu1 %v10524_v21 }
 0x8c5   : > { %v10534_v10 = vpop.f32.mrf.mxu1 }
 0x8c7   : > { %v10537_v9 = vpop.f32.mrf.mxu1 }
 0x8c8   : > { %4494 = vmax.xlane.f32.xlu1 %v10531_v58 }
 0x8c9   : > { %v10540_v8 = vpop.f32.mrf.mxu1 }
 0x8cb   : > { %v10547_v37 = vpop.f32.mrf.mxu1 }
 0x8cc   : > { %4490 = vmax.xlane.f32.xlu1 %v10534_v10 }
 0x8cd   : > { %v10550_v56 = vpop.f32.mrf.mxu1 }
 0x8cf   : > { %v10553_v25 = vpop.f32.mrf.mxu1 }
 0x8d0   : > { %4496 = vmax.xlane.f32.xlu1 %v10537_v9 }
 0x8d1   : > { %v10556_v43 = vpop.f32.mrf.mxu1 }
 0x8d4   : > { %4492 = vmax.xlane.f32.xlu1 %v10540_v8 }
 0x8d8   : > { %4775 = vrot.lane.b32.xlu0 %v10152_v41, %s8889_s26 }
 0x8e5   : > { %4777 = vrot.lane.b32.xlu1 %v10143_v57, %s8889_s26 }
 0x8f7   : > { %4502 = vmax.xlane.f32.xlu0 %v10547_v37 }
 0x8fb   : > { %4498 = vmax.xlane.f32.xlu0 %v10550_v56 }
 0x8ff   : > { %4504 = vmax.xlane.f32.xlu0 %v10553_v25 }
 0x909   : > { %4500 = vmax.xlane.f32.xlu1 %v10556_v43 }
 0x915   : > { %4773 = vrot.lane.b32.xlu0 %v10162_v36, %s8889_s26 }
 0x919   : > { %4755 = vrot.lane.b32.xlu0 %v10221_v27, %s8889_s26 }
 0x91a   : > { %4771 = vrot.lane.b32.xlu1 %v10174_v54, %s8889_s26 }
 0x91d   : > { %4759 = vrot.lane.b32.xlu0 %v10231_v51, %s8889_s26 }
 0x91e   : > { %4757 = vrot.lane.b32.xlu1 %v10227_v19, %s8889_s26 }
 0x921   : > { %4763 = vrot.lane.b32.xlu0 %v10243_v61, %s8889_s26 }
 0x922   : > { %4761 = vrot.lane.b32.xlu1 %v10239_v16, %s8889_s26 }
 0x925   : > { %4767 = vrot.lane.b32.xlu0 %v10255_v28, %s8889_s26 }
 0x926   : > { %4765 = vrot.lane.b32.xlu1 %v10251_v0, %s8889_s26 }
 0x929   : > { %5066 = vrot.lane.b32.xlu0 %v10577_v29, %s8889_s26 }
 0x92a   : > { %4769 = vrot.lane.b32.xlu1 %v10263_v13, %s8889_s26 }
 0x92d   : > { %5062 = vrot.lane.b32.xlu0 %v10583_v47, %s8889_s26 }
 0x92e   : > { %5064 = vrot.lane.b32.xlu1 %v10587_v44, %s8889_s26 }
 0x931   : > { %5060 = vrot.lane.b32.xlu0 %v10591_v30, %s8889_s26 }
 0x932   : > { %5056 = vrot.lane.b32.xlu1 %v10595_v5, %s8889_s26 }
 0x935   : > { %5058 = vrot.lane.b32.xlu0 %v10601_v52, %s8889_s26 }
 0x936   : > { %5052 = vrot.lane.b32.xlu1 %v10605_v55, %s8889_s26 }
 0x939   : > { %5054 = vrot.lane.b32.xlu0 %v10611_v35, %s8889_s26 }
 0x93a   : > { %5239 = vrot.lane.b32.xlu1 %v10131_v7, %s8890_s28 }
 0x93d   : > { %5243 = vrot.lane.b32.xlu0 %v10103_v33, %s8890_s28  ;;  %v4479_v50 = vpop.xlane.xlu1 %4478 }
 0x93e   : > { %5235 = vrot.lane.b32.xlu1 %v10143_v57, %s8890_s28  ;;  %v4508_v7 = vsub.f32 %v10507_v6, %v4479_v50 }
 0x93f   : > { %v4475_v31 = vpop.xlane.xlu0 %4474 }
 0x940   : > { %v4506_v40 = vsub.f32 %v10510_v12, %v4475_v31 }
 0x941   : > { %5241 = vrot.lane.b32.xlu0 %v10107_v49, %s8890_s28  ;;  %v4481_v2 = vpop.xlane.xlu1 %4480  ;;  %v4526_v49 = vmul.f32 1.442695, %v4508_v7 }
 0x942   : > { %v4509_v45 = vsub.f32 %v10513_v53, %v4481_v2  ;;  %5229 = vrot.lane.b32.xlu1 %v10174_v54, %s8890_s28  ;;  %v4522_v11 = vmul.f32 1.442695, %v4506_v40 }
 0x944   : > { %v4528_v57 = vmul.f32 1.442695, %v4509_v45  ;;  %8317 = vpow2.f32 %v4522_v11 }
 0x945   : > { %5237 = vrot.lane.b32.xlu0 %v10137_v48, %s8890_s28  ;;  %v4477_v33 = vpop.xlane.xlu1 %4476  ;;  %v4487_v46 = vpop.xlane.xlu0 %4486 }
 0x946   : > { %v4507_v31 = vsub.f32 %v10516_v34, %v4477_v33  ;;  %5215 = vrot.lane.b32.xlu1 %v10227_v19, %s8890_s28  ;;  %v4512_v2 = vsub.f32 %v10518_v63, %v4487_v46  ;;  %8319 = vpow2.f32 %v4528_v57 }
 0x948   : > { %v4524_v12 = vmul.f32 1.442695, %v4507_v31  ;;  %v4534_v40 = vmul.f32 1.442695, %v4512_v2 }
 0x949   : > { %5233 = vrot.lane.b32.xlu0 %v10152_v41, %s8890_s28  ;;  %v4483_v54 = vpop.xlane.xlu1 %4482 }
 0x94a   : > { %v4510_v48 = vsub.f32 %v10522_v3, %v4483_v54  ;;  %5219 = vrot.lane.b32.xlu1 %v10239_v16, %s8890_s28  ;;  %8321 = vpow2.f32 %v4524_v12 }
 0x94b   : > { %v4485_v45 = vpop.xlane.xlu0 %4484  ;;  %8323 = vpow2.f32 %v4526_v49 }
 0x94c   : > { %v4530_v50 = vmul.f32 1.442695, %v4510_v48  ;;  %v4511_v19 = vsub.f32 %v10527_v60, %v4485_v45 }
 0x94d   : > { %5231 = vrot.lane.b32.xlu0 %v10162_v36, %s8890_s28  ;;  %v4489_v46 = vpop.xlane.xlu1 %4488 }
 0x94e   : > { %v4532_v11 = vmul.f32 1.442695, %v4511_v19  ;;  %v4513_v41 = vsub.f32 %v10524_v21, %v4489_v46  ;;  %5223 = vrot.lane.b32.xlu1 %v10251_v0, %s8890_s28  ;;  %8325 = vpow2.f32 %v4530_v50 }
 0x94f   : > { %v4776_v2 = vpop.permute.xlu0 %4775 }
 0x950   : > { %8327 = vpow2.f32 %v4532_v11  ;;  %v4536_v16 = vmul.f32 1.442695, %v4513_v41  ;;  %v4818_v45 = vsel %vm1732_vm0, %v4776_v2, 0 }
 0x951   : > { %8329 = vpow2.f32 %v4534_v40  ;;  %5213 = vrot.lane.b32.xlu0 %v10221_v27, %s8890_s28  ;;  %v4495_v53 = vpop.xlane.xlu1 %4494  ;;  %v10653_v60 = vpop.eup %8317 }
 0x952   : > { %8331 = vpow2.f32 %v4536_v16  ;;  %5227 = vrot.lane.b32.xlu1 %v10263_v13, %s8890_s28  ;;  %v4516_v3 = vsub.f32 %v10531_v58, %v4495_v53 }
 0x953   : > { %v10657_v0 = vpop.eup %8319 }
 0x954   : > { %v4542_v31 = vmul.f32 1.442695, %v4516_v3 }
 0x955   : > { %5217 = vrot.lane.b32.xlu0 %v10231_v51, %s8890_s28  ;;  %v4491_v36 = vpop.xlane.xlu1 %4490 }
 0x956   : > { %5524 = vrot.lane.b32.xlu1 %v10577_v29, %s8890_s28  ;;  %v4514_v27 = vsub.f32 %v10534_v10, %v4491_v36 }
 0x957   : > { %v10659_v21 = vpop.eup %8321 }
 0x958   : > { %v10662_v34 = vpop.eup %8323  ;;  %v4586_v51 = vpack.c.bf16 %v10659_v21, %v10653_v60  ;;  %v4538_v6 = vmul.f32 1.442695, %v4514_v27 }
 0x959   : > { %5221 = vrot.lane.b32.xlu0 %v10243_v61, %s8890_s28  ;;  %v4497_v13 = vpop.xlane.xlu1 %4496  ;;  %v4587_v29 = vpack.c.bf16 %v10657_v0, %v10662_v34  ;;  %v4833_v61 = vsel %vm1732_vm0, %v10470_v23, 0 }
 0x95a   : > { %v4517_v63 = vsub.f32 %v10537_v9, %v4497_v13  ;;  %5520 = vrot.lane.b32.xlu1 %v10583_v47, %s8890_s28  ;;  %7575 = vmatprep.mubr.bf16.mxu0 %v4586_v51  ;;  %8333 = vpow2.f32 %v4538_v6 }
 0x95b   : > { %v10674_v10 = vpop.eup %8325  ;;  %7576 = vmatmul.mubr.bf16.vlgmr.msra.gmra.mxu0 %v4587_v29 }
 0x95c   : > { %v4544_v33 = vmul.f32 1.442695, %v4517_v63  ;;  %7592 = vmatpush3.bf16.xpose.msra.mxu0 %v4833_v61 }
 0x95d   : > { %v10678_v7 = vpop.eup %8327  ;;  %5225 = vrot.lane.b32.xlu0 %v10255_v28, %s8890_s28  ;;  %v4493_v9 = vpop.xlane.xlu1 %4492  ;;  %7768 = vmatprep.subr.msk.bf16.mxu0 %vm1732_vm0, %v10599_v20 }
 0x95e   : > { %v10682_v47 = vpop.eup %8329  ;;  %v4515_v58 = vsub.f32 %v10540_v8, %v4493_v9  ;;  %5518 = vrot.lane.b32.xlu1 %v10591_v30, %s8890_s28  ;;  %v4588_v23 = vpack.c.bf16 %v10678_v7, %v10674_v10  ;;  %8335 = vpow2.f32 %v4544_v33  ;;  %v4830_v30 = vsel %vm1732_vm0, %v10599_v20, 0 }
 0x95f   : > { %v10691_v57 = vpop.eup %8331 }
 0x960   : > { %v4540_v49 = vmul.f32 1.442695, %v4515_v58  ;;  %7579 = vmatprep.mubr.bf16.mxu0 %v4588_v23  ;;  %v4589_v28 = vpack.c.bf16 %v10691_v57, %v10682_v47 }
 0x961   : > { %5522 = vrot.lane.b32.xlu0 %v10587_v44, %s8890_s28  ;;  %v4778_v12 = vpop.permute.xlu1 %4777 }
 0x962   : > { %8337 = vpow2.f32 %v4540_v49  ;;  %5516 = vrot.lane.b32.xlu1 %v10601_v52, %s8890_s28  ;;  %v4827_v52 = vsel %vm1732_vm0, %v10609_v26, 0  ;;  %v4821_v54 = vsel %vm1732_vm0, %v4778_v12, 0 }
 0x963   : > { %8339 = vpow2.f32 %v4542_v31  ;;  %7580 = vmatmul.mubr.bf16.gmra.mxu0 %v4589_v28 }
 0x964   : > { %7594 = vmatpush3.bf16.xpose.msra.mxu0 %v4830_v30 }
 0x965   : > { %5514 = vrot.lane.b32.xlu0 %v10595_v5, %s8890_s28  ;;  %7769 = vmatprep.subr.msk.bf16.mxu0 %vm1732_vm0, %v10609_v26  ;;  %v4824_v26 = vsel %vm1732_vm0, %v10617_v22, 0 }
 0x966   : > { %5512 = vrot.lane.b32.xlu1 %v10611_v35, %s8890_s28 }
 0x967   : > { %v10711_v8 = vpop.eup %8333 }
 0x96a   : > { %5510 = vrot.lane.b32.xlu1 %v10605_v55, %s8890_s28 }
 0x96b   : > { %v10713_v20 = vpop.eup %8335 }
 0x96c   : > { %7596 = vmatpush3.bf16.xpose.msra.mxu0 %v4827_v52 }
 0x96d   : > { %7770 = vmatprep.subr.msk.bf16.mxu0 %vm1732_vm0, %v10617_v22 }
 0x96f   : > { %v10717_v5 = vpop.eup %8337 }
 0x970   : > { %v10719_v44 = vpop.eup %8339  ;;  %v4590_v35 = vpack.c.bf16 %v10717_v5, %v10711_v8 }
 0x971   : > { %v4591_v55 = vpack.c.bf16 %v10713_v20, %v10719_v44 }
 0x972   : > { %7583 = vmatprep.mubr.bf16.mxu0 %v4590_v35 }
 0x973   : > { %7584 = vmatmul.mubr.bf16.gmra.mxu0 %v4591_v55 }
 0x974   : > { %7598 = vmatpush3.bf16.xpose.msra.mxu0 %v4824_v26 }
 0x975   : > { %7771 = vmatprep.subr.msk.bf16.mxu0 %vm1732_vm0, %v4778_v12 }
 0x97c   : > { %7600 = vmatpush3.bf16.xpose.msra.mxu0 %v4821_v54 }
 0x97d   : > { %7772 = vmatprep.subr.msk.bf16.mxu0 %vm1732_vm0, %v4776_v2 }
 0x980   : > { %v4503_v48 = vpop.xlane.xlu0 %4502 }
 0x981   : > { %v4520_v41 = vsub.f32 %v10547_v37, %v4503_v48 }
 0x983   : > { %v4550_v51 = vmul.f32 1.442695, %v4520_v41 }
 0x984   : > { %v4499_v50 = vpop.xlane.xlu0 %4498  ;;  %7602 = vmatpush3.bf16.xpose.msra.mxu0 %v4818_v45 }
 0x985   : > { %v4518_v46 = vsub.f32 %v10550_v56, %v4499_v50 }
 0x987   : > { %v4546_v53 = vmul.f32 1.442695, %v4518_v46 }
 0x988   : > { %v4505_v19 = vpop.xlane.xlu0 %4504 }
 0x989   : > { %v4521_v11 = vsub.f32 %v10553_v25, %v4505_v19  ;;  %8341 = vpow2.f32 %v4546_v53 }
 0x98b   : > { %v4552_v36 = vmul.f32 1.442695, %v4521_v11 }
 0x98c   : > { %v4774_v40 = vpop.permute.xlu0 %4773 }
 0x98d   : > { %7773 = vmatprep.subr.msk.bf16.mxu0 %vm1732_vm0, %v4774_v40  ;;  %v4815_v22 = vsel %vm1732_vm0, %v4774_v40, 0  ;;  %8343 = vpow2.f32 %v4552_v36 }
 0x98e   : > { %7604 = vmatpush3.bf16.xpose.msra.mxu0 %v4815_v22 }
 0x990   : > { %v4756_v16 = vpop.permute.xlu0 %4755 }
 0x992   : > { %v4501_v27 = vpop.xlane.xlu1 %4500 }
 0x993   : > { %v4519_v13 = vsub.f32 %v10556_v43, %v4501_v27 }
 0x994   : > { %v4760_v63 = vpop.permute.xlu0 %4759 }
 0x995   : > { %v4548_v29 = vmul.f32 1.442695, %v4519_v13 }
 0x996   : > { %v4772_v56 = vpop.permute.xlu1 %4771  ;;  %v10739_v43 = vpop.eup %8341 }
 0x997   : > { %8345 = vpow2.f32 %v4548_v29  ;;  %7774 = vmatprep.subr.msk.bf16.mxu0 %vm1732_vm0, %v4772_v56  ;;  %v4812_v25 = vsel %vm1732_vm0, %v4772_v56, 0 }
 0x998   : > { %8347 = vpow2.f32 %v4550_v51  ;;  %v4764_v3 = vpop.permute.xlu0 %4763  ;;  %7606 = vmatpush3.bf16.xpose.msra.mxu0 %v4812_v25 }
 0x99a   : > { %v4758_v37 = vpop.permute.xlu1 %4757  ;;  %v10741_v58 = vpop.eup %8343 }
 0x99c   : > { %v4768_v6 = vpop.permute.xlu0 %4767 }
 0x99e   : > { %v4762_v61 = vpop.permute.xlu1 %4761 }
 0x9a0   : > { %v5067_v33 = vpop.permute.xlu0 %5066 }
 0x9a1   : > { %7623 = vmatprep.subr.bf16.mxu1 %v5067_v33 }
 0x9a2   : > { %7624 = vmatpush3.bf16.msra.mxu1 %v5067_v33  ;;  %v4766_v9 = vpop.permute.xlu1 %4765 }
 0x9a4   : > { %v10743_v23 = vpop.eup %8345  ;;  %v5063_v31 = vpop.permute.xlu0 %5062 }
 0x9a5   : > { %v10745_v49 = vpop.eup %8347  ;;  %v4592_v28 = vpack.c.bf16 %v10743_v23, %v10739_v43 }
 0x9a6   : > { %v4770_v30 = vpop.permute.xlu1 %4769  ;;  %v4593_v52 = vpack.c.bf16 %v10741_v58, %v10745_v49 }
 0x9a7   : > { %7587 = vmatprep.mubr.bf16.mxu0 %v4592_v28 }
 0x9a8   : > { %v5061_v35 = vpop.permute.xlu0 %5060  ;;  %7588 = vmatmul.mubr.bf16.gmra.mxu0 %v4593_v52 }
 0x9a9   : > { %7607 = vmatprep.mubr.msk.bf16.mxu0 %vm1732_vm0, %v4756_v16 }
 0x9aa   : > { %v5065_v55 = vpop.permute.xlu1 %5064 }
 0x9ab   : > { %7625 = vmatprep.subr.bf16.mxu1 %v5065_v55 }
 0x9ac   : > { %v5059_v26 = vpop.permute.xlu0 %5058  ;;  %7626 = vmatpush3.bf16.msra.mxu1 %v5065_v55 }
 0x9ad   : > { %7627 = vmatprep.subr.bf16.mxu1 %v5063_v31 }
 0x9ae   : > { %v5057_v12 = vpop.permute.xlu1 %5056 }
 0x9b0   : > { %v5055_v2 = vpop.permute.xlu0 %5054  ;;  %7608 = vmatmul.mubr.msk.bf16.vlgmr.msra.gmra.mxu0 %vm1732_vm0, %v4758_v37  ;;  %7628 = vmatpush3.bf16.msra.mxu1 %v5063_v31 }
 0x9b1   : > { %7611 = vmatprep.mubr.msk.bf16.mxu0 %vm1732_vm0, %v4760_v63  ;;  %7629 = vmatprep.subr.bf16.mxu1 %v5061_v35 }
 0x9b2   : > { %v5053_v54 = vpop.permute.xlu1 %5052 }
 0x9b4   : > { %v10754_v48 = vpop.permute.xlu0 %5243  ;;  %7630 = vmatpush3.bf16.msra.mxu1 %v5061_v35 }
 0x9b5   : > { %7631 = vmatprep.subr.bf16.mxu1 %v5059_v26 }
 0x9b6   : > { %v10756_v45 = vpop.permute.xlu1 %5239 }
 0x9b8   : > { %v10758_v50 = vpop.permute.xlu0 %5241  ;;  %7612 = vmatmul.mubr.msk.bf16.gmra.mxu0 %vm1732_vm0, %v4762_v61  ;;  %7632 = vmatpush3.bf16.msra.mxu1 %v5059_v26 }
 0x9b9   : > { %7615 = vmatprep.mubr.msk.bf16.mxu0 %vm1732_vm0, %v4764_v3  ;;  %7633 = vmatprep.subr.bf16.mxu1 %v5057_v12 }
 0x9ba   : > { %v10762_v19 = vpop.permute.xlu1 %5235 }
 0x9bc   : > { %v10764_v40 = vpop.permute.xlu0 %5237  ;;  %7634 = vmatpush3.bf16.msra.mxu1 %v5057_v12 }
 0x9bd   : > { %7635 = vmatprep.subr.bf16.mxu1 %v5055_v2 }
 0x9be   : > { %v10766_v46 = vpop.permute.xlu1 %5229 }
 0x9c0   : > { %v10768_v22 = vpop.permute.xlu0 %5233  ;;  %7616 = vmatmul.mubr.msk.bf16.gmra.mxu0 %vm1732_vm0, %v4766_v9  ;;  %7636 = vmatpush3.bf16.msra.mxu1 %v5055_v2 }
 0x9c1   : > { %7619 = vmatprep.mubr.msk.bf16.mxu0 %vm1732_vm0, %v4768_v6  ;;  %7637 = vmatprep.subr.bf16.mxu1 %v5053_v54 }
 0x9c2   : > { %v10772_v11 = vpop.permute.xlu1 %5215 }
 0x9c4   : > { %v10774_v41 = vpop.permute.xlu0 %5231  ;;  %7638 = vmatpush3.bf16.msra.mxu1 %v5053_v54 }
 0x9c5   : > { %7775 = vmatprep.subr.msk.bf16.mxu1 %vm1732_vm0, %v10754_v48 }
 0x9c6   : > { %v10778_v16 = vpop.permute.xlu1 %5219 }
 0x9c8   : > { %v10780_v53 = vpop.permute.xlu0 %5213  ;;  %7620 = vmatmul.mubr.msk.bf16.gmra.mxu0 %vm1732_vm0, %v4770_v30 }
 0x9ca   : > { %v10783_v36 = vpop.permute.xlu1 %5223 }
 0x9cc   : > { %v10785_v27 = vpop.permute.xlu0 %5217 }
 0x9ce   : > { %v10787_v13 = vpop.permute.xlu1 %5227 }
 0x9d0   : > { %v10789_v51 = vpop.permute.xlu0 %5221 }
 0x9d2   : > { %v5525_v63 = vpop.permute.xlu1 %5524 }
 0x9d3   : > { %7687 = vmatprep.subr.bf16.mxu0 %v5525_v63 }
 0x9d4   : > { %v10791_v29 = vpop.permute.xlu0 %5225  ;;  %7688 = vmatpush3.bf16.msra.mxu0 %v5525_v63 }
 0x9d6   : > { %v5521_v56 = vpop.permute.xlu1 %5520 }
 0x9d8   : > { %v5523_v25 = vpop.permute.xlu0 %5522 }
 0x9d9   : > { %7689 = vmatprep.subr.bf16.mxu0 %v5523_v25 }
 0x9da   : > { %7690 = vmatpush3.bf16.msra.mxu0 %v5523_v25  ;;  %v5519_v3 = vpop.permute.xlu1 %5518 }
 0x9db   : > { %7691 = vmatprep.subr.bf16.mxu0 %v5521_v56 }
 0x9dc   : > { %v5515_v6 = vpop.permute.xlu0 %5514 }
 0x9de   : > { %7692 = vmatpush3.bf16.msra.mxu0 %v5521_v56  ;;  %v5517_v37 = vpop.permute.xlu1 %5516 }
 0x9df   : > { %7693 = vmatprep.subr.bf16.mxu0 %v5519_v3 }
 0x9e2   : > { %7694 = vmatpush3.bf16.msra.mxu0 %v5519_v3  ;;  %v5513_v61 = vpop.permute.xlu1 %5512 }
 0x9e3   : > { %7695 = vmatprep.subr.bf16.mxu0 %v5517_v37 }
 0x9e6   : > { %7696 = vmatpush3.bf16.msra.mxu0 %v5517_v37  ;;  %v5511_v33 = vpop.permute.xlu1 %5510 }
 0x9e7   : > { %7697 = vmatprep.subr.bf16.mxu0 %v5515_v6 }
 0x9ea   : > { %7698 = vmatpush3.bf16.msra.mxu0 %v5515_v6 }
 0x9eb   : > { %7699 = vmatprep.subr.bf16.mxu0 %v5513_v61 }
 0x9ee   : > { %7700 = vmatpush3.bf16.msra.mxu0 %v5513_v61 }
 0x9ef   : > { %7701 = vmatprep.subr.bf16.mxu0 %v5511_v33 }
 0x9f2   : > { %7702 = vmatpush3.bf16.msra.mxu0 %v5511_v33 }
 0xa1b   : > { %v10793_v9 = vpop.f32.mrf.mxu0 }
 0xa1d   : > { %v10795_v31 = vpop.f32.mrf.mxu0 }
 0xa1f   : > { %v10797_v28 = vpop.f32.mrf.mxu0 }
 0xa21   : > { %v10799_v30 = vpop.f32.mrf.mxu0 }
 0xa23   : > { %v10801_v52 = vpop.f32.mrf.mxu0 }
 0xa25   : > { %v10803_v35 = vpop.f32.mrf.mxu0 }
 0xa27   : > { %v10805_v55 = vpop.f32.mrf.mxu0 }
 0xa29   : > { %v10807_v26 = vpop.f32.mrf.mxu0 }
 0xa33   : > { %v10809_v12 = vpop.f32.mrf.mxu0 }
 0xa34   : > { %12218 = vst [vmem:[#allocation164_spill] sm:$0xff] %v10809_v12 }
 0xa35   : > { %v10811_v2 = vpop.f32.mrf.mxu0 }
 0xa36   : > { %12219 = vst [vmem:[#allocation165_spill] sm:$0xff] %v10811_v2 }
 0xa37   : > { %v10813_v54 = vpop.f32.mrf.mxu0 }
 0xa38   : > { %12220 = vst [vmem:[#allocation166_spill] sm:$0xff] %v10813_v54 }
 0xa39   : > { %v10815_v63 = vpop.f32.mrf.mxu0 }
 0xa3a   : > { %12221 = vst [vmem:[#allocation167_spill] sm:$0xff] %v10815_v63  ;;  %v5288_v63 = vsel %vm1732_vm0, %v10758_v50, 0 }
 0xa68   : > { %v10817_v56 = vpop.f32.mrf.mxu0 }
 0xa69   : > { %12222 = vst [vmem:[#allocation168_spill] sm:$0xff] %v10817_v56 }
 0xa6a   : > { %v10819_v25 = vpop.f32.mrf.mxu0 }
 0xa6b   : > { %12223 = vst [vmem:[#allocation169_spill] sm:$0xff] %v10819_v25 }
 0xa6c   : > { %v10821_v3 = vpop.f32.mrf.mxu0 }
 0xa6d   : > { %12224 = vst [vmem:[#allocation170_spill] sm:$0xff] %v10821_v3 }
 0xa6e   : > { %v10823_v37 = vpop.f32.mrf.mxu0 }
 0xa6f   : > { %12225 = vst [vmem:[#allocation171_spill] sm:$0xff] %v10823_v37 }
 0xa70   : > { %v10825_v6 = vpop.f32.mrf.mxu0 }
 0xa71   : > { %4936 = vmax.xlane.f32.xlu1 %v10825_v6 }
 0xa72   : > { %v10828_v61 = vpop.f32.mrf.mxu0 }
 0xa73   : > { %4932 = vmax.xlane.f32.xlu0 %v10828_v61 }
 0xa74   : > { %v10831_v33 = vpop.f32.mrf.mxu0 }
 0xa75   : > { %4938 = vmax.xlane.f32.xlu1 %v10831_v33 }
 0xa76   : > { %v10834_v54 = vpop.f32.mrf.mxu0 }
 0xa77   : > { %2450 = vadd.xlane.f32.xlu0 %v9748_v32 }
 0xa78   : > { %v10838_v3 = vpop.f32.mrf.mxu0 }
 0xa79   : > { %4934 = vmax.xlane.f32.xlu1 %v10834_v54 }
 0xa7a   : > { %v10842_v56 = vpop.f32.mrf.mxu0 }
 0xa7b   : > { %4556 = vadd.xlane.f32.xlu0 %v10659_v21 }
 0xa7c   : > { %v10846_v37 = vpop.f32.mrf.mxu0 }
 0xa7d   : > { %2448 = vadd.xlane.f32.xlu1 %v9741_v39 }
 0xa7e   : > { %v10850_v32 = vpop.f32.mrf.mxu0 }
 0xa7f   : > { %2908 = vadd.xlane.f32.xlu0 %v9855_v18 }
 0xa80   : > { %v10854_v21 = vpop.f32.mrf.mxu0 }
 0xa81   : > { %4554 = vadd.xlane.f32.xlu1 %v10653_v60  ;;  %v12227_v60 = vld [vmem:[#allocation121_spill] sm:$0xff] }
 0xa82   : > { %v10858_v39 = vpop.f32.mrf.mxu0 }
 0xa83   : > { %3366 = vadd.xlane.f32.xlu0 %v10117_v42  ;;  %v12226_v42 = vld [vmem:[#allocation119_spill] sm:$0xff] }
 0xa84   : > { %v10862_v18 = vpop.f32.mrf.mxu0 }
 0xa85   : > { %2906 = vadd.xlane.f32.xlu1 %v9851_v38 }
 0xa87   : > { %2454 = vadd.xlane.f32.xlu0 %v9743_v14  ;;  %v10866_v14 = vpop.f32.mrf.mxu0 }
 0xa89   : > { %3364 = vadd.xlane.f32.xlu1 %v10113_v24  ;;  %v10870_v38 = vpop.f32.mrf.mxu0 }
 0xa8b   : > { %4560 = vadd.xlane.f32.xlu0 %v10657_v0  ;;  %v12228_v0 = vld [vmem:[#allocation61_spill] sm:$0xff] }
 0xa8d   : > { %2452 = vadd.xlane.f32.xlu1 %v9751_v62  ;;  %v10874_v62 = vpop.f32.mrf.mxu0 }
 0xa8f   : > { %4944 = vmax.xlane.f32.xlu0 %v10838_v3  ;;  %v10878_v24 = vpop.f32.mrf.mxu0 }
 0xa91   : > { %4558 = vadd.xlane.f32.xlu1 %v10662_v34  ;;  %v12232_v34 = vld [vmem:[#allocation120_spill] sm:$0xff] }
 0xa93   : > { %4942 = vmax.xlane.f32.xlu0 %v10850_v32 }
 0xa95   : > { %4940 = vmax.xlane.f32.xlu1 %v10842_v56 }
 0xa97   : > { %2912 = vadd.xlane.f32.xlu0 %v9853_v17  ;;  %v10887_v17 = vpop.f32.mrf.mxu0 }
 0xa99   : > { %4946 = vmax.xlane.f32.xlu1 %v10846_v37 }
 0xa9b   : > { %4960 = vmax.xlane.f32.xlu0 %v10870_v38 }
 0xa9d   : > { %4952 = vmax.xlane.f32.xlu1 %v10854_v21 }
 0xa9f   : > { %4956 = vmax.xlane.f32.xlu0 %v10874_v62 }
 0xaa1   : > { %4948 = vmax.xlane.f32.xlu1 %v10858_v39 }
 0xaa3   : > { %4962 = vmax.xlane.f32.xlu0 %v10878_v24 }
 0xaa5   : > { %4954 = vmax.xlane.f32.xlu1 %v10862_v18 }
 0xaa7   : > { %3370 = vadd.xlane.f32.xlu0 %v10115_v59  ;;  %v12229_v59 = vld [vmem:[#allocation62_spill] sm:$0xff] }
 0xaa9   : > { %4950 = vmax.xlane.f32.xlu1 %v10866_v14 }
 0xaab   : > { %2458 = vadd.xlane.f32.xlu0 %v9779_v1  ;;  %v12230_v1 = vld [vmem:[#allocation34_spill] sm:$0xff] }
 0xaad   : > { %2910 = vadd.xlane.f32.xlu1 %v9857_v15  ;;  %v12231_v15 = vld [vmem:[#allocation33_spill] sm:$0xff] }
 0xaaf   : > { %4564 = vadd.xlane.f32.xlu0 %v10678_v7  ;;  %v12233_v7 = vld [vmem:[#allocation123_spill] sm:$0xff] }
 0xab1   : > { %4958 = vmax.xlane.f32.xlu1 %v10887_v17 }
 0xab3   : > { %2916 = vadd.xlane.f32.xlu0 %v9870_v4  ;;  %v12234_v4 = vld [vmem:[#allocation63_spill] sm:$0xff] }
 0xab5   : > { %3368 = vadd.xlane.f32.xlu1 %v12226_v42  ;;  %v12235_v42 = vld [vmem:[#allocation65_spill] sm:$0xff] }
 0xab7   : > { %3374 = vadd.xlane.f32.xlu0 %v12227_v60  ;;  %v12236_v60 = vld [vmem:[#allocation38_spill] sm:$0xff] }
 0xab9   : > { %2456 = vadd.xlane.f32.xlu1 %v12228_v0  ;;  %v12239_v0 = vld [vmem:[#allocation125_spill] sm:$0xff] }
 0xabb   : > { %2462 = vadd.xlane.f32.xlu0 %v12229_v59  ;;  %v12240_v59 = vld [vmem:[#allocation66_spill] sm:$0xff] }
 0xabd   : > { %4562 = vadd.xlane.f32.xlu1 %v10674_v10  ;;  %v12237_v10 = vld [vmem:[#allocation37_spill] sm:$0xff] }
 0xabf   : > { %4568 = vadd.xlane.f32.xlu0 %v10691_v57  ;;  %v12238_v57 = vld [vmem:[#allocation122_spill] sm:$0xff] }
 0xac1   : > { %2914 = vadd.xlane.f32.xlu1 %v12230_v1  ;;  %v12241_v1 = vld [vmem:[#allocation32_spill] sm:$0xff] }
 0xac3   : > { %2920 = vadd.xlane.f32.xlu0 %v12231_v15  ;;  %v12242_v15 = vld [vmem:[#allocation43_spill] sm:$0xff] }
 0xac5   : > { %3372 = vadd.xlane.f32.xlu1 %v12232_v34  ;;  %v12245_v34 = vld [vmem:[#allocation127_spill] sm:$0xff] }
 0xac7   : > { %3378 = vadd.xlane.f32.xlu0 %v12233_v7  ;;  %v12246_v7 = vld [vmem:[#allocation64_spill] sm:$0xff] }
 0xac9   : > { %2460 = vadd.xlane.f32.xlu1 %v12234_v4  ;;  %v12247_v4 = vld [vmem:[#allocation35_spill] sm:$0xff] }
 0xacb   : > { %2466 = vadd.xlane.f32.xlu0 %v12235_v42  ;;  %v12248_v42 = vld [vmem:[#allocation42_spill] sm:$0xff] }
 0xacd   : > { %4566 = vadd.xlane.f32.xlu1 %v10682_v47  ;;  %v12243_v47 = vld [vmem:[#allocation41_spill] sm:$0xff] }
 0xacf   : > { %4572 = vadd.xlane.f32.xlu0 %v10717_v5  ;;  %v12244_v5 = vld [vmem:[#allocation124_spill] sm:$0xff] }
 0xad1   : > { %2918 = vadd.xlane.f32.xlu1 %v12236_v60  ;;  %v12251_v60 = vld [vmem:[#allocation129_spill] sm:$0xff] }
 0xad3   : > { %2924 = vadd.xlane.f32.xlu0 %v12237_v10  ;;  %v12252_v10 = vld [vmem:[#allocation36_spill] sm:$0xff] }
 0xad5   : > { %3376 = vadd.xlane.f32.xlu1 %v12238_v57 }
 0xad7   : > { %3382 = vadd.xlane.f32.xlu0 %v12239_v0  ;;  %v12253_v0 = vld [vmem:[#allocation39_spill] sm:$0xff] }
 0xad9   : > { %2464 = vadd.xlane.f32.xlu1 %v12240_v59 }
 0xadb   : > { %2470 = vadd.xlane.f32.xlu0 %v12241_v1 }
 0xadd   : > { %4570 = vadd.xlane.f32.xlu1 %v10711_v8  ;;  %v12249_v8 = vld [vmem:[#allocation69_spill] sm:$0xff] }
 0xadf   : > { %4576 = vadd.xlane.f32.xlu0 %v10713_v20  ;;  %v12250_v20 = vld [vmem:[#allocation126_spill] sm:$0xff] }
 0xae1   : > { %2922 = vadd.xlane.f32.xlu1 %v12242_v15 }
 0xae3   : > { %2928 = vadd.xlane.f32.xlu0 %v12243_v47 }
 0xae5   : > { %3380 = vadd.xlane.f32.xlu1 %v12244_v5 }
 0xae7   : > { %3386 = vadd.xlane.f32.xlu0 %v12245_v34  ;;  %v12254_v34 = vld [vmem:[#allocation67_spill] sm:$0xff] }
 0xae9   : > { %2468 = vadd.xlane.f32.xlu1 %v12246_v7 }
 0xaeb   : > { %2474 = vadd.xlane.f32.xlu0 %v12247_v4 }
 0xaed   : > { %4574 = vadd.xlane.f32.xlu1 %v10719_v44 }
 0xaef   : > { %4580 = vadd.xlane.f32.xlu0 %v10743_v23 }
 0xaf1   : > { %2926 = vadd.xlane.f32.xlu1 %v12248_v42 }
 0xaf3   : > { %2932 = vadd.xlane.f32.xlu0 %v12249_v8  ;;  %v12255_v8 = vld [vmem:[#allocation68_spill] sm:$0xff] }
 0xaf5   : > { %3384 = vadd.xlane.f32.xlu1 %v12250_v20  ;;  %v12256_v20 = vld [vmem:[#allocation128_spill] sm:$0xff] }
 0xaf7   : > { %3390 = vadd.xlane.f32.xlu0 %v12251_v60 }
 0xaf9   : > { %2472 = vadd.xlane.f32.xlu1 %v12252_v10  ;;  %v12258_v10 = vld [vmem:[#allocation40_spill] sm:$0xff] }
 0xafa   : > { %v4937_v57 = vpop.xlane.xlu1 %4936 }
 0xafb   : > { %2478 = vadd.xlane.f32.xlu0 %v12253_v0  ;;  %v4966_v15 = vsub.f32 %v10825_v6, %v4937_v57  ;;  %v12257_v6 = vld [vmem:[#allocation46_spill] sm:$0xff]  ;;  %v12259_v57 = vld [vmem:[#allocation131_spill] sm:$0xff] }
 0xafc   : > { %v4933_v59 = vpop.xlane.xlu0 %4932 }
 0xafd   : > { %v4964_v1 = vsub.f32 %v10828_v61, %v4933_v59  ;;  %4578 = vadd.xlane.f32.xlu1 %v10739_v43  ;;  %v4984_v61 = vmul.f32 1.442695, %v4966_v15 }
 0xafe   : > { %v4939_v44 = vpop.xlane.xlu1 %4938 }
 0xaff   : > { %v4967_v23 = vsub.f32 %v10831_v33, %v4939_v44  ;;  %4584 = vadd.xlane.f32.xlu0 %v10741_v58  ;;  %v4980_v5 = vmul.f32 1.442695, %v4964_v1  ;;  %v12260_v1 = vld [vmem:[#allocation134_spill] sm:$0xff] }
 0xb00   : > { %v10932_v47 = vpop.xlane.xlu0 %2450 }
 0xb01   : > { %2930 = vadd.xlane.f32.xlu1 %v12254_v34  ;;  %v4986_v7 = vmul.f32 1.442695, %v4967_v23  ;;  %8349 = vpow2.f32 %v4980_v5  ;;  %v12261_v23 = vld [vmem:[#allocation70_spill] sm:$0xff] }
 0xb02   : > { %v4935_v4 = vpop.xlane.xlu1 %4934 }
 0xb03   : > { %v4965_v42 = vsub.f32 %v10834_v54, %v4935_v4  ;;  %2936 = vadd.xlane.f32.xlu0 %v12255_v8  ;;  %8351 = vpow2.f32 %v4986_v7  ;;  %v12262_v7 = vld [vmem:[#allocation48_spill] sm:$0xff]  ;;  %v12263_v8 = vld [vmem:[#allocation45_spill] sm:$0xff] }
 0xb04   : > { %v10937_v43 = vpop.xlane.xlu0 %4556 }
 0xb05   : > { %v4982_v33 = vmul.f32 1.442695, %v4965_v42  ;;  %3388 = vadd.xlane.f32.xlu1 %v12256_v20 }
 0xb06   : > { %v10940_v58 = vpop.xlane.xlu1 %2448 }
 0xb07   : > { %8353 = vpow2.f32 %v4982_v33  ;;  %1960 = vadd.xlane.f32.xlu0 %v12257_v6  ;;  %v12264_v6 = vld [vmem:[#allocation133_spill] sm:$0xff] }
 0xb08   : > { %8355 = vpow2.f32 %v4984_v61  ;;  %v10943_v60 = vpop.xlane.xlu0 %2908 }
 0xb09   : > { %2476 = vadd.xlane.f32.xlu1 %v12258_v10 }
 0xb0a   : > { %v4555_v54 = vpop.xlane.xlu1 %4554 }
 0xb0b   : > { %3394 = vadd.xlane.f32.xlu0 %v12259_v57  ;;  %v5291_v57 = vsel %vm1732_vm0, %v10754_v48, 0 }
 0xb0c   : > { %v10947_v0 = vpop.xlane.xlu0 %3366 }
 0xb0d   : > { %4582 = vadd.xlane.f32.xlu1 %v10745_v49 }
 0xb0e   : > { %v10950_v59 = vpop.xlane.xlu1 %2906  ;;  %v10956_v15 = vpop.eup %8349 }
 0xb0f   : > { %4066 = vadd.xlane.f32.xlu0 %v12260_v1  ;;  %v12265_v1 = vld [vmem:[#allocation130_spill] sm:$0xff] }
 0xb10   : > { %v10953_v44 = vpop.xlane.xlu0 %2454  ;;  %v10960_v34 = vpop.eup %8351 }
 0xb11   : > { %2934 = vadd.xlane.f32.xlu1 %v12261_v23 }
 0xb12   : > { %v10958_v5 = vpop.xlane.xlu1 %3364 }
 0xb13   : > { %1964 = vadd.xlane.f32.xlu0 %v12262_v7  ;;  %v12266_v7 = vld [vmem:[#allocation51_spill] sm:$0xff] }
 0xb14   : > { %v10963_v4 = vpop.eup %8353  ;;  %v10965_v42 = vpop.xlane.xlu0 %4560 }
 0xb15   : > { %v10967_v49 = vpop.eup %8355  ;;  %1958 = vadd.xlane.f32.xlu1 %v12263_v8  ;;  %v5044_v61 = vpack.c.bf16 %v10963_v4, %v10956_v15 }
 0xb16   : > { %v5045_v33 = vpack.c.bf16 %v10960_v34, %v10967_v49  ;;  %v10974_v20 = vpop.xlane.xlu1 %2452 }
 0xb17   : > { %4070 = vadd.xlane.f32.xlu0 %v12264_v6  ;;  %7639 = vmatprep.mubr.bf16.mxu1 %v5044_v61  ;;  %v12267_v6 = vld [vmem:[#allocation132_spill] sm:$0xff] }
 0xb18   : > { %v4945_v10 = vpop.xlane.xlu0 %4944  ;;  %7640 = vmatmul.mubr.bf16.vlgmr.msra.gmra.mxu1 %v5045_v33 }
 0xb19   : > { %7656 = vmatpush3.bf16.xpose.msra.mxu1 %v5291_v57  ;;  %3392 = vadd.xlane.f32.xlu1 %v12265_v1  ;;  %v4970_v61 = vsub.f32 %v10838_v3, %v4945_v10  ;;  %v12268_v57 = vld [vmem:[#allocation138_spill] sm:$0xff] }
 0xb1a   : > { %7776 = vmatprep.subr.msk.bf16.mxu1 %vm1732_vm0, %v10758_v50  ;;  %v10982_v23 = vpop.xlane.xlu1 %4558  ;;  %v12271_v50 = vld [vmem:[#allocation135_spill] sm:$0xff] }
 0xb1b   : > { %1968 = vadd.xlane.f32.xlu0 %v12266_v7  ;;  %v12269_v7 = vld [vmem:[#allocation47_spill] sm:$0xff] }
 0xb1c   : > { %v4943_v8 = vpop.xlane.xlu0 %4942 }
 0xb1d   : > { %v4969_v25 = vsub.f32 %v10850_v32, %v4943_v8  ;;  %4064 = vadd.xlane.f32.xlu1 %v12267_v6  ;;  %v4992_v32 = vmul.f32 1.442695, %v4970_v61  ;;  %v12272_v6 = vld [vmem:[#allocation137_spill] sm:$0xff]  ;;  %v5285_v61 = vsel %vm1732_vm0, %v10756_v45, 0 }
 0xb1e   : > { %v4941_v33 = vpop.xlane.xlu1 %4940 }
 0xb1f   : > { %v4990_v12 = vmul.f32 1.442695, %v4969_v25  ;;  %v4968_v48 = vsub.f32 %v10842_v56, %v4941_v33  ;;  %4074 = vadd.xlane.f32.xlu0 %v12268_v57  ;;  %v12270_v25 = vld [vmem:[#allocation49_spill] sm:$0xff] }
 0xb20   : > { %v10990_v1 = vpop.xlane.xlu0 %2912 }
 0xb21   : > { %v4988_v2 = vmul.f32 1.442695, %v4968_v48  ;;  %7658 = vmatpush3.bf16.xpose.msra.mxu1 %v5288_v63  ;;  %1962 = vadd.xlane.f32.xlu1 %v12269_v7  ;;  %8357 = vpow2.f32 %v4990_v12  ;;  %v12274_v48 = vld [vmem:[#allocation136_spill] sm:$0xff] }
 0xb22   : > { %7777 = vmatprep.subr.msk.bf16.mxu1 %vm1732_vm0, %v10756_v45  ;;  %v4947_v3 = vpop.xlane.xlu1 %4946 }
 0xb23   : > { %8359 = vpow2.f32 %v4988_v2  ;;  %v4971_v56 = vsub.f32 %v10846_v37, %v4947_v3  ;;  %1972 = vadd.xlane.f32.xlu0 %v12270_v25  ;;  %v12273_v2 = vld [vmem:[#allocation50_spill] sm:$0xff] }
 0xb24   : > { %v10999_v10 = vpop.xlane.xlu0 %4960  ;;  %8361 = vrcp.f32 %v4555_v54 }
 0xb25   : > { %v4994_v8 = vmul.f32 1.442695, %v4971_v56  ;;  %4068 = vadd.xlane.f32.xlu1 %v12271_v50  ;;  %8363 = vpow2.f32 %v4992_v32  ;;  %v5282_v56 = vsel %vm1732_vm0, %v10764_v40, 0 }
 0xb26   : > { %v4953_v63 = vpop.xlane.xlu1 %4952 }
 0xb27   : > { %8365 = vpow2.f32 %v4994_v8  ;;  %4078 = vadd.xlane.f32.xlu0 %v12272_v6 }
 0xb28   : > { %v4957_v12 = vpop.xlane.xlu0 %4956  ;;  %8367 = vrcp.f32 %v10937_v43  ;;  %v4974_v43 = vsub.f32 %v10854_v21, %v4953_v63 }
 0xb29   : > { %7660 = vmatpush3.bf16.xpose.msra.mxu1 %v5285_v61  ;;  %1966 = vadd.xlane.f32.xlu1 %v12273_v2  ;;  %8369 = vrcp.f32 %v10940_v58 }
 0xb2a   : > { %7778 = vmatprep.subr.msk.bf16.mxu1 %vm1732_vm0, %v10764_v40  ;;  %v4949_v37 = vpop.xlane.xlu1 %4948  ;;  %8371 = vrcp.f32 %v10932_v47  ;;  %v5000_v6 = vmul.f32 1.442695, %v4974_v43  ;;  %v4976_v47 = vsub.f32 %v10874_v62, %v4957_v12  ;;  %v4978_v62 = vsub.f32 %v10870_v38, %v10999_v10 }
 0xb2b   : > { %v4972_v33 = vsub.f32 %v10858_v39, %v4949_v37  ;;  %v12275_v39 = vld [vmem:[#allocation52_spill] sm:$0xff]  ;;  %8373 = vrcp.f32 %v10943_v60  ;;  %v12276_v37 = vld [vmem:[#allocation139_spill] sm:$0xff] }
 0xb2c   : > { %v4963_v54 = vpop.xlane.xlu0 %4962  ;;  %8375 = vrcp.f32 %v10950_v59 }
 0xb2d   : > { %4072 = vadd.xlane.f32.xlu1 %v12274_v48  ;;  %v4996_v25 = vmul.f32 1.442695, %v4972_v33 }
 0xb2e   : > { %v4955_v57 = vpop.xlane.xlu1 %4954  ;;  %v11011_v7 = vpop.eup %8357 }
 0xb2f   : > { %v4975_v32 = vsub.f32 %v10862_v18, %v4955_v57  ;;  %8377 = vpow2.f32 %v4996_v25  ;;  %v5279_v57 = vsel %vm1732_vm0, %v10762_v19, 0  ;;  %v5008_v25 = vmul.f32 1.442695, %v4978_v62 }
 0xb30   : > { %v11014_v45 = vpop.eup %8359  ;;  %v11018_v3 = vpop.xlane.xlu0 %3370 }
 0xb31   : > { %7662 = vmatpush3.bf16.xpose.msra.mxu1 %v5282_v56  ;;  %1970 = vadd.xlane.f32.xlu1 %v12275_v39  ;;  %v5046_v8 = vpack.c.bf16 %v11011_v7, %v11014_v45  ;;  %v8362_v50 = vpop.eup %8361  ;;  %v5002_v18 = vmul.f32 1.442695, %v4975_v32  ;;  %v5004_v32 = vmul.f32 1.442695, %v4976_v47 }
 0xb32   : > { %7779 = vmatprep.subr.msk.bf16.mxu1 %vm1732_vm0, %v10762_v19  ;;  %v4951_v21 = vpop.xlane.xlu1 %4950  ;;  %v11028_v58 = vpop.eup %8363  ;;  %v4731_v59 = vmul.f32 %v8362_v50, %v10795_v31 }
 0xb33   : > { %v4973_v40 = vsub.f32 %v10866_v14, %v4951_v21  ;;  %7643 = vmatprep.mubr.bf16.mxu1 %v5046_v8  ;;  %v4979_v14 = vsub.f32 %v10878_v24, %v4963_v54  ;;  %8379 = vpow2.f32 %v5002_v18  ;;  %v12277_v18 = vld [vmem:[#allocation88_spill] sm:$0xff] }
 0xb34   : > { %v11032_v63 = vpop.eup %8365  ;;  %v11035_v61 = vpop.xlane.xlu0 %2458 }
 0xb35   : > { %v4998_v2 = vmul.f32 1.442695, %v4973_v40  ;;  %4076 = vadd.xlane.f32.xlu1 %v12276_v37  ;;  %v5047_v33 = vpack.c.bf16 %v11032_v63, %v11028_v58  ;;  %v8368_v60 = vpop.eup %8367  ;;  %v5010_v54 = vmul.f32 1.442695, %v4979_v14 }
 0xb36   : > { %v11042_v48 = vpop.xlane.xlu1 %2910  ;;  %v4732_v24 = vmul.f32 %v8368_v60, %v10799_v30  ;;  %v8370_v10 = vpop.eup %8369 }
 0xb37   : > { %8381 = vpow2.f32 %v4998_v2  ;;  %7644 = vmatmul.mubr.bf16.gmra.mxu1 %v5047_v33  ;;  %v8372_v30 = vpop.eup %8371  ;;  %v2625_v21 = vmul.f32 %v8370_v10, %v12277_v18  ;;  %v12278_v2 = vld [vmem:[#allocation90_spill] sm:$0xff] }
 0xb38   : > { %8383 = vpow2.f32 %v5000_v6  ;;  %v11047_v12 = vpop.xlane.xlu0 %4564  ;;  %v4747_v56 = vpack.c.bf16 %v4732_v24, %v4731_v59  ;;  %v8374_v8 = vpop.eup %8373  ;;  %v2626_v37 = vmul.f32 %v8372_v30, %v12278_v2  ;;  %v12279_v59 = vld [vmem:[#allocation104_spill] sm:$0xff] }
 0xb39   : > { %7664 = vmatpush3.bf16.xpose.msra.mxu1 %v5279_v57  ;;  %8385 = vpow2.f32 %v5004_v32  ;;  %v8376_v40 = vpop.eup %8375 }
 0xb3a   : > { %7780 = vmatprep.subr.msk.bf16.mxu1 %vm1732_vm0, %v10768_v22  ;;  %v4959_v43 = vpop.xlane.xlu1 %4958  ;;  %8387 = vpow2.f32 %v5010_v54  ;;  %v3083_v62 = vmul.f32 %v8376_v40, %v12279_v59 }
 0xb3b   : > { %v4977_v31 = vsub.f32 %v10887_v17, %v4959_v43  ;;  %v5276_v17 = vsel %vm1732_vm0, %v10768_v22, 0  ;;  %v2641_v22 = vpack.c.bf16 %v2626_v37, %v2625_v21  ;;  %v12280_v43 = vld [vmem:[#allocation106_spill] sm:$0xff] }
 0xb3c   : > { %v11055_v38 = vpop.xlane.xlu0 %2916  ;;  %v11065_v6 = vpop.eup %8377 }
 0xb3d   : > { %v5006_v39 = vmul.f32 1.442695, %v4977_v31  ;;  %5679 = vrot.lane.b32.xlu0 %v4747_v56, %s8890_s28  ;;  %v3084_v31 = vmul.f32 %v8374_v8, %v12280_v43 }
 0xb3e   : > { %v11058_v19 = vpop.xlane.xlu1 %3368 }
 0xb3f   : > { %8389 = vpow2.f32 %v5006_v39  ;;  %v3099_v10 = vpack.c.bf16 %v3084_v31, %v3083_v62 }
 0xb40   : > { %8391 = vpow2.f32 %v5008_v25  ;;  %v11060_v50 = vpop.xlane.xlu0 %3374  ;;  %v11072_v33 = vpop.eup %8379  ;;  %v5273_v25 = vsel %vm1732_vm0, %v10774_v41, 0 }
 0xb41   : > { %7666 = vmatpush3.bf16.xpose.msra.mxu1 %v5276_v17  ;;  %8393 = vrcp.f32 %v10958_v5 }
 0xb42   : > { %7781 = vmatprep.subr.msk.bf16.mxu1 %vm1732_vm0, %v10774_v41  ;;  %v11069_v47 = vpop.xlane.xlu1 %2456  ;;  %8395 = vrcp.f32 %v10947_v0 }
 0xb43   : > { %8397 = vrcp.f32 %v10974_v20  ;;  %v12294_v20 = vld [vmem:[#allocation18_spill] sm:$0xff] }
 0xb44   : > { %v11074_v60 = vpop.eup %8381  ;;  %v11076_v14 = vpop.xlane.xlu0 %2462  ;;  %8399 = vrcp.f32 %v10953_v44 }
 0xb45   : > { %v11079_v57 = vpop.eup %8383  ;;  %v5048_v32 = vpack.c.bf16 %v11074_v60, %v11065_v6  ;;  %8401 = vrcp.f32 %v10982_v23  ;;  %v12295_v23 = vld [vmem:[#allocation55_spill] sm:$0xff] }
 0xb46   : > { %3573 = vrot.lane.b32.xlu1 %v2641_v22, %s8890_s28  ;;  %v11084_v24 = vpop.xlane.xlu1 %4562  ;;  %v5049_v54 = vpack.c.bf16 %v11072_v33, %v11079_v57  ;;  %v11093_v39 = vpop.eup %8385  ;;  %v5270_v22 = vsel %vm1732_vm0, %v10766_v46, 0  ;;  %8403 = vrcp.f32 %v10965_v42 }
 0xb47   : > { %7647 = vmatprep.mubr.bf16.mxu1 %v5048_v32  ;;  %v11100_v17 = vpop.eup %8387 }
 0xb48   : > { %v11089_v56 = vpop.xlane.xlu0 %4568  ;;  %7648 = vmatmul.mubr.bf16.gmra.mxu1 %v5049_v54 }
 0xb49   : > { %7668 = vmatpush3.bf16.xpose.msra.mxu1 %v5273_v25 }
 0xb4a   : > { %7782 = vmatprep.subr.msk.bf16.mxu1 %vm1732_vm0, %v10766_v46  ;;  %3597 = vrot.lane.b32.xlu1 %v3099_v10, %s8889_s26  ;;  %v11098_v30 = vpop.xlane.xlu1 %2914  ;;  %v12286_v46 = vld [vmem:[#allocation54_spill] sm:$0xff] }
 0xb4c   : > { %v11102_v8 = vpop.eup %8389  ;;  %v11104_v18 = vpop.xlane.xlu0 %2920 }
 0xb4d   : > { %12281 = vst [vmem:[#allocation119_spill] sm:$0xff] %v11104_v18  ;;  %v11106_v21 = vpop.eup %8391  ;;  %v5050_v41 = vpack.c.bf16 %v11102_v8, %v11093_v39 }
 0xb4e   : > { %v11110_v40 = vpop.xlane.xlu1 %3372  ;;  %v5051_v2 = vpack.c.bf16 %v11100_v17, %v11106_v21  ;;  %v8394_v5 = vpop.eup %8393 }
 0xb4f   : > { %7651 = vmatprep.mubr.bf16.mxu1 %v5050_v41  ;;  %v8396_v44 = vpop.eup %8395  ;;  %v3541_v25 = vmul.f32 %v8394_v5, %v12294_v20  ;;  %v12297_v41 = vld [vmem:[#allocation20_spill] sm:$0xff]  ;;  %v12302_v20 = vld [vmem:[#allocation89_spill] sm:$0xff] }
 0xb50   : > { %v11114_v37 = vpop.xlane.xlu0 %3378  ;;  %7652 = vmatmul.mubr.bf16.gmra.mxu1 %v5051_v2  ;;  %v8398_v10 = vpop.eup %8397  ;;  %v3542_v2 = vmul.f32 %v8396_v44, %v12297_v41 }
 0xb51   : > { %12282 = vst [vmem:[#allocation121_spill] sm:$0xff] %v11114_v37  ;;  %7670 = vmatpush3.bf16.xpose.msra.mxu1 %v5270_v22  ;;  %7671 = vmatprep.mubr.msk.bf16.mxu1 %vm1732_vm0, %v10780_v53  ;;  %v8400_v22 = vpop.eup %8399 }
 0xb52   : > { %v11120_v59 = vpop.xlane.xlu1 %2460 }
 0xb54   : > { %v11122_v62 = vpop.xlane.xlu0 %2466 }
 0xb55   : > { %12283 = vst [vmem:[#allocation61_spill] sm:$0xff] %v11122_v62 }
 0xb56   : > { %v11124_v32 = vpop.xlane.xlu1 %4566 }
 0xb58   : > { %v11126_v54 = vpop.xlane.xlu0 %4572  ;;  %7672 = vmatmul.mubr.msk.bf16.vlgmr.msra.gmra.mxu1 %vm1732_vm0, %v10772_v11 }
 0xb59   : > { %12284 = vst [vmem:[#allocation62_spill] sm:$0xff] %v11126_v54  ;;  %7675 = vmatprep.mubr.msk.bf16.mxu1 %vm1732_vm0, %v10785_v27 }
 0xb5a   : > { %v11132_v43 = vpop.xlane.xlu1 %2918 }
 0xb5b   : > { %12285 = vst [vmem:[#allocation34_spill] sm:$0xff] %v11132_v43 }
 0xb5c   : > { %1974 = vadd.xlane.f32.xlu0 %v12286_v46  ;;  %v11136_v53 = vpop.xlane.xlu0 %2924  ;;  %v3557_v46 = vpack.c.bf16 %v3542_v2, %v3541_v25 }
 0xb5d   : > { %12287 = vst [vmem:[#allocation33_spill] sm:$0xff] %v11136_v53  ;;  %v12300_v53 = vld [vmem:[#allocation141_spill] sm:$0xff] }
 0xb5e   : > { %v11139_v31 = vpop.xlane.xlu1 %3376 }
 0xb5f   : > { %12288 = vst [vmem:[#allocation120_spill] sm:$0xff] %v11139_v31 }
 0xb60   : > { %7676 = vmatmul.mubr.msk.bf16.gmra.mxu1 %vm1732_vm0, %v10778_v16  ;;  %v11149_v27 = vpop.xlane.xlu0 %3382 }
 0xb61   : > { %7679 = vmatprep.mubr.msk.bf16.mxu1 %vm1732_vm0, %v10789_v51  ;;  %12290 = vst [vmem:[#allocation63_spill] sm:$0xff] %v11149_v27  ;;  %v8402_v27 = vpop.eup %8401 }
 0xb62   : > { %v11147_v11 = vpop.xlane.xlu1 %2464  ;;  %v4733_v41 = vmul.f32 %v8402_v27, %v10793_v9 }
 0xb63   : > { %12289 = vst [vmem:[#allocation123_spill] sm:$0xff] %v11147_v11 }
 0xb64   : > { %v11157_v16 = vpop.xlane.xlu0 %2470 }
 0xb65   : > { %12292 = vst [vmem:[#allocation38_spill] sm:$0xff] %v11157_v16 }
 0xb66   : > { %v11153_v0 = vpop.xlane.xlu1 %4570 }
 0xb67   : > { %12291 = vst [vmem:[#allocation65_spill] sm:$0xff] %v11153_v0 }
 0xb68   : > { %7680 = vmatmul.mubr.msk.bf16.gmra.mxu1 %vm1732_vm0, %v10783_v36  ;;  %v11168_v36 = vpop.xlane.xlu0 %4576 }
 0xb69   : > { %7683 = vmatprep.mubr.msk.bf16.mxu1 %vm1732_vm0, %v10791_v29  ;;  %12298 = vst [vmem:[#allocation125_spill] sm:$0xff] %v11168_v36  ;;  %v12299_v29 = vld [vmem:[#allocation87_spill] sm:$0xff] }
 0xb6a   : > { %v11161_v51 = vpop.xlane.xlu1 %2922  ;;  %v2627_v16 = vmul.f32 %v8398_v10, %v12299_v29 }
 0xb6b   : > { %12293 = vst [vmem:[#allocation37_spill] sm:$0xff] %v11161_v51  ;;  %v12304_v51 = vld [vmem:[#allocation140_spill] sm:$0xff] }
 0xb6c   : > { %v11179_v36 = vpop.xlane.xlu0 %2928 }
 0xb6d   : > { %12303 = vst [vmem:[#allocation32_spill] sm:$0xff] %v11179_v36 }
 0xb6e   : > { %1976 = vadd.xlane.f32.xlu1 %v12295_v23  ;;  %v11165_v42 = vpop.xlane.xlu1 %3380  ;;  %v2628_v23 = vmul.f32 %v8400_v22, %v12302_v20 }
 0xb6f   : > { %12296 = vst [vmem:[#allocation122_spill] sm:$0xff] %v11165_v42  ;;  %v8404_v42 = vpop.eup %8403 }
 0xb70   : > { %7684 = vmatmul.mubr.msk.bf16.gmra.mxu1 %vm1732_vm0, %v10787_v13  ;;  %v2642_v44 = vpack.c.bf16 %v2628_v23, %v2627_v16  ;;  %v11190_v16 = vpop.xlane.xlu0 %3386 }
 0xb71   : > { %12307 = vst [vmem:[#allocation124_spill] sm:$0xff] %v11190_v16 }
 0xb72   : > { %4080 = vadd.xlane.f32.xlu1 %v12300_v53  ;;  %3621 = vrot.lane.b32.xlu0 %v3557_v46, %s8888_s1  ;;  %v11175_v5 = vpop.xlane.xlu1 %2468  ;;  %v4734_v53 = vmul.f32 %v8404_v42, %v10797_v28 }
 0xb73   : > { %12301 = vst [vmem:[#allocation66_spill] sm:$0xff] %v11175_v5 }
 0xb74   : > { %v4748_v25 = vpack.c.bf16 %v4734_v53, %v4733_v41  ;;  %v11195_v27 = vpop.xlane.xlu0 %2474 }
 0xb75   : > { %12309 = vst [vmem:[#allocation64_spill] sm:$0xff] %v11195_v27 }
 0xb76   : > { %4082 = vadd.xlane.f32.xlu1 %v12304_v51  ;;  %3575 = vrot.lane.b32.xlu0 %v2642_v44, %s8890_s28  ;;  %v11183_v13 = vpop.xlane.xlu1 %4574 }
 0xb77   : > { %12305 = vst [vmem:[#allocation43_spill] sm:$0xff] %v11183_v13  ;;  %v12339_v13 = vld [vmem:[#allocation74_spill] sm:$0xff] }
 0xb7a   : > { %5016 = vadd.xlane.f32.xlu1 %v10967_v49  ;;  %5681 = vrot.lane.b32.xlu0 %v4748_v25, %s8890_s28  ;;  %v11188_v10 = vpop.xlane.xlu1 %2926  ;;  %v11203_v49 = vpop.xlane.xlu0 %4580 }
 0xb7b   : > { %12306 = vst [vmem:[#allocation41_spill] sm:$0xff] %v11188_v10  ;;  %12312 = vst [vmem:[#allocation69_spill] sm:$0xff] %v11203_v49  ;;  %v12338_v49 = vld [vmem:[#allocation72_spill] sm:$0xff] }
 0xb7e   : > { %5012 = vadd.xlane.f32.xlu1 %v10956_v15  ;;  %v11193_v9 = vpop.xlane.xlu1 %3384  ;;  %v11208_v2 = vpop.xlane.xlu0 %2932 }
 0xb7f   : > { %12308 = vst [vmem:[#allocation127_spill] sm:$0xff] %v11193_v9  ;;  %12314 = vst [vmem:[#allocation129_spill] sm:$0xff] %v11208_v2 }
 0xb82   : > { %5024 = vadd.xlane.f32.xlu1 %v11028_v58  ;;  %v11198_v51 = vpop.xlane.xlu1 %2472  ;;  %v11214_v58 = vpop.xlane.xlu0 %3390 }
 0xb83   : > { %12310 = vst [vmem:[#allocation35_spill] sm:$0xff] %v11198_v51  ;;  %12316 = vst [vmem:[#allocation39_spill] sm:$0xff] %v11214_v58 }
 0xb86   : > { %5020 = vadd.xlane.f32.xlu1 %v11014_v45  ;;  %v11201_v28 = vpop.xlane.xlu1 %4578  ;;  %v11219_v22 = vpop.xlane.xlu0 %2478 }
 0xb87   : > { %12311 = vst [vmem:[#allocation42_spill] sm:$0xff] %v11201_v28  ;;  %12318 = vst [vmem:[#allocation68_spill] sm:$0xff] %v11219_v22 }
 0xb8a   : > { %5032 = vadd.xlane.f32.xlu1 %v11079_v57  ;;  %v11206_v42 = vpop.xlane.xlu1 %2930  ;;  %v11225_v46 = vpop.xlane.xlu0 %4584 }
 0xb8b   : > { %12313 = vst [vmem:[#allocation126_spill] sm:$0xff] %v11206_v42  ;;  %12320 = vst [vmem:[#allocation46_spill] sm:$0xff] %v11225_v46 }
 0xb8e   : > { %5028 = vadd.xlane.f32.xlu1 %v11065_v6  ;;  %v11211_v15 = vpop.xlane.xlu1 %3388 }
 0xb8f   : > { %12315 = vst [vmem:[#allocation36_spill] sm:$0xff] %v11211_v15 }
 0xb92   : > { %5040 = vadd.xlane.f32.xlu1 %v11106_v21  ;;  %v11217_v45 = vpop.xlane.xlu1 %2476  ;;  %v11230_v21 = vpop.xlane.xlu0 %2936 }
 0xb93   : > { %12317 = vst [vmem:[#allocation67_spill] sm:$0xff] %v11217_v45  ;;  %12322 = vst [vmem:[#allocation131_spill] sm:$0xff] %v11230_v21 }
 0xb96   : > { %5036 = vadd.xlane.f32.xlu1 %v11093_v39  ;;  %v11223_v57 = vpop.xlane.xlu1 %4582  ;;  %v1961_v29 = vpop.xlane.xlu0 %1960 }
 0xb97   : > { %12319 = vst [vmem:[#allocation128_spill] sm:$0xff] %v11223_v57 }
 0xb99   : > { %5018 = vadd.xlane.f32.xlu0 %v10960_v34 }
 0xb9a   : > { %v11228_v6 = vpop.xlane.xlu1 %2934 }
 0xb9b   : > { %12321 = vst [vmem:[#allocation40_spill] sm:$0xff] %v11228_v6 }
 0xb9d   : > { %5014 = vadd.xlane.f32.xlu0 %v10963_v4  ;;  %v11237_v4 = vpop.xlane.xlu0 %3394 }
 0xb9e   : > { %v1959_v39 = vpop.xlane.xlu1 %1958  ;;  %12324 = vst [vmem:[#allocation70_spill] sm:$0xff] %v11237_v4 }
 0xb9f   : > { %8405 = vrcp.f32 %v1959_v39 }
 0xba0   : > { %8407 = vrcp.f32 %v1961_v29 }
 0xba1   : > { %5026 = vadd.xlane.f32.xlu0 %v11032_v63  ;;  %v11243_v20 = vpop.xlane.xlu0 %4066 }
 0xba2   : > { %v11235_v34 = vpop.xlane.xlu1 %3392  ;;  %12326 = vst [vmem:[#allocation45_spill] sm:$0xff] %v11243_v20 }
 0xba3   : > { %12323 = vst [vmem:[#allocation134_spill] sm:$0xff] %v11235_v34 }
 0xba5   : > { %5022 = vadd.xlane.f32.xlu0 %v11011_v7  ;;  %v11247_v7 = vpop.xlane.xlu0 %1964 }
 0xba6   : > { %v11241_v63 = vpop.xlane.xlu1 %4064 }
 0xba7   : > { %12325 = vst [vmem:[#allocation48_spill] sm:$0xff] %v11241_v63 }
 0xba9   : > { %5034 = vadd.xlane.f32.xlu0 %v11072_v33  ;;  %v11251_v44 = vpop.xlane.xlu0 %4070 }
 0xbaa   : > { %v11245_v23 = vpop.xlane.xlu1 %1962  ;;  %12328 = vst [vmem:[#allocation130_spill] sm:$0xff] %v11251_v44 }
 0xbad   : > { %5030 = vadd.xlane.f32.xlu0 %v11074_v60  ;;  %v11255_v41 = vpop.xlane.xlu0 %1968 }
 0xbae   : > { %v11249_v33 = vpop.xlane.xlu1 %4068  ;;  %12330 = vst [vmem:[#allocation132_spill] sm:$0xff] %v11255_v41 }
 0xbaf   : > { %12327 = vst [vmem:[#allocation133_spill] sm:$0xff] %v11249_v33  ;;  %v8406_v33 = vpop.eup %8405 }
 0xbb0   : > { %v8408_v46 = vpop.eup %8407  ;;  %v2159_v28 = vmul.f32 %v8406_v33, %v12338_v49 }
 0xbb1   : > { %5042 = vadd.xlane.f32.xlu0 %v11100_v17  ;;  %v11259_v17 = vpop.xlane.xlu0 %4074  ;;  %v2160_v4 = vmul.f32 %v8408_v46, %v12339_v13 }
 0xbb2   : > { %v11253_v60 = vpop.xlane.xlu1 %1966  ;;  %12332 = vst [vmem:[#allocation47_spill] sm:$0xff] %v11259_v17 }
 0xbb3   : > { %12329 = vst [vmem:[#allocation51_spill] sm:$0xff] %v11253_v60  ;;  %v2175_v39 = vpack.c.bf16 %v2160_v4, %v2159_v28 }
 0xbb5   : > { %5038 = vadd.xlane.f32.xlu0 %v11102_v8  ;;  %v11263_v25 = vpop.xlane.xlu0 %1972 }
 0xbb6   : > { %v11257_v53 = vpop.xlane.xlu1 %4072  ;;  %12334 = vst [vmem:[#allocation135_spill] sm:$0xff] %v11263_v25 }
 0xbb7   : > { %12331 = vst [vmem:[#allocation138_spill] sm:$0xff] %v11257_v53 }
 0xbb9   : > { %v11267_v63 = vpop.xlane.xlu0 %4078 }
 0xbba   : > { %v11261_v8 = vpop.xlane.xlu1 %1970  ;;  %12336 = vst [vmem:[#allocation50_spill] sm:$0xff] %v11267_v63 }
 0xbbb   : > { %12333 = vst [vmem:[#allocation49_spill] sm:$0xff] %v11261_v8 }
 0xbbd   : > { %v11269_v57 = vpop.permute.xlu0 %5679 }
 0xbbe   : > { %v11265_v20 = vpop.xlane.xlu1 %4076  ;;  %12337 = vst [vmem:[#allocation136_spill] sm:$0xff] %v11269_v57 }
 0xbbf   : > { %12335 = vst [vmem:[#allocation137_spill] sm:$0xff] %v11265_v20 }
 0xbc2   : > { %v3574_v44 = vpop.permute.xlu1 %3573 }
 0xbc3   : > { %v3639_v25 = vsel %vm1732_vm0, %v2175_v39, %v3574_v44 }
 0xbc6   : > { %v3598_v29 = vpop.permute.xlu1 %3597 }
 0xbc7   : > { %v3663_v8 = vsel %vm3661_vm1, %v3639_v25, %v3598_v29 }
 0xbd8   : > { %v7641_v57 = vpop.f32.mrf.mxu1 }
 0xbda   : > { %v11278_v49 = vpop.f32.mrf.mxu1 }
 0xbdc   : > { %v11280_v13 = vpop.f32.mrf.mxu1 }
 0xbde   : > { %v11284_v46 = vpop.f32.mrf.mxu1 }
 0xbe5   : > { %v11273_v34 = vpop.xlane.xlu0 %1974 }
 0xbe6   : > { %12340 = vst [vmem:[#allocation52_spill] sm:$0xff] %v11273_v34 }
 0xbe9   : > { %v3622_v63 = vpop.permute.xlu0 %3621 }
 0xbea   : > { %v3680_v20 = vsel %vm3678_vm2, %v3663_v8, %v3622_v63 }
 0xbeb   : > { %v6752_v21 = vcombine.low %v3680_v20, %v3680_v20  ;;  %v6753_v6 = vcombine.high %v3680_v20, %v3680_v20 }
 0xbed   : > { %3751 = vst [vmem:[#allocation3] sm:$0xf] %v6752_v21  ;;  %3752 = vst [vmem:[#allocation3 + $0x8] sm:$0xf] %v6753_v6  ;;  %v11308_v27 = vpop.permute.xlu0 %3575 }
 0xbee   : > { %12344 = vst [vmem:[#allocation104_spill] sm:$0xff] %v11308_v27 }
 0xbf7   : > { %v11282_v28 = vpop.xlane.xlu1 %1976  ;;  %v7645_v4 = vpop.f32.mrf.mxu1 }
 0xbf8   : > { %12341 = vst [vmem:[#allocation139_spill] sm:$0xff] %v11282_v28 }
 0xbf9   : > { %v11288_v44 = vpop.f32.mrf.mxu1 }
 0xbfb   : > { %v11286_v33 = vpop.xlane.xlu1 %4080  ;;  %v11292_v63 = vpop.f32.mrf.mxu1 }
 0xbfc   : > { %12342 = vst [vmem:[#allocation88_spill] sm:$0xff] %v11286_v33 }
 0xbfd   : > { %v11294_v6 = vpop.f32.mrf.mxu1 }
 0xbff   : > { %v11290_v25 = vpop.xlane.xlu1 %4082 }
 0xc00   : > { %12343 = vst [vmem:[#allocation90_spill] sm:$0xff] %v11290_v25 }
 0xc03   : > { %v5017_v20 = vpop.xlane.xlu1 %5016 }
 0xc04   : > { %8409 = vrcp.f32 %v5017_v20 }
 0xc07   : > { %v5013_v21 = vpop.xlane.xlu1 %5012 }
 0xc08   : > { %v7649_v8 = vpop.f32.mrf.mxu1 }
 0xc0a   : > { %v5142_v39 = vpop.f32.mrf.mxu1 }
 0xc0b   : > { %v5025_v29 = vpop.xlane.xlu1 %5024 }
 0xc0c   : > { %8411 = vrcp.f32 %v5025_v29  ;;  %v11296_v34 = vpop.f32.mrf.mxu1 }
 0xc0e   : > { %v11298_v28 = vpop.f32.mrf.mxu1 }
 0xc0f   : > { %v5021_v33 = vpop.xlane.xlu1 %5020 }
 0xc10   : > { %v7653_v22 = vpop.f32.mrf.mxu1 }
 0xc11   : > { %v8410_v45 = vpop.eup %8409 }
 0xc12   : > { %v11300_v58 = vpop.f32.mrf.mxu1  ;;  %v11302_v25 = vmul.f32 %v8410_v45, %v7641_v57  ;;  %v11320_v57 = vpop.permute.xlu0 %5681 }
 0xc13   : > { %v5033_v15 = vpop.xlane.xlu1 %5032  ;;  %12345 = vst [vmem:[#allocation106_spill] sm:$0xff] %v11320_v57 }
 0xc14   : > { %8413 = vrcp.f32 %v5033_v15  ;;  %v11304_v20 = vpop.f32.mrf.mxu1 }
 0xc16   : > { %v11306_v2 = vpop.f32.mrf.mxu1 }
 0xc17   : > { %v5029_v42 = vpop.xlane.xlu1 %5028 }
 0xc18   : > { %8415 = vrcp.f32 %v5029_v42  ;;  %v11310_v29 = vpop.f32.mrf.mxu1 }
 0xc19   : > { %v8412_v51 = vpop.eup %8411  ;;  %5394 = vmax.xlane.f32.xlu0 %v11310_v29 }
 0xc1a   : > { %v11313_v16 = vpop.f32.mrf.mxu1  ;;  %v11315_v9 = vmul.f32 %v8412_v51, %v7645_v4 }
 0xc1b   : > { %v5041_v45 = vpop.xlane.xlu1 %5040 }
 0xc1c   : > { %8417 = vrcp.f32 %v5041_v45  ;;  %v11317_v15 = vpop.f32.mrf.mxu1 }
 0xc1d   : > { %5390 = vmax.xlane.f32.xlu0 %v11313_v16  ;;  %8419 = vrcp.f32 %v5013_v21 }
 0xc1e   : > { %v11322_v36 = vpop.f32.mrf.mxu1 }
 0xc1f   : > { %v5037_v43 = vpop.xlane.xlu1 %5036 }
 0xc20   : > { %v11324_v42 = vpop.f32.mrf.mxu1 }
 0xc21   : > { %v8414_v10 = vpop.eup %8413  ;;  %5396 = vmax.xlane.f32.xlu0 %v11317_v15 }
 0xc22   : > { %v11327_v5 = vpop.xlane.xlu0 %5018  ;;  %v11329_v54 = vpop.f32.mrf.mxu1  ;;  %v11331_v51 = vmul.f32 %v8414_v10, %v7649_v8 }
 0xc24   : > { %v11333_v4 = vpop.f32.mrf.mxu1 }
 0xc25   : > { %v8416_v45 = vpop.eup %8415  ;;  %5402 = vmax.xlane.f32.xlu0 %v11324_v42 }
 0xc26   : > { %v5015_v57 = vpop.xlane.xlu0 %5014  ;;  %v11336_v0 = vpop.f32.mrf.mxu1  ;;  %v11338_v62 = vmul.f32 %v8416_v45, %v5142_v39 }
 0xc27   : > { %8421 = vrcp.f32 %v5015_v57 }
 0xc28   : > { %v11340_v11 = vpop.f32.mrf.mxu1 }
 0xc29   : > { %v8418_v37 = vpop.eup %8417  ;;  %5398 = vmax.xlane.f32.xlu0 %v11329_v54 }
 0xc2a   : > { %v5027_v31 = vpop.xlane.xlu0 %5026  ;;  %v11343_v10 = vpop.f32.mrf.mxu1  ;;  %v11345_v8 = vmul.f32 %v8418_v37, %v7653_v22 }
 0xc2b   : > { %8423 = vrcp.f32 %v5027_v31  ;;  %v8420_v57 = vpop.eup %8419 }
 0xc2c   : > { %v11347_v21 = vpop.f32.mrf.mxu1  ;;  %8425 = vrcp.f32 %v5021_v33  ;;  %v5189_v37 = vmul.f32 %v8420_v57, %v11278_v49 }
 0xc2d   : > { %5404 = vmax.xlane.f32.xlu0 %v11333_v4 }
 0xc2e   : > { %v5023_v41 = vpop.xlane.xlu0 %5022  ;;  %v11350_v39 = vpop.f32.mrf.mxu1 }
 0xc2f   : > { %8427 = vrcp.f32 %v5023_v41 }
 0xc30   : > { %v11353_v17 = vpop.f32.mrf.mxu1 }
 0xc31   : > { %5410 = vmax.xlane.f32.xlu0 %v11340_v11 }
 0xc32   : > { %v5035_v45 = vpop.xlane.xlu0 %5034  ;;  %v11358_v53 = vpop.f32.mrf.mxu1 }
 0xc33   : > { %8429 = vrcp.f32 %v5035_v45 }
 0xc34   : > { %v8422_v60 = vpop.eup %8421 }
 0xc35   : > { %5406 = vmax.xlane.f32.xlu0 %v11343_v10  ;;  %v5190_v31 = vmul.f32 %v8422_v60, %v11284_v46  ;;  %v11367_v46 = vpop.f32.mrf.mxu1 }
 0xc36   : > { %v5031_v22 = vpop.xlane.xlu0 %5030 }
 0xc37   : > { %8431 = vrcp.f32 %v5031_v22  ;;  %v5205_v33 = vpack.c.bf16 %v5190_v31, %v5189_v37  ;;  %v11378_v22 = vpop.f32.mrf.mxu1 }
 0xc38   : > { %v8424_v41 = vpop.eup %8423 }
 0xc39   : > { %5412 = vmax.xlane.f32.xlu0 %v11347_v21  ;;  %5703 = vrot.lane.b32.xlu1 %v5205_v33, %s8889_s26  ;;  %v11363_v45 = vmul.f32 %v8424_v41, %v11292_v63  ;;  %v8426_v18 = vpop.eup %8425  ;;  %v12346_v33 = vld [vmem:[#allocation103_spill] sm:$0xff] }
 0xc3a   : > { %v5043_v27 = vpop.xlane.xlu0 %5042  ;;  %v11371_v57 = vmul.f32 %v8426_v18, %v11288_v44 }
 0xc3b   : > { %8433 = vrcp.f32 %v5043_v27 }
 0xc3c   : > { %v8428_v49 = vpop.eup %8427  ;;  %8435 = vrcp.f32 %v5037_v43 }
 0xc3d   : > { %5420 = vmax.xlane.f32.xlu0 %v11367_v46  ;;  %v11374_v37 = vmul.f32 %v8428_v49, %v11294_v6 }
 0xc3e   : > { %v5039_v63 = vpop.xlane.xlu0 %5038 }
 0xc3f   : > { %8437 = vrcp.f32 %v5039_v63 }
 0xc40   : > { %v8430_v31 = vpop.eup %8429  ;;  %8439 = vrcp.f32 %v11042_v48 }
 0xc41   : > { %5416 = vmax.xlane.f32.xlu0 %v11378_v22  ;;  %v11383_v43 = vmul.f32 %v8430_v31, %v11296_v34  ;;  %8441 = vrcp.f32 %v10990_v1 }
 0xc42   : > { %8443 = vrcp.f32 %v11327_v5  ;;  %v12349_v5 = vld [vmem:[#allocation17_spill] sm:$0xff] }
 0xc43   : > { %8445 = vrcp.f32 %v11058_v19 }
 0xc44   : > { %v8432_v44 = vpop.eup %8431  ;;  %8447 = vrcp.f32 %v11018_v3 }
 0xc45   : > { %v11389_v6 = vmul.f32 %v8432_v44, %v11298_v28  ;;  %8449 = vrcp.f32 %v11069_v47  ;;  %v12350_v47 = vld [vmem:[#allocation19_spill] sm:$0xff] }
 0xc46   : > { %8451 = vrcp.f32 %v11035_v61 }
 0xc47   : > { %8453 = vrcp.f32 %v11084_v24 }
 0xc48   : > { %v8434_v41 = vpop.eup %8433  ;;  %8455 = vrcp.f32 %v11047_v12 }
 0xc49   : > { %v11394_v48 = vmul.f32 %v8434_v41, %v11304_v20  ;;  %v8436_v49 = vpop.eup %8435  ;;  %v12347_v20 = vld [vmem:[#allocation105_spill] sm:$0xff]  ;;  %8457 = vrcp.f32 %v11098_v30 }
 0xc4a   : > { %v11399_v1 = vmul.f32 %v8436_v49, %v11300_v58  ;;  %v12348_v58 = vld [vmem:[#allocation56_spill] sm:$0xff]  ;;  %8459 = vrcp.f32 %v11055_v38 }
 0xc4b   : > { %v5212_v34 = vpack.c.bf16 %v11394_v48, %v11345_v8  ;;  %8461 = vrcp.f32 %v11110_v40  ;;  %v12487_v48 = vld [vmem:[#allocation106_spill] sm:$0xff] }
 0xc4c   : > { %v8438_v63 = vpop.eup %8437  ;;  %8463 = vrcp.f32 %v11060_v50 }
 0xc4d   : > { %v11402_v31 = vmul.f32 %v8438_v63, %v11306_v2  ;;  %v8440_v28 = vpop.eup %8439  ;;  %8465 = vrcp.f32 %v11120_v59  ;;  %v12361_v59 = vld [vmem:[#allocation24_spill] sm:$0xff] }
 0xc4e   : > { %v8442_v18 = vpop.eup %8441  ;;  %v3085_v60 = vmul.f32 %v8440_v28, %v12346_v33  ;;  %v12352_v28 = vld [vmem:[#allocation94_spill] sm:$0xff]  ;;  %8467 = vrcp.f32 %v11076_v14  ;;  %v12363_v14 = vld [vmem:[#allocation93_spill] sm:$0xff] }
 0xc4f   : > { %v5211_v44 = vpack.c.bf16 %v11402_v31, %v11399_v1  ;;  %v3086_v41 = vmul.f32 %v8442_v18, %v12347_v20  ;;  %v8444_v2 = vpop.eup %8443  ;;  %8469 = vrcp.f32 %v11124_v32 }
 0xc50   : > { %v8446_v19 = vpop.eup %8445  ;;  %8471 = vrcp.f32 %v11089_v56 }
 0xc51   : > { %v3100_v27 = vpack.c.bf16 %v3086_v41, %v3085_v60  ;;  %v5192_v60 = vmul.f32 %v8444_v2, %v11280_v13  ;;  %v8448_v3 = vpop.eup %8447  ;;  %v3543_v13 = vmul.f32 %v8446_v19, %v12349_v5 }
 0xc52   : > { %v8450_v18 = vpop.eup %8449  ;;  %v3544_v33 = vmul.f32 %v8448_v3, %v12350_v47  ;;  %v12354_v3 = vld [vmem:[#allocation110_spill] sm:$0xff] }
 0xc53   : > { %v8452_v61 = vpop.eup %8451  ;;  %v12356_v47 = vld [vmem:[#allocation142_spill] sm:$0xff] }
 0xc54   : > { %v3558_v49 = vpack.c.bf16 %v3544_v33, %v3543_v13  ;;  %v8454_v24 = vpop.eup %8453  ;;  %v2630_v12 = vmul.f32 %v8452_v61, %v12352_v28  ;;  %v12359_v61 = vpack.c.bf16 %v11374_v37, %v11371_v57  ;;  %v12362_v57 = vld [vmem:[#allocation91_spill] sm:$0xff] }
 0xc55   : > { %v8456_v20 = vpop.eup %8455  ;;  %v4735_v41 = vmul.f32 %v8454_v24, %v10803_v35  ;;  %v12357_v35 = vld [vmem:[#allocation143_spill] sm:$0xff]  ;;  %v12360_v24 = vld [vmem:[#allocation22_spill] sm:$0xff] }
 0xc56   : > { %v8458_v38 = vpop.eup %8457  ;;  %v4736_v2 = vmul.f32 %v8456_v20, %v10807_v26  ;;  %v12358_v26 = vld [vmem:[#allocation58_spill] sm:$0xff] }
 0xc57   : > { %3599 = vrot.lane.b32.xlu0 %v3100_v27, %s8889_s26  ;;  %v5206_v27 = vpack.c.bf16 %v5192_v60, %v11302_v25  ;;  %v12351_v25 = vld [vmem:[#allocation92_spill] sm:$0xff] }
 0xc58   : > { %v2629_v63 = vmul.f32 %v8450_v18, %v12351_v25  ;;  %v4749_v60 = vpack.c.bf16 %v4736_v2, %v4735_v41  ;;  %v12355_v18 = vld [vmem:[#allocation53_spill] sm:$0xff] }
 0xc5a   : > { %v2643_v30 = vpack.c.bf16 %v2630_v12, %v2629_v63 }
 0xc5d   : > { %5392 = vmax.xlane.f32.xlu1 %v11322_v36 }
 0xc61   : > { %5400 = vmax.xlane.f32.xlu1 %v11336_v0 }
 0xc65   : > { %5408 = vmax.xlane.f32.xlu1 %v11350_v39 }
 0xc69   : > { %5418 = vmax.xlane.f32.xlu1 %v11353_v17 }
 0xc6d   : > { %5414 = vmax.xlane.f32.xlu1 %v11358_v53 }
 0xc76   : > { %1978 = vadd.xlane.f32.xlu0 %v12348_v58  ;;  %v8460_v58 = vpop.eup %8459 }
 0xc77   : > { %v3088_v5 = vmul.f32 %v8460_v58, %v12354_v3  ;;  %v8462_v40 = vpop.eup %8461 }
 0xc78   : > { %v8464_v63 = vpop.eup %8463  ;;  %v3545_v28 = vmul.f32 %v8462_v40, %v12360_v24  ;;  %v12365_v24 = vld [vmem:[#allocation144_spill] sm:$0xff] }
 0xc79   : > { %v8466_v50 = vpop.eup %8465  ;;  %v3546_v20 = vmul.f32 %v8464_v63, %v12361_v59 }
 0xc7a   : > { %v2631_v37 = vmul.f32 %v8466_v50, %v12362_v57  ;;  %v12366_v50 = vld [vmem:[#allocation146_spill] sm:$0xff] }
 0xc7b   : > { %v3559_v41 = vpack.c.bf16 %v3546_v20, %v3545_v28 }
 0xc7e   : > { %5705 = vrot.lane.b32.xlu1 %v5206_v27, %s8889_s26  ;;  %v12353_v27 = vld [vmem:[#allocation108_spill] sm:$0xff] }
 0xc7f   : > { %v3087_v19 = vmul.f32 %v8458_v38, %v12353_v27 }
 0xc81   : > { %v3101_v13 = vpack.c.bf16 %v3088_v5, %v3087_v19 }
 0xc8c   : > { %3623 = vrot.lane.b32.xlu0 %v3558_v49, %s8888_s1 }
 0xc90   : > { %3577 = vrot.lane.b32.xlu0 %v2643_v30, %s8890_s28  ;;  %v8468_v30 = vpop.eup %8467 }
 0xc91   : > { %v8470_v38 = vpop.eup %8469  ;;  %v2632_v32 = vmul.f32 %v8468_v30, %v12363_v14 }
 0xc92   : > { %v8472_v2 = vpop.eup %8471 }
 0xc93   : > { %v2644_v58 = vpack.c.bf16 %v2632_v32, %v2631_v37  ;;  %v4738_v27 = vmul.f32 %v8472_v2, %v10805_v55 }
 0xc94   : > { %5683 = vrot.lane.b32.xlu0 %v4749_v60, %s8890_s28  ;;  %v4737_v60 = vmul.f32 %v8470_v38, %v10801_v52 }
 0xc96   : > { %v4750_v19 = vpack.c.bf16 %v4738_v27, %v4737_v60 }
 0xc98   : > { %3601 = vrot.lane.b32.xlu0 %v3101_v13, %s8889_s26 }
 0xca2   : > { %1980 = vadd.xlane.f32.xlu1 %v12355_v18  ;;  %v5395_v33 = vpop.xlane.xlu0 %5394 }
 0xca3   : > { %v5424_v5 = vsub.f32 %v11310_v29, %v5395_v33 }
 0xca5   : > { %v5442_v13 = vmul.f32 1.442695, %v5424_v5 }
 0xca6   : > { %4084 = vadd.xlane.f32.xlu1 %v12356_v47  ;;  %v5391_v49 = vpop.xlane.xlu0 %5390 }
 0xca7   : > { %v5422_v18 = vsub.f32 %v11313_v16, %v5391_v49  ;;  %8473 = vpow2.f32 %v5442_v13 }
 0xcaa   : > { %4086 = vadd.xlane.f32.xlu1 %v12357_v35  ;;  %v5397_v25 = vpop.xlane.xlu0 %5396  ;;  %v5438_v35 = vmul.f32 1.442695, %v5422_v18 }
 0xcab   : > { %v5425_v52 = vsub.f32 %v11317_v15, %v5397_v25  ;;  %v11468_v33 = vpop.permute.xlu1 %5703 }
 0xcac   : > { %8475 = vpow2.f32 %v5438_v35 }
 0xcad   : > { %v5444_v29 = vmul.f32 1.442695, %v5425_v52 }
 0xcae   : > { %v5403_v12 = vpop.xlane.xlu0 %5402 }
 0xcb2   : > { %v5399_v56 = vpop.xlane.xlu0 %5398 }
 0xcb3   : > { %v5426_v63 = vsub.f32 %v11329_v54, %v5399_v56 }
 0xcb4   : > { %v8474_v20 = vpop.eup %8473 }
 0xcb5   : > { %v5446_v16 = vmul.f32 1.442695, %v5426_v63 }
 0xcb6   : > { %v5405_v3 = vpop.xlane.xlu0 %5404 }
 0xcb7   : > { %1982 = vadd.xlane.f32.xlu0 %v12358_v26  ;;  %v5428_v26 = vsub.f32 %v11324_v42, %v5403_v12  ;;  %v5429_v42 = vsub.f32 %v11333_v4, %v5405_v3 }
 0xcb9   : > { %v5450_v55 = vmul.f32 1.442695, %v5428_v26  ;;  %v5452_v30 = vmul.f32 1.442695, %v5429_v42  ;;  %v8476_v37 = vpop.eup %8475 }
 0xcba   : > { %v5411_v47 = vpop.xlane.xlu0 %5410 }
 0xcbb   : > { %5707 = vrot.lane.b32.xlu1 %v12359_v61, %s8889_s26  ;;  %v12364_v61 = vld [vmem:[#allocation59_spill] sm:$0xff]  ;;  %8477 = vpow2.f32 %v5450_v55  ;;  %v5432_v49 = vsub.f32 %v11340_v11, %v5411_v47 }
 0xcbc   : > { %8479 = vpow2.f32 %v5444_v29 }
 0xcbd   : > { %8481 = vpow2.f32 %v5446_v16  ;;  %v5458_v54 = vmul.f32 1.442695, %v5432_v49 }
 0xcbe   : > { %v5407_v40 = vpop.xlane.xlu0 %5406  ;;  %8483 = vrcp.f32 %v11247_v7 }
 0xcbf   : > { %v5430_v12 = vsub.f32 %v11343_v10, %v5407_v40 }
 0xcc2   : > { %v5413_v15 = vpop.xlane.xlu0 %5412 }
 0xcc3   : > { %v5433_v10 = vsub.f32 %v11347_v21, %v5413_v15 }
 0xcc6   : > { %v5421_v4 = vpop.xlane.xlu0 %5420 }
 0xcc7   : > { %v5437_v3 = vsub.f32 %v11367_v46, %v5421_v4  ;;  %v12367_v46 = vld [vmem:[#allocation71_spill] sm:$0xff] }
 0xcc8   : > { %v8478_v32 = vpop.eup %8477 }
 0xcca   : > { %v5417_v2 = vpop.xlane.xlu0 %5416 }
 0xccb   : > { %v5435_v60 = vsub.f32 %v11378_v22, %v5417_v2 }
 0xccd   : > { %3625 = vrot.lane.b32.xlu0 %v3559_v41, %s8888_s1  ;;  %v5464_v47 = vmul.f32 1.442695, %v5435_v60 }
 0xcce   : > { %v3600_v40 = vpop.permute.xlu0 %3599 }
 0xcd1   : > { %3579 = vrot.lane.b32.xlu0 %v2644_v58, %s8890_s28 }
 0xcd5   : > { %5685 = vrot.lane.b32.xlu0 %v4750_v19, %s8890_s28 }
 0xcdf   : > { %1984 = vadd.xlane.f32.xlu1 %v12364_v61  ;;  %v5468_v61 = vmul.f32 1.442695, %v5437_v3 }
 0xce3   : > { %4088 = vadd.xlane.f32.xlu1 %v12365_v24  ;;  %v12368_v24 = vld [vmem:[#allocation73_spill] sm:$0xff] }
 0xce6   : > { %v5393_v25 = vpop.xlane.xlu1 %5392 }
 0xce7   : > { %v5423_v28 = vsub.f32 %v11322_v36, %v5393_v25  ;;  %4090 = vadd.xlane.f32.xlu1 %v12366_v50  ;;  %v5454_v36 = vmul.f32 1.442695, %v5430_v12  ;;  %v12369_v25 = vld [vmem:[#allocation104_spill] sm:$0xff] }
 0xce9   : > { %v5440_v59 = vmul.f32 1.442695, %v5423_v28 }
 0xcea   : > { %v5401_v41 = vpop.xlane.xlu1 %5400 }
 0xceb   : > { %8485 = vpow2.f32 %v5440_v59  ;;  %v5427_v11 = vsub.f32 %v11336_v0, %v5401_v41  ;;  %5474 = vadd.xlane.f32.xlu1 %v8474_v20  ;;  %v5460_v0 = vmul.f32 1.442695, %v5433_v10 }
 0xcec   : > { %8487 = vrcp.f32 %v11245_v23  ;;  %v8480_v23 = vpop.eup %8479 }
 0xced   : > { %8489 = vpow2.f32 %v5458_v54  ;;  %v5448_v57 = vmul.f32 1.442695, %v5427_v11  ;;  %v8482_v27 = vpop.eup %8481  ;;  %v5503_v52 = vpack.c.bf16 %v8480_v23, %v8474_v20 }
 0xcee   : > { %8491 = vpow2.f32 %v5452_v30  ;;  %v5409_v38 = vpop.xlane.xlu1 %5408 }
 0xcef   : > { %8493 = vpow2.f32 %v5448_v57  ;;  %v5431_v7 = vsub.f32 %v11350_v39, %v5409_v38  ;;  %5470 = vadd.xlane.f32.xlu1 %v8476_v37  ;;  %v8484_v39 = vpop.eup %8483 }
 0xcf0   : > { %8495 = vpow2.f32 %v5454_v36  ;;  %v2162_v16 = vmul.f32 %v8484_v39, %v12368_v24 }
 0xcf1   : > { %v5456_v14 = vmul.f32 1.442695, %v5431_v7  ;;  %v12370_v7 = vld [vmem:[#allocation34_spill] sm:$0xff] }
 0xcf2   : > { %v5419_v56 = vpop.xlane.xlu1 %5418 }
 0xcf3   : > { %8497 = vpow2.f32 %v5456_v14  ;;  %v5436_v58 = vsub.f32 %v11353_v17, %v5419_v56  ;;  %5482 = vadd.xlane.f32.xlu1 %v8478_v32 }
 0xcf4   : > { %5476 = vadd.xlane.f32.xlu0 %v8480_v23  ;;  %8499 = vpow2.f32 %v5460_v0  ;;  %v12372_v0 = vpack.c.bf16 %v11363_v45, %v11315_v9  ;;  %v12373_v23 = vld [vmem:[#allocation138_spill] sm:$0xff]  ;;  %v12377_v9 = vld [vmem:[#allocation51_spill] sm:$0xff] }
 0xcf5   : > { %v5466_v21 = vmul.f32 1.442695, %v5436_v58  ;;  %v12374_v58 = vld [vmem:[#allocation107_spill] sm:$0xff] }
 0xcf6   : > { %v5415_v19 = vpop.xlane.xlu1 %5414 }
 0xcf7   : > { %8501 = vpow2.f32 %v5466_v21  ;;  %v5434_v5 = vsub.f32 %v11358_v53, %v5415_v19  ;;  %5478 = vadd.xlane.f32.xlu1 %v8482_v27  ;;  %v12375_v21 = vld [vmem:[#allocation47_spill] sm:$0xff] }
 0xcf8   : > { %v8486_v13 = vpop.eup %8485 }
 0xcf9   : > { %v8488_v18 = vpop.eup %8487  ;;  %v5462_v35 = vmul.f32 1.442695, %v5434_v5  ;;  %5472 = vadd.xlane.f32.xlu0 %v8486_v13  ;;  %v5502_v17 = vpack.c.bf16 %v8486_v13, %v8476_v37 }
 0xcfa   : > { %v8490_v26 = vpop.eup %8489  ;;  %v2161_v63 = vmul.f32 %v8488_v18, %v12367_v46  ;;  %v11501_v3 = vpop.permute.xlu1 %5705  ;;  %v12378_v18 = vld [vmem:[#allocation132_spill] sm:$0xff] }
 0xcfb   : > { %v8492_v22 = vpop.eup %8491  ;;  %8503 = vpow2.f32 %v5462_v35  ;;  %5490 = vadd.xlane.f32.xlu1 %v8490_v26  ;;  %7703 = vmatprep.mubr.bf16.mxu0 %v5502_v17  ;;  %v12379_v17 = vld [vmem:[#allocation153_spill] sm:$0xff] }
 0xcfc   : > { %v8494_v55 = vpop.eup %8493  ;;  %7704 = vmatmul.mubr.bf16.vlgmr.msra.gmra.mxu0 %v5503_v52  ;;  %8505 = vpow2.f32 %v5464_v47  ;;  %v2176_v15 = vpack.c.bf16 %v2162_v16, %v2161_v63  ;;  %v5505_v50 = vpack.c.bf16 %v8492_v22, %v8478_v32  ;;  %v12371_v32 = vld [vmem:[#allocation119_spill] sm:$0xff] }
 0xcfd   : > { %5484 = vadd.xlane.f32.xlu0 %v8492_v22  ;;  %v5504_v53 = vpack.c.bf16 %v8494_v55, %v8482_v27  ;;  %v8496_v29 = vpop.eup %8495  ;;  %8507 = vpow2.f32 %v5468_v61  ;;  %v12376_v27 = vld [vmem:[#allocation109_spill] sm:$0xff]  ;;  %v12380_v52 = vld [vmem:[#allocation155_spill] sm:$0xff] }
 0xcfe   : > { %v3642_v28 = vsel %vm1732_vm0, %v2176_v15, %v12369_v25  ;;  %8509 = vrcp.f32 %v12370_v7  ;;  %v12382_v15 = vld [vmem:[#allocation81_spill] sm:$0xff] }
 0xcff   : > { %v1979_v49 = vpop.xlane.xlu0 %1978  ;;  %5486 = vadd.xlane.f32.xlu1 %v8496_v29  ;;  %7707 = vmatprep.mubr.bf16.mxu0 %v5504_v53  ;;  %v3665_v12 = vsel %vm3661_vm1, %v3642_v28, %v3600_v40  ;;  %8511 = vrcp.f32 %v12371_v32  ;;  %v12388_v32 = vld [vmem:[#allocation147_spill] sm:$0xff] }
 0xd00   : > { %v8498_v42 = vpop.eup %8497  ;;  %8513 = vrcp.f32 %v12373_v23 }
 0xd01   : > { %5480 = vadd.xlane.f32.xlu0 %v8494_v55  ;;  %v8500_v54 = vpop.eup %8499  ;;  %v5506_v20 = vpack.c.bf16 %v8498_v42, %v8496_v29  ;;  %8515 = vrcp.f32 %v12375_v21 }
 0xd02   : > { %v5507_v37 = vpack.c.bf16 %v8500_v54, %v8490_v26  ;;  %8517 = vrcp.f32 %v1979_v49  ;;  %v12381_v49 = vld [vmem:[#allocation79_spill] sm:$0xff] }
 0xd03   : > { %v3624_v59 = vpop.permute.xlu0 %3623 }
 0xd04   : > { %v8502_v30 = vpop.eup %8501  ;;  %v3682_v41 = vsel %vm3678_vm2, %v3665_v12, %v3624_v59  ;;  %7708 = vmatmul.mubr.bf16.gmra.mxu0 %v5505_v50  ;;  %v12383_v12 = vld [vmem:[#allocation76_spill] sm:$0xff] }
 0xd05   : > { %v6754_v11 = vcombine.low %v3682_v41, %v3682_v41  ;;  %v6755_v4 = vcombine.high %v3682_v41, %v3682_v41  ;;  %5492 = vadd.xlane.f32.xlu0 %v8500_v54  ;;  %7711 = vmatprep.mubr.bf16.mxu0 %v5506_v20 }
 0xd06   : > { %5498 = vadd.xlane.f32.xlu1 %v8502_v30 }
 0xd07   : > { %3753 = vst [vmem:[#allocation3 + $0x10] sm:$0xf] %v6754_v11  ;;  %3754 = vst [vmem:[#allocation3 + $0x18] sm:$0xf] %v6755_v4  ;;  %v3578_v13 = vpop.permute.xlu0 %3577  ;;  %v12385_v11 = vld [vmem:[#allocation57_spill] sm:$0xff] }
 0xd08   : > { %v8504_v36 = vpop.eup %8503 }
 0xd09   : > { %5488 = vadd.xlane.f32.xlu0 %v8498_v42  ;;  %v8506_v57 = vpop.eup %8505 }
 0xd0a   : > { %5494 = vadd.xlane.f32.xlu1 %v8504_v36  ;;  %v5508_v10 = vpack.c.bf16 %v8506_v57, %v8504_v36  ;;  %v8508_v38 = vpop.eup %8507 }
 0xd0b   : > { %v5509_v14 = vpack.c.bf16 %v8508_v38, %v8502_v30  ;;  %v8510_v2 = vpop.eup %8509  ;;  %v5684_v40 = vpop.permute.xlu0 %5683  ;;  %v12384_v30 = vld [vmem:[#allocation78_spill] sm:$0xff] }
 0xd0c   : > { %7712 = vmatmul.mubr.bf16.gmra.mxu0 %v5507_v37  ;;  %v8512_v56 = vpop.eup %8511  ;;  %v3089_v60 = vmul.f32 %v8510_v2, %v12374_v58  ;;  %v12386_v37 = vld [vmem:[#allocation156_spill] sm:$0xff] }
 0xd0d   : > { %5500 = vadd.xlane.f32.xlu0 %v8508_v38  ;;  %7715 = vmatprep.mubr.bf16.mxu0 %v5508_v10  ;;  %v3090_v19 = vmul.f32 %v8512_v56, %v12376_v27  ;;  %v8514_v45 = vpop.eup %8513  ;;  %v12387_v38 = vld [vmem:[#allocation158_spill] sm:$0xff]  ;;  %v12389_v58 = vld [vmem:[#allocation120_spill] sm:$0xff] }
 0xd0e   : > { %v8516_v35 = vpop.eup %8515  ;;  %v4269_v26 = vmul.f32 %v8514_v45, %v12379_v17  ;;  %v12390_v27 = vld [vmem:[#allocation60_spill] sm:$0xff]  ;;  %v12395_v45 = vld [vmem:[#allocation62_spill] sm:$0xff] }
 0xd0f   : > { %v3102_v39 = vpack.c.bf16 %v3090_v19, %v3089_v60  ;;  %v4270_v22 = vmul.f32 %v8516_v35, %v12380_v52  ;;  %v8518_v46 = vpop.eup %8517  ;;  %v3602_v50 = vpop.permute.xlu0 %3601  ;;  %v12391_v19 = vld [vmem:[#allocation121_spill] sm:$0xff]  ;;  %v12398_v17 = vld [vmem:[#allocation122_spill] sm:$0xff] }
 0xd10   : > { %v11513_v42 = vmul.f32 %v8518_v46, %v12381_v49 }
 0xd11   : > { %5496 = vadd.xlane.f32.xlu0 %v8506_v57  ;;  %v4283_v55 = vpack.c.bf16 %v4270_v22, %v4269_v26  ;;  %v12399_v26 = vld [vmem:[#allocation21_spill] sm:$0xff] }
 0xd13   : > { %v5751_v63 = vsel %vm1732_vm0, %v4283_v55, %v5684_v40  ;;  %v12401_v40 = vld [vmem:[#allocation23_spill] sm:$0xff] }
 0xd14   : > { %7716 = vmatmul.mubr.bf16.gmra.mxu0 %v5509_v14 }
 0xd1b   : > { %5709 = vrot.lane.b32.xlu1 %v12372_v0, %s8889_s26 }
 0xd27   : > { %3603 = vrot.lane.b32.xlu0 %v3102_v39, %s8889_s26  ;;  %v12392_v39 = vld [vmem:[#allocation123_spill] sm:$0xff] }
 0xd2b   : > { %v1981_v5 = vpop.xlane.xlu1 %1980 }
 0xd2c   : > { %8519 = vrcp.f32 %v1981_v5  ;;  %v12393_v5 = vld [vmem:[#allocation61_spill] sm:$0xff] }
 0xd2d   : > { %8521 = vrcp.f32 %v12377_v9  ;;  %v12394_v9 = vld [vmem:[#allocation65_spill] sm:$0xff] }
 0xd2e   : > { %8523 = vrcp.f32 %v12378_v18 }
 0xd2f   : > { %v4085_v47 = vpop.xlane.xlu1 %4084 }
 0xd30   : > { %8525 = vrcp.f32 %v4085_v47  ;;  %v12397_v47 = vld [vmem:[#allocation33_spill] sm:$0xff] }
 0xd33   : > { %v4087_v61 = vpop.xlane.xlu1 %4086 }
 0xd34   : > { %8527 = vrcp.f32 %v4087_v61  ;;  %v12400_v61 = vld [vmem:[#allocation63_spill] sm:$0xff] }
 0xd35   : > { %8529 = vrcp.f32 %v12389_v58  ;;  %v12412_v58 = vld [vmem:[#allocation124_spill] sm:$0xff] }
 0xd36   : > { %8531 = vrcp.f32 %v12391_v19  ;;  %v12414_v19 = vld [vmem:[#allocation35_spill] sm:$0xff] }
 0xd37   : > { %v5708_v53 = vpop.permute.xlu1 %5707  ;;  %8533 = vrcp.f32 %v12392_v39 }
 0xd38   : > { %v11510_v29 = vsel %vm3661_vm1, %v5751_v63, %v5708_v53  ;;  %8535 = vrcp.f32 %v12393_v5  ;;  %v12402_v63 = vld [vmem:[#allocation66_spill] sm:$0xff] }
 0xd39   : > { %v8520_v24 = vpop.eup %8519  ;;  %8537 = vrcp.f32 %v12394_v9  ;;  %v12415_v5 = vld [vmem:[#allocation26_spill] sm:$0xff] }
 0xd3a   : > { %v8522_v16 = vpop.eup %8521  ;;  %v11516_v25 = vmul.f32 %v8520_v24, %v12382_v15  ;;  %8539 = vrcp.f32 %v12395_v45  ;;  %v12403_v24 = vld [vmem:[#allocation96_spill] sm:$0xff]  ;;  %v12404_v15 = vld [vmem:[#allocation38_spill] sm:$0xff] }
 0xd3b   : > { %v8524_v28 = vpop.eup %8523  ;;  %v2163_v59 = vmul.f32 %v8522_v16, %v12383_v12 }
 0xd3c   : > { %v2180_v54 = vpack.c.bf16 %v11516_v25, %v11513_v42  ;;  %v2164_v41 = vmul.f32 %v8524_v28, %v12384_v30  ;;  %v12405_v28 = vld [vmem:[#allocation98_spill] sm:$0xff]  ;;  %v12407_v30 = vld [vmem:[#allocation165_spill] sm:$0xff] }
 0xd3d   : > { %v8526_v20 = vpop.eup %8525 }
 0xd3e   : > { %v2177_v57 = vpack.c.bf16 %v2164_v41, %v2163_v59  ;;  %v11524_v10 = vmul.f32 %v8526_v20, %v12386_v37  ;;  %v12406_v59 = vld [vmem:[#allocation41_spill] sm:$0xff] }
 0xd3f   : > { %1988 = vadd.xlane.f32.xlu1 %v12385_v11 }
 0xd40   : > { %v1983_v4 = vpop.xlane.xlu0 %1982  ;;  %v3645_v14 = vsel %vm1732_vm0, %v2177_v57, %v3578_v13  ;;  %v12396_v13 = vld [vmem:[#allocation37_spill] sm:$0xff]  ;;  %v12409_v57 = vld [vmem:[#allocation167_spill] sm:$0xff] }
 0xd41   : > { %v8528_v36 = vpop.eup %8527  ;;  %v3667_v0 = vsel %vm3661_vm1, %v3645_v14, %v3602_v50  ;;  %8541 = vrcp.f32 %v12396_v13  ;;  %v12410_v14 = vld [vmem:[#allocation127_spill] sm:$0xff]  ;;  %v12416_v13 = vld [vmem:[#allocation64_spill] sm:$0xff] }
 0xd42   : > { %v11527_v7 = vmul.f32 %v8528_v36, %v12387_v38  ;;  %v8530_v18 = vpop.eup %8529  ;;  %8543 = vrcp.f32 %v12397_v47  ;;  %v12408_v36 = vld [vmem:[#allocation32_spill] sm:$0xff] }
 0xd43   : > { %4092 = vadd.xlane.f32.xlu1 %v12388_v32  ;;  %v8532_v35 = vpop.eup %8531  ;;  %8545 = vrcp.f32 %v12398_v17  ;;  %v3547_v52 = vmul.f32 %v8530_v18, %v12399_v26  ;;  %v12417_v47 = vld [vmem:[#allocation28_spill] sm:$0xff]  ;;  %v12418_v26 = vld [vmem:[#allocation126_spill] sm:$0xff] }
 0xd44   : > { %v3626_v2 = vpop.permute.xlu0 %3625  ;;  %v4286_v56 = vpack.c.bf16 %v11527_v7, %v11524_v10  ;;  %v8534_v22 = vpop.eup %8533  ;;  %8547 = vrcp.f32 %v12400_v61  ;;  %v3548_v55 = vmul.f32 %v8532_v35, %v12401_v40 }
 0xd45   : > { %v3684_v23 = vsel %vm3678_vm2, %v3667_v0, %v3626_v2  ;;  %v8536_v46 = vpop.eup %8535  ;;  %8549 = vrcp.f32 %v12402_v63  ;;  %v2633_v16 = vmul.f32 %v8534_v22, %v12403_v24  ;;  %v12411_v0 = vld [vmem:[#allocation112_spill] sm:$0xff]  ;;  %v12419_v22 = vld [vmem:[#allocation95_spill] sm:$0xff] }
 0xd46   : > { %v6756_v60 = vcombine.low %v3684_v23, %v3684_v23  ;;  %v6757_v21 = vcombine.high %v3684_v23, %v3684_v23  ;;  %1986 = vadd.xlane.f32.xlu0 %v12390_v27  ;;  %v3560_v53 = vpack.c.bf16 %v3548_v55, %v3547_v52  ;;  %v8538_v49 = vpop.eup %8537  ;;  %8551 = vrcp.f32 %v12404_v15  ;;  %v12420_v55 = vld [vmem:[#allocation129_spill] sm:$0xff]  ;;  %v12422_v24 = vld [vmem:[#allocation36_spill] sm:$0xff] }
 0xd47   : > { %v2634_v50 = vmul.f32 %v8536_v46, %v12405_v28  ;;  %v8540_v12 = vpop.eup %8539  ;;  %8553 = vrcp.f32 %v12406_v59  ;;  %v4739_v41 = vmul.f32 %v8538_v49, %v12407_v30  ;;  %v12421_v46 = vld [vmem:[#allocation97_spill] sm:$0xff]  ;;  %v12423_v49 = vld [vmem:[#allocation111_spill] sm:$0xff] }
 0xd48   : > { %3755 = vst [vmem:[#allocation3 + $0x20] sm:$0xf] %v6756_v60  ;;  %3756 = vst [vmem:[#allocation3 + $0x28] sm:$0xf] %v6757_v21  ;;  %8555 = vrcp.f32 %v12408_v36  ;;  %v4740_v37 = vmul.f32 %v8540_v12, %v12409_v57  ;;  %v12413_v60 = vld [vmem:[#allocation114_spill] sm:$0xff]  ;;  %v12425_v59 = vld [vmem:[#allocation113_spill] sm:$0xff] }
 0xd49   : > { %v2645_v20 = vpack.c.bf16 %v2634_v50, %v2633_v16  ;;  %8557 = vrcp.f32 %v12410_v14  ;;  %v12424_v50 = vld [vmem:[#allocation39_spill] sm:$0xff]  ;;  %v12427_v36 = vld [vmem:[#allocation25_spill] sm:$0xff]  ;;  %v12428_v14 = vld [vmem:[#allocation68_spill] sm:$0xff] }
 0xd4a   : > { %v4751_v32 = vpack.c.bf16 %v4740_v37, %v4739_v41  ;;  %8559 = vrcp.f32 %v12412_v58  ;;  %v12426_v41 = vld [vmem:[#allocation67_spill] sm:$0xff] }
 0xd4b   : > { %8561 = vrcp.f32 %v12414_v19 }
 0xd4c   : > { %8563 = vrcp.f32 %v1983_v4 }
 0xd4d   : > { %8565 = vrcp.f32 %v12416_v13 }
 0xd4e   : > { %v8542_v11 = vpop.eup %8541 }
 0xd4f   : > { %v8544_v38 = vpop.eup %8543  ;;  %v3091_v2 = vmul.f32 %v8542_v11, %v12411_v0  ;;  %v12429_v0 = vld [vmem:[#allocation27_spill] sm:$0xff] }
 0xd50   : > { %v8546_v23 = vpop.eup %8545  ;;  %v3092_v21 = vmul.f32 %v8544_v38, %v12413_v60  ;;  %v12430_v60 = vld [vmem:[#allocation40_spill] sm:$0xff] }
 0xd51   : > { %v8548_v27 = vpop.eup %8547  ;;  %v3549_v9 = vmul.f32 %v8546_v23, %v12415_v5  ;;  %v12432_v5 = vld [vmem:[#allocation84_spill] sm:$0xff] }
 0xd52   : > { %v3103_v39 = vpack.c.bf16 %v3092_v21, %v3091_v2  ;;  %v8550_v45 = vpop.eup %8549  ;;  %v3550_v35 = vmul.f32 %v8548_v27, %v12417_v47  ;;  %v12431_v27 = vld [vmem:[#allocation100_spill] sm:$0xff] }
 0xd53   : > { %v8552_v17 = vpop.eup %8551  ;;  %v2635_v61 = vmul.f32 %v8550_v45, %v12419_v22  ;;  %v12433_v45 = vld [vmem:[#allocation86_spill] sm:$0xff] }
 0xd54   : > { %v3561_v52 = vpack.c.bf16 %v3550_v35, %v3549_v9  ;;  %v8554_v40 = vpop.eup %8553  ;;  %v2636_v63 = vmul.f32 %v8552_v17, %v12421_v46  ;;  %v12435_v35 = vld [vmem:[#allocation102_spill] sm:$0xff] }
 0xd55   : > { %v3093_v15 = vmul.f32 %v8554_v40, %v12423_v49  ;;  %v12436_v22 = vld [vmem:[#allocation134_spill] sm:$0xff]  ;;  %v12437_v40 = vld [vmem:[#allocation116_spill] sm:$0xff] }
 0xd56   : > { %v2646_v16 = vpack.c.bf16 %v2636_v63, %v2635_v61  ;;  %v12438_v63 = vld [vmem:[#allocation70_spill] sm:$0xff] }
 0xd5c   : > { %3627 = vrot.lane.b32.xlu0 %v3560_v53, %s8888_s1  ;;  %v8556_v53 = vpop.eup %8555 }
 0xd5d   : > { %v8558_v28 = vpop.eup %8557 }
 0xd5e   : > { %v8560_v30 = vpop.eup %8559  ;;  %v3551_v57 = vmul.f32 %v8558_v28, %v12427_v36 }
 0xd5f   : > { %v8562_v37 = vpop.eup %8561  ;;  %v3552_v2 = vmul.f32 %v8560_v30, %v12429_v0 }
 0xd60   : > { %3581 = vrot.lane.b32.xlu0 %v2645_v20, %s8890_s28  ;;  %v3094_v20 = vmul.f32 %v8556_v53, %v12425_v59  ;;  %v8564_v38 = vpop.eup %8563  ;;  %v2637_v19 = vmul.f32 %v8562_v37, %v12431_v27  ;;  %v12447_v27 = vld [vmem:[#allocation101_spill] sm:$0xff] }
 0xd61   : > { %v8566_v23 = vpop.eup %8565  ;;  %v3562_v21 = vpack.c.bf16 %v3552_v2, %v3551_v57  ;;  %v11588_v9 = vmul.f32 %v8564_v38, %v12432_v5  ;;  %v12443_v57 = vld [vmem:[#allocation44_spill] sm:$0xff] }
 0xd62   : > { %v3104_v11 = vpack.c.bf16 %v3094_v20, %v3093_v15  ;;  %v2638_v17 = vmul.f32 %v8566_v23, %v12435_v35  ;;  %v12441_v20 = vld [vmem:[#allocation161_spill] sm:$0xff]  ;;  %v12445_v23 = vld [vmem:[#allocation99_spill] sm:$0xff] }
 0xd64   : > { %5687 = vrot.lane.b32.xlu0 %v4751_v32, %s8890_s28  ;;  %v2647_v61 = vpack.c.bf16 %v2638_v17, %v2637_v19 }
 0xd68   : > { %3605 = vrot.lane.b32.xlu0 %v3103_v39, %s8889_s26  ;;  %v1985_v18 = vpop.xlane.xlu1 %1984 }
 0xd69   : > { %8567 = vrcp.f32 %v1985_v18  ;;  %v12434_v18 = vld [vmem:[#allocation131_spill] sm:$0xff] }
 0xd6a   : > { %8569 = vrcp.f32 %v12418_v26 }
 0xd6b   : > { %8571 = vrcp.f32 %v12420_v55 }
 0xd6c   : > { %3629 = vrot.lane.b32.xlu0 %v3561_v52, %s8888_s1  ;;  %v4089_v4 = vpop.xlane.xlu1 %4088  ;;  %8573 = vrcp.f32 %v12422_v24  ;;  %v12439_v24 = vld [vmem:[#allocation118_spill] sm:$0xff] }
 0xd6d   : > { %8575 = vrcp.f32 %v4089_v4 }
 0xd6e   : > { %8577 = vrcp.f32 %v12424_v50  ;;  %v12440_v50 = vld [vmem:[#allocation30_spill] sm:$0xff] }
 0xd70   : > { %3583 = vrot.lane.b32.xlu0 %v2646_v16, %s8890_s28  ;;  %v4091_v12 = vpop.xlane.xlu1 %4090 }
 0xd71   : > { %8579 = vrcp.f32 %v4091_v12 }
 0xd72   : > { %8581 = vrcp.f32 %v12426_v41  ;;  %v12442_v41 = vld [vmem:[#allocation163_spill] sm:$0xff] }
 0xd73   : > { %8583 = vrcp.f32 %v12428_v14  ;;  %v12444_v14 = vld [vmem:[#allocation137_spill] sm:$0xff] }
 0xd74   : > { %3607 = vrot.lane.b32.xlu0 %v3104_v11, %s8889_s26  ;;  %v11582_v32 = vpop.xlane.xlu1 %5474  ;;  %8585 = vrcp.f32 %v12430_v60 }
 0xd75   : > { %8587 = vrcp.f32 %v12434_v18  ;;  %v12448_v18 = vld [vmem:[#allocation115_spill] sm:$0xff] }
 0xd76   : > { %v8568_v58 = vpop.eup %8567  ;;  %8589 = vrcp.f32 %v12436_v22 }
 0xd77   : > { %v8570_v39 = vpop.eup %8569  ;;  %v11591_v13 = vmul.f32 %v8568_v58, %v12433_v45  ;;  %8591 = vrcp.f32 %v12438_v63  ;;  %v8085_v63 = vld [vmem:[#allocation10 + $0x70] ss:$8 sps:$4 sm:$0xff]  }
 0xd78   : > { %3631 = vrot.lane.b32.xlu0 %v3562_v21, %s8888_s1  ;;  %v11595_v47 = vpop.xlane.xlu1 %5470  ;;  %v8572_v26 = vpop.eup %8571  ;;  %v3095_v55 = vmul.f32 %v8570_v39, %v12437_v40  ;;  %8593 = vrcp.f32 %v12444_v14  ;;  %v12446_v21 = vld [vmem:[#allocation50_spill] sm:$0xff]  ;;  %v8087_v40 = vld [vmem:[#allocation10 + $0x74] ss:$8 sps:$4 sm:$0xff]  }
 0xd79   : > { %v2181_v52 = vpack.c.bf16 %v11591_v13, %v11588_v9  ;;  %v8574_v4 = vpop.eup %8573  ;;  %v3096_v16 = vmul.f32 %v8572_v26, %v12439_v24  ;;  %8595 = vrcp.f32 %v12446_v21  ;;  %v12449_v26 = vld [vmem:[#allocation117_spill] sm:$0xff]  ;;  %6171 = vmatprep.subr.bf16.mxu0 %v8087_v40  ;;  %v8105_v40 = vld [vmem:[#allocation10 + $0x14] ss:$8 sps:$4 sm:$0xff]   ;;  %v12465_v9 = vpack.c.bf16 %v11389_v6, %v11338_v62  ;;  %v12468_v6 = vld [vmem:[#allocation42_spill] sm:$0xff] }
 0xd7a   : > { %v8576_v46 = vpop.eup %8575  ;;  %v3553_v12 = vmul.f32 %v8574_v4, %v12440_v50  ;;  %v12450_v4 = vld [vmem:[#allocation29_spill] sm:$0xff]  ;;  %6172 = vmatpush1.bf16.msra.mxu0 %v8085_v63  ;;  %8597 = vrcp.f32 %v11582_v32 }
 0xd7b   : > { %v8578_v49 = vpop.eup %8577  ;;  %v3105_v28 = vpack.c.bf16 %v3096_v16, %v3095_v55  ;;  %v11609_v30 = vmul.f32 %v8576_v46, %v12441_v20  ;;  %v8090_v16 = vld [vmem:[#allocation10 + $0x64] ss:$8 sps:$4 sm:$0xff]   ;;  %v8093_v20 = vld [vmem:[#allocation10 + $0x54] ss:$8 sps:$4 sm:$0xff]   ;;  %v8106_v63 = vld [vmem:[#allocation10] ss:$8 sps:$4 sm:$0xff]  }
 0xd7c   : > { %3585 = vrot.lane.b32.xlu0 %v2647_v61, %s8890_s28  ;;  %v11604_v53 = vpop.xlane.xlu1 %5482  ;;  %v3554_v37 = vmul.f32 %v8578_v49, %v12443_v57  ;;  %v12451_v49 = vld [vmem:[#allocation31_spill] sm:$0xff]  ;;  %6173 = vmatprep.subr.bf16.mxu0 %v8090_v16  ;;  %v8126_v32 = vld [vmem:[#allocation10 + $0xa4] ss:$8 sps:$4 sm:$0xff]  }
 0xd7d   : > { %v8111_v16 = vld [vmem:[#allocation10 + $0xf4] ss:$8 sps:$4 sm:$0xff]  }
 0xd7e   : > { %v8580_v15 = vpop.eup %8579  ;;  %v3563_v2 = vpack.c.bf16 %v3554_v37, %v3553_v12  ;;  %v11635_v12 = vpop.permute.xlu0 %3579  ;;  %v8091_v37 = vld [vmem:[#allocation10 + $0x50] ss:$8 sps:$4 sm:$0xff]  }
 0xd7f   : > { %v8582_v59 = vpop.eup %8581  ;;  %v11612_v11 = vmul.f32 %v8580_v15, %v12442_v41 }
 0xd80   : > { %3609 = vrot.lane.b32.xlu0 %v3105_v28, %s8889_s26  ;;  %v11615_v36 = vpop.xlane.xlu1 %5478  ;;  %v8584_v38 = vpop.eup %8583  ;;  %v2639_v58 = vmul.f32 %v8582_v59, %v12445_v23  ;;  %v8088_v28 = vld [vmem:[#allocation10 + $0x60] ss:$8 sps:$4 sm:$0xff]  }
 0xd81   : > { %v4287_v0 = vpack.c.bf16 %v11612_v11, %v11609_v30  ;;  %v8586_v60 = vpop.eup %8585  ;;  %v2640_v19 = vmul.f32 %v8584_v38, %v12447_v27  ;;  %6174 = vmatpush1.bf16.msra.mxu0 %v8088_v28  ;;  %v12452_v38 = vld [vmem:[#allocation152_spill] sm:$0xff]  ;;  %v12453_v23 = vld [vmem:[#allocation154_spill] sm:$0xff] }
 0xd82   : > { %v8588_v39 = vpop.eup %8587  ;;  %v3097_v35 = vmul.f32 %v8586_v60, %v12448_v18  ;;  %6175 = vmatprep.subr.bf16.mxu0 %v8093_v20  ;;  %v5686_v21 = vpop.permute.xlu0 %5685  ;;  %v8094_v27 = vld [vmem:[#allocation10 + $0x40] ss:$8 sps:$4 sm:$0xff]   ;;  %v8114_v28 = vld [vmem:[#allocation10 + $0xe4] ss:$8 sps:$4 sm:$0xff]   ;;  %v8117_v20 = vld [vmem:[#allocation10 + $0xd4] ss:$8 sps:$4 sm:$0xff]  }
 0xd83   : > { %v2648_v45 = vpack.c.bf16 %v2640_v19, %v2639_v58  ;;  %v8590_v17 = vpop.eup %8589  ;;  %v3098_v22 = vmul.f32 %v8588_v39, %v12449_v26  ;;  %v8099_v39 = vld [vmem:[#allocation10 + $0x34] ss:$8 sps:$4 sm:$0xff]   ;;  %v8102_v26 = vld [vmem:[#allocation10 + $0x24] ss:$8 sps:$4 sm:$0xff]  }
 0xd84   : > { %3633 = vrot.lane.b32.xlu0 %v3563_v2, %s8888_s1  ;;  %v11625_v5 = vpop.xlane.xlu1 %5490  ;;  %v8592_v61 = vpop.eup %8591  ;;  %v3555_v46 = vmul.f32 %v8590_v17, %v12450_v4  ;;  %v8096_v2 = vld [vmem:[#allocation10 + $0x44] ss:$8 sps:$4 sm:$0xff]   ;;  %v8097_v17 = vld [vmem:[#allocation10 + $0x30] ss:$8 sps:$4 sm:$0xff]  }
 0xd85   : > { %v3106_v55 = vpack.c.bf16 %v3098_v22, %v3097_v35  ;;  %v3556_v15 = vmul.f32 %v8592_v61, %v12451_v49  ;;  %v8594_v50 = vpop.eup %8593  ;;  %6176 = vmatpush1.bf16.msra.mxu0 %v8091_v37  ;;  %v8100_v61 = vld [vmem:[#allocation10 + $0x20] ss:$8 sps:$4 sm:$0xff]   ;;  %v8120_v37 = vld [vmem:[#allocation10 + $0xc4] ss:$8 sps:$4 sm:$0xff]  }
 0xd86   : > { %v8596_v57 = vpop.eup %8595  ;;  %v4271_v14 = vmul.f32 %v8594_v50, %v12452_v38  ;;  %6177 = vmatprep.subr.bf16.mxu0 %v8096_v2  ;;  %v5477_v22 = vpop.xlane.xlu0 %5476  ;;  %v8112_v50 = vld [vmem:[#allocation10 + $0xe0] ss:$8 sps:$4 sm:$0xff]  }
 0xd87   : > { %v3564_v59 = vpack.c.bf16 %v3556_v15, %v3555_v46  ;;  %v4272_v58 = vmul.f32 %v8596_v57, %v12453_v23  ;;  %v8108_v46 = vld [vmem:[#allocation10 + $0x4] ss:$8 sps:$4 sm:$0xff]   ;;  %v8109_v15 = vld [vmem:[#allocation10 + $0xf0] ss:$8 sps:$4 sm:$0xff]   ;;  %8599 = vrcp.f32 %v5477_v22  ;;  %v8123_v23 = vld [vmem:[#allocation10 + $0xb4] ss:$8 sps:$4 sm:$0xff]  }
 0xd88   : > { %3587 = vrot.lane.b32.xlu0 %v2648_v45, %s8890_s28  ;;  %v11631_v24 = vpop.xlane.xlu1 %5486  ;;  %v8115_v57 = vld [vmem:[#allocation10 + $0xd0] ss:$8 sps:$4 sm:$0xff]  }
 0xd89   : > { %v4284_v19 = vpack.c.bf16 %v4272_v58, %v4271_v14  ;;  %6178 = vmatpush1.bf16.msra.mxu0 %v8094_v27  ;;  %v8118_v14 = vld [vmem:[#allocation10 + $0xc0] ss:$8 sps:$4 sm:$0xff]   ;;  %v8121_v58 = vld [vmem:[#allocation10 + $0xb0] ss:$8 sps:$4 sm:$0xff]  }
 0xd8a   : > { %6179 = vmatprep.subr.bf16.mxu0 %v8099_v39  ;;  %v5473_v4 = vpop.xlane.xlu0 %5472 }
 0xd8b   : > { %v5754_v45 = vsel %vm1732_vm0, %v4284_v19, %v5686_v21  ;;  %8601 = vrcp.f32 %v5473_v4  ;;  %v12454_v21 = vld [vmem:[#allocation49_spill] sm:$0xff]  ;;  %v12455_v19 = vld [vmem:[#allocation135_spill] sm:$0xff] }
 0xd8c   : > { %3611 = vrot.lane.b32.xlu0 %v3106_v55, %s8889_s26  ;;  %v8103_v55 = vld [vmem:[#allocation10 + $0x10] ss:$8 sps:$4 sm:$0xff]   ;;  %8603 = vrcp.f32 %v11595_v47  ;;  %v8129_v47 = vld [vmem:[#allocation10 + $0x94] ss:$8 sps:$4 sm:$0xff]   ;;  %v8132_v4 = vld [vmem:[#allocation10 + $0x84] ss:$8 sps:$4 sm:$0xff]  }
 0xd8d   : > { %6180 = vmatpush1.bf16.msra.mxu0 %v8097_v17  ;;  %8605 = vrcp.f32 %v12454_v21  ;;  %v12456_v21 = vld [vmem:[#allocation139_spill] sm:$0xff] }
 0xd8e   : > { %6181 = vmatprep.subr.bf16.mxu0 %v8102_v26  ;;  %v11648_v49 = vpop.xlane.xlu0 %5484  ;;  %8607 = vrcp.f32 %v12455_v19  ;;  %v12458_v19 = vld [vmem:[#allocation52_spill] sm:$0xff] }
 0xd8f   : > { %v11637_v41 = vpop.xlane.xlu1 %5498  ;;  %8609 = vrcp.f32 %v12456_v21 }
 0xd90   : > { %3635 = vrot.lane.b32.xlu0 %v3564_v59, %s8888_s1  ;;  %8611 = vrcp.f32 %v12458_v19 }
 0xd91   : > { %6182 = vmatpush1.bf16.msra.mxu0 %v8100_v61  ;;  %v8127_v61 = vld [vmem:[#allocation10 + $0x90] ss:$8 sps:$4 sm:$0xff]   ;;  %8613 = vrcp.f32 %v11648_v49 }
 0xd92   : > { %6183 = vmatprep.subr.bf16.mxu0 %v8105_v40  ;;  %v11650_v59 = vpop.xlane.xlu0 %5480  ;;  %8615 = vrcp.f32 %v11604_v53  ;;  %v12463_v49 = vld [vmem:[#allocation43_spill] sm:$0xff] }
 0xd93   : > { %v11642_v60 = vpop.xlane.xlu1 %5494 }
 0xd95   : > { %6184 = vmatpush1.bf16.msra.mxu0 %v8103_v55 }
 0xd96   : > { %6185 = vmatprep.subr.bf16.mxu0 %v8108_v46  ;;  %v11653_v38 = vpop.xlane.xlu0 %5492 }
 0xd97   : > { %v5710_v18 = vpop.permute.xlu1 %5709 }
 0xd98   : > { %v11646_v35 = vsel %vm3661_vm1, %v5754_v45, %v5710_v18  ;;  %v8124_v45 = vld [vmem:[#allocation10 + $0xa0] ss:$8 sps:$4 sm:$0xff]   ;;  %v8598_v18 = vpop.eup %8597 }
 0xd99   : > { %6186 = vmatpush1.bf16.msra.mxu0 %v8106_v63  ;;  %v8600_v26 = vpop.eup %8599 }
 0xd9a   : > { %6187 = vmatprep.subr.bf16.mxu0 %v8111_v16  ;;  %v11656_v2 = vpop.xlane.xlu0 %5488  ;;  %v8602_v46 = vpop.eup %8601 }
 0xd9d   : > { %6188 = vmatpush2.bf16.msra.mxu0 %v8109_v15 }
 0xd9e   : > { %6189 = vmatprep.subr.bf16.mxu0 %v8114_v28  ;;  %v11660_v17 = vpop.xlane.xlu0 %5500  ;;  %v8604_v28 = vpop.eup %8603 }
 0xda1   : > { %6190 = vmatpush2.bf16.msra.mxu0 %v8112_v50  ;;  %v8130_v50 = vld [vmem:[#allocation10 + $0x80] ss:$8 sps:$4 sm:$0xff]  }
 0xda2   : > { %6191 = vmatprep.subr.bf16.mxu0 %v8117_v20  ;;  %v11662_v20 = vpop.xlane.xlu0 %5496 }
 0xda5   : > { %6192 = vmatpush2.bf16.msra.mxu0 %v8115_v57 }
 0xda6   : > { %6193 = vmatprep.subr.bf16.mxu0 %v8120_v37 }
 0xda9   : > { %6194 = vmatpush2.bf16.msra.mxu0 %v8118_v14  ;;  %v8606_v14 = vpop.eup %8605 }
 0xdaa   : > { %6195 = vmatprep.subr.bf16.mxu0 %v8123_v23  ;;  %v8608_v23 = vpop.eup %8607 }
 0xdad   : > { %6196 = vmatpush2.bf16.msra.mxu0 %v8121_v58  ;;  %v3604_v58 = vpop.permute.xlu0 %3603 }
 0xdae   : > { %6197 = vmatprep.subr.bf16.mxu0 %v8126_v32 }
 0xdb1   : > { %6198 = vmatpush2.bf16.msra.mxu0 %v8124_v45  ;;  %v12459_v45 = vld [vmem:[#allocation77_spill] sm:$0xff] }
 0xdb2   : > { %6199 = vmatprep.subr.bf16.mxu0 %v8129_v47 }
 0xdb5   : > { %6200 = vmatpush2.bf16.msra.mxu0 %v8127_v61 }
 0xdb6   : > { %6201 = vmatprep.subr.bf16.mxu0 %v8132_v4 }
 0xdb9   : > { %6202 = vmatpush2.bf16.msra.mxu0 %v8130_v50 }
 0xdbc   : > { %v7705_v27 = vpop.f32.mrf.mxu0 }
 0xdbd   : > { %v5649_v40 = vmul.f32 %v8598_v18, %v7705_v27  ;;  %v12457_v27 = vld [vmem:[#allocation75_spill] sm:$0xff]  ;;  %v2166_v18 = vmul.f32 %v8608_v23, %v12459_v45 }
 0xdbe   : > { %v5568_v39 = vpop.f32.mrf.mxu0  ;;  %v2165_v32 = vmul.f32 %v8606_v14, %v12457_v27 }
 0xdbf   : > { %v5647_v57 = vmul.f32 %v8604_v28, %v5568_v39  ;;  %v12460_v28 = vld [vmem:[#allocation82_spill] sm:$0xff] }
 0xdc0   : > { %v7706_v22 = vpop.f32.mrf.mxu0  ;;  %v2178_v39 = vpack.c.bf16 %v2166_v18, %v2165_v32 }
 0xdc1   : > { %v5650_v55 = vmul.f32 %v8600_v26, %v7706_v22 }
 0xdc2   : > { %v5571_v63 = vpop.f32.mrf.mxu0  ;;  %v3648_v26 = vsel %vm1732_vm0, %v2178_v39, %v11635_v12  ;;  %v12462_v39 = vld [vmem:[#allocation145_spill] sm:$0xff] }
 0xdc3   : > { %v5664_v16 = vpack.c.bf16 %v5650_v55, %v5649_v40  ;;  %v5648_v15 = vmul.f32 %v8602_v46, %v5571_v63  ;;  %v3669_v22 = vsel %vm3661_vm1, %v3648_v26, %v3604_v58  ;;  %v8610_v63 = vpop.eup %8609 }
 0xdc4   : > { %v2168_v50 = vmul.f32 %v8610_v63, %v12460_v28 }
 0xdc5   : > { %5729 = vrot.lane.b32.xlu1 %v5664_v16, %s8888_s1  ;;  %v5663_v37 = vpack.c.bf16 %v5648_v15, %v5647_v57  ;;  %v8612_v16 = vpop.eup %8611  ;;  %v12461_v57 = vld [vmem:[#allocation80_spill] sm:$0xff] }
 0xdc9   : > { %5727 = vrot.lane.b32.xlu1 %v5663_v37, %s8888_s1  ;;  %v2167_v37 = vmul.f32 %v8612_v16, %v12461_v57  ;;  %v8614_v16 = vpop.eup %8613 }
 0xdca   : > { %v8616_v57 = vpop.eup %8615 }
 0xdcb   : > { %v2179_v12 = vpack.c.bf16 %v2168_v50, %v2167_v37 }
 0xdcf   : > { %v1987_v47 = vpop.xlane.xlu0 %1986 }
 0xdd0   : > { %8617 = vrcp.f32 %v1987_v47 }
 0xdd1   : > { %8619 = vrcp.f32 %v11650_v59 }
 0xdd3   : > { %v3628_v61 = vpop.permute.xlu0 %3627 }
 0xdd4   : > { %v3686_v40 = vsel %vm3678_vm2, %v3669_v22, %v3628_v61  ;;  %v1989_v22 = vpop.xlane.xlu1 %1988 }
 0xdd5   : > { %v6758_v55 = vcombine.low %v3686_v40, %v3686_v40  ;;  %v6759_v4 = vcombine.high %v3686_v40, %v3686_v40  ;;  %8621 = vrcp.f32 %v1989_v22 }
 0xdd6   : > { %8623 = vrcp.f32 %v12463_v49 }
 0xdd7   : > { %3757 = vst [vmem:[#allocation3 + $0x30] sm:$0xf] %v6758_v55  ;;  %3758 = vst [vmem:[#allocation3 + $0x38] sm:$0xf] %v6759_v4  ;;  %v3582_v46 = vpop.permute.xlu0 %3581  ;;  %v7709_v4 = vpop.f32.mrf.mxu0  ;;  %8625 = vrcp.f32 %v11615_v36 }
 0xdd8   : > { %v3651_v23 = vsel %vm1732_vm0, %v2179_v12, %v3582_v46 }
 0xdd9   : > { %v5584_v25 = vpop.f32.mrf.mxu0 }
 0xddb   : > { %v11674_v15 = vpop.permute.xlu0 %5687  ;;  %v7710_v47 = vpop.f32.mrf.mxu0 }
 0xddc   : > { %v5654_v37 = vmul.f32 %v8614_v16, %v7710_v47 }
 0xddd   : > { %v8618_v12 = vpop.eup %8617  ;;  %v5587_v36 = vpop.f32.mrf.mxu0 }
 0xddf   : > { %v3606_v14 = vpop.permute.xlu0 %3605  ;;  %v7713_v22 = vpop.f32.mrf.mxu0 }
 0xde0   : > { %v3671_v58 = vsel %vm3661_vm1, %v3651_v23, %v3606_v14 }
 0xde1   : > { %v5600_v49 = vpop.f32.mrf.mxu0 }
 0xde3   : > { %v3630_v21 = vpop.permute.xlu0 %3629 }
 0xde4   : > { %v3688_v27 = vsel %vm3678_vm2, %v3671_v58, %v3630_v21  ;;  %v8620_v21 = vpop.eup %8619 }
 0xde5   : > { %v6760_v32 = vcombine.low %v3688_v27, %v3688_v27  ;;  %v6761_v19 = vcombine.high %v3688_v27, %v3688_v27  ;;  %v5653_v27 = vmul.f32 %v8616_v57, %v7709_v4  ;;  %v8622_v13 = vpop.eup %8621 }
 0xde7   : > { %3759 = vst [vmem:[#allocation3 + $0x40] sm:$0xf] %v6760_v32  ;;  %3760 = vst [vmem:[#allocation3 + $0x48] sm:$0xf] %v6761_v19  ;;  %v3584_v45 = vpop.permute.xlu0 %3583  ;;  %v8624_v32 = vpop.eup %8623  ;;  %v5666_v19 = vpack.c.bf16 %v5654_v37, %v5653_v27  ;;  %v12472_v37 = vld [vmem:[#allocation128_spill] sm:$0xff] }
 0xde8   : > { %v3654_v26 = vsel %vm1732_vm0, %v2180_v54, %v3584_v45  ;;  %v12464_v54 = vld [vmem:[#allocation125_spill] sm:$0xff]  ;;  %v5652_v45 = vmul.f32 %v8620_v21, %v5587_v36  ;;  %v12474_v21 = vpack.c.bf16 %v11383_v43, %v11331_v51  ;;  %v12476_v51 = vld [vmem:[#allocation171_spill] sm:$0xff] }
 0xde9   : > { %8627 = vrcp.f32 %v12464_v54 }
 0xdea   : > { %8629 = vrcp.f32 %v11653_v38 }
 0xdeb   : > { %v3608_v18 = vpop.permute.xlu0 %3607  ;;  %8631 = vrcp.f32 %v11625_v5 }
 0xdec   : > { %v3673_v61 = vsel %vm3661_vm1, %v3654_v26, %v3608_v18  ;;  %v12466_v18 = vld [vmem:[#allocation83_spill] sm:$0xff]  ;;  %v8626_v26 = vpop.eup %8625  ;;  %8633 = vrcp.f32 %v11656_v2 }
 0xded   : > { %4094 = vadd.xlane.f32.xlu1 %v12462_v39  ;;  %v2173_v39 = vmul.f32 %v8618_v12, %v12466_v18  ;;  %v5651_v38 = vmul.f32 %v8626_v26, %v5584_v25  ;;  %8635 = vrcp.f32 %v12468_v6  ;;  %v12471_v25 = vld [vmem:[#allocation166_spill] sm:$0xff]  ;;  %v12475_v26 = vld [vmem:[#allocation169_spill] sm:$0xff]  ;;  %v12477_v6 = vld [vmem:[#allocation168_spill] sm:$0xff] }
 0xdee   : > { %8637 = vrcp.f32 %v11631_v24  ;;  %v7714_v24 = vpop.f32.mrf.mxu0 }
 0xdef   : > { %v3632_v40 = vpop.permute.xlu0 %3631  ;;  %v5665_v5 = vpack.c.bf16 %v5652_v45, %v5651_v38 }
 0xdf0   : > { %v3690_v55 = vsel %vm3678_vm2, %v3673_v61, %v3632_v40  ;;  %v12467_v61 = vld [vmem:[#allocation85_spill] sm:$0xff]  ;;  %v5603_v36 = vpop.f32.mrf.mxu0 }
 0xdf1   : > { %v6762_v46 = vcombine.low %v3690_v55, %v3690_v55  ;;  %v6763_v63 = vcombine.high %v3690_v55, %v3690_v55  ;;  %v2174_v40 = vmul.f32 %v8622_v13, %v12467_v61 }
 0xdf3   : > { %3761 = vst [vmem:[#allocation3 + $0x50] sm:$0xf] %v6762_v46  ;;  %3762 = vst [vmem:[#allocation3 + $0x58] sm:$0xf] %v6763_v63  ;;  %v3586_v42 = vpop.permute.xlu0 %3585  ;;  %v2182_v4 = vpack.c.bf16 %v2174_v40, %v2173_v39  ;;  %v12469_v46 = vld [vmem:[#allocation164_spill] sm:$0xff] }
 0xdf4   : > { %v3657_v59 = vsel %vm1732_vm0, %v2181_v52, %v3586_v42  ;;  %v4741_v63 = vmul.f32 %v8624_v32, %v12469_v46  ;;  %v12470_v42 = vld [vmem:[#allocation69_spill] sm:$0xff] }
 0xdf5   : > { %8639 = vrcp.f32 %v12470_v42 }
 0xdf6   : > { %v8628_v62 = vpop.eup %8627  ;;  %8641 = vrcp.f32 %v12472_v37 }
 0xdf7   : > { %v3610_v53 = vpop.permute.xlu0 %3609  ;;  %v4742_v54 = vmul.f32 %v8628_v62, %v12471_v25  ;;  %v8630_v57 = vpop.eup %8629  ;;  %v12481_v25 = vld [vmem:[#allocation48_spill] sm:$0xff] }
 0xdf8   : > { %v3675_v28 = vsel %vm3661_vm1, %v3657_v59, %v3610_v53  ;;  %v8632_v12 = vpop.eup %8631 }
 0xdf9   : > { %v4752_v16 = vpack.c.bf16 %v4742_v54, %v4741_v63  ;;  %v8634_v27 = vpop.eup %8633  ;;  %v12479_v63 = vld [vmem:[#allocation133_spill] sm:$0xff] }
 0xdfa   : > { %v12482_v54 = vld [vmem:[#allocation45_spill] sm:$0xff]  ;;  %v8148_v11 = vld [vmem:[#allocation3 + $0x50] ss:$8 sps:$4 sm:$0xff]  }
 0xdfb   : > { %v3634_v50 = vpop.permute.xlu0 %3633 }
 0xdfc   : > { %v3692_v14 = vsel %vm3678_vm2, %v3675_v28, %v3634_v50 }
 0xdfd   : > { %v6764_v23 = vcombine.low %v3692_v14, %v3692_v14  ;;  %v6765_v58 = vcombine.high %v3692_v14, %v3692_v14  ;;  %v5658_v14 = vmul.f32 %v8630_v57, %v7714_v24 }
 0xdfe   : > { %5711 = vrot.lane.b32.xlu1 %v12465_v9, %s8889_s26  ;;  %v8636_v9 = vpop.eup %8635 }
 0xdff   : > { %3763 = vst [vmem:[#allocation3 + $0x60] sm:$0xf] %v6764_v23  ;;  %3764 = vst [vmem:[#allocation3 + $0x68] sm:$0xf] %v6765_v58  ;;  %v3588_v52 = vpop.permute.xlu0 %3587  ;;  %v12473_v23 = vld [vmem:[#allocation46_spill] sm:$0xff]  ;;  %v5657_v58 = vmul.f32 %v8632_v12, %v7713_v22  ;;  %v8638_v32 = vpop.eup %8637  ;;  %v4743_v22 = vmul.f32 %v8636_v9, %v12475_v26 }
 0xe00   : > { %v3660_v2 = vsel %vm1732_vm0, %v2182_v4, %v3588_v52  ;;  %8643 = vrcp.f32 %v12473_v23  ;;  %v5656_v52 = vmul.f32 %v8634_v27, %v5603_v36  ;;  %v5655_v45 = vmul.f32 %v8638_v32, %v5600_v49  ;;  %v12485_v36 = vld [vmem:[#allocation150_spill] sm:$0xff] }
 0xe01   : > { %v5668_v13 = vpack.c.bf16 %v5658_v14, %v5657_v58  ;;  %8645 = vrcp.f32 %v11662_v20  ;;  %v12484_v14 = vld [vmem:[#allocation149_spill] sm:$0xff]  ;;  %v11755_v58 = vpop.xlane.xlu1 %4092 }
 0xe02   : > { %5733 = vrot.lane.b32.xlu1 %v5666_v19, %s8888_s1  ;;  %v7717_v19 = vpop.f32.mrf.mxu0  ;;  %v8640_v18 = vpop.eup %8639  ;;  %8647 = vrcp.f32 %v11642_v60  ;;  %v5667_v39 = vpack.c.bf16 %v5656_v52, %v5655_v45 }
 0xe03   : > { %v3612_v55 = vpop.permute.xlu0 %3611  ;;  %v4744_v43 = vmul.f32 %v8640_v18, %v12476_v51  ;;  %v8642_v40 = vpop.eup %8641  ;;  %8649 = vrcp.f32 %v11660_v17  ;;  %v12488_v18 = vld [vmem:[#allocation136_spill] sm:$0xff] }
 0xe04   : > { %v3677_v53 = vsel %vm3661_vm1, %v3660_v2, %v3612_v55  ;;  %v5616_v38 = vpop.f32.mrf.mxu0  ;;  %8651 = vrcp.f32 %v11637_v41  ;;  %v4745_v60 = vmul.f32 %v8642_v40, %v12477_v6  ;;  %v12480_v2 = vld [vmem:[#allocation130_spill] sm:$0xff] }
 0xe05   : > { %v4753_v61 = vpack.c.bf16 %v4744_v43, %v4743_v22  ;;  %8653 = vrcp.f32 %v12479_v63 }
 0xe06   : > { %5731 = vrot.lane.b32.xlu1 %v5665_v5, %s8888_s1  ;;  %v7718_v62 = vpop.f32.mrf.mxu0  ;;  %v12478_v5 = vld [vmem:[#allocation170_spill] sm:$0xff]  ;;  %8655 = vrcp.f32 %v12480_v2 }
 0xe07   : > { %v3636_v47 = vpop.permute.xlu0 %3635  ;;  %8657 = vrcp.f32 %v12481_v25 }
 0xe08   : > { %v3694_v59 = vsel %vm3678_vm2, %v3677_v53, %v3636_v47  ;;  %v5619_v55 = vpop.f32.mrf.mxu0  ;;  %8659 = vrcp.f32 %v12482_v54 }
 0xe09   : > { %v6766_v28 = vcombine.low %v3694_v59, %v3694_v59  ;;  %v6767_v50 = vcombine.high %v3694_v59, %v3694_v59 }
 0xe0a   : > { %5689 = vrot.lane.b32.xlu1 %v4752_v16, %s8890_s28 }
 0xe0b   : > { %3765 = vst [vmem:[#allocation3 + $0x70] sm:$0xf] %v6766_v28  ;;  %3766 = vst [vmem:[#allocation3 + $0x78] sm:$0xf] %v6767_v50  ;;  %v12483_v50 = vld [vmem:[#allocation148_spill] sm:$0xff] }
 0xe0d   : > { %v8644_v20 = vpop.eup %8643 }
 0xe0e   : > { %5713 = vrot.lane.b32.xlu1 %v12474_v21, %s8889_s26  ;;  %v4746_v4 = vmul.f32 %v8644_v20, %v12478_v5  ;;  %v8646_v46 = vpop.eup %8645  ;;  %v12486_v21 = vld [vmem:[#allocation151_spill] sm:$0xff] }
 0xe0f   : > { %v5660_v49 = vmul.f32 %v8646_v46, %v5619_v55  ;;  %v8648_v42 = vpop.eup %8647 }
 0xe10   : > { %v4754_v17 = vpack.c.bf16 %v4746_v4, %v4745_v60  ;;  %v5659_v41 = vmul.f32 %v8648_v42, %v5616_v38  ;;  %v8650_v1 = vpop.eup %8649  ;;  %v12490_v60 = vld [vmem:[#allocation88_spill] sm:$0xff] }
 0xe11   : > { %v5662_v31 = vmul.f32 %v8650_v1, %v7718_v62  ;;  %v8136_v62 = vld [vmem:[#allocation3 + $0x10] ss:$8 sps:$4 sm:$0xff]  }
 0xe12   : > { %5737 = vrot.lane.b32.xlu1 %v5668_v13, %s8888_s1  ;;  %v5669_v53 = vpack.c.bf16 %v5660_v49, %v5659_v41 }
 0xe16   : > { %5735 = vrot.lane.b32.xlu1 %v5667_v39, %s8888_s1 }
 0xe1a   : > { %5691 = vrot.lane.b32.xlu1 %v4753_v61, %s8890_s28 }
 0xe1e   : > { %5715 = vrot.lane.b32.xlu1 %v5211_v44, %s8889_s26  ;;  %v8652_v44 = vpop.eup %8651 }
 0xe1f   : > { %v5661_v47 = vmul.f32 %v8652_v44, %v7717_v19  ;;  %v8654_v16 = vpop.eup %8653 }
 0xe20   : > { %v8656_v24 = vpop.eup %8655  ;;  %v4267_v57 = vmul.f32 %v8654_v16, %v12483_v50 }
 0xe21   : > { %v5670_v59 = vpack.c.bf16 %v5662_v31, %v5661_v47  ;;  %v8658_v28 = vpop.eup %8657  ;;  %v4268_v23 = vmul.f32 %v8656_v24, %v12485_v36  ;;  %v12492_v31 = vld [vmem:[#allocation157_spill] sm:$0xff] }
 0xe22   : > { %5693 = vrot.lane.b32.xlu1 %v4754_v17, %s8890_s28  ;;  %v8660_v37 = vpop.eup %8659  ;;  %v4265_v12 = vmul.f32 %v8658_v28, %v12484_v14  ;;  %v8139_v47 = vld [vmem:[#allocation3 + $0x20] ss:$8 sps:$4 sm:$0xff]  }
 0xe23   : > { %v4266_v27 = vmul.f32 %v8660_v37, %v12486_v21  ;;  %v4282_v9 = vpack.c.bf16 %v4268_v23, %v4267_v57  ;;  %v8142_v21 = vld [vmem:[#allocation3 + $0x30] ss:$8 sps:$4 sm:$0xff]  }
 0xe25   : > { %v4281_v8 = vpack.c.bf16 %v4266_v27, %v4265_v12  ;;  %v8145_v27 = vld [vmem:[#allocation3 + $0x40] ss:$8 sps:$4 sm:$0xff]  }
 0xe26   : > { %5739 = vrot.lane.b32.xlu1 %v5669_v53, %s8888_s1  ;;  %v12491_v53 = vld [vmem:[#allocation159_spill] sm:$0xff] }
 0xe27   : > { %v5745_v39 = vsel %vm1732_vm0, %v4281_v8, %v12488_v18 }
 0xe28   : > { %v5768_v26 = vsel %vm3661_vm1, %v5745_v39, %v11468_v33  ;;  %v12489_v33 = vld [vmem:[#allocation90_spill] sm:$0xff] }
 0xe29   : > { %8661 = vrcp.f32 %v12489_v33  ;;  %v8154_v33 = vld [vmem:[#allocation3 + $0x70] ss:$8 sps:$4 sm:$0xff]  }
 0xe2a   : > { %5717 = vrot.lane.b32.xlu1 %v5212_v34, %s8889_s26  ;;  %v5748_v34 = vsel %vm1732_vm0, %v4282_v9, %v12487_v48  ;;  %8663 = vrcp.f32 %v12490_v60 }
 0xe2b   : > { %v5770_v13 = vsel %vm3661_vm1, %v5748_v34, %v11501_v3  ;;  %v8133_v3 = vld [vmem:[#allocation3] ss:$8 sps:$4 sm:$0xff]  }
 0xe2e   : > { %5741 = vrot.lane.b32.xlu1 %v5670_v59, %s8888_s1 }
 0xe36   : > { %v8662_v25 = vpop.eup %8661 }
 0xe37   : > { %v5730_v52 = vpop.permute.xlu1 %5729  ;;  %v8664_v41 = vpop.eup %8663  ;;  %v4274_v1 = vmul.f32 %v8662_v25, %v12491_v53 }
 0xe38   : > { %v5786_v32 = vsel %vm3678_vm2, %v5770_v13, %v5730_v52 }
 0xe39   : > { %v6818_v19 = vcombine.low %v5786_v32, %v5786_v32  ;;  %v6819_v45 = vcombine.high %v5786_v32, %v5786_v32 }
 0xe3b   : > { %5857 = vst [vmem:[#allocation3 + $0x14] sm:$0xf] %v6818_v19  ;;  %5858 = vst [vmem:[#allocation3 + $0x1c] sm:$0xf] %v6819_v45  ;;  %v5728_v22 = vpop.permute.xlu1 %5727  ;;  %v12493_v19 = vld [vmem:[#allocation162_spill] sm:$0xff] }
 0xe3c   : > { %v5784_v38 = vsel %vm3678_vm2, %v5768_v26, %v5728_v22  ;;  %v12494_v22 = vld [vmem:[#allocation160_spill] sm:$0xff] }
 0xe3d   : > { %v6816_v51 = vcombine.low %v5784_v38, %v5784_v38  ;;  %v6817_v43 = vcombine.high %v5784_v38, %v5784_v38 }
 0xe3f   : > { %5855 = vst [vmem:[#allocation3 + $0x4] sm:$0xf] %v6816_v51  ;;  %5856 = vst [vmem:[#allocation3 + $0xc] sm:$0xf] %v6817_v43 }
 0xe42   : > { %v8138_v40 = vld [vmem:[#allocation3 + $0x14] ss:$8 sps:$4 sm:$0xff]  }
 0xe46   : > { %v8135_v61 = vld [vmem:[#allocation3 + $0x4] ss:$8 sps:$4 sm:$0xff]  }
 0xe47   : > { %6203 = vmatprep.mubr.bf16.mxu0 %v8135_v61 }
 0xe48   : > { %6204 = vmatmul.mubr.bf16.vlgmr.msra.gmra.mxu0 %v8133_v3 }
 0xe49   : > { %6213 = vmatprep.mubr.bf16.mxu0 %v8138_v40 }
 0xe50   : > { %6214 = vmatmul.mubr.bf16.gmra.mxu0 %v8136_v62 }
 0xe76   : > { %v4095_v20 = vpop.xlane.xlu1 %4094 }
 0xe77   : > { %8665 = vrcp.f32 %v4095_v20  ;;  %v8151_v20 = vld [vmem:[#allocation3 + $0x60] ss:$8 sps:$4 sm:$0xff]  }
 0xe78   : > { %8667 = vrcp.f32 %v11755_v58 }
 0xe7a   : > { %v5712_v6 = vpop.permute.xlu1 %5711 }
 0xe7e   : > { %v5734_v55 = vpop.permute.xlu1 %5733 }
 0xe7f   : > { %v5790_v5 = vsel %vm3678_vm2, %v11646_v35, %v5734_v55  ;;  %v4273_v35 = vmul.f32 %v8664_v41, %v12492_v31  ;;  %v5921_v55 = vlaneseq }
 0xe80   : > { %v6822_v4 = vcombine.low %v5790_v5, %v5790_v5  ;;  %v6823_v46 = vcombine.high %v5790_v5, %v5790_v5 }
 0xe81   : > { %v4285_v24 = vpack.c.bf16 %v4274_v1, %v4273_v35  ;;  %v5922_v5 = vshrl.u32 %v5921_v55, 7 }
 0xe82   : > { %5861 = vst [vmem:[#allocation3 + $0x34] sm:$0xf] %v6822_v4  ;;  %5862 = vst [vmem:[#allocation3 + $0x3c] sm:$0xf] %v6823_v46  ;;  %v5732_v63 = vpop.permute.xlu1 %5731 }
 0xe83   : > { %v5788_v49 = vsel %vm3678_vm2, %v11510_v29, %v5732_v63  ;;  %v5757_v14 = vsel %vm1732_vm0, %v4285_v24, %v11674_v15  ;;  %v5923_v4 = vsub.s32 0, %v5922_v5  ;;  %v5927_v46 = vsub.s32 1, %v5922_v5  ;;  %v5919_v63 = vld [vmem:[%s11916_s4] sm:$0x3] }
 0xe84   : > { %v6820_v17 = vcombine.low %v5788_v49, %v5788_v49  ;;  %v6821_v42 = vcombine.high %v5788_v49, %v5788_v49  ;;  %v5776_v10 = vsel %vm3661_vm1, %v5757_v14, %v5712_v6  ;;  %v8666_v48 = vpop.eup %8665 }
 0xe85   : > { %v8668_v52 = vpop.eup %8667  ;;  %v4280_v45 = vmul.f32 %v8666_v48, %v12493_v19  ;;  %v11801_v49 = vrot.slane %v5919_v63, %v5923_v4 }
 0xe86   : > { %5859 = vst [vmem:[#allocation3 + $0x24] sm:$0xf] %v6820_v17  ;;  %5860 = vst [vmem:[#allocation3 + $0x2c] sm:$0xf] %v6821_v42  ;;  %v5690_v2 = vpop.permute.xlu1 %5689  ;;  %v4279_v38 = vmul.f32 %v8668_v52, %v12494_v22  ;;  %v11803_v17 = vrot.slane %v5919_v63, %v5927_v46 }
 0xe87   : > { %v5760_v44 = vsel %vm1732_vm0, %v4286_v56, %v5690_v2 }
 0xe88   : > { %v4288_v30 = vpack.c.bf16 %v4280_v45, %v4279_v38 }
 0xe89   : > { %v8144_v37 = vld [vmem:[#allocation3 + $0x34] ss:$8 sps:$4 sm:$0xff]  }
 0xe8a   : > { %v5714_v54 = vpop.permute.xlu1 %5713 }
 0xe8b   : > { %v5778_v29 = vsel %vm3661_vm1, %v5760_v44, %v5714_v54 }
 0xe8d   : > { %v8141_v16 = vld [vmem:[#allocation3 + $0x24] ss:$8 sps:$4 sm:$0xff]  }
 0xe8e   : > { %v5738_v59 = vpop.permute.xlu1 %5737  ;;  %6223 = vmatprep.mubr.bf16.mxu0 %v8141_v16 }
 0xe8f   : > { %v5794_v28 = vsel %vm3678_vm2, %v5778_v29, %v5738_v59  ;;  %6224 = vmatmul.mubr.bf16.gmra.mxu0 %v8139_v47 }
 0xe90   : > { %v6826_v50 = vcombine.low %v5794_v28, %v5794_v28  ;;  %v6827_v57 = vcombine.high %v5794_v28, %v5794_v28  ;;  %6233 = vmatprep.mubr.bf16.mxu0 %v8144_v37 }
 0xe92   : > { %5865 = vst [vmem:[#allocation3 + $0x54] sm:$0xf] %v6826_v50  ;;  %5866 = vst [vmem:[#allocation3 + $0x5c] sm:$0xf] %v6827_v57  ;;  %v5736_v7 = vpop.permute.xlu1 %5735 }
 0xe93   : > { %v5792_v56 = vsel %vm3678_vm2, %v5776_v10, %v5736_v7 }
 0xe94   : > { %v6824_v12 = vcombine.low %v5792_v56, %v5792_v56  ;;  %v6825_v36 = vcombine.high %v5792_v56, %v5792_v56 }
 0xe96   : > { %5863 = vst [vmem:[#allocation3 + $0x44] sm:$0xf] %v6824_v12  ;;  %5864 = vst [vmem:[#allocation3 + $0x4c] sm:$0xf] %v6825_v36  ;;  %v5692_v23 = vpop.permute.xlu1 %5691 }
 0xe97   : > { %6234 = vmatmul.mubr.bf16.gmra.mxu0 %v8142_v21  ;;  %v5763_v13 = vsel %vm1732_vm0, %v4287_v0, %v5692_v23 }
 0xe99   : > { %v8150_v34 = vld [vmem:[#allocation3 + $0x54] ss:$8 sps:$4 sm:$0xff]  }
 0xe9a   : > { %v5716_v15 = vpop.permute.xlu1 %5715 }
 0xe9b   : > { %v5780_v58 = vsel %vm3661_vm1, %v5763_v13, %v5716_v15 }
 0xe9d   : > { %v8147_v8 = vld [vmem:[#allocation3 + $0x44] ss:$8 sps:$4 sm:$0xff]  }
 0xe9e   : > { %v5694_v9 = vpop.permute.xlu1 %5693  ;;  %6243 = vmatprep.mubr.bf16.mxu0 %v8147_v8 }
 0xe9f   : > { %6244 = vmatmul.mubr.bf16.gmra.mxu0 %v8145_v27  ;;  %v5766_v0 = vsel %vm1732_vm0, %v4288_v30, %v5694_v9 }
 0xea0   : > { %6253 = vmatprep.mubr.bf16.mxu0 %v8150_v34 }
 0xea2   : > { %v5740_v32 = vpop.permute.xlu1 %5739 }
 0xea3   : > { %v5796_v18 = vsel %vm3678_vm2, %v5780_v58, %v5740_v32 }
 0xea4   : > { %v6828_v39 = vcombine.low %v5796_v18, %v5796_v18  ;;  %v6829_v26 = vcombine.high %v5796_v18, %v5796_v18 }
 0xea6   : > { %5867 = vst [vmem:[#allocation3 + $0x64] sm:$0xf] %v6828_v39  ;;  %5868 = vst [vmem:[#allocation3 + $0x6c] sm:$0xf] %v6829_v26  ;;  %v5718_v51 = vpop.permute.xlu1 %5717 }
 0xea7   : > { %6254 = vmatmul.mubr.bf16.gmra.mxu0 %v8148_v11  ;;  %v5782_v43 = vsel %vm3661_vm1, %v5766_v0, %v5718_v51 }
 0xeaa   : > { %v5742_v3 = vpop.permute.xlu1 %5741 }
 0xeab   : > { %v5798_v61 = vsel %vm3678_vm2, %v5782_v43, %v5742_v3 }
 0xeac   : > { %v6830_v40 = vcombine.low %v5798_v61, %v5798_v61  ;;  %v6831_v62 = vcombine.high %v5798_v61, %v5798_v61 }
 0xead   : > { %v8153_v6 = vld [vmem:[#allocation3 + $0x64] ss:$8 sps:$4 sm:$0xff]  }
 0xeae   : > { %5869 = vst [vmem:[#allocation3 + $0x74] sm:$0xf] %v6830_v40  ;;  %5870 = vst [vmem:[#allocation3 + $0x7c] sm:$0xf] %v6831_v62  ;;  %6263 = vmatprep.mubr.bf16.mxu0 %v8153_v6 }
 0xeaf   : > { %6264 = vmatmul.mubr.bf16.gmra.mxu0 %v8151_v20 }
 0xeb5   : > { %v8156_v60 = vld [vmem:[#allocation3 + $0x74] ss:$8 sps:$4 sm:$0xff]  }
 0xeb6   : > { %6273 = vmatprep.mubr.bf16.mxu0 %v8156_v60 }
 0xeb7   : > { %6274 = vmatmul.mubr.bf16.gmra.mxu0 %v8154_v33 }
 0xf08   : > { %v6205_v42 = vpop.f32.mrf.mxu0 }
 0xf09   : > { %v6206_v25 = vadd.f32 %v6205_v42, %v11801_v49 }
 0xf0a   : > { %v6207_v2 = vpop.f32.mrf.mxu0 }
 0xf0b   : > { %v6208_v41 = vadd.f32 %v6207_v2, %v11803_v17 }
 0xf0c   : > { %v6209_v54 = vpop.f32.mrf.mxu0 }
 0xf0d   : > { %v6934_v53 = vpack.c.bf16 %v6208_v41, %v6206_v25  ;;  %v6210_v31 = vadd.f32 %v6209_v54, %v11801_v49 }
 0xf0e   : > { %v6211_v1 = vpop.f32.mrf.mxu0 }
 0xf0f   : > { %6380 = vst [vmem:[%s11809_s10] sm:$0xff] %v6934_v53  ;;  %v6212_v35 = vadd.f32 %v6211_v1, %v11803_v17 }
 0xf10   : > { %v6215_v44 = vpop.f32.mrf.mxu0 }
 0xf11   : > { %v6935_v47 = vpack.c.bf16 %v6212_v35, %v6210_v31  ;;  %v6216_v59 = vadd.f32 %v6215_v44, %v11801_v49 }
 0xf12   : > { %v6217_v29 = vpop.f32.mrf.mxu0 }
 0xf13   : > { %6381 = vst [vmem:[%s11809_s10 + $0x8] sm:$0xff] %v6935_v47  ;;  %v6218_v16 = vadd.f32 %v6217_v29, %v11803_v17 }
 0xf14   : > { %v6219_v24 = vpop.f32.mrf.mxu0 }
 0xf15   : > { %v6936_v28 = vpack.c.bf16 %v6218_v16, %v6216_v59  ;;  %v6220_v57 = vadd.f32 %v6219_v24, %v11801_v49 }
 0xf16   : > { %v6221_v50 = vpop.f32.mrf.mxu0 }
 0xf17   : > { %6382 = vst [vmem:[%s11809_s10 + $0x10] sm:$0xff] %v6936_v28  ;;  %v6222_v37 = vadd.f32 %v6221_v50, %v11803_v17 }
 0xf19   : > { %v6937_v14 = vpack.c.bf16 %v6222_v37, %v6220_v57 }
 0xf1b   : > { %6383 = vst [vmem:[%s11809_s10 + $0x18] sm:$0xff] %v6937_v14 }
 0xf4f   : > { %v6225_v10 = vpop.f32.mrf.mxu0 }
 0xf50   : > { %v6226_v56 = vadd.f32 %v6225_v10, %v11801_v49 }
 0xf51   : > { %v6227_v7 = vpop.f32.mrf.mxu0 }
 0xf52   : > { %v6228_v12 = vadd.f32 %v6227_v7, %v11803_v17 }
 0xf53   : > { %v6229_v36 = vpop.f32.mrf.mxu0 }
 0xf54   : > { %v6938_v23 = vpack.c.bf16 %v6228_v12, %v6226_v56  ;;  %v6230_v15 = vadd.f32 %v6229_v36, %v11801_v49 }
 0xf55   : > { %v6231_v21 = vpop.f32.mrf.mxu0 }
 0xf56   : > { %6384 = vst [vmem:[%s11809_s10 + $0x20] sm:$0xff] %v6938_v23  ;;  %v6232_v27 = vadd.f32 %v6231_v21, %v11803_v17 }
 0xf57   : > { %v6235_v9 = vpop.f32.mrf.mxu0 }
 0xf58   : > { %v6939_v8 = vpack.c.bf16 %v6232_v27, %v6230_v15  ;;  %v6236_v34 = vadd.f32 %v6235_v9, %v11801_v49 }
 0xf59   : > { %v6237_v48 = vpop.f32.mrf.mxu0 }
 0xf5a   : > { %6385 = vst [vmem:[%s11809_s10 + $0x28] sm:$0xff] %v6939_v8  ;;  %v6238_v13 = vadd.f32 %v6237_v48, %v11803_v17 }
 0xf5b   : > { %v6239_v52 = vpop.f32.mrf.mxu0 }
 0xf5c   : > { %v6940_v58 = vpack.c.bf16 %v6238_v13, %v6236_v34  ;;  %v6240_v19 = vadd.f32 %v6239_v52, %v11801_v49 }
 0xf5d   : > { %v6241_v32 = vpop.f32.mrf.mxu0 }
 0xf5e   : > { %6386 = vst [vmem:[%s11809_s10 + $0x30] sm:$0xff] %v6940_v58  ;;  %v6242_v45 = vadd.f32 %v6241_v32, %v11803_v17 }
 0xf5f   : > { %v6245_v18 = vpop.f32.mrf.mxu0 }
 0xf60   : > { %v6941_v39 = vpack.c.bf16 %v6242_v45, %v6240_v19  ;;  %v6246_v22 = vadd.f32 %v6245_v18, %v11801_v49 }
 0xf61   : > { %v6247_v26 = vpop.f32.mrf.mxu0 }
 0xf62   : > { %6387 = vst [vmem:[%s11809_s10 + $0x38] sm:$0xff] %v6941_v39  ;;  %v6248_v38 = vadd.f32 %v6247_v26, %v11803_v17 }
 0xf63   : > { %v6249_v51 = vpop.f32.mrf.mxu0 }
 0xf64   : > { %v6942_v30 = vpack.c.bf16 %v6248_v38, %v6246_v22  ;;  %v6250_v0 = vadd.f32 %v6249_v51, %v11801_v49 }
 0xf65   : > { %v6251_v11 = vpop.f32.mrf.mxu0 }
 0xf66   : > { %6388 = vst [vmem:[%s11809_s10 + $0x40] sm:$0xff] %v6942_v30  ;;  %v6252_v43 = vadd.f32 %v6251_v11, %v11803_v17 }
 0xf67   : > { %v6255_v3 = vpop.f32.mrf.mxu0 }
 0xf68   : > { %v6943_v61 = vpack.c.bf16 %v6252_v43, %v6250_v0  ;;  %v6256_v62 = vadd.f32 %v6255_v3, %v11801_v49 }
 0xf69   : > { %v6257_v40 = vpop.f32.mrf.mxu0 }
 0xf6a   : > { %6389 = vst [vmem:[%s11809_s10 + $0x48] sm:$0xff] %v6943_v61  ;;  %v6258_v20 = vadd.f32 %v6257_v40, %v11803_v17 }
 0xf6b   : > { %v6259_v6 = vpop.f32.mrf.mxu0 }
 0xf6c   : > { %v6944_v33 = vpack.c.bf16 %v6258_v20, %v6256_v62  ;;  %v6260_v55 = vadd.f32 %v6259_v6, %v11801_v49 }
 0xf6d   : > { %v6261_v60 = vpop.f32.mrf.mxu0 }
 0xf6e   : > { %6390 = vst [vmem:[%s11809_s10 + $0x50] sm:$0xff] %v6944_v33  ;;  %v6262_v5 = vadd.f32 %v6261_v60, %v11803_v17 }
 0xf6f   : > { %v6265_v4 = vpop.f32.mrf.mxu0 }
 0xf70   : > { %v6945_v46 = vpack.c.bf16 %v6262_v5, %v6260_v55  ;;  %v6266_v42 = vadd.f32 %v6265_v4, %v11801_v49 }
 0xf71   : > { %v6267_v63 = vpop.f32.mrf.mxu0 }
 0xf72   : > { %6391 = vst [vmem:[%s11809_s10 + $0x58] sm:$0xff] %v6945_v46  ;;  %v6268_v2 = vadd.f32 %v6267_v63, %v11803_v17 }
 0xf73   : > { %v6269_v25 = vpop.f32.mrf.mxu0 }
 0xf74   : > { %v6946_v41 = vpack.c.bf16 %v6268_v2, %v6266_v42  ;;  %v6270_v53 = vadd.f32 %v6269_v25, %v11801_v49 }
 0xf75   : > { %v6271_v54 = vpop.f32.mrf.mxu0 }
 0xf76   : > { %6392 = vst [vmem:[%s11809_s10 + $0x60] sm:$0xff] %v6946_v41  ;;  %v6272_v1 = vadd.f32 %v6271_v54, %v11803_v17 }
 0xf77   : > { %v6275_v31 = vpop.f32.mrf.mxu0 }
 0xf78   : > { %v6947_v35 = vpack.c.bf16 %v6272_v1, %v6270_v53  ;;  %v6276_v47 = vadd.f32 %v6275_v31, %v11801_v49 }
 0xf79   : > { %v6277_v44 = vpop.f32.mrf.mxu0 }
 0xf7a   : > { %6393 = vst [vmem:[%s11809_s10 + $0x68] sm:$0xff] %v6947_v35  ;;  %v6278_v29 = vadd.f32 %v6277_v44, %v11803_v17 }
 0xf7b   : > { %v6279_v59 = vpop.f32.mrf.mxu0 }
 0xf7c   : > { %v6948_v16 = vpack.c.bf16 %v6278_v29, %v6276_v47  ;;  %v6280_v28 = vadd.f32 %v6279_v59, %v11801_v49 }
 0xf7d   : > { %v6281_v24 = vpop.f32.mrf.mxu0 }
 0xf7e   : > { %6394 = vst [vmem:[%s11809_s10 + $0x70] sm:$0xff] %v6948_v16  ;;  %v6282_v50 = vadd.f32 %v6281_v24, %v11803_v17 }
 0xf80   : > { %v6949_v57 = vpack.c.bf16 %v6282_v50, %v6280_v28 }
 0xf82   : > { %6395 = vst [vmem:[%s11809_s10 + $0x78] sm:$0xff] %v6949_v57 }
 0xf83   : > { %8803 = shalt.err (!%p8800_p2)
}
 0xf84   : > { %s8804_s11 = scalar_lea.hbm %s11861_s9, 2048  ;;  %s8808_s28 = scalar_lea.hbm %s11917_s5, 4096 }
 0xf85   : > { %p8805_p7 = scmp.ne.s32.totalorder %s11861_s9, %s8804_s11  ;;  %p8809_p13 = scmp.lt.s32.totalorder %s11861_s9, %s11917_s5 }
 0xf86   : > { %p8810_p0 = scmp.lt.s32.totalorder %s8808_s28, %s8804_s11 }
 0xf87   : > { %p8806_p9 = pnand %p8805_p7, %p12495_p4 }
 0xf88   : > { %p8811_p3 = por %p8810_p0, %p8809_p13 }
 0xf89   : > { %p8807_p12 = pneg %p8806_p9 }
 0xf8b   : > { %p8812_p1 = pnand %p8811_p3, %p8807_p12 }
 0xf8d   : > { %8815 = shalt.err (!%p8812_p1)
}
 0xf8e   : > { %s8892_s10 = smov 128   ;;  %s8893_s14 = smov 8  }
 0xf8f   : > { %7797 = dma.vmem_to_hbm [thread:$0]  (%p12495_p4), %s11863_s27, 2048, %s11861_s9, %s6397_s21, %s8892_s10, %s8892_s10, %s8893_s14  }
 0xf90 PF: > { %s6428_s24 = sand.u32 1, %s8858_s18   ;;  %p12496_p6 = scmp.ne.s32.totalorder %s12005_s29, 0 }
 0xf91   : > { %p12497_p8 = scmp.ge.s32.totalorder %s8878_s23, 2  ;;  %s6429_s8 = scalar_lea.sflag [#allocation6], %s6428_s24 }
 0xf93   : > { %p7814_p10 = pnand %p12497_p8, %p12496_p6 }
 0xf95   : > { %p7815_p5 = pneg %p7814_p10 }
 0xf97   : > { %8853 = dma.done.wait (%p7815_p5), %s6429_s8, 2048  }
 0xf98   : > { %8855 = vsyncadd (%p7815_p5), %s6429_s8, 4294965248  ;;  %s23_s23 = sadd.s32 1, %s8878_s23   ;;  %s12498_s18 = smov %s8862_s19 }
 0xf99   : > { %p20_p11 = scmp.ge.s32.totalorder %s23_s23, 4   ;;  %s12499_s19 = smov %s8866_s20 }
 0xf9a   : > { %s12500_s20 = smov %s9045_s7  ;;  %s12501_s21 = smov %s8874_s22 }
 0xf9b   : > { %s12502_s22 = smov %s12504_s15  ;;  %22 = sbr.rel (!%p20_p11) target bundleno = 11 (0xb), region = 102 }
 0xfa0   :  { %6434 = vsyncpa [#allocation5], 1 }
 0xfa1   :  { %6436 = vsyncpa [#allocation5 + $0x1], 1 }
 0xfa2   :  { %6437 = vsyncpa [#allocation8], 1 }
 0xfa3   :  { %6438 = vsyncpa [#allocation11], 1 }
 0xfa4   :  { %6439 = vsyncpa [#allocation6], 1 }
 0xfa5   :  { %6441 = vsyncpa [#allocation6 + $0x1], 1 }

</bundles_post_ra>
